<compile_context>
chip_gen: v6e
topology: v6e:2x2x1
jax: 0.10.0
libtpu: 0.0.40
codegen_flags: <defaults>
</compile_context>

<pallas_src>
import functools

import jax
import jax.numpy as jnp
from jax.experimental import pallas as pl
from jax.experimental.pallas import tpu as pltpu


def _round_up(x: int, m: int) -> int:
    return ((x + m - 1) // m) * m


def _render_kernel(sigma_ref, delta_ref, rgb_ref, scan_ref, diff_ref, bg_ref,
                   out_ref):
    # sigma_ref, delta_ref : (TR, S)     input dtype
    # rgb_ref              : (C, TR, S)  input dtype
    # scan_ref             : (S, S) f32  upper-triangular ones (incl. diagonal)
    # diff_ref             : (S, S) f32  eye(k=1) - eye  (shifted difference)
    # bg_ref               : (C,)   f32  SMEM scalars
    # out_ref              : (C, TR) f32
    f32 = jnp.float32
    sd = sigma_ref[...].astype(f32) * delta_ref[...].astype(f32)        # (TR, S)

    # Inclusive prefix sum along the sample (lane) axis on the MXU:
    #   csum[:, i] = sum_{j <= i} sd[:, j]
    csum = jnp.dot(sd, scan_ref[...],
                   precision=jax.lax.Precision.HIGHEST,
                   preferred_element_type=f32)                          # (TR, S)

    # Single EUP pass: t[:, i] = exp(-csum_i)  (transmittance past sample i).
    t = jnp.exp(-csum)                                                  # (TR, S)

    # w_i = t_{i-1} - t_i (with t_{-1} = 1), via an exact 0/±1 MXU matmul,
    # then fix up column 0 (add the implicit t_{-1} = 1).
    w = jnp.dot(t, diff_ref[...],
                precision=jax.lax.Precision.HIGHEST,
                preferred_element_type=f32)                             # (TR, S)
    lane = jax.lax.broadcasted_iota(jnp.int32, w.shape, 1)
    w = jnp.where(lane == 0, w + 1.0, w)

    # Residual transmittance == 1 - sum_i w_i (telescoping): background weight.
    t_last = t[:, t.shape[-1] - 1]                                      # (TR,)

    # out_c = sum_i w_i * rgb_{c,i} + t_last * bg_c
    num_channels = out_ref.shape[0]
    for c in range(num_channels):                                       # C is tiny (3)
        rgb_c = rgb_ref[c].astype(f32)                                  # (TR, S)
        out_ref[c] = jnp.sum(w * rgb_c, axis=-1) + t_last * bg_ref[c]   # (TR,)


@functools.partial(jax.jit, static_argnames=("ray_tile",))
def render(sigma, delta, rgb_crs, bg_color, *, ray_tile=1024):
    """sigma/delta: (R, S), rgb_crs: (C, R, S), bg_color: (C,).

    Returns composited colors of shape (R, C), float32.
    """
    R, S = sigma.shape
    C = rgb_crs.shape[0]

    # Lane-align the sample axis and tile/pad the ray axis.  Padded entries
    # have sd == 0 -> weights == 0 and do not perturb t[:, -1]; padded rays
    # are sliced off below.
    S_pad = _round_up(S, 128)
    ray_tile = int(min(ray_tile, _round_up(R, 128)))
    R_pad = _round_up(R, ray_tile)
    if (R_pad, S_pad) != (R, S):
        pr, ps = R_pad - R, S_pad - S
        sigma = jnp.pad(sigma, ((0, pr), (0, ps)))
        delta = jnp.pad(delta, ((0, pr), (0, ps)))
        rgb_crs = jnp.pad(rgb_crs, ((0, 0), (0, pr), (0, ps)))

    # Constant matrices for the MXU-based scan / shifted difference
    # (64 KiB each for S=128; constant index_map keeps them VMEM-resident).
    scan_mat = jnp.triu(jnp.ones((S_pad, S_pad), dtype=jnp.float32))    # j <= i
    diff_mat = (jnp.eye(S_pad, k=1, dtype=jnp.float32)
                - jnp.eye(S_pad, dtype=jnp.float32))                    # t_{i-1} - t_i

    bg = bg_color.astype(jnp.float32)

    out_cr = pl.pallas_call(
        _render_kernel,
        out_shape=jax.ShapeDtypeStruct((C, R_pad), jnp.float32),
        grid_spec=pltpu.PrefetchScalarGridSpec(
            num_scalar_prefetch=0,
            grid=(R_pad // ray_tile,),
            in_specs=[
                pl.BlockSpec((ray_tile, S_pad), lambda i: (i, 0)),
                pl.BlockSpec((ray_tile, S_pad), lambda i: (i, 0)),
                pl.BlockSpec((C, ray_tile, S_pad), lambda i: (0, i, 0)),
                pl.BlockSpec((S_pad, S_pad), lambda i: (0, 0)),
                pl.BlockSpec((S_pad, S_pad), lambda i: (0, 0)),
                pl.BlockSpec(memory_space=pltpu.MemorySpace.SMEM),
            ],
            out_specs=pl.BlockSpec((C, ray_tile), lambda i: (0, i)),
        ),
        compiler_params=pltpu.CompilerParams(
            dimension_semantics=("parallel",)),
    )(sigma, delta, rgb_crs, scan_mat, diff_mat, bg)

    # Kernel output stays lane-dense over rays ((C, R)); transpose outside the
    # kernel to the PyTorch-style [rays, 3] convention.
    return out_cr[:, :R].T


def _reference(sigma, delta, rgb_crs, bg_color):
    sd = sigma * delta
    alpha = 1.0 - jnp.exp(-sd)
    trans = jnp.exp(sd - jnp.cumsum(sd, axis=-1))
    w = trans * alpha                                  # (R, S)
    acc = jnp.sum(w, axis=-1)                          # (R,)
    wrgb = jnp.einsum('rs,crs->rc', w, rgb_crs)        # (R, C)
    return wrgb + (1.0 - acc)[:, None] * bg_color[None, :]


def _make_inputs(key, R, S, C):
    k1, k2, k3 = jax.random.split(key, 3)
    # positive densities and step sizes
    sigma = jax.nn.softplus(jax.random.normal(k1, (R, S), dtype=jnp.float32))
    delta = 0.01 + 0.05 * jax.random.uniform(k2, (R, S), dtype=jnp.float32)
    rgb_crs = jax.nn.sigmoid(jax.random.normal(k3, (C, R, S), dtype=jnp.float32))
    return sigma, delta, rgb_crs


if __name__ == "__main__":
    key = jax.random.PRNGKey(0)
    C = 3
    # deterministic "registered buffer": white background
    bg_color = jnp.ones((C,), dtype=jnp.float32)

    # Aligned shapes (rays x samples-per-ray).
    sigma, delta, rgb_crs = _make_inputs(key, 256, 128, C)
    out = render(sigma, delta, rgb_crs, bg_color)
    jax.block_until_ready(out)
    ref = _reference(sigma, delta, rgb_crs, bg_color)
    assert out.shape == (256, C)
    err = float(jnp.max(jnp.abs(out - ref)))
    assert jnp.allclose(out, ref, atol=1e-4, rtol=1e-4), err

    # Unaligned shapes exercise the ray / sample padding path.
    sigma, delta, rgb_crs = _make_inputs(jax.random.PRNGKey(1), 100, 96, C)
    out = render(sigma, delta, rgb_crs, bg_color)
    jax.block_until_ready(out)
    ref = _reference(sigma, delta, rgb_crs, bg_color)
    assert out.shape == (100, C)
    err = float(jnp.max(jnp.abs(out - ref)))
    assert jnp.allclose(out, ref, atol=1e-4, rtol=1e-4), err

    print("KERNEL_OK")
</pallas_src>

<mosaic_0001>
module attributes {stable_mosaic.version = 11 : i64} {
  func.func @_render_kernel(%arg0: i32, %arg1: memref<256x128xf32, #tpu.memory_space<vmem>>, %arg2: memref<256x128xf32, #tpu.memory_space<vmem>>, %arg3: memref<3x256x128xf32, #tpu.memory_space<vmem>>, %arg4: memref<128x128xf32, #tpu.memory_space<vmem>>, %arg5: memref<128x128xf32, #tpu.memory_space<vmem>>, %arg6: memref<3xf32, #tpu.memory_space<smem>>, %arg7: memref<3x256xf32, #tpu.memory_space<vmem>>) attributes {dimension_semantics = [#tpu.dimension_semantics<parallel>], iteration_bounds = array<i64: 1>, scalar_prefetch = 0 : i64, scratch_operands = 0 : i64, tpu.core_type = #tpu.core_type<tc>, window_params = [{transform_indices = @transform_0, window_bounds = array<i64: 256, 128>}, {transform_indices = @transform_1, window_bounds = array<i64: 256, 128>}, {transform_indices = @transform_2, window_bounds = array<i64: 3, 256, 128>}, {pipeline_mode = #tpu.pipeline_mode<synchronous>, transform_indices = @transform_3, window_bounds = array<i64: 128, 128>}, {pipeline_mode = #tpu.pipeline_mode<synchronous>, transform_indices = @transform_4, window_bounds = array<i64: 128, 128>}, {transform_indices = @transform_5, window_bounds = array<i64: 3>}, {transform_indices = @transform_6, window_bounds = array<i64: 3, 256>}]} {
    %c0 = arith.constant 0 : index
    %c0_0 = arith.constant 0 : index
    %0 = vector.load %arg1[%c0, %c0_0] : memref<256x128xf32, #tpu.memory_space<vmem>>, vector<256x128xf32>
    %c0_1 = arith.constant 0 : index
    %c0_2 = arith.constant 0 : index
    %1 = vector.load %arg2[%c0_1, %c0_2] : memref<256x128xf32, #tpu.memory_space<vmem>>, vector<256x128xf32>
    %2 = arith.mulf %0, %1 : vector<256x128xf32>
    %c0_3 = arith.constant 0 : index
    %c0_4 = arith.constant 0 : index
    %3 = vector.load %arg4[%c0_3, %c0_4] : memref<128x128xf32, #tpu.memory_space<vmem>>, vector<128x128xf32>
    %cst = arith.constant dense<0.000000e+00> : vector<256x128xf32>
    %4 = tpu.matmul %2, %3, %cst {dimension_numbers = #tpu.dot_dimension_numbers<[1], [0], [0], [1], [0, 0, 1, 1], [], []>, precision = #tpu.contract_precision<fp32>} : vector<256x128xf32>, vector<128x128xf32>, vector<256x128xf32> -> vector<256x128xf32>
    %cst_5 = arith.constant 0.000000e+00 : f32
    %5 = vector.broadcast %cst_5 : f32 to vector<256x128xf32>
    %6 = arith.subf %5, %4 : vector<256x128xf32>
    %7 = math.exp %6 : vector<256x128xf32>
    %c0_6 = arith.constant 0 : index
    %c0_7 = arith.constant 0 : index
    %8 = vector.load %arg5[%c0_6, %c0_7] : memref<128x128xf32, #tpu.memory_space<vmem>>, vector<128x128xf32>
    %cst_8 = arith.constant dense<0.000000e+00> : vector<256x128xf32>
    %9 = tpu.matmul %7, %8, %cst_8 {dimension_numbers = #tpu.dot_dimension_numbers<[1], [0], [0], [1], [0, 0, 1, 1], [], []>, precision = #tpu.contract_precision<fp32>} : vector<256x128xf32>, vector<128x128xf32>, vector<256x128xf32> -> vector<256x128xf32>
    %10 = tpu.iota {dimensions = array<i32: 1>} : vector<256x128xi32>
    %c0_i32 = arith.constant 0 : i32
    %11 = vector.broadcast %c0_i32 : i32 to vector<256x128xi32>
    %12 = arith.cmpi eq, %10, %11 : vector<256x128xi32>
    %cst_9 = arith.constant 1.000000e+00 : f32
    %13 = vector.broadcast %cst_9 : f32 to vector<256x128xf32>
    %14 = arith.addf %9, %13 : vector<256x128xf32>
    %15 = arith.select %12, %14, %9 : vector<256x128xi1>, vector<256x128xf32>
    %16 = vector.extract_strided_slice %7 {offsets = [0, 127], sizes = [256, 1], strides = [1, 1]} : vector<256x128xf32> to vector<256x1xf32>
    %17 = vector.shape_cast %16 : vector<256x1xf32> to vector<256xf32>
    %c0_10 = arith.constant 0 : index
    %c0_11 = arith.constant 0 : index
    %c0_12 = arith.constant 0 : index
    %18 = vector.load %arg3[%c0_10, %c0_11, %c0_12] : memref<3x256x128xf32, #tpu.memory_space<vmem>>, vector<1x256x128xf32>
    %19 = vector.shape_cast %18 : vector<1x256x128xf32> to vector<256x128xf32>
    %20 = arith.mulf %15, %19 : vector<256x128xf32>
    %cst_13 = arith.constant dense<0.000000e+00> : vector<256xf32>
    %21 = vector.multi_reduction <add>, %20, %cst_13 [1] : vector<256x128xf32> to vector<256xf32>
    %c0_14 = arith.constant 0 : index
    %22 = memref.load %arg6[%c0_14] : memref<3xf32, #tpu.memory_space<smem>>
    %23 = vector.broadcast %22 : f32 to vector<256xf32>
    %24 = arith.mulf %17, %23 : vector<256xf32>
    %25 = arith.addf %21, %24 : vector<256xf32>
    %c0_15 = arith.constant 0 : index
    %c0_16 = arith.constant 0 : index
    %26 = vector.load %arg7[%c0_15, %c0_16] : memref<3x256xf32, #tpu.memory_space<vmem>>, vector<1x256xf32>
    %27 = vector.shape_cast %26 : vector<1x256xf32> to vector<256xf32>
    %28 = vector.shape_cast %25 : vector<256xf32> to vector<1x256xf32>
    tpu.vector_store %arg7[%c0_15, %c0_16], %28 {strides = array<i32>} : memref<3x256xf32, #tpu.memory_space<vmem>>, vector<1x256xf32>,
    %c1 = arith.constant 1 : index
    %c0_17 = arith.constant 0 : index
    %c0_18 = arith.constant 0 : index
    %29 = vector.load %arg3[%c1, %c0_17, %c0_18] : memref<3x256x128xf32, #tpu.memory_space<vmem>>, vector<1x256x128xf32>
    %30 = vector.shape_cast %29 : vector<1x256x128xf32> to vector<256x128xf32>
    %31 = arith.mulf %15, %30 : vector<256x128xf32>
    %cst_19 = arith.constant dense<0.000000e+00> : vector<256xf32>
    %32 = vector.multi_reduction <add>, %31, %cst_19 [1] : vector<256x128xf32> to vector<256xf32>
    %c1_20 = arith.constant 1 : index
    %33 = memref.load %arg6[%c1_20] : memref<3xf32, #tpu.memory_space<smem>>
    %34 = vector.broadcast %33 : f32 to vector<256xf32>
    %35 = arith.mulf %17, %34 : vector<256xf32>
    %36 = arith.addf %32, %35 : vector<256xf32>
    %c1_21 = arith.constant 1 : index
    %c0_22 = arith.constant 0 : index
    %37 = vector.load %arg7[%c1_21, %c0_22] : memref<3x256xf32, #tpu.memory_space<vmem>>, vector<1x256xf32>
    %38 = vector.shape_cast %37 : vector<1x256xf32> to vector<256xf32>
    %39 = vector.shape_cast %36 : vector<256xf32> to vector<1x256xf32>
    tpu.vector_store %arg7[%c1_21, %c0_22], %39 {strides = array<i32>} : memref<3x256xf32, #tpu.memory_space<vmem>>, vector<1x256xf32>,
    %c2 = arith.constant 2 : index
    %c0_23 = arith.constant 0 : index
    %c0_24 = arith.constant 0 : index
    %40 = vector.load %arg3[%c2, %c0_23, %c0_24] : memref<3x256x128xf32, #tpu.memory_space<vmem>>, vector<1x256x128xf32>
    %41 = vector.shape_cast %40 : vector<1x256x128xf32> to vector<256x128xf32>
    %42 = arith.mulf %15, %41 : vector<256x128xf32>
    %cst_25 = arith.constant dense<0.000000e+00> : vector<256xf32>
    %43 = vector.multi_reduction <add>, %42, %cst_25 [1] : vector<256x128xf32> to vector<256xf32>
    %c2_26 = arith.constant 2 : index
    %44 = memref.load %arg6[%c2_26] : memref<3xf32, #tpu.memory_space<smem>>
    %45 = vector.broadcast %44 : f32 to vector<256xf32>
    %46 = arith.mulf %17, %45 : vector<256xf32>
    %47 = arith.addf %43, %46 : vector<256xf32>
    %c2_27 = arith.constant 2 : index
    %c0_28 = arith.constant 0 : index
    %48 = vector.load %arg7[%c2_27, %c0_28] : memref<3x256xf32, #tpu.memory_space<vmem>>, vector<1x256xf32>
    %49 = vector.shape_cast %48 : vector<1x256xf32> to vector<256xf32>
    %50 = vector.shape_cast %47 : vector<256xf32> to vector<1x256xf32>
    tpu.vector_store %arg7[%c2_27, %c0_28], %50 {strides = array<i32>} : memref<3x256xf32, #tpu.memory_space<vmem>>, vector<1x256xf32>,
    return
  }
  func.func @transform_0(%arg0: i32) -> (i32, i32) {
    %c0_i32 = arith.constant 0 : i32
    %c0_i32_0 = arith.constant 0 : i32
    return %arg0, %c0_i32 : i32, i32
  }
  func.func @transform_1(%arg0: i32) -> (i32, i32) {
    %c0_i32 = arith.constant 0 : i32
    %c0_i32_0 = arith.constant 0 : i32
    return %arg0, %c0_i32 : i32, i32
  }
  func.func @transform_2(%arg0: i32) -> (i32, i32, i32) {
    %c0_i32 = arith.constant 0 : i32
    %c0_i32_0 = arith.constant 0 : i32
    %c0_i32_1 = arith.constant 0 : i32
    return %c0_i32, %arg0, %c0_i32_0 : i32, i32, i32
  }
  func.func @transform_3(%arg0: i32) -> (i32, i32) {
    %c0_i32 = arith.constant 0 : i32
    %c0_i32_0 = arith.constant 0 : i32
    %c0_i32_1 = arith.constant 0 : i32
    return %c0_i32, %c0_i32_0 : i32, i32
  }
  func.func @transform_4(%arg0: i32) -> (i32, i32) {
    %c0_i32 = arith.constant 0 : i32
    %c0_i32_0 = arith.constant 0 : i32
    %c0_i32_1 = arith.constant 0 : i32
    return %c0_i32, %c0_i32_0 : i32, i32
  }
  func.func @transform_5(%arg0: i32) -> i32 {
    %c0_i32 = arith.constant 0 : i32
    %c0_i32_0 = arith.constant 0 : i32
    return %c0_i32 : i32
  }
  func.func @transform_6(%arg0: i32) -> (i32, i32) {
    %c0_i32 = arith.constant 0 : i32
    %c0_i32_0 = arith.constant 0 : i32
    return %c0_i32, %arg0 : i32, i32
  }
}

</mosaic_0001>

<bundles_post_ra>
// kernel: render.1
= control target key start
LH: loop header
LB: loop body
LE: loop exit
PB: predicated region body
PF: predicated region fallthrough
CT: control target
= control target key end

     0   :  { %11 = vsyncpa [#allocation3], 0  ;;  %s23446_s0 = inlined_call_operand.vmem [shape: f32[256,128], index: 0, kind: input, shape index: {}]   ;;  %s23447_s1 = inlined_call_operand.hbm [shape: f32[256,128], index: 1, kind: input, shape index: {}]   ;;  %s23448_s2 = inlined_call_operand.hbm [shape: f32[3,256,128], index: 2, kind: input, shape index: {}]   ;;  %s23449_s3 = inlined_call_operand.vmem [shape: f32[128,128], index: 3, kind: input, shape index: {}]   ;;  %s23450_s4 = inlined_call_operand.vmem [shape: f32[128,128], index: 4, kind: input, shape index: {}]   ;;  %s23451_s5 = inlined_call_operand.vmem [shape: f32[3], index: 5, kind: input, shape index: {}]   ;;  %s23452_s6 = inlined_call_operand.hbm [shape: f32[3,256], index: 6, kind: output, shape index: {}]  }
   0x1   :  { %12 = vsyncpa [#allocation7], 0 }
   0x2   :  { %13 = vsyncpa [#allocation5], 0 }
   0x3   :  { %14 = vsyncpa [#allocation4], 0  ;;  %s17142_s21 = smov [#allocation2]  }
   0x4   :  { %s22_s22 = sshll.u32 %s17142_s21, 4  ;;  %s23_s22 = int_to_ptr.vmem [resolvable:$true] %s22_s22 }
   0x5   :  { %s17070_s23 = scalar_lea.vmem %s23_s22, 4096  ;;  %p17075_p1 = scmp.lt.s32.totalorder %s23_s22, %s23_s22 }
   0x6   :  { %p17071_p0 = scmp.ne.s32.totalorder %s23_s22, %s17070_s23  ;;  %p17076_p2 = scmp.lt.s32.totalorder %s17070_s23, %s17070_s23 }
   0x8   :  { %p17077_p3 = por %p17076_p2, %p17075_p1 }
   0xa   :  { %p17078_p4 = pnand %p17077_p3, %p17071_p0 }
   0xc   :  { %17081 = shalt.err (!%p17078_p4)
}
   0xd   :  { %s17143_s24 = smov 128   ;;  %s17144_s25 = smov 8  }
   0xe   :  { %28 = dma.hbm_to_vmem [thread:$0]  %s23447_s1, 4096, %s23_s22, [#allocation3], %s17143_s24, %s17143_s24, %s17144_s25  }
   0xf   :  { %s17145_s28 = smov [#allocation6]   ;;  %s51_s8 = sshll.u32 %s23451_s5, 4  ;;  %s52_s8 = int_to_ptr.vmem [resolvable:$true] %s51_s8 }
  0x10   :  { %s34_s29 = sshll.u32 %s17145_s28, 4  ;;  %s35_s29 = int_to_ptr.vmem [resolvable:$true] %s34_s29 }
  0x11   :  { %s17090_s9 = scalar_lea.vmem %s35_s29, 12288  ;;  %p17095_p6 = scmp.lt.s32.totalorder %s35_s29, %s35_s29 }
  0x12   :  { %p17091_p5 = scmp.ne.s32.totalorder %s35_s29, %s17090_s9  ;;  %p17096_p7 = scmp.lt.s32.totalorder %s17090_s9, %s17090_s9 }
  0x14   :  { %p17097_p8 = por %p17096_p7, %p17095_p6 }
  0x16   :  { %p17098_p9 = pnand %p17097_p8, %p17091_p5 }
  0x18   :  { %17101 = shalt.err (!%p17098_p9)
}
  0x19   :  { %40 = dma.hbm_to_vmem [thread:$0]  %s23448_s2, 12288, %s35_s29, [#allocation7], %s17143_s24, %s17143_s24, %s17144_s25  }
  0x1a   :  { %s17102_s1 = scalar_lea.vmem %s52_s8, 16  ;;  %p17107_p11 = scmp.lt.s32.totalorder %s52_s8, %s52_s8 }
  0x1b   :  { %p17103_p10 = scmp.ne.s32.totalorder %s52_s8, %s17102_s1  ;;  %p17108_p12 = scmp.lt.s32.totalorder %s17102_s1, %s17102_s1 }
  0x1d   :  { %p17109_p13 = por %p17108_p12, %p17107_p11 }
  0x1f   :  { %p17110_p0 = pnand %p17109_p13, %p17103_p10 }
  0x21   :  { %17113 = shalt.err (!%p17110_p0)
}
  0x22   :  { %s17146_s5 = smov [#allocation8]  }
  0x23   :  { %54 = dma.vmem_to_smem %s52_s8, 16, %s17146_s5, [#allocation5]  }
  0x24   :  { %17134 = dma.done.wait [#allocation3], 4096  }
  0x25   :  { %17135 = vsyncadd [#allocation3], 4294963200 }
  0x26   :  { %17136 = dma.done.wait [#allocation7], 12288  }
  0x27   :  { %17137 = vsyncadd [#allocation7], 4294955008 }
  0x28   :  { %17138 = dma.done.wait [#allocation5], 16  }
  0x29   :  { %17139 = vsyncadd [#allocation5], 4294967280 }
  0x2a   :  { %64 = sfence }
  0x2b   :  { %v176_v0 = vld [vmem:[%s23449_s3 + $0x78] sm:$0xff]  ;;  %v175_v1 = vld [vmem:[%s23449_s3 + $0x70] sm:$0xff]  ;;  %v174_v2 = vld [vmem:[%s23449_s3 + $0x68] sm:$0xff]  ;;  %s15322_s25 = sld [smem:[#allocation8 + $0x1]]  ;;  %vm7771_vm1 = vcmask 130112   ;;  %vm7778_vm2 = vcmask 195712  }
  0x2c   :  { %v17203_v3 = vand.u32 4294901760, %v176_v0  ;;  %v17205_v4 = vand.u32 4294901760, %v175_v1  ;;  %v17207_v5 = vand.u32 4294901760, %v174_v2  ;;  %v173_v6 = vld [vmem:[%s23449_s3 + $0x60] sm:$0xff]  ;;  %v172_v7 = vld [vmem:[%s23449_s3 + $0x58] sm:$0xff]  ;;  %v171_v8 = vld [vmem:[%s23449_s3 + $0x50] sm:$0xff] }
  0x2d   :  { %v17218_v9 = vand.u32 4294901760, %v173_v6  ;;  %v17220_v10 = vand.u32 4294901760, %v172_v7  ;;  %v17222_v11 = vand.u32 4294901760, %v171_v8  ;;  %v170_v12 = vld [vmem:[%s23449_s3 + $0x48] sm:$0xff]  ;;  %v169_v13 = vld [vmem:[%s23449_s3 + $0x40] sm:$0xff]  ;;  %v168_v18 = vld [vmem:[%s23449_s3 + $0x38] sm:$0xff] }
  0x2e   :  { %16028 = vmatprep.subr.mxu0 %v17203_v3  ;;  %v17232_v14 = vsub.f32 %v176_v0, %v17203_v3  ;;  %v17235_v15 = vsub.f32 %v175_v1, %v17205_v4  ;;  %v17237_v16 = vand.u32 4294901760, %v170_v12  ;;  %v17240_v17 = vsub.f32 %v174_v2, %v17207_v5  ;;  %v167_v25 = vld [vmem:[%s23449_s3 + $0x30] sm:$0xff]  ;;  %v166_v26 = vld [vmem:[%s23449_s3 + $0x28] sm:$0xff]  ;;  %v165_v35 = vld [vmem:[%s23449_s3 + $0x20] sm:$0xff]  ;;  %s15387_s26 = sld [smem:[#allocation8 + $0x2]]  ;;  %s17149_s27 = smov [#allocation9]  }
  0x2f   :  { %16029 = vmatpush3.msra.mxu0 %v17203_v3  ;;  %v17247_v19 = vsub.f32 %v173_v6, %v17218_v9  ;;  %v17250_v20 = vsub.f32 %v172_v7, %v17220_v10  ;;  %v17262_v24 = vand.u32 4294901760, %v169_v13  ;;  %v17274_v28 = vand.u32 4294901760, %v168_v18  ;;  %v164_v39 = vld [vmem:[%s23449_s3 + $0x18] sm:$0xff]  ;;  %v163_v50 = vld [vmem:[%s23449_s3 + $0x10] sm:$0xff]  ;;  %v65_v51 = vld [vmem:[%s23446_s0] sm:$0xff]  ;;  %s15247_s28 = sshll.u32 %s17149_s27, 4  ;;  %s15248_s28 = int_to_ptr.vmem [resolvable:$true] %s15247_s28 }
  0x30   :  { %16030 = vmatprep.subr.mxu0 %v17205_v4  ;;  %v17254_v21 = vand.u32 4294901760, %v17232_v14  ;;  %v17257_v22 = vand.u32 4294901760, %v17235_v15  ;;  %v17260_v23 = vand.u32 4294901760, %v17240_v17  ;;  %v17280_v30 = vsub.f32 %v171_v8, %v17222_v11  ;;  %v97_v52 = vld [vmem:[#allocation2] sm:$0xff]  ;;  %v66_v56 = vld [vmem:[%s23446_s0 + $0x8] sm:$0xff]  ;;  %s17114_s29 = scalar_lea.vmem %s15248_s28, 128  ;;  %p17119_p2 = scmp.lt.s32.totalorder %s15248_s28, %s15248_s28 }
  0x31   :  { %16031 = vmatpush3.msra.mxu0 %v17205_v4  ;;  %v17272_v27 = vand.u32 4294901760, %v17247_v19  ;;  %v17277_v29 = vand.u32 4294901760, %v17250_v20  ;;  %v17290_v34 = vsub.f32 %v170_v12, %v17237_v16  ;;  %v17296_v36 = vand.u32 4294901760, %v167_v25  ;;  %v98_v57 = vld [vmem:[#allocation2 + $0x8] sm:$0xff]  ;;  %p17115_p1 = scmp.ne.s32.totalorder %s15248_s28, %s17114_s29  ;;  %p17120_p3 = scmp.lt.s32.totalorder %s17114_s29, %s17114_s29 }
  0x32   :  { %23826 = vst [vmem:[#allocation14_spill] sm:$0xff] %v17254_v21  ;;  %23827 = vst [vmem:[#allocation15_spill] sm:$0xff] %v17257_v22  ;;  %16032 = vmatprep.subr.mxu0 %v17207_v5  ;;  %v582_v31 = vsub.f32 %v17232_v14, %v17254_v21  ;;  %v589_v32 = vsub.f32 %v17235_v15, %v17257_v22  ;;  %v596_v33 = vsub.f32 %v17240_v17, %v17260_v23  ;;  %v162_v0 = vld [vmem:[%s23449_s3 + $0x8] sm:$0xff]  ;;  %vm7785_vm3 = vcmask 261312  }
  0x33   :  { %23828 = vst [vmem:[#allocation16_spill] sm:$0xff] %v17260_v23  ;;  %23829 = vst [vmem:[#allocation17_spill] sm:$0xff] %v17272_v27  ;;  %16033 = vmatpush3.msra.mxu0 %v17207_v5  ;;  %v17299_v37 = vand.u32 4294901760, %v17280_v30  ;;  %v17301_v38 = vand.u32 4294901760, %v166_v26  ;;  %v603_v42 = vsub.f32 %v17247_v19, %v17272_v27  ;;  %v17310_v43 = vand.u32 4294901760, %v17290_v34  ;;  %p17121_p4 = por %p17120_p3, %p17119_p2 }
  0x34   :  { %23830 = vst [vmem:[#allocation18_spill] sm:$0xff] %v17277_v29  ;;  %16034 = vmatprep.subr.mxu0 %v17218_v9  ;;  %v583_v40 = vand.u32 4294901760, %v582_v31  ;;  %v590_v41 = vand.u32 4294901760, %v589_v32  ;;  %v17313_v44 = vand.u32 4294901760, %v165_v35  ;;  %v17316_v45 = vsub.f32 %v169_v13, %v17262_v24  ;;  %v67_v32 = vld [vmem:[%s23446_s0 + $0x10] sm:$0xff] }
  0x35   :  { %23831 = vst [vmem:[#allocation19_spill] sm:$0xff] %v17299_v37  ;;  %23832 = vst [vmem:[#allocation20_spill] sm:$0xff] %v17310_v43  ;;  %16035 = vmatpush3.msra.mxu0 %v17218_v9  ;;  %v597_v46 = vand.u32 4294901760, %v596_v33  ;;  %v610_v47 = vsub.f32 %v17250_v20, %v17277_v29  ;;  %v17321_v48 = vand.u32 4294901760, %v164_v39  ;;  %v17324_v49 = vsub.f32 %v168_v18, %v17274_v28  ;;  %v99_v33 = vld [vmem:[#allocation2 + $0x10] sm:$0xff]  ;;  %p17122_p5 = pnand %p17121_p4, %p17115_p1 }
  0x36   :  { %23833 = vst [vmem:[#allocation21_spill] sm:$0xff] %v17313_v44  ;;  %16036 = vmatprep.subr.mxu0 %v17220_v10  ;;  %16108 = vmatprep.subr.mxu1 %v583_v40  ;;  %v617_v53 = vsub.f32 %v17280_v30, %v17299_v37  ;;  %v17336_v54 = vand.u32 4294901760, %v17316_v45  ;;  %v17339_v55 = vsub.f32 %v167_v25, %v17296_v36  ;;  %v604_v58 = vand.u32 4294901760, %v603_v42  ;;  %v161_v25 = vld [vmem:[%s23449_s3] sm:$0xff]  ;;  %v68_v42 = vld [vmem:[%s23446_s0 + $0x18] sm:$0xff]  ;;  %v103_v37 = vld [vmem:[#allocation2 + $0x30] sm:$0xff] }
  0x37   :  { %23834 = vst [vmem:[#allocation22_spill] sm:$0xff] %v17321_v48  ;;  %16037 = vmatpush3.msra.mxu0 %v17220_v10  ;;  %16109 = vmatpush3.msra.mxu1 %v583_v40  ;;  %v624_v59 = vsub.f32 %v17290_v34, %v17310_v43  ;;  %v17348_v60 = vand.u32 4294901760, %v17324_v49  ;;  %v17351_v61 = vsub.f32 %v166_v26, %v17301_v38  ;;  %v17354_v62 = vand.u32 4294901760, %v163_v50 }
  0x38   :  { %23835 = vst [vmem:[#allocation23_spill] sm:$0xff] %v17336_v54  ;;  %16038 = vmatprep.subr.mxu0 %v17222_v11  ;;  %16110 = vmatprep.subr.mxu1 %v590_v41  ;;  %v17357_v63 = vand.u32 4294901760, %v17339_v55  ;;  %v17363_v1 = vsub.f32 %v165_v35, %v17313_v44  ;;  %v129_v2 = vmul.f32 %v97_v52, %v65_v51  ;;  %v611_v6 = vand.u32 4294901760, %v610_v47 }
  0x39   :  { %23836 = vst [vmem:[#allocation24_spill] sm:$0xff] %v17348_v60  ;;  %16039 = vmatpush3.msra.mxu0 %v17222_v11  ;;  %16111 = vmatpush3.msra.mxu1 %v590_v41  ;;  %23837 = vst [vmem:[#allocation25_spill] sm:$0xff] %v17354_v62  ;;  %v17367_v7 = vand.u32 4294901760, %v17351_v61  ;;  %v130_v8 = vmul.f32 %v98_v57, %v66_v56  ;;  %v17370_v12 = vsub.f32 %v164_v39, %v17321_v48  ;;  %vm7792_vm4 = vcmask 326912  }
  0x3a   :  { %23838 = vst [vmem:[#allocation26_spill] sm:$0xff] %v17357_v63  ;;  %16040 = vmatprep.subr.mxu0 %v17237_v16  ;;  %16112 = vmatprep.subr.mxu1 %v597_v46  ;;  %v618_v13 = vand.u32 4294901760, %v617_v53  ;;  %v631_v18 = vsub.f32 %v17316_v45, %v17336_v54  ;;  %v17379_v26 = vand.u32 4294901760, %v17363_v1  ;;  %v17381_v31 = vand.u32 4294901760, %v129_v2  ;;  %v101_v54 = vld [vmem:[#allocation2 + $0x20] sm:$0xff] }
  0x3b   :  { %23839 = vst [vmem:[#allocation27_spill] sm:$0xff] %v17367_v7  ;;  %23840 = vst [vmem:[#allocation28_spill] sm:$0xff] %v17370_v12  ;;  %16041 = vmatpush3.msra.mxu0 %v17237_v16  ;;  %16113 = vmatpush3.msra.mxu1 %v597_v46  ;;  %v638_v35 = vsub.f32 %v17324_v49, %v17348_v60  ;;  %v17389_v39 = vand.u32 4294901760, %v162_v0  ;;  %v17391_v40 = vand.u32 4294901760, %v130_v8  ;;  %v17394_v41 = vand.u32 4294901760, %v17370_v12  ;;  %v100_v46 = vld [vmem:[#allocation2 + $0x18] sm:$0xff] }
  0x3c   :  { %23841 = vst [vmem:[#allocation29_spill] sm:$0xff] %v17379_v26  ;;  %23842 = vst [vmem:[#allocation30_spill] sm:$0xff] %v17381_v31  ;;  %16042 = vmatprep.subr.mxu0 %v17262_v24  ;;  %16114 = vmatprep.subr.mxu1 %v604_v58  ;;  %v625_v47 = vand.u32 4294901760, %v624_v59  ;;  %v645_v51 = vsub.f32 %v17339_v55, %v17357_v63  ;;  %v17403_v52 = vsub.f32 %v129_v2, %v17381_v31  ;;  %vm7799_vm5 = vcmask 392512  }
  0x3d   :  { %23843 = vst [vmem:[#allocation31_spill] sm:$0xff] %v17389_v39  ;;  %23844 = vst [vmem:[#allocation32_spill] sm:$0xff] %v17391_v40  ;;  %16043 = vmatpush3.msra.mxu0 %v17262_v24  ;;  %16115 = vmatpush3.msra.mxu1 %v604_v58  ;;  %v17406_v53 = vsub.f32 %v163_v50, %v17354_v62  ;;  %v652_v56 = vsub.f32 %v17351_v61, %v17367_v7  ;;  %v17411_v57 = vand.u32 4294901760, %v161_v25  ;;  %v69_v7 = vld [vmem:[%s23446_s0 + $0x20] sm:$0xff]  ;;  %vm7806_vm6 = vcmask 458112  }
  0x3e   :  { %23845 = vst [vmem:[#allocation33_spill] sm:$0xff] %v17394_v41  ;;  %23846 = vst [vmem:[#allocation34_spill] sm:$0xff] %v17403_v52  ;;  %16044 = vmatprep.subr.mxu0 %v17274_v28  ;;  %16116 = vmatprep.subr.mxu1 %v611_v6  ;;  %v17414_v58 = vsub.f32 %v130_v8, %v17391_v40  ;;  %v131_v59 = vmul.f32 %v99_v33, %v67_v32  ;;  %v632_v2 = vand.u32 4294901760, %v631_v18  ;;  %vm7813_vm7 = vcmask 523712  }
  0x3f   :  { %23847 = vst [vmem:[#allocation35_spill] sm:$0xff] %v17406_v53  ;;  %23848 = vst [vmem:[#allocation36_spill] sm:$0xff] %v17411_v57  ;;  %16045 = vmatpush3.msra.mxu0 %v17274_v28  ;;  %16117 = vmatpush3.msra.mxu1 %v611_v6  ;;  %v659_v50 = vsub.f32 %v17363_v1, %v17379_v26  ;;  %v132_v60 = vmul.f32 %v100_v46, %v68_v42  ;;  %v17427_v6 = vand.u32 4294901760, %v17406_v53  ;;  %v71_v46 = vld [vmem:[%s23446_s0 + $0x30] sm:$0xff]  ;;  %vm7820_vm8 = vcmask 589312  }
  0x40   :  { %23849 = vst [vmem:[#allocation37_spill] sm:$0xff] %v17414_v58  ;;  %16046 = vmatprep.subr.mxu0 %v17296_v36  ;;  %16118 = vmatprep.subr.mxu1 %v618_v13  ;;  %v666_v8 = vsub.f32 %v17370_v12, %v17394_v41  ;;  %v17429_v18 = vand.u32 4294901760, %v131_v59  ;;  %v17432_v32 = vsub.f32 %v162_v0, %v17389_v39  ;;  %v639_v33 = vand.u32 4294901760, %v638_v35  ;;  %v70_v41 = vld [vmem:[%s23446_s0 + $0x28] sm:$0xff] }
  0x41   :  { %23850 = vst [vmem:[#allocation38_spill] sm:$0xff] %v17427_v6  ;;  %16047 = vmatpush3.msra.mxu0 %v17296_v36  ;;  %16119 = vmatpush3.msra.mxu1 %v618_v13  ;;  %v646_v42 = vand.u32 4294901760, %v645_v51  ;;  %v17436_v63 = vand.u32 4294901760, %v132_v60  ;;  %v17442_v26 = vand.u32 4294901760, %v652_v56  ;;  %v23854_v0 = vand.u32 4294901760, %v17403_v52  ;;  %v102_v51 = vld [vmem:[#allocation2 + $0x28] sm:$0xff] }
  0x42   :  { %23851 = vst [vmem:[#allocation39_spill] sm:$0xff] %v17429_v18  ;;  %23852 = vst [vmem:[#allocation40_spill] sm:$0xff] %v17432_v32  ;;  %16048 = vmatprep.subr.mxu0 %v17301_v38  ;;  %16120 = vmatprep.subr.mxu1 %v625_v47  ;;  %v17450_v13 = vsub.f32 %v131_v59, %v17429_v18  ;;  %v133_v35 = vmul.f32 %v101_v54, %v69_v7  ;;  %v17456_v56 = vand.u32 4294901760, %v659_v50  ;;  %v72_v54 = vld [vmem:[%s23446_s0 + $0x38] sm:$0xff]  ;;  %vm7827_vm9 = vcmask 654912  }
  0x43   :  { %23853 = vst [vmem:[#allocation41_spill] sm:$0xff] %v17436_v63  ;;  %v17447_v43 = vsub.f32 %v17403_v52, %v23854_v0  ;;  %16049 = vmatpush3.msra.mxu0 %v17301_v38  ;;  %16121 = vmatpush3.msra.mxu1 %v625_v47  ;;  %v17459_v29 = vsub.f32 %v132_v60, %v17436_v63  ;;  %v17462_v0 = vand.u32 4294901760, %v17432_v32  ;;  %v104_v7 = vld [vmem:[#allocation2 + $0x38] sm:$0xff]  ;;  %v17471_v47 = vand.u32 4294901760, %v666_v8  ;;  %v105_v52 = vld [vmem:[#allocation2 + $0x40] sm:$0xff] }
  0x44   :  { %23855 = vst [vmem:[#allocation42_spill] sm:$0xff] %v17450_v13  ;;  %v17465_v59 = vsub.f32 %v161_v25, %v17411_v57  ;;  %16050 = vmatprep.subr.mxu0 %v17313_v44  ;;  %16122 = vmatprep.subr.mxu1 %v632_v2  ;;  %v673_v60 = vsub.f32 %v17406_v53, %v17427_v6  ;;  %v17476_v27 = vand.u32 4294901760, %v133_v35  ;;  %v23860_v25 = vand.u32 4294901760, %v17414_v58  ;;  %v73_v6 = vld [vmem:[%s23446_s0 + $0x40] sm:$0xff] }
  0x45   :  { %23856 = vst [vmem:[#allocation43_spill] sm:$0xff] %v17459_v29  ;;  %23857 = vst [vmem:[#allocation44_spill] sm:$0xff] %v17462_v0  ;;  %16051 = vmatpush3.msra.mxu0 %v17313_v44  ;;  %16123 = vmatpush3.msra.mxu1 %v632_v2  ;;  %v134_v21 = vmul.f32 %v102_v51, %v70_v41  ;;  %v135_v8 = vmul.f32 %v103_v37, %v71_v46  ;;  %v262_v50 = vand.u32 4294901760, %v17447_v43  ;;  %v74_v37 = vld [vmem:[%s23446_s0 + $0x48] sm:$0xff]  ;;  %vm7834_vm10 = vcmask 720512  }
  0x46   :  { %23858 = vst [vmem:[#allocation45_spill] sm:$0xff] %v17465_v59  ;;  %23859 = vst [vmem:[#allocation46_spill] sm:$0xff] %v17476_v27  ;;  %v17482_v23 = vsub.f32 %v17414_v58, %v23860_v25  ;;  %16052 = vmatprep.subr.mxu0 %v17321_v48  ;;  %16124 = vmatprep.subr.mxu1 %v639_v33  ;;  %v23861_v2 = vand.u32 4294901760, %v17450_v13  ;;  %v17496_v25 = vsub.f32 %v133_v35, %v17476_v27  ;;  %v106_v46 = vld [vmem:[#allocation2 + $0x48] sm:$0xff]  ;;  %v75_v35 = vld [vmem:[%s23446_s0 + $0x50] sm:$0xff]  ;;  %vm7841_vm11 = vcmask 786112  }
  0x47   :  { %v136_v41 = vmul.f32 %v104_v7, %v72_v54  ;;  %16053 = vmatpush3.msra.mxu0 %v17321_v48  ;;  %16125 = vmatpush3.msra.mxu1 %v639_v33  ;;  %v680_v43 = vsub.f32 %v17432_v32, %v17462_v0  ;;  %v17505_v51 = vand.u32 4294901760, %v17465_v59  ;;  %v17509_v22 = vand.u32 4294901760, %v135_v8  ;;  %v107_v54 = vld [vmem:[#allocation2 + $0x50] sm:$0xff]  ;;  %v76_v32 = vld [vmem:[%s23446_s0 + $0x58] sm:$0xff] }
  0x48   :  { %v17493_v53 = vsub.f32 %v17450_v13, %v23861_v2  ;;  %23862 = vst [vmem:[#allocation47_spill] sm:$0xff] %v17496_v25  ;;  %v17507_v2 = vand.u32 4294901760, %v134_v21  ;;  %16054 = vmatprep.subr.mxu0 %v17354_v62  ;;  %16126 = vmatprep.subr.mxu1 %v646_v42  ;;  %v23866_v33 = vand.u32 4294901760, %v17459_v29  ;;  %v137_v58 = vmul.f32 %v105_v52, %v73_v6  ;;  %v108_v48 = vld [vmem:[#allocation2 + $0x58] sm:$0xff] }
  0x49   :  { %23863 = vst [vmem:[#allocation48_spill] sm:$0xff] %v17505_v51  ;;  %23865 = vst [vmem:[#allocation50_spill] sm:$0xff] %v17509_v22  ;;  %v17521_v13 = vand.u32 4294901760, %v136_v41  ;;  %16055 = vmatpush3.msra.mxu0 %v17354_v62  ;;  %16127 = vmatpush3.msra.mxu1 %v646_v42  ;;  %v272_v12 = vand.u32 4294901760, %v17482_v23  ;;  %v138_v0 = vmul.f32 %v106_v46, %v74_v37  ;;  %vm7848_vm12 = vcmask 851712  }
  0x4a   :  { %23864 = vst [vmem:[#allocation49_spill] sm:$0xff] %v17507_v2  ;;  %v17518_v7 = vsub.f32 %v17459_v29, %v23866_v33  ;;  %v17529_v44 = vsub.f32 %v134_v21, %v17507_v2  ;;  %v17532_v33 = vsub.f32 %v135_v8, %v17509_v22  ;;  %16056 = vmatprep.subr.mxu0 %v17389_v39  ;;  %v282_v52 = vand.u32 4294901760, %v17493_v53  ;;  %v77_v53 = vld [vmem:[%s23446_s0 + $0x60] sm:$0xff] }
  0x4b   :  { %23867 = vst [vmem:[#allocation51_spill] sm:$0xff] %v17521_v13  ;;  %16128 = vmatprep.subr.mxu1 %v17442_v26  ;;  %v17538_v6 = vsub.f32 %v136_v41, %v17521_v13  ;;  %v17540_v29 = vand.u32 4294901760, %v137_v58  ;;  %v139_v42 = vmul.f32 %v107_v54, %v75_v35  ;;  %16057 = vmatpush3.msra.mxu0 %v17389_v39  ;;  %v23871_v21 = vand.u32 4294901760, %v17496_v25  ;;  %v109_v41 = vld [vmem:[#allocation2 + $0x60] sm:$0xff]  ;;  %v111_v39 = vld [vmem:[#allocation2 + $0x70] sm:$0xff] }
  0x4c   :  { %23868 = vst [vmem:[#allocation52_spill] sm:$0xff] %v17529_v44  ;;  %23869 = vst [vmem:[#allocation53_spill] sm:$0xff] %v17532_v33  ;;  %16129 = vmatpush3.msra.mxu1 %v17442_v26  ;;  %v17548_v37 = vand.u32 4294901760, %v138_v0  ;;  %v140_v46 = vmul.f32 %v108_v48, %v76_v32  ;;  %16058 = vmatprep.subr.mxu0 %v17411_v57  ;;  %v687_v26 = vsub.f32 %v17465_v59, %v17505_v51  ;;  %v78_v51 = vld [vmem:[%s23446_s0 + $0x68] sm:$0xff]  ;;  %vm7855_vm13 = vcmask 917312  }
  0x4d   :  { %23870 = vst [vmem:[#allocation54_spill] sm:$0xff] %v17540_v29  ;;  %v301_v23 = vsub.f32 %v17496_v25, %v23871_v21  ;;  %16130 = vmatprep.subr.mxu1 %v17456_v56  ;;  %v17559_v54 = vsub.f32 %v137_v58, %v17540_v29  ;;  %v17561_v21 = vand.u32 4294901760, %v139_v42  ;;  %16059 = vmatpush3.msra.mxu0 %v17411_v57  ;;  %v674_v48 = vand.u32 4294901760, %v673_v60  ;;  %v79_v57 = vld [vmem:[%s23446_s0 + $0x70] sm:$0xff] }
  0x4e   :  { %23872 = vst [vmem:[#allocation55_spill] sm:$0xff] %v17548_v37  ;;  %16060 = vmatprep.mubr.f32.mxu0 %v262_v50  ;;  %v17565_v32 = vsub.f32 %v138_v0, %v17548_v37  ;;  %v17567_v8 = vand.u32 4294901760, %v140_v46  ;;  %16131 = vmatpush3.msra.mxu1 %v17456_v56  ;;  %v292_v58 = vand.u32 4294901760, %v17518_v7  ;;  %v23875_v35 = vand.u32 4294901760, %v17529_v44  ;;  %v110_v0 = vld [vmem:[#allocation2 + $0x68] sm:$0xff] }
  0x4f   :  { %23873 = vst [vmem:[#allocation56_spill] sm:$0xff] %v17561_v21  ;;  %16061 = vmatmul.mubr.f32.vlgmr.msra.gmra.mxu0 %v272_v12  ;;  %v141_v50 = vmul.f32 %v109_v41, %v77_v53  ;;  %16132 = vmatprep.subr.mxu1 %v17471_v47  ;;  %v681_v56 = vand.u32 4294901760, %v680_v43  ;;  %v302_v12 = vand.u32 4294901760, %v301_v23  ;;  %v17584_v59 = vsub.f32 %v139_v42, %v17561_v21  ;;  %v80_v53 = vld [vmem:[%s23446_s0 + $0x78] sm:$0xff] }
  0x50   :  { %23874 = vst [vmem:[#allocation57_spill] sm:$0xff] %v17567_v8  ;;  %v311_v25 = vsub.f32 %v17529_v44, %v23875_v35  ;;  %16063 = vmatprep.mubr.f32.mxu0 %v282_v52  ;;  %v112_v41 = vld [vmem:[#allocation2 + $0x78] sm:$0xff]  ;;  %16133 = vmatpush3.msra.mxu1 %v17471_v47  ;;  %v688_v35 = vand.u32 4294901760, %v687_v26  ;;  %v23876_v60 = vand.u32 4294901760, %v17532_v33  ;;  %v23519_v42 = vand.u32 4294901760, %v17565_v32  ;;  %v81_v47 = vld [vmem:[%s23446_s0 + $0x80] sm:$0xff] }
  0x51   :  { %16188 = vmatprep.subr.mxu0 %v17232_v14  ;;  %v17594_v52 = vand.u32 4294901760, %v141_v50  ;;  %16134 = vmatprep.subr.mxu1 %v674_v48  ;;  %v17599_v23 = vsub.f32 %v140_v46, %v17567_v8  ;;  %v142_v7 = vmul.f32 %v110_v0, %v78_v51  ;;  %v143_v44 = vmul.f32 %v111_v39, %v79_v57  ;;  %v113_v26 = vld [vmem:[#allocation2 + $0x80] sm:$0xff] }
  0x52   :  { %v321_v43 = vsub.f32 %v17532_v33, %v23876_v60  ;;  %16140 = vmatprep.mubr.f32.mxu1 %v17381_v31  ;;  %16135 = vmatpush3.msra.mxu1 %v674_v48  ;;  %v312_v60 = vand.u32 4294901760, %v311_v25  ;;  %v23878_v33 = vand.u32 4294901760, %v17538_v6  ;;  %v144_v31 = vmul.f32 %v112_v41, %v80_v53  ;;  %v82_v48 = vld [vmem:[%s23446_s0 + $0x88] sm:$0xff] }
  0x53   :  { %23877 = vst [vmem:[#allocation58_spill] sm:$0xff] %v17594_v52  ;;  %16064 = vmatmul.mubr.f32.gmra.mxu0 %v292_v58  ;;  %16136 = vmatprep.subr.mxu1 %v681_v56  ;;  %v23879_v46 = vand.u32 4294901760, %v17559_v54  ;;  %v23520_v39 = vand.u32 4294901760, %v17584_v59  ;;  %v17611_v57 = vand.u32 4294901760, %v142_v7  ;;  %v114_v25 = vld [vmem:[#allocation2 + $0x88] sm:$0xff]  ;;  %v17618_v58 = vsub.f32 %v141_v50, %v17594_v52 }
  0x54   :  { %v331_v62 = vsub.f32 %v17538_v6, %v23878_v33  ;;  %16066 = vmatprep.mubr.f32.mxu0 %v302_v12  ;;  %16137 = vmatpush3.msra.mxu1 %v681_v56  ;;  %v322_v33 = vand.u32 4294901760, %v321_v43  ;;  %v17620_v0 = vand.u32 4294901760, %v143_v44  ;;  %v145_v12 = vmul.f32 %v113_v26, %v81_v47  ;;  %v115_v56 = vld [vmem:[#allocation2 + $0x90] sm:$0xff] }
  0x55   :  { %v341_v51 = vsub.f32 %v17559_v54, %v23879_v46  ;;  %23880 = vst [vmem:[#allocation59_spill] sm:$0xff] %v17611_v57  ;;  %16189 = vmatpush3.msra.mxu0 %v17232_v14  ;;  %23881 = vst [vmem:[#allocation60_spill] sm:$0xff] %v17618_v58  ;;  %16138 = vmatprep.subr.mxu1 %v688_v35  ;;  %v351_v53 = vsub.f32 %v17565_v32, %v23519_v42  ;;  %v83_v14 = vld [vmem:[%s23446_s0 + $0x90] sm:$0xff]  ;;  %v17633_v47 = vand.u32 4294901760, %v144_v31  ;;  %vm7862_vm14 = vcmask 982912  }
  0x56   :  { %16190 = vmatprep.subr.mxu0 %v17235_v15  ;;  %16139 = vmatpush3.msra.mxu1 %v688_v35  ;;  %v332_v50 = vand.u32 4294901760, %v331_v62  ;;  %v17631_v43 = vsub.f32 %v142_v7, %v17611_v57  ;;  %v146_v26 = vmul.f32 %v114_v25, %v82_v48  ;;  %v361_v42 = vsub.f32 %v17584_v59, %v23520_v39  ;;  %v84_v35 = vld [vmem:[%s23446_s0 + $0x98] sm:$0xff]  ;;  %v85_v25 = vld [vmem:[%s23446_s0 + $0xa0] sm:$0xff] }
  0x57   :  { %16067 = vmatmul.mubr.f32.gmra.mxu0 %v312_v60  ;;  %16141 = vmatmul.mubr.f32.vlgmr.msra.gmra.mxu1 %v17391_v40  ;;  %v342_v46 = vand.u32 4294901760, %v341_v51  ;;  %v116_v62 = vld [vmem:[#allocation2 + $0x98] sm:$0xff]  ;;  %v17646_v60 = vsub.f32 %v143_v44, %v17620_v0  ;;  %v17648_v48 = vand.u32 4294901760, %v145_v12  ;;  %v147_v51 = vmul.f32 %v115_v56, %v83_v14  ;;  %v117_v39 = vld [vmem:[#allocation2 + $0xa0] sm:$0xff] }
  0x58   :  { %16268 = vmatprep.subr.mxu1 %v17203_v3  ;;  %16069 = vmatprep.mubr.f32.mxu0 %v322_v33  ;;  %v352_v41 = vand.u32 4294901760, %v351_v53  ;;  %v23882_v33 = vand.u32 4294901760, %v17599_v23  ;;  %v17661_v14 = vsub.f32 %v144_v31, %v17633_v47  ;;  %v17663_v56 = vand.u32 4294901760, %v146_v26  ;;  %v118_v53 = vld [vmem:[#allocation2 + $0xa8] sm:$0xff] }
  0x59   :  { %16269 = vmatpush3.msra.mxu1 %v17203_v3  ;;  %16143 = vmatprep.mubr.f32.mxu1 %v17429_v18  ;;  %v148_v40 = vmul.f32 %v116_v62, %v84_v35  ;;  %v23884_v31 = vand.u32 4294901760, %v17618_v58  ;;  %v17676_v62 = vsub.f32 %v145_v12, %v17648_v48  ;;  %v17678_v18 = vand.u32 4294901760, %v147_v51 }
  0x5a   :  { %16191 = vmatpush3.msra.mxu0 %v17235_v15  ;;  %v371_v7 = vsub.f32 %v17599_v23, %v23882_v33  ;;  %16270 = vmatprep.subr.mxu1 %v17205_v4  ;;  %23883 = vst [vmem:[#allocation61_spill] sm:$0xff] %v17661_v14  ;;  %v86_v15 = vld [vmem:[%s23446_s0 + $0xa8] sm:$0xff]  ;;  %v149_v33 = vmul.f32 %v117_v39, %v85_v25  ;;  %v23885_v25 = vand.u32 4294901760, %v17631_v43  ;;  %vm7869_vm15 = vcmask 1048512  }
  0x5b   :  { %16070 = vmatmul.mubr.f32.gmra.mxu0 %v332_v50  ;;  %16144 = vmatmul.mubr.f32.gmra.mxu1 %v17436_v63  ;;  %v362_v50 = vand.u32 4294901760, %v361_v42  ;;  %v381_v44 = vsub.f32 %v17618_v58, %v23884_v31  ;;  %v87_v63 = vld [vmem:[%s23446_s0 + $0xb0] sm:$0xff]  ;;  %v17691_v35 = vsub.f32 %v146_v26, %v17663_v56  ;;  %v17693_v58 = vand.u32 4294901760, %v148_v40 }
  0x5c   :  { %16192 = vmatprep.subr.mxu0 %v17240_v17  ;;  %16271 = vmatpush3.msra.mxu1 %v17205_v4  ;;  %v119_v42 = vld [vmem:[#allocation2 + $0xb0] sm:$0xff]  ;;  %v372_v39 = vand.u32 4294901760, %v371_v7  ;;  %v391_v12 = vsub.f32 %v17631_v43, %v23885_v25  ;;  %v120_v7 = vld [vmem:[#allocation2 + $0xb8] sm:$0xff]  ;;  %v23886_v26 = vand.u32 4294901760, %v17646_v60 }
  0x5d   :  { %16072 = vmatprep.mubr.f32.mxu0 %v342_v46  ;;  %16146 = vmatprep.mubr.f32.mxu1 %v17476_v27  ;;  %v150_v46 = vmul.f32 %v118_v53, %v86_v15  ;;  %v151_v15 = vmul.f32 %v119_v42, %v87_v63  ;;  %v382_v53 = vand.u32 4294901760, %v381_v44  ;;  %v17708_v27 = vsub.f32 %v147_v51, %v17678_v18  ;;  %v89_v44 = vld [vmem:[%s23446_s0 + $0xc0] sm:$0xff] }
  0x5e   :  { %16193 = vmatpush3.msra.mxu0 %v17240_v17  ;;  %16272 = vmatprep.subr.mxu1 %v17207_v5  ;;  %v88_v17 = vld [vmem:[%s23446_s0 + $0xb8] sm:$0xff]  ;;  %v401_v25 = vsub.f32 %v17646_v60, %v23886_v26  ;;  %v392_v42 = vand.u32 4294901760, %v391_v12  ;;  %v23888_v26 = vand.u32 4294901760, %v17661_v14  ;;  %v90_v12 = vld [vmem:[%s23446_s0 + $0xc8] sm:$0xff] }
  0x5f   :  { %16073 = vmatmul.mubr.f32.gmra.mxu0 %v352_v41  ;;  %16147 = vmatmul.mubr.f32.gmra.mxu1 %v17507_v2  ;;  %v17700_v41 = vand.u32 4294901760, %v149_v33  ;;  %23887 = vst [vmem:[#allocation62_spill] sm:$0xff] %v17708_v27  ;;  %v17712_v2 = vand.u32 4294901760, %v150_v46  ;;  %v152_v63 = vmul.f32 %v120_v7, %v88_v17  ;;  %v122_v7 = vld [vmem:[#allocation2 + $0xc8] sm:$0xff] }
  0x60   :  { %16194 = vmatprep.subr.mxu0 %v17247_v19  ;;  %16273 = vmatpush3.msra.mxu1 %v17207_v5  ;;  %v411_v51 = vsub.f32 %v17661_v14, %v23888_v26  ;;  %v402_v26 = vand.u32 4294901760, %v401_v25  ;;  %v123_v25 = vld [vmem:[#allocation2 + $0xd0] sm:$0xff] }
  0x61   :  { %16075 = vmatprep.mubr.f32.mxu0 %v362_v50  ;;  %16149 = vmatprep.mubr.f32.mxu1 %v17509_v22  ;;  %v121_v50 = vld [vmem:[#allocation2 + $0xc0] sm:$0xff]  ;;  %v17728_v17 = vsub.f32 %v149_v33, %v17700_v41  ;;  %v17743_v33 = vsub.f32 %v150_v46, %v17712_v2  ;;  %v17745_v14 = vand.u32 4294901760, %v152_v63 }
  0x62   :  { %16195 = vmatpush3.msra.mxu0 %v17247_v19  ;;  %16274 = vmatprep.subr.mxu1 %v17218_v9  ;;  %v17723_v19 = vsub.f32 %v148_v40, %v17693_v58  ;;  %v23890_v40 = vand.u32 4294901760, %v17676_v62  ;;  %v153_v22 = vmul.f32 %v121_v50, %v89_v44  ;;  %v23891_v44 = vand.u32 4294901760, %v17691_v35 }
  0x63   :  { %16076 = vmatmul.mubr.f32.gmra.mxu0 %v372_v39  ;;  %16150 = vmatmul.mubr.f32.gmra.mxu1 %v17521_v13  ;;  %23889 = vst [vmem:[#allocation63_spill] sm:$0xff] %v17728_v17  ;;  %v17730_v39 = vand.u32 4294901760, %v151_v15  ;;  %v154_v13 = vmul.f32 %v122_v7, %v90_v12  ;;  %v23893_v12 = vand.u32 4294901760, %v17708_v27  ;;  %v17774_v46 = vsub.f32 %v152_v63, %v17745_v14 }
  0x64   :  { %16196 = vmatprep.subr.mxu0 %v17250_v20  ;;  %16275 = vmatpush3.msra.mxu1 %v17218_v9  ;;  %v421_v31 = vsub.f32 %v17676_v62, %v23890_v40  ;;  %v412_v40 = vand.u32 4294901760, %v411_v51  ;;  %v431_v50 = vsub.f32 %v17691_v35, %v23891_v44  ;;  %v124_v51 = vld [vmem:[#allocation2 + $0xd8] sm:$0xff]  ;;  %v23895_v63 = vand.u32 4294901760, %v17728_v17 }
  0x65   :  { %16078 = vmatprep.mubr.f32.mxu0 %v382_v53  ;;  %16152 = vmatprep.mubr.f32.mxu1 %v17540_v29  ;;  %v91_v53 = vld [vmem:[%s23446_s0 + $0xd0] sm:$0xff]  ;;  %v17759_v29 = vsub.f32 %v151_v15, %v17730_v39  ;;  %v441_v7 = vsub.f32 %v17708_v27, %v23893_v12  ;;  %v126_v27 = vld [vmem:[#allocation2 + $0xe8] sm:$0xff] }
  0x66   :  { %16197 = vmatpush3.msra.mxu0 %v17250_v20  ;;  %16276 = vmatprep.subr.mxu1 %v17220_v10  ;;  %v422_v44 = vand.u32 4294901760, %v421_v31  ;;  %v17768_v20 = vand.u32 4294901760, %v153_v22  ;;  %v93_v31 = vld [vmem:[%s23446_s0 + $0xe0] sm:$0xff]  ;;  %v432_v12 = vand.u32 4294901760, %v431_v50  ;;  %v461_v15 = vsub.f32 %v17728_v17, %v23895_v63  ;;  %v94_v50 = vld [vmem:[%s23446_s0 + $0xe8] sm:$0xff] }
  0x67   :  { %16079 = vmatmul.mubr.f32.gmra.mxu0 %v392_v42  ;;  %16153 = vmatmul.mubr.f32.gmra.mxu1 %v17548_v37  ;;  %23892 = vst [vmem:[#allocation64_spill] sm:$0xff] %v17759_v29  ;;  %v92_v42 = vld [vmem:[%s23446_s0 + $0xd8] sm:$0xff]  ;;  %v155_v37 = vmul.f32 %v123_v25, %v91_v53  ;;  %v23894_v53 = vand.u32 4294901760, %v17723_v19  ;;  %v23896_v63 = vand.u32 4294901760, %v17743_v33  ;;  %v23897_v17 = vand.u32 4294901760, %v17759_v29 }
  0x68   :  { %16198 = vmatprep.subr.mxu0 %v17280_v30  ;;  %16277 = vmatpush3.msra.mxu1 %v17220_v10 }
  0x69   :  { %16081 = vmatprep.mubr.f32.mxu0 %v402_v26  ;;  %16155 = vmatprep.mubr.f32.mxu1 %v17561_v21  ;;  %v125_v26 = vld [vmem:[#allocation2 + $0xe0] sm:$0xff]  ;;  %v451_v25 = vsub.f32 %v17723_v19, %v23894_v53  ;;  %v17783_v21 = vand.u32 4294901760, %v154_v13  ;;  %v442_v53 = vand.u32 4294901760, %v441_v7  ;;  %v127_v7 = vld [vmem:[#allocation2 + $0xf0] sm:$0xff] }
  0x6a   :  { %16199 = vmatpush3.msra.mxu0 %v17280_v30  ;;  %16278 = vmatprep.subr.mxu1 %v17222_v11  ;;  %v156_v30 = vmul.f32 %v124_v51, %v92_v42  ;;  %v17796_v42 = vsub.f32 %v153_v22, %v17768_v20  ;;  %v17798_v51 = vand.u32 4294901760, %v155_v37 }
  0x6b   :  { %16082 = vmatmul.mubr.f32.gmra.mxu0 %v412_v40  ;;  %16156 = vmatmul.mubr.f32.gmra.mxu1 %v17567_v8  ;;  %v157_v8 = vmul.f32 %v125_v26, %v93_v31  ;;  %v471_v40 = vsub.f32 %v17743_v33, %v23896_v63  ;;  %v452_v22 = vand.u32 4294901760, %v451_v25  ;;  %v17811_v31 = vsub.f32 %v154_v13, %v17783_v21  ;;  %v128_v25 = vld [vmem:[#allocation2 + $0xf8] sm:$0xff] }
  0x6c   :  { %16200 = vmatprep.subr.mxu0 %v17290_v34  ;;  %16279 = vmatpush3.msra.mxu1 %v17222_v11  ;;  %v17813_v26 = vand.u32 4294901760, %v156_v30  ;;  %v462_v63 = vand.u32 4294901760, %v461_v15 }
  0x6d   :  { %16084 = vmatprep.mubr.f32.mxu0 %v422_v44  ;;  %16158 = vmatprep.mubr.f32.mxu1 %v17594_v52  ;;  %v95_v44 = vld [vmem:[%s23446_s0 + $0xf0] sm:$0xff]  ;;  %v481_v52 = vsub.f32 %v17759_v29, %v23897_v17  ;;  %v472_v17 = vand.u32 4294901760, %v471_v40 }
  0x6e   :  { %16201 = vmatpush3.msra.mxu0 %v17290_v34  ;;  %16280 = vmatprep.subr.mxu1 %v17237_v16  ;;  %v158_v34 = vmul.f32 %v126_v27, %v94_v50  ;;  %v17826_v27 = vsub.f32 %v155_v37, %v17798_v51  ;;  %v17828_v50 = vand.u32 4294901760, %v157_v8  ;;  %v159_v15 = vmul.f32 %v127_v7, %v95_v44 }
  0x6f   :  { %16085 = vmatmul.mubr.f32.gmra.mxu0 %v432_v12  ;;  %16159 = vmatmul.mubr.f32.gmra.mxu1 %v17611_v57  ;;  %v96_v12 = vld [vmem:[%s23446_s0 + $0xf8] sm:$0xff]  ;;  %v23898_v57 = vand.u32 4294901760, %v17774_v46  ;;  %v17838_v37 = vsub.f32 %v156_v30, %v17813_v26 }
  0x70   :  { %16202 = vmatprep.subr.mxu0 %v17316_v45  ;;  %16281 = vmatpush3.msra.mxu1 %v17237_v16  ;;  %v17840_v13 = vand.u32 4294901760, %v158_v34  ;;  %v160_v44 = vmul.f32 %v128_v25, %v96_v12  ;;  %v23557_v7 = vand.u32 4294901760, %v17826_v27  ;;  %v17850_v30 = vsub.f32 %v157_v8, %v17828_v50 }
  0x71   :  { %16087 = vmatprep.mubr.f32.mxu0 %v442_v53  ;;  %16161 = vmatprep.mubr.f32.mxu1 %v17620_v0  ;;  %v491_v29 = vsub.f32 %v17774_v46, %v23898_v57  ;;  %v23563_v53 = vand.u32 4294901760, %v17811_v31  ;;  %v23899_v57 = vand.u32 4294901760, %v17796_v42 }
  0x72   :  { %16203 = vmatpush3.msra.mxu0 %v17316_v45  ;;  %16282 = vmatprep.subr.mxu1 %v17262_v24  ;;  %v482_v45 = vand.u32 4294901760, %v481_v52  ;;  %v17862_v25 = vsub.f32 %v158_v34, %v17840_v13  ;;  %v17864_v8 = vand.u32 4294901760, %v160_v44 }
  0x73   :  { %16088 = vmatmul.mubr.f32.gmra.mxu0 %v452_v22  ;;  %16162 = vmatmul.mubr.f32.gmra.mxu1 %v17633_v47  ;;  %v501_v40 = vsub.f32 %v17796_v42, %v23899_v57  ;;  %v17852_v22 = vand.u32 4294901760, %v159_v15  ;;  %v492_v12 = vand.u32 4294901760, %v491_v29  ;;  %v511_v52 = vsub.f32 %v17811_v31, %v23563_v53 }
  0x74   :  { %16204 = vmatprep.subr.mxu0 %v17324_v49  ;;  %16283 = vmatpush3.msra.mxu1 %v17262_v24  ;;  %23901 = vst [vmem:[#allocation66_spill] sm:$0xff] %v17864_v8 }
  0x75   :  { %16090 = vmatprep.mubr.f32.mxu0 %v462_v63  ;;  %23900 = vst [vmem:[#allocation65_spill] sm:$0xff] %v17852_v22  ;;  %16164 = vmatprep.mubr.f32.mxu1 %v17648_v48  ;;  %v23562_v63 = vand.u32 4294901760, %v17838_v37  ;;  %v502_v29 = vand.u32 4294901760, %v501_v40  ;;  %v17874_v57 = vsub.f32 %v159_v15, %v17852_v22  ;;  %v512_v34 = vand.u32 4294901760, %v511_v52 }
  0x76   :  { %16205 = vmatpush3.msra.mxu0 %v17324_v49  ;;  %16284 = vmatprep.subr.mxu1 %v17274_v28  ;;  %v521_v49 = vsub.f32 %v17826_v27, %v23557_v7  ;;  %v23558_v40 = vand.u32 4294901760, %v17862_v25  ;;  %v17884_v7 = vsub.f32 %v160_v44, %v17864_v8 }
  0x77   :  { %16091 = vmatmul.mubr.f32.gmra.mxu0 %v472_v17  ;;  %16165 = vmatmul.mubr.f32.gmra.mxu1 %v17663_v56  ;;  %v23561_v17 = vand.u32 4294901760, %v17850_v30 }
  0x78   :  { %16206 = vmatprep.subr.mxu0 %v17339_v55  ;;  %16285 = vmatpush3.msra.mxu1 %v17274_v28  ;;  %v551_v52 = vsub.f32 %v17862_v25, %v23558_v40 }
  0x79   :  { %16093 = vmatprep.mubr.f32.mxu0 %v482_v45  ;;  %16167 = vmatprep.mubr.f32.mxu1 %v17678_v18  ;;  %v531_v45 = vsub.f32 %v17838_v37, %v23562_v63  ;;  %v541_v15 = vsub.f32 %v17850_v30, %v23561_v17  ;;  %v23918_v17 = vld [vmem:[#allocation15_spill] sm:$0xff]  ;;  %v23919_v63 = vld [vmem:[#allocation52_spill] sm:$0xff] }
  0x7a   :  { %16207 = vmatpush3.msra.mxu0 %v17339_v55  ;;  %16286 = vmatprep.subr.mxu1 %v17296_v36  ;;  %v522_v55 = vand.u32 4294901760, %v521_v49 }
  0x7b   :  { %16094 = vmatmul.mubr.f32.gmra.mxu0 %v492_v12  ;;  %16168 = vmatmul.mubr.f32.gmra.mxu1 %v17693_v58  ;;  %v23560_v12 = vand.u32 4294901760, %v17874_v57  ;;  %v532_v44 = vand.u32 4294901760, %v531_v45  ;;  %v542_v49 = vand.u32 4294901760, %v541_v15  ;;  %v552_v45 = vand.u32 4294901760, %v551_v52  ;;  %v23905_v52 = vld [vmem:[#allocation35_spill] sm:$0xff] }
  0x7c   :  { %16208 = vmatprep.subr.mxu0 %v17351_v61  ;;  %16287 = vmatpush3.msra.mxu1 %v17296_v36 }
  0x7d   :  { %16096 = vmatprep.mubr.f32.mxu0 %v502_v29  ;;  %16170 = vmatprep.mubr.f32.mxu1 %v17700_v41  ;;  %v23559_v29 = vand.u32 4294901760, %v17884_v7 }
  0x7e   :  { %16209 = vmatpush3.msra.mxu0 %v17351_v61  ;;  %16288 = vmatprep.subr.mxu1 %v17301_v38  ;;  %v561_v61 = vsub.f32 %v17874_v57, %v23560_v12 }
  0x7f   :  { %16097 = vmatmul.mubr.f32.gmra.mxu0 %v512_v34  ;;  %16171 = vmatmul.mubr.f32.gmra.mxu1 %v17712_v2  ;;  %v23902_v34 = vld [vmem:[#allocation21_spill] sm:$0xff]  ;;  %v571_v40 = vsub.f32 %v17884_v7, %v23559_v29  ;;  %v23916_v29 = vld [vmem:[#allocation47_spill] sm:$0xff] }
  0x80   :  { %16210 = vmatprep.subr.mxu0 %v17363_v1  ;;  %16289 = vmatpush3.msra.mxu1 %v17301_v38  ;;  %v562_v15 = vand.u32 4294901760, %v561_v61  ;;  %v23907_v61 = vld [vmem:[#allocation25_spill] sm:$0xff] }
  0x81   :  { %16099 = vmatprep.mubr.f32.mxu0 %v522_v55  ;;  %16173 = vmatprep.mubr.f32.mxu1 %v17730_v39  ;;  %v23903_v55 = vld [vmem:[#allocation28_spill] sm:$0xff] }
  0x82   :  { %16211 = vmatpush3.msra.mxu0 %v17363_v1  ;;  %16290 = vmatprep.subr.mxu1 %v23902_v34  ;;  %v23904_v1 = vld [vmem:[#allocation22_spill] sm:$0xff] }
  0x83   :  { %16100 = vmatmul.mubr.f32.gmra.mxu0 %v532_v44  ;;  %16174 = vmatmul.mubr.f32.gmra.mxu1 %v17745_v14  ;;  %v572_v44 = vand.u32 4294901760, %v571_v40  ;;  %v23908_v40 = vld [vmem:[#allocation45_spill] sm:$0xff] }
  0x84   :  { %16212 = vmatprep.subr.mxu0 %v23903_v55  ;;  %16291 = vmatpush3.msra.mxu1 %v23902_v34 }
  0x85   :  { %16102 = vmatprep.mubr.f32.mxu0 %v542_v49  ;;  %16176 = vmatprep.mubr.f32.mxu1 %v17768_v20  ;;  %v23906_v49 = vld [vmem:[#allocation40_spill] sm:$0xff] }
  0x86   :  { %16213 = vmatpush3.msra.mxu0 %v23903_v55  ;;  %16292 = vmatprep.subr.mxu1 %v23904_v1  ;;  %v23910_v55 = vld [vmem:[#allocation37_spill] sm:$0xff] }
  0x87   :  { %16103 = vmatmul.mubr.f32.gmra.mxu0 %v552_v45  ;;  %16177 = vmatmul.mubr.f32.gmra.mxu1 %v17783_v21  ;;  %v23909_v45 = vld [vmem:[#allocation34_spill] sm:$0xff]  ;;  %v23920_v53 = vand.u32 4294901760, %v23910_v55 }
  0x88   :  { %16214 = vmatprep.subr.mxu0 %v23905_v52  ;;  %16293 = vmatpush3.msra.mxu1 %v23904_v1  ;;  %v23917_v12 = vand.u32 4294901760, %v23909_v45 }
  0x89   :  { %16105 = vmatprep.mubr.f32.mxu0 %v562_v15  ;;  %16179 = vmatprep.mubr.f32.mxu1 %v17798_v51  ;;  %v23911_v15 = vld [vmem:[#allocation31_spill] sm:$0xff] }
  0x8a   :  { %16215 = vmatpush3.msra.mxu0 %v23905_v52  ;;  %16294 = vmatprep.subr.mxu1 %v23907_v61  ;;  %v23913_v52 = vld [vmem:[#allocation36_spill] sm:$0xff] }
  0x8b   :  { %16106 = vmatmul.mubr.f32.gmra.mxu0 %v572_v44  ;;  %16216 = vmatprep.subr.mxu0 %v23906_v49  ;;  %v23912_v44 = vld [vmem:[#allocation42_spill] sm:$0xff] }
  0x8c   :  { %16180 = vmatmul.mubr.f32.gmra.mxu1 %v17813_v26  ;;  %16217 = vmatpush3.msra.mxu0 %v23906_v49  ;;  %v23914_v49 = vld [vmem:[#allocation14_spill] sm:$0xff] }
  0x8d   :  { %16295 = vmatpush3.msra.mxu1 %v23907_v61  ;;  %16218 = vmatprep.subr.mxu0 %v23908_v40 }
  0x8e   :  { %16182 = vmatprep.mubr.f32.mxu1 %v17828_v50  ;;  %16219 = vmatpush3.msra.mxu0 %v23908_v40  ;;  %v23915_v40 = vld [vmem:[#allocation43_spill] sm:$0xff] }
  0x8f   :  { %16220 = vmatprep.mubr.f32.mxu0 %v23909_v45  ;;  %16296 = vmatprep.subr.mxu1 %v23911_v15  ;;  %v23924_v45 = vand.u32 4294901760, %v23915_v40 }
  0x90   :  { %16183 = vmatmul.mubr.f32.gmra.mxu1 %v17840_v13  ;;  %16221 = vmatmul.mubr.f32.vlgmr.msra.gmra.mxu0 %v23910_v55  ;;  %v23934_v55 = vand.u32 4294901760, %v17565_v32 }
  0x91   :  { %16185 = vmatprep.mubr.f32.mxu1 %v17852_v22  ;;  %16297 = vmatpush3.msra.mxu1 %v23911_v15  ;;  %v23922_v22 = vand.u32 4294901760, %v23912_v44 }
  0x92   :  { %16223 = vmatprep.mubr.f32.mxu0 %v23912_v44  ;;  %16298 = vmatprep.subr.mxu1 %v23913_v52  ;;  %v23938_v44 = vand.u32 4294901760, %v17599_v23 }
  0x93   :  { %16348 = vmatprep.subr.mxu0 %v23914_v49  ;;  %16299 = vmatpush3.msra.mxu1 %v23913_v52 }
  0x94   :  { %16186 = vmatmul.mubr.f32.gmra.mxu1 %v17864_v8  ;;  %16224 = vmatmul.mubr.f32.gmra.mxu0 %v23915_v40  ;;  %v23921_v8 = vld [vmem:[#allocation53_spill] sm:$0xff] }
  0x95   :  { %16226 = vmatprep.mubr.f32.mxu0 %v23916_v29  ;;  %16300 = vmatprep.mubr.f32.mxu1 %v23917_v12  ;;  %v23923_v12 = vld [vmem:[#allocation16_spill] sm:$0xff] }
  0x96   :  { %16349 = vmatpush3.msra.mxu0 %v23914_v49  ;;  %16428 = vmatprep.subr.mxu1 %v17203_v3  ;;  %v23944_v49 = vld [vmem:[#allocation24_spill] sm:$0xff] }
  0x97   :  { %16350 = vmatprep.subr.mxu0 %v23918_v17 }
  0x98   :  { %16227 = vmatmul.mubr.f32.gmra.mxu0 %v23919_v63  ;;  %16301 = vmatmul.mubr.f32.vlgmr.msra.gmra.mxu1 %v23920_v53  ;;  %v23926_v53 = vld [vmem:[#allocation17_spill] sm:$0xff] }
  0x99   :  { %16429 = vmatpush3.msra.mxu1 %v17203_v3  ;;  %16229 = vmatprep.mubr.f32.mxu0 %v23921_v8  ;;  %v23925_v3 = vand.u32 4294901760, %v23916_v29  ;;  %v23930_v29 = vand.u32 4294901760, %v17538_v6 }
  0x9a   :  { %16303 = vmatprep.mubr.f32.mxu1 %v23922_v22  ;;  %16351 = vmatpush3.msra.mxu0 %v23918_v17  ;;  %v23927_v22 = vand.u32 4294901760, %v23919_v63  ;;  %v23929_v17 = vld [vmem:[#allocation18_spill] sm:$0xff]  ;;  %v23931_v63 = vld [vmem:[#allocation60_spill] sm:$0xff] }
  0x9b   :  { %16430 = vmatprep.subr.mxu1 %v17205_v4  ;;  %16352 = vmatprep.subr.mxu0 %v23923_v12 }
  0x9c   :  { %16230 = vmatmul.mubr.f32.gmra.mxu0 %v17538_v6  ;;  %16304 = vmatmul.mubr.f32.gmra.mxu1 %v23924_v45  ;;  %v23936_v6 = vld [vmem:[#allocation20_spill] sm:$0xff] }
  0x9d   :  { %16431 = vmatpush3.msra.mxu1 %v17205_v4  ;;  %16232 = vmatprep.mubr.f32.mxu0 %v17559_v54  ;;  %v23928_v4 = vand.u32 4294901760, %v23921_v8  ;;  %v23933_v8 = vld [vmem:[#allocation19_spill] sm:$0xff]  ;;  %v23950_v45 = vld [vmem:[#allocation64_spill] sm:$0xff] }
  0x9e   :  { %16306 = vmatprep.mubr.f32.mxu1 %v23925_v3  ;;  %16353 = vmatpush3.msra.mxu0 %v23923_v12  ;;  %v23949_v12 = vand.u32 4294901760, %v17691_v35  ;;  %v23953_v3 = vand.u32 4294901760, %v17723_v19 }
  0x9f   :  { %16432 = vmatprep.subr.mxu1 %v17207_v5  ;;  %16354 = vmatprep.subr.mxu0 %v23926_v53 }
  0xa0   :  { %16233 = vmatmul.mubr.f32.gmra.mxu0 %v17565_v32  ;;  %16307 = vmatmul.mubr.f32.gmra.mxu1 %v23927_v22  ;;  %v23941_v32 = vand.u32 4294901760, %v17631_v43  ;;  %v23959_v22 = vand.u32 4294901760, %v17774_v46 }
  0xa1   :  { %16433 = vmatpush3.msra.mxu1 %v17207_v5  ;;  %16235 = vmatprep.mubr.f32.mxu0 %v17584_v59  ;;  %v23932_v5 = vand.u32 4294901760, %v17559_v54  ;;  %v23937_v54 = vld [vmem:[#allocation61_spill] sm:$0xff] }
  0xa2   :  { %16309 = vmatprep.mubr.f32.mxu1 %v23928_v4  ;;  %16355 = vmatpush3.msra.mxu0 %v23926_v53  ;;  %v23945_v40 = vand.u32 4294901760, %v23937_v54  ;;  %v23956_v53 = vand.u32 4294901760, %v17743_v33  ;;  %v23962_v4 = vand.u32 4294901760, %v17811_v31 }
  0xa3   :  { %16434 = vmatprep.subr.mxu1 %v17218_v9  ;;  %16356 = vmatprep.subr.mxu0 %v23929_v17 }
  0xa4   :  { %16236 = vmatmul.mubr.f32.gmra.mxu0 %v17599_v23  ;;  %16310 = vmatmul.mubr.f32.gmra.mxu1 %v23930_v29  ;;  %v23942_v23 = vld [vmem:[#allocation62_spill] sm:$0xff]  ;;  %v23970_v29 = vld [vmem:[#allocation32_spill] sm:$0xff] }
  0xa5   :  { %16435 = vmatpush3.msra.mxu1 %v17218_v9  ;;  %16238 = vmatprep.mubr.f32.mxu0 %v23931_v63  ;;  %v23935_v9 = vand.u32 4294901760, %v17584_v59  ;;  %v23940_v59 = vld [vmem:[#allocation23_spill] sm:$0xff] }
  0xa6   :  { %16312 = vmatprep.mubr.f32.mxu1 %v23932_v5  ;;  %16357 = vmatpush3.msra.mxu0 %v23929_v17  ;;  %v23969_v17 = vand.u32 4294901760, %v17862_v25  ;;  %v23976_v5 = vld [vmem:[#allocation49_spill] sm:$0xff] }
  0xa7   :  { %16436 = vmatprep.subr.mxu1 %v17220_v10  ;;  %16358 = vmatprep.subr.mxu0 %v23933_v8 }
  0xa8   :  { %16239 = vmatmul.mubr.f32.gmra.mxu0 %v17631_v43  ;;  %16313 = vmatmul.mubr.f32.gmra.mxu1 %v23934_v55  ;;  %v23946_v43 = vld [vmem:[#allocation63_spill] sm:$0xff]  ;;  %v23982_v55 = vld [vmem:[#allocation57_spill] sm:$0xff] }
  0xa9   :  { %16437 = vmatpush3.msra.mxu1 %v17220_v10  ;;  %16241 = vmatprep.mubr.f32.mxu0 %v17646_v60  ;;  %v23939_v10 = vand.u32 4294901760, %v23931_v63  ;;  %v23974_v63 = vld [vmem:[#allocation41_spill] sm:$0xff] }
  0xaa   :  { %16315 = vmatprep.mubr.f32.mxu1 %v23935_v9  ;;  %16359 = vmatpush3.msra.mxu0 %v23933_v8  ;;  %v23981_v8 = vld [vmem:[#allocation56_spill] sm:$0xff]  ;;  %v23983_v9 = vld [vmem:[#allocation58_spill] sm:$0xff] }
  0xab   :  { %16438 = vmatprep.subr.mxu1 %v17222_v11  ;;  %16360 = vmatprep.subr.mxu0 %v23936_v6 }
  0xac   :  { %16242 = vmatmul.mubr.f32.gmra.mxu0 %v23937_v54  ;;  %16316 = vmatmul.mubr.f32.gmra.mxu1 %v23938_v44 }
  0xad   :  { %16439 = vmatpush3.msra.mxu1 %v17222_v11  ;;  %16244 = vmatprep.mubr.f32.mxu0 %v17676_v62  ;;  %v23943_v11 = vand.u32 4294901760, %v17646_v60  ;;  %v23948_v60 = vld [vmem:[#allocation26_spill] sm:$0xff] }
  0xae   :  { %16318 = vmatprep.mubr.f32.mxu1 %v23939_v10  ;;  %16361 = vmatpush3.msra.mxu0 %v23936_v6  ;;  %v23984_v6 = vld [vmem:[#allocation59_spill] sm:$0xff] }
  0xaf   :  { %16440 = vmatprep.subr.mxu1 %v17237_v16  ;;  %16362 = vmatprep.subr.mxu0 %v23940_v59 }
  0xb0   :  { %16245 = vmatmul.mubr.f32.gmra.mxu0 %v17691_v35  ;;  %16319 = vmatmul.mubr.f32.gmra.mxu1 %v23941_v32  ;;  %v23955_v35 = vld [vmem:[#allocation29_spill] sm:$0xff] }
  0xb1   :  { %16441 = vmatpush3.msra.mxu1 %v17237_v16  ;;  %16247 = vmatprep.mubr.f32.mxu0 %v23942_v23  ;;  %v23947_v16 = vand.u32 4294901760, %v17676_v62  ;;  %v23952_v62 = vld [vmem:[#allocation27_spill] sm:$0xff] }
  0xb2   :  { %16321 = vmatprep.mubr.f32.mxu1 %v23943_v11  ;;  %16363 = vmatpush3.msra.mxu0 %v23940_v59 }
  0xb3   :  { %16442 = vmatprep.subr.mxu1 %v17262_v24  ;;  %16364 = vmatprep.subr.mxu0 %v23944_v49 }
  0xb4   :  { %16248 = vmatmul.mubr.f32.gmra.mxu0 %v17723_v19  ;;  %16322 = vmatmul.mubr.f32.gmra.mxu1 %v23945_v40  ;;  %v23958_v19 = vld [vmem:[#allocation33_spill] sm:$0xff] }
  0xb5   :  { %16443 = vmatpush3.msra.mxu1 %v17262_v24  ;;  %16250 = vmatprep.mubr.f32.mxu0 %v23946_v43  ;;  %v23951_v24 = vand.u32 4294901760, %v23942_v23 }
  0xb6   :  { %16324 = vmatprep.mubr.f32.mxu1 %v23947_v16  ;;  %16365 = vmatpush3.msra.mxu0 %v23944_v49  ;;  %v23995_v49 = vld [vmem:[#allocation65_spill] sm:$0xff]  ;;  %v23997_v16 = vld [vmem:[#allocation66_spill] sm:$0xff] }
  0xb7   :  { %16444 = vmatprep.subr.mxu1 %v17274_v28  ;;  %16366 = vmatprep.subr.mxu0 %v23948_v60 }
  0xb8   :  { %16251 = vmatmul.mubr.f32.gmra.mxu0 %v17743_v33  ;;  %16325 = vmatmul.mubr.f32.gmra.mxu1 %v23949_v12  ;;  %v23961_v33 = vld [vmem:[#allocation38_spill] sm:$0xff] }
  0xb9   :  { %16445 = vmatpush3.msra.mxu1 %v17274_v28  ;;  %16253 = vmatprep.mubr.f32.mxu0 %v23950_v45  ;;  %v23954_v28 = vand.u32 4294901760, %v23946_v43 }
  0xba   :  { %16327 = vmatprep.mubr.f32.mxu1 %v23951_v24  ;;  %16367 = vmatpush3.msra.mxu0 %v23948_v60 }
  0xbb   :  { %16446 = vmatprep.subr.mxu1 %v17296_v36  ;;  %16368 = vmatprep.subr.mxu0 %v23952_v62 }
  0xbc   :  { %16254 = vmatmul.mubr.f32.gmra.mxu0 %v17774_v46  ;;  %16328 = vmatmul.mubr.f32.gmra.mxu1 %v23953_v3  ;;  %v23963_v46 = vand.u32 4294901760, %v17826_v27 }
  0xbd   :  { %16447 = vmatpush3.msra.mxu1 %v17296_v36  ;;  %16256 = vmatprep.mubr.f32.mxu0 %v17796_v42  ;;  %v23957_v36 = vand.u32 4294901760, %v23950_v45 }
  0xbe   :  { %16330 = vmatprep.mubr.f32.mxu1 %v23954_v28  ;;  %16369 = vmatpush3.msra.mxu0 %v23952_v62 }
  0xbf   :  { %16448 = vmatprep.subr.mxu1 %v17301_v38  ;;  %16370 = vmatprep.subr.mxu0 %v23955_v35 }
  0xc0   :  { %16257 = vmatmul.mubr.f32.gmra.mxu0 %v17811_v31  ;;  %16331 = vmatmul.mubr.f32.gmra.mxu1 %v23956_v53  ;;  %v23966_v31 = vld [vmem:[#allocation48_spill] sm:$0xff] }
  0xc1   :  { %16449 = vmatpush3.msra.mxu1 %v17301_v38  ;;  %16259 = vmatprep.mubr.f32.mxu0 %v17826_v27  ;;  %v23960_v38 = vand.u32 4294901760, %v17796_v42  ;;  %v23964_v42 = vld [vmem:[#allocation44_spill] sm:$0xff]  ;;  %v23967_v27 = vand.u32 4294901760, %v17850_v30 }
  0xc2   :  { %16333 = vmatprep.mubr.f32.mxu1 %v23957_v36  ;;  %16371 = vmatpush3.msra.mxu0 %v23955_v35 }
  0xc3   :  { %16450 = vmatprep.subr.mxu1 %v23902_v34  ;;  %16372 = vmatprep.subr.mxu0 %v23958_v19 }
  0xc4   :  { %16260 = vmatmul.mubr.f32.gmra.mxu0 %v17838_v37  ;;  %16334 = vmatmul.mubr.f32.gmra.mxu1 %v23959_v22 }
  0xc5   :  { %16451 = vmatpush3.msra.mxu1 %v23902_v34  ;;  %16262 = vmatprep.mubr.f32.mxu0 %v17850_v30  ;;  %v23965_v34 = vand.u32 4294901760, %v17838_v37  ;;  %v23971_v37 = vand.u32 4294901760, %v17874_v57  ;;  %v23973_v30 = vand.u32 4294901760, %v17884_v7 }
  0xc6   :  { %16336 = vmatprep.mubr.f32.mxu1 %v23960_v38  ;;  %16373 = vmatpush3.msra.mxu0 %v23958_v19  ;;  %v2256_v19 = vld [vmem:[%s23450_s4 + $0x48] sm:$0xff] }
  0xc7   :  { %16452 = vmatprep.subr.mxu1 %v23904_v1  ;;  %16374 = vmatprep.subr.mxu0 %v23961_v33 }
  0xc8   :  { %16263 = vmatmul.mubr.f32.gmra.mxu0 %v17862_v25  ;;  %16337 = vmatmul.mubr.f32.gmra.mxu1 %v23962_v4  ;;  %v23975_v25 = vld [vmem:[#allocation46_spill] sm:$0xff] }
  0xc9   :  { %16453 = vmatpush3.msra.mxu1 %v23904_v1  ;;  %16265 = vmatprep.mubr.f32.mxu0 %v17874_v57  ;;  %v23968_v1 = vld [vmem:[#allocation30_spill] sm:$0xff] }
  0xca   :  { %16339 = vmatprep.mubr.f32.mxu1 %v23963_v46  ;;  %16375 = vmatpush3.msra.mxu0 %v23961_v33  ;;  %v23977_v57 = vld [vmem:[#allocation50_spill] sm:$0xff]  ;;  %v18255_v33 = vand.u32 4294901760, %v2256_v19  ;;  %v2255_v46 = vld [vmem:[%s23450_s4 + $0x40] sm:$0xff] }
  0xcb   :  { %16376 = vmatprep.subr.mxu0 %v23964_v42  ;;  %16454 = vmatprep.subr.mxu1 %v23907_v61 }
  0xcc   :  { %16266 = vmatmul.mubr.f32.gmra.mxu0 %v17884_v7  ;;  %16340 = vmatmul.mubr.f32.gmra.mxu1 %v23965_v34  ;;  %v23979_v7 = vld [vmem:[#allocation54_spill] sm:$0xff]  ;;  %24005 = vst [vmem:[#allocation16_spill] sm:$0xff] %v18255_v33  ;;  %v18266_v34 = vsub.f32 %v2256_v19, %v18255_v33 }
  0xcd   :  { %16377 = vmatpush3.msra.mxu0 %v23964_v42  ;;  %16455 = vmatpush3.msra.mxu1 %v23907_v61  ;;  %v23972_v61 = vld [vmem:[#allocation39_spill] sm:$0xff] }
  0xce   :  { %16378 = vmatprep.subr.mxu0 %v23966_v31  ;;  %16342 = vmatprep.mubr.f32.mxu1 %v23967_v27  ;;  %24006 = vst [vmem:[#allocation17_spill] sm:$0xff] %v18266_v34 }
  0xcf   :  { %16379 = vmatpush3.msra.mxu0 %v23966_v31  ;;  %16380 = vmatprep.mubr.f32.mxu0 %v23968_v1  ;;  %v18268_v31 = vand.u32 4294901760, %v2255_v46 }
  0xd0   :  { %16343 = vmatmul.mubr.f32.gmra.mxu1 %v23969_v17  ;;  %16381 = vmatmul.mubr.f32.vlgmr.msra.gmra.mxu0 %v23970_v29 }
  0xd1   :  { %16456 = vmatprep.subr.mxu1 %v23911_v15  ;;  %16345 = vmatprep.mubr.f32.mxu1 %v23971_v37  ;;  %24007 = vst [vmem:[#allocation18_spill] sm:$0xff] %v18268_v31  ;;  %v18275_v37 = vand.u32 4294901760, %v18266_v34 }
  0xd2   :  { %16457 = vmatpush3.msra.mxu1 %v23911_v15  ;;  %16383 = vmatprep.mubr.f32.mxu0 %v23972_v61  ;;  %v23978_v15 = vld [vmem:[#allocation51_spill] sm:$0xff] }
  0xd3   :  { %16458 = vmatprep.subr.mxu1 %v23913_v52  ;;  %24008 = vst [vmem:[#allocation60_spill] sm:$0xff] %v18275_v37 }
  0xd4   :  { %16346 = vmatmul.mubr.f32.gmra.mxu1 %v23973_v30  ;;  %16384 = vmatmul.mubr.f32.gmra.mxu0 %v23974_v63 }
  0xd5   :  { %16459 = vmatpush3.msra.mxu1 %v23913_v52  ;;  %16386 = vmatprep.mubr.f32.mxu0 %v23975_v25  ;;  %v23980_v52 = vld [vmem:[#allocation55_spill] sm:$0xff] }
  0xd6   :  { %16460 = vmatprep.mubr.f32.mxu1 %v23968_v1  ;;  %v2254_v1 = vld [vmem:[%s23450_s4 + $0x38] sm:$0xff] }
  0xd7   :  { %v18281_v30 = vand.u32 4294901760, %v2254_v1 }
  0xd8   :  { %16387 = vmatmul.mubr.f32.gmra.mxu0 %v23976_v5  ;;  %16461 = vmatmul.mubr.f32.vlgmr.msra.gmra.mxu1 %v23970_v29 }
  0xd9   :  { %16389 = vmatprep.mubr.f32.mxu0 %v23977_v57  ;;  %16463 = vmatprep.mubr.f32.mxu1 %v23972_v61  ;;  %v18279_v61 = vsub.f32 %v2255_v46, %v18268_v31  ;;  %24010 = vst [vmem:[#allocation20_spill] sm:$0xff] %v18281_v30 }
  0xdb   :  { %24009 = vst [vmem:[#allocation19_spill] sm:$0xff] %v18279_v61 }
  0xdc   :  { %16390 = vmatmul.mubr.f32.gmra.mxu0 %v23978_v15  ;;  %16464 = vmatmul.mubr.f32.gmra.mxu1 %v23974_v63 }
  0xdd   :  { %16392 = vmatprep.mubr.f32.mxu0 %v23979_v7  ;;  %16466 = vmatprep.mubr.f32.mxu1 %v23975_v25 }
  0xe0   :  { %16393 = vmatmul.mubr.f32.gmra.mxu0 %v23980_v52  ;;  %16467 = vmatmul.mubr.f32.gmra.mxu1 %v23976_v5 }
  0xe1   :  { %16395 = vmatprep.mubr.f32.mxu0 %v23981_v8  ;;  %16469 = vmatprep.mubr.f32.mxu1 %v23977_v57  ;;  %v2710_v57 = vsub.f32 %v18266_v34, %v18275_v37 }
  0xe4   :  { %16396 = vmatmul.mubr.f32.gmra.mxu0 %v23982_v55  ;;  %16470 = vmatmul.mubr.f32.gmra.mxu1 %v23978_v15  ;;  %v18293_v15 = vand.u32 4294901760, %v18279_v61 }
  0xe5   :  { %16398 = vmatprep.mubr.f32.mxu0 %v23983_v9  ;;  %16472 = vmatprep.mubr.f32.mxu1 %v23979_v7  ;;  %v18297_v7 = vsub.f32 %v2254_v1, %v18281_v30 }
  0xe6   :  { %24011 = vst [vmem:[#allocation61_spill] sm:$0xff] %v18293_v15 }
  0xe7   :  { %24012 = vst [vmem:[#allocation23_spill] sm:$0xff] %v18297_v7 }
  0xe8   :  { %16399 = vmatmul.mubr.f32.gmra.mxu0 %v23984_v6  ;;  %16473 = vmatmul.mubr.f32.gmra.mxu1 %v23980_v52  ;;  %v2253_v52 = vld [vmem:[%s23450_s4 + $0x30] sm:$0xff] }
  0xe9   :  { %16401 = vmatprep.mubr.f32.mxu0 %v17620_v0  ;;  %16475 = vmatprep.mubr.f32.mxu1 %v23981_v8 }
  0xec   :  { %16402 = vmatmul.mubr.f32.gmra.mxu0 %v17633_v47  ;;  %16476 = vmatmul.mubr.f32.gmra.mxu1 %v23982_v55  ;;  %v18303_v55 = vand.u32 4294901760, %v2253_v52 }
  0xed   :  { %16404 = vmatprep.mubr.f32.mxu0 %v17648_v48  ;;  %16478 = vmatprep.mubr.f32.mxu1 %v23983_v9 }
  0xee   :  { %24013 = vst [vmem:[#allocation62_spill] sm:$0xff] %v18303_v55 }
  0xf0   :  { %16405 = vmatmul.mubr.f32.gmra.mxu0 %v17663_v56  ;;  %16479 = vmatmul.mubr.f32.gmra.mxu1 %v23984_v6  ;;  %v2711_v6 = vand.u32 4294901760, %v2710_v57 }
  0xf1   :  { %16407 = vmatprep.mubr.f32.mxu0 %v17678_v18  ;;  %16481 = vmatprep.mubr.f32.mxu1 %v17620_v0  ;;  %v2262_v0 = vld [vmem:[%s23450_s4 + $0x78] sm:$0xff] }
  0xf4   :  { %16408 = vmatmul.mubr.f32.gmra.mxu0 %v17693_v58  ;;  %16482 = vmatmul.mubr.f32.gmra.mxu1 %v17633_v47  ;;  %v18145_v47 = vand.u32 4294901760, %v2262_v0 }
  0xf5   :  { %16410 = vmatprep.mubr.f32.mxu0 %v17700_v41  ;;  %16484 = vmatprep.mubr.f32.mxu1 %v17648_v48 }
  0xf6   :  { %23985 = vst [vmem:[#allocation21_spill] sm:$0xff] %v18145_v47  ;;  %16508 = vmatprep.subr.mxu0 %v18145_v47  ;;  %v18151_v48 = vsub.f32 %v2262_v0, %v18145_v47  ;;  %v2717_v0 = vsub.f32 %v18279_v61, %v18293_v15 }
  0xf7   :  { %16509 = vmatpush3.msra.mxu0 %v18145_v47 }
  0xf8   :  { %16411 = vmatmul.mubr.f32.gmra.mxu0 %v17712_v2  ;;  %16485 = vmatmul.mubr.f32.gmra.mxu1 %v17663_v56  ;;  %23986 = vst [vmem:[#allocation28_spill] sm:$0xff] %v18151_v48 }
  0xf9   :  { %16413 = vmatprep.mubr.f32.mxu0 %v17730_v39  ;;  %16487 = vmatprep.mubr.f32.mxu1 %v17678_v18  ;;  %v2261_v18 = vld [vmem:[%s23450_s4 + $0x70] sm:$0xff] }
  0xfa   :  { %v18162_v56 = vand.u32 4294901760, %v2261_v18 }
  0xfc   :  { %16414 = vmatmul.mubr.f32.gmra.mxu0 %v17745_v14  ;;  %16488 = vmatmul.mubr.f32.gmra.mxu1 %v17693_v58  ;;  %v18160_v58 = vand.u32 4294901760, %v18151_v48  ;;  %23988 = vst [vmem:[#allocation35_spill] sm:$0xff] %v18162_v56  ;;  %v18170_v54 = vsub.f32 %v2261_v18, %v18162_v56  ;;  %v18308_v18 = vand.u32 4294901760, %v18297_v7 }
  0xfd   :  { %16416 = vmatprep.mubr.f32.mxu0 %v17768_v20  ;;  %16490 = vmatprep.mubr.f32.mxu1 %v17700_v41 }
  0xfe   :  { %23987 = vst [vmem:[#allocation22_spill] sm:$0xff] %v18160_v58  ;;  %v2668_v41 = vsub.f32 %v18151_v48, %v18160_v58  ;;  %16510 = vmatprep.subr.mxu0 %v18162_v56  ;;  %23989 = vst [vmem:[#allocation40_spill] sm:$0xff] %v18170_v54 }
  0xff   :  { %16511 = vmatpush3.msra.mxu0 %v18162_v56  ;;  %24014 = vst [vmem:[#allocation24_spill] sm:$0xff] %v18308_v18 }
 0x100   :  { %16417 = vmatmul.mubr.f32.gmra.mxu0 %v17783_v21  ;;  %16491 = vmatmul.mubr.f32.gmra.mxu1 %v17712_v2  ;;  %v2260_v2 = vld [vmem:[%s23450_s4 + $0x68] sm:$0xff]  ;;  %v2669_v44 = vand.u32 4294901760, %v2668_v41 }
 0x101   :  { %16419 = vmatprep.mubr.f32.mxu0 %v17798_v51  ;;  %16493 = vmatprep.mubr.f32.mxu1 %v17730_v39  ;;  %v18179_v39 = vand.u32 4294901760, %v18170_v54  ;;  %v18181_v10 = vand.u32 4294901760, %v2260_v2  ;;  %v2252_v41 = vld [vmem:[%s23450_s4 + $0x28] sm:$0xff] }
 0x102   :  { %16588 = vmatprep.subr.mxu1 %v2669_v44 }
 0x103   :  { %23990 = vst [vmem:[#allocation25_spill] sm:$0xff] %v18179_v39  ;;  %23991 = vst [vmem:[#allocation45_spill] sm:$0xff] %v18181_v10  ;;  %v2675_v59 = vsub.f32 %v18170_v54, %v18179_v39  ;;  %16512 = vmatprep.subr.mxu0 %v18181_v10  ;;  %v18189_v32 = vsub.f32 %v2260_v2, %v18181_v10  ;;  %16589 = vmatpush3.msra.mxu1 %v2669_v44 }
 0x104   :  { %16420 = vmatmul.mubr.f32.gmra.mxu0 %v17813_v26  ;;  %16494 = vmatmul.mubr.f32.gmra.mxu1 %v17745_v14  ;;  %v2259_v14 = vld [vmem:[%s23450_s4 + $0x60] sm:$0xff] }
 0x105   :  { %16422 = vmatprep.mubr.f32.mxu0 %v17828_v50  ;;  %16496 = vmatprep.mubr.f32.mxu1 %v17768_v20  ;;  %23992 = vst [vmem:[#allocation34_spill] sm:$0xff] %v18189_v32  ;;  %v2676_v20 = vand.u32 4294901760, %v2675_v59  ;;  %v18198_v23 = vand.u32 4294901760, %v18189_v32  ;;  %v18200_v11 = vand.u32 4294901760, %v2259_v14  ;;  %v18319_v59 = vsub.f32 %v2253_v52, %v18303_v55 }
 0x106   :  { %16513 = vmatpush3.msra.mxu0 %v18181_v10 }
 0x107   :  { %23993 = vst [vmem:[#allocation37_spill] sm:$0xff] %v18198_v23  ;;  %23994 = vst [vmem:[#allocation31_spill] sm:$0xff] %v18200_v11  ;;  %16590 = vmatprep.subr.mxu1 %v2676_v20  ;;  %v2682_v40 = vsub.f32 %v18189_v32, %v18198_v23  ;;  %16514 = vmatprep.subr.mxu0 %v18200_v11  ;;  %v18208_v43 = vsub.f32 %v2259_v14, %v18200_v11  ;;  %v18321_v14 = vand.u32 4294901760, %v2252_v41 }
 0x108   :  { %16423 = vmatmul.mubr.f32.gmra.mxu0 %v17840_v13  ;;  %16497 = vmatmul.mubr.f32.gmra.mxu1 %v17783_v21  ;;  %v2258_v21 = vld [vmem:[%s23450_s4 + $0x58] sm:$0xff]  ;;  %24015 = vst [vmem:[#allocation63_spill] sm:$0xff] %v18319_v59 }
 0x109   :  { %16425 = vmatprep.mubr.f32.mxu0 %v23995_v49  ;;  %16499 = vmatprep.mubr.f32.mxu1 %v17798_v51  ;;  %23996 = vst [vmem:[#allocation42_spill] sm:$0xff] %v18208_v43  ;;  %v2683_v51 = vand.u32 4294901760, %v2682_v40  ;;  %v18217_v60 = vand.u32 4294901760, %v18208_v43  ;;  %v18219_v12 = vand.u32 4294901760, %v2258_v21  ;;  %24016 = vst [vmem:[#allocation26_spill] sm:$0xff] %v18321_v14  ;;  %v2724_v40 = vsub.f32 %v18297_v7, %v18308_v18 }
 0x10a   :  { %16591 = vmatpush3.msra.mxu1 %v2676_v20  ;;  %16515 = vmatpush3.msra.mxu0 %v18200_v11 }
 0x10b   :  { %23998 = vst [vmem:[#allocation36_spill] sm:$0xff] %v18217_v60  ;;  %23999 = vst [vmem:[#allocation14_spill] sm:$0xff] %v18219_v12  ;;  %16592 = vmatprep.subr.mxu1 %v2683_v51  ;;  %v2689_v45 = vsub.f32 %v18208_v43, %v18217_v60  ;;  %16516 = vmatprep.subr.mxu0 %v18219_v12  ;;  %v18226_v24 = vsub.f32 %v2258_v21, %v18219_v12  ;;  %v2251_v21 = vld [vmem:[%s23450_s4 + $0x20] sm:$0xff] }
 0x10c   :  { %16426 = vmatmul.mubr.f32.gmra.mxu0 %v23997_v16  ;;  %16500 = vmatmul.mubr.f32.gmra.mxu1 %v17813_v26  ;;  %v2257_v26 = vld [vmem:[%s23450_s4 + $0x50] sm:$0xff] }
 0x10d   :  { %16502 = vmatprep.mubr.f32.mxu1 %v17828_v50  ;;  %24000 = vst [vmem:[#allocation43_spill] sm:$0xff] %v18226_v24  ;;  %16593 = vmatpush3.msra.mxu1 %v2683_v51  ;;  %v2690_v50 = vand.u32 4294901760, %v2689_v45  ;;  %v18234_v3 = vand.u32 4294901760, %v18226_v24  ;;  %v18236_v28 = vand.u32 4294901760, %v2257_v26  ;;  %v18332_v51 = vand.u32 4294901760, %v18319_v59 }
 0x10e   :  { %16517 = vmatpush3.msra.mxu0 %v18219_v12  ;;  %v18336_v45 = vsub.f32 %v2252_v41, %v18321_v14 }
 0x10f   :  { %v16062_v62 = vpop.f32.mrf.mxu0  ;;  %24001 = vst [vmem:[#allocation47_spill] sm:$0xff] %v18234_v3  ;;  %24002 = vst [vmem:[#allocation15_spill] sm:$0xff] %v18236_v28  ;;  %16594 = vmatprep.subr.mxu1 %v2690_v50  ;;  %v2696_v53 = vsub.f32 %v18226_v24, %v18234_v3  ;;  %16518 = vmatprep.subr.mxu0 %v18236_v28  ;;  %v18245_v36 = vsub.f32 %v2257_v26, %v18236_v28 }
 0x110   :  { %16503 = vmatmul.mubr.f32.gmra.mxu1 %v17840_v13  ;;  %16519 = vmatpush3.msra.mxu0 %v18236_v28  ;;  %24017 = vst [vmem:[#allocation64_spill] sm:$0xff] %v18332_v51  ;;  %24018 = vst [vmem:[#allocation27_spill] sm:$0xff] %v18336_v45  ;;  %v18351_v46 = vand.u32 4294901760, %v18336_v45 }
 0x111   :  { %v18238_v35 = vpop.f32.mrf.mxu0  ;;  %16505 = vmatprep.mubr.f32.mxu1 %v23995_v49  ;;  %24003 = vst [vmem:[#allocation52_spill] sm:$0xff] %v18245_v36  ;;  %16595 = vmatpush3.msra.mxu1 %v2690_v50  ;;  %v2697_v22 = vand.u32 4294901760, %v2696_v53  ;;  %v18253_v38 = vand.u32 4294901760, %v18245_v36  ;;  %v2718_v49 = vand.u32 4294901760, %v2717_v0  ;;  %v2725_v50 = vand.u32 4294901760, %v2724_v40  ;;  %v2250_v53 = vld [vmem:[%s23450_s4 + $0x18] sm:$0xff] }
 0x112   :  { %16520 = vmatprep.subr.mxu0 %v18255_v33  ;;  %24021 = vst [vmem:[#allocation38_spill] sm:$0xff] %v18351_v46  ;;  %v2738_v52 = vsub.f32 %v18336_v45, %v18351_v46 }
 0x113   :  { %v16065_v13 = vpop.f32.mrf.mxu0  ;;  %24004 = vst [vmem:[#allocation53_spill] sm:$0xff] %v18253_v38  ;;  %16596 = vmatprep.subr.mxu1 %v2697_v22  ;;  %v2703_v42 = vsub.f32 %v18245_v36, %v18253_v38  ;;  %16521 = vmatpush3.msra.mxu0 %v18255_v33 }
 0x114   :  { %16506 = vmatmul.mubr.f32.gmra.mxu1 %v23997_v16  ;;  %16522 = vmatprep.subr.mxu0 %v18268_v31 }
 0x115   :  { %v18257_v4 = vpop.f32.mrf.mxu0  ;;  %16597 = vmatpush3.msra.mxu1 %v2697_v22  ;;  %v2704_v29 = vand.u32 4294901760, %v2703_v42  ;;  %16523 = vmatpush3.msra.mxu0 %v18268_v31  ;;  %v2731_v22 = vsub.f32 %v18319_v59, %v18332_v51 }
 0x116   :  { %16524 = vmatprep.subr.mxu0 %v18281_v30 }
 0x117   :  { %v16068_v27 = vpop.f32.mrf.mxu0  ;;  %v16142_v17 = vpop.f32.mrf.mxu1  ;;  %16598 = vmatprep.subr.mxu1 %v2704_v29  ;;  %16525 = vmatpush3.msra.mxu0 %v18281_v30  ;;  %v2732_v57 = vand.u32 4294901760, %v2731_v22 }
 0x118   :  { %v18283_v63 = vadd.f32 %v16142_v17, %v16062_v62  ;;  %16599 = vmatpush3.msra.mxu1 %v2704_v29  ;;  %16526 = vmatprep.subr.mxu0 %v18303_v55  ;;  %v18338_v62 = vand.u32 4294901760, %v2251_v21  ;;  %v2249_v17 = vld [vmem:[%s23450_s4 + $0x10] sm:$0xff] }
 0x119   :  { %v18285_v25 = vpop.f32.mrf.mxu0  ;;  %v18288_v5 = vpop.f32.mrf.mxu1  ;;  %16600 = vmatprep.subr.mxu1 %v2711_v6  ;;  %16527 = vmatpush3.msra.mxu0 %v18303_v55  ;;  %v18374_v41 = vand.u32 4294901760, %v2249_v17 }
 0x11a   :  { %16601 = vmatpush3.msra.mxu1 %v2711_v6  ;;  %16528 = vmatprep.subr.mxu0 %v18321_v14  ;;  %24019 = vst [vmem:[#allocation29_spill] sm:$0xff] %v18338_v62  ;;  %v18355_v42 = vsub.f32 %v2251_v21, %v18338_v62 }
 0x11b   :  { %v16071_v8 = vpop.f32.mrf.mxu0  ;;  %v16145_v9 = vpop.f32.mrf.mxu1  ;;  %16602 = vmatprep.subr.mxu1 %v2718_v49  ;;  %16529 = vmatpush3.msra.mxu0 %v18321_v14  ;;  %24026 = vst [vmem:[#allocation39_spill] sm:$0xff] %v18374_v41 }
 0x11c   :  { %v18313_v2 = vadd.f32 %v16145_v9, %v16065_v13  ;;  %16603 = vmatpush3.msra.mxu1 %v2718_v49  ;;  %16530 = vmatprep.subr.mxu0 %v18338_v62  ;;  %24022 = vst [vmem:[#allocation44_spill] sm:$0xff] %v18355_v42  ;;  %v18368_v9 = vand.u32 4294901760, %v18355_v42  ;;  %v2248_v49 = vld [vmem:[%s23450_s4 + $0x8] sm:$0xff] }
 0x11d   :  { %v18315_v44 = vpop.f32.mrf.mxu0  ;;  %v18323_v20 = vpop.f32.mrf.mxu1  ;;  %16604 = vmatprep.subr.mxu1 %v2725_v50  ;;  %16531 = vmatpush3.msra.mxu0 %v18338_v62  ;;  %v18386_v22 = vand.u32 4294901760, %v2248_v49 }
 0x11e   :  { %16605 = vmatpush3.msra.mxu1 %v2725_v50  ;;  %24024 = vst [vmem:[#allocation30_spill] sm:$0xff] %v18368_v9  ;;  %v2745_v50 = vsub.f32 %v18355_v42, %v18368_v9 }
 0x11f   :  { %v16074_v16 = vpop.f32.mrf.mxu0  ;;  %v16148_v26 = vpop.f32.mrf.mxu1  ;;  %16606 = vmatprep.subr.mxu1 %v2732_v57  ;;  %24028 = vst [vmem:[#allocation46_spill] sm:$0xff] %v18386_v22  ;;  %v18401_v51 = vsub.f32 %v2248_v49, %v18386_v22 }
 0x120   :  { %v18344_v13 = vadd.f32 %v16148_v26, %v16068_v27  ;;  %v18360_v27 = vand.u32 4294901760, %v2250_v53  ;;  %v2739_v26 = vand.u32 4294901760, %v2738_v52  ;;  %16607 = vmatpush3.msra.mxu1 %v2732_v57  ;;  %v2247_v52 = vld [vmem:[%s23450_s4] sm:$0xff]  ;;  %v2746_v9 = vand.u32 4294901760, %v2745_v50  ;;  %s4432_s4 = sld [smem:[#allocation8]] }
 0x121   :  { %v18346_v19 = vpop.f32.mrf.mxu0  ;;  %v18357_v1 = vpop.f32.mrf.mxu1  ;;  %24031 = vst [vmem:[#allocation51_spill] sm:$0xff] %v18401_v51  ;;  %v18404_v57 = vand.u32 4294901760, %v2247_v52  ;;  %v18417_v49 = vand.u32 4294901760, %v18401_v51 }
 0x122   :  { %24020 = vst [vmem:[#allocation33_spill] sm:$0xff] %v18344_v13  ;;  %24023 = vst [vmem:[#allocation48_spill] sm:$0xff] %v18360_v27  ;;  %16532 = vmatprep.subr.mxu0 %v18360_v27  ;;  %v18372_v0 = vsub.f32 %v2250_v53, %v18360_v27  ;;  %16608 = vmatprep.subr.mxu1 %v2739_v26 }
 0x123   :  { %v16077_v29 = vpop.f32.mrf.mxu0  ;;  %v16151_v6 = vpop.f32.mrf.mxu1  ;;  %16533 = vmatpush3.msra.mxu0 %v18360_v27  ;;  %24032 = vst [vmem:[#allocation54_spill] sm:$0xff] %v18404_v57  ;;  %16609 = vmatpush3.msra.mxu1 %v2739_v26  ;;  %24034 = vst [vmem:[#allocation56_spill] sm:$0xff] %v18417_v49  ;;  %v18420_v38 = vsub.f32 %v2247_v52, %v18404_v57 }
 0x124   :  { %24025 = vst [vmem:[#allocation32_spill] sm:$0xff] %v18372_v0  ;;  %v18379_v40 = vadd.f32 %v16151_v6, %v16071_v8  ;;  %v18391_v46 = vand.u32 4294901760, %v18372_v0  ;;  %v18394_v8 = vsub.f32 %v2249_v17, %v18374_v41  ;;  %16534 = vmatprep.subr.mxu0 %v18374_v41  ;;  %16610 = vmatprep.subr.mxu1 %v2746_v9 }
 0x125   :  { %v18381_v21 = vpop.f32.mrf.mxu0  ;;  %v18388_v53 = vpop.f32.mrf.mxu1  ;;  %16535 = vmatpush3.msra.mxu0 %v18374_v41  ;;  %24035 = vst [vmem:[#allocation57_spill] sm:$0xff] %v18420_v38  ;;  %16611 = vmatpush3.msra.mxu1 %v2746_v9  ;;  %v18431_v60 = vand.u32 4294901760, %v18420_v38 }
 0x126   :  { %24027 = vst [vmem:[#allocation41_spill] sm:$0xff] %v18379_v40  ;;  %24029 = vst [vmem:[#allocation49_spill] sm:$0xff] %v18391_v46  ;;  %v2752_v17 = vsub.f32 %v18372_v0, %v18391_v46  ;;  %v18409_v15 = vand.u32 4294901760, %v18394_v8  ;;  %16536 = vmatprep.subr.mxu0 %v18386_v22 }
 0x127   :  { %24030 = vst [vmem:[#allocation50_spill] sm:$0xff] %v18394_v8  ;;  %v16080_v6 = vpop.f32.mrf.mxu0  ;;  %v16154_v18 = vpop.f32.mrf.mxu1  ;;  %16537 = vmatpush3.msra.mxu0 %v18386_v22  ;;  %24036 = vst [vmem:[#allocation58_spill] sm:$0xff] %v18431_v60  ;;  %v2773_v39 = vsub.f32 %v18420_v38, %v18431_v60 }
 0x128   :  { %24033 = vst [vmem:[#allocation55_spill] sm:$0xff] %v18409_v15  ;;  %v18412_v37 = vadd.f32 %v16154_v18, %v16074_v16  ;;  %v2753_v46 = vand.u32 4294901760, %v2752_v17  ;;  %v2759_v3 = vsub.f32 %v18394_v8, %v18409_v15  ;;  %16538 = vmatprep.subr.mxu0 %v18404_v57  ;;  %v2766_v16 = vsub.f32 %v18401_v51, %v18417_v49 }
 0x129   :  { %v18414_v50 = vpop.f32.mrf.mxu0  ;;  %v18423_v26 = vpop.f32.mrf.mxu1  ;;  %16539 = vmatpush3.msra.mxu0 %v18404_v57  ;;  %v2774_v51 = vand.u32 4294901760, %v2773_v39 }
 0x12a   :  { %16612 = vmatprep.subr.mxu1 %v2753_v46  ;;  %v2760_v23 = vand.u32 4294901760, %v2759_v3  ;;  %16668 = vmatprep.subr.mxu0 %v18151_v48  ;;  %v2767_v15 = vand.u32 4294901760, %v2766_v16 }
 0x12b   :  { %v16083_v18 = vpop.f32.mrf.mxu0  ;;  %v16157_v52 = vpop.f32.mrf.mxu1  ;;  %16613 = vmatpush3.msra.mxu1 %v2753_v46 }
 0x12c   :  { %v18435_v9 = vadd.f32 %v16157_v52, %v16077_v29  ;;  %16614 = vmatprep.subr.mxu1 %v2760_v23 }
 0x12d   :  { %v18437_v17 = vpop.f32.mrf.mxu0  ;;  %v18441_v49 = vpop.f32.mrf.mxu1  ;;  %16615 = vmatpush3.msra.mxu1 %v2760_v23 }
 0x12e   :  { %16616 = vmatprep.subr.mxu1 %v2767_v15 }
 0x12f   :  { %v16086_v58 = vpop.f32.mrf.mxu0  ;;  %v16160_v57 = vpop.f32.mrf.mxu1  ;;  %16617 = vmatpush3.msra.mxu1 %v2767_v15 }
 0x130   :  { %v18443_v3 = vadd.f32 %v16160_v57, %v16080_v6  ;;  %16618 = vmatprep.subr.mxu1 %v2774_v51 }
 0x131   :  { %v18445_v22 = vpop.f32.mrf.mxu0  ;;  %v18447_v29 = vpop.f32.mrf.mxu1  ;;  %16619 = vmatpush3.msra.mxu1 %v2774_v51 }
 0x132   :  { %16748 = vmatprep.subr.mxu1 %v18145_v47 }
 0x133   :  { %v16089_v46 = vpop.f32.mrf.mxu0  ;;  %v16163_v16 = vpop.f32.mrf.mxu1 }
 0x134   :  { %v18450_v52 = vadd.f32 %v16163_v16, %v16083_v18 }
 0x135   :  { %v18452_v60 = vpop.f32.mrf.mxu0  ;;  %v18454_v39 = vpop.f32.mrf.mxu1 }
 0x137   :  { %v16092_v23 = vpop.f32.mrf.mxu0  ;;  %v16166_v6 = vpop.f32.mrf.mxu1 }
 0x138   :  { %v18456_v57 = vadd.f32 %v16166_v6, %v16086_v58 }
 0x139   :  { %v18458_v38 = vpop.f32.mrf.mxu0  ;;  %v18460_v15 = vpop.f32.mrf.mxu1 }
 0x13b   :  { %v16095_v8 = vpop.f32.mrf.mxu0  ;;  %v16169_v41 = vpop.f32.mrf.mxu1 }
 0x13c   :  { %v18462_v51 = vadd.f32 %v16169_v41, %v16089_v46 }
 0x13d   :  { %v18464_v27 = vpop.f32.mrf.mxu0  ;;  %v18466_v18 = vpop.f32.mrf.mxu1 }
 0x13f   :  { %v16098_v16 = vpop.f32.mrf.mxu0  ;;  %v16172_v0 = vpop.f32.mrf.mxu1 }
 0x140   :  { %v18468_v62 = vadd.f32 %v16172_v0, %v16092_v23 }
 0x141   :  { %v18470_v42 = vpop.f32.mrf.mxu0  ;;  %v18472_v58 = vpop.f32.mrf.mxu1 }
 0x143   :  { %v16101_v6 = vpop.f32.mrf.mxu0  ;;  %v16175_v14 = vpop.f32.mrf.mxu1 }
 0x144   :  { %v18474_v45 = vadd.f32 %v16175_v14, %v16095_v8 }
 0x145   :  { %v18476_v55 = vpop.f32.mrf.mxu0  ;;  %v18478_v41 = vpop.f32.mrf.mxu1 }
 0x147   :  { %v16104_v46 = vpop.f32.mrf.mxu0  ;;  %v16178_v59 = vpop.f32.mrf.mxu1 }
 0x148   :  { %v18480_v30 = vadd.f32 %v16178_v59, %v16098_v16 }
 0x149   :  { %v18482_v7 = vpop.f32.mrf.mxu0  ;;  %v18484_v0 = vpop.f32.mrf.mxu1 }
 0x14b   :  { %v16107_v23 = vpop.f32.mrf.mxu0 }
 0x14c   :  { %v16181_v31 = vpop.f32.mrf.mxu1 }
 0x14d   :  { %v18486_v61 = vadd.f32 %v16181_v31, %v16101_v6  ;;  %v18488_v34 = vpop.f32.mrf.mxu0 }
 0x14e   :  { %v18490_v14 = vpop.f32.mrf.mxu1 }
 0x150   :  { %v16184_v8 = vpop.f32.mrf.mxu1  ;;  %v18492_v33 = vpop.f32.mrf.mxu0 }
 0x151   :  { %v18494_v36 = vadd.f32 %v16184_v8, %v16104_v46 }
 0x152   :  { %v18496_v24 = vpop.f32.mrf.mxu1  ;;  %v18498_v59 = vpop.f32.mrf.mxu0 }
 0x154   :  { %v16187_v16 = vpop.f32.mrf.mxu1  ;;  %v18500_v28 = vpop.f32.mrf.mxu0 }
 0x155   :  { %v18502_v43 = vadd.f32 %v16187_v16, %v16107_v23 }
 0x156   :  { %v18504_v31 = vpop.f32.mrf.mxu1  ;;  %v18506_v6 = vpop.f32.mrf.mxu0 }
 0x157   :  { %24037 = vst [vmem:[#allocation59_spill] sm:$0xff] %v18504_v31  ;;  %24038 = vst [vmem:[#allocation65_spill] sm:$0xff] %v18506_v6 }
 0x158   :  { %v18508_v32 = vpop.f32.mrf.mxu0  ;;  %v18510_v12 = vpop.f32.mrf.mxu1 }
 0x159   :  { %24039 = vst [vmem:[#allocation66_spill] sm:$0xff] %v18508_v32 }
 0x15a   :  { %v18512_v54 = vpop.f32.mrf.mxu0  ;;  %v18514_v46 = vpop.f32.mrf.mxu1 }
 0x15b   :  { %24040 = vst [vmem:[#allocation67_spill] sm:$0xff] %v18512_v54 }
 0x15c   :  { %v18516_v8 = vpop.f32.mrf.mxu0  ;;  %v18518_v48 = vpop.f32.mrf.mxu1 }
 0x15d   :  { %24041 = vst [vmem:[#allocation68_spill] sm:$0xff] %v18516_v8  ;;  %24042 = vst [vmem:[#allocation69_spill] sm:$0xff] %v18518_v48 }
 0x15e   :  { %v18520_v11 = vpop.f32.mrf.mxu0  ;;  %v18522_v23 = vpop.f32.mrf.mxu1 }
 0x15f   :  { %24043 = vst [vmem:[#allocation70_spill] sm:$0xff] %v18520_v11  ;;  %24044 = vst [vmem:[#allocation71_spill] sm:$0xff] %v18522_v23 }
 0x160   :  { %v16234_v16 = vpop.f32.mrf.mxu0  ;;  %v18524_v10 = vpop.f32.mrf.mxu1 }
 0x161   :  { %24045 = vst [vmem:[#allocation72_spill] sm:$0xff] %v18524_v10  ;;  %v1079_v56 = vadd.f32 %v16234_v16, %v18412_v37 }
 0x162   :  { %v18527_v47 = vpop.f32.mrf.mxu0  ;;  %v18529_v40 = vpop.f32.mrf.mxu1 }
 0x163   :  { %24046 = vst [vmem:[#allocation73_spill] sm:$0xff] %v18527_v47  ;;  %24047 = vst [vmem:[#allocation74_spill] sm:$0xff] %v18529_v40 }
 0x164   :  { %v16237_v54 = vpop.f32.mrf.mxu0  ;;  %v18531_v32 = vpop.f32.mrf.mxu1 }
 0x165   :  { %24048 = vst [vmem:[#allocation75_spill] sm:$0xff] %v18531_v32  ;;  %v1093_v8 = vadd.f32 %v16237_v54, %v18435_v9 }
 0x166   :  { %v18534_v13 = vpop.f32.mrf.mxu0  ;;  %v18536_v6 = vpop.f32.mrf.mxu1 }
 0x167   :  { %24049 = vst [vmem:[#allocation76_spill] sm:$0xff] %v18534_v13  ;;  %24050 = vst [vmem:[#allocation77_spill] sm:$0xff] %v18536_v6 }
 0x168   :  { %v16240_v11 = vpop.f32.mrf.mxu0  ;;  %v16314_v23 = vpop.f32.mrf.mxu1 }
 0x169   :  { %v1107_v48 = vadd.f32 %v16240_v11, %v18443_v3  ;;  %v18539_v10 = vadd.f32 %v16314_v23, %v1079_v56 }
 0x16a   :  { %v18541_v37 = vpop.f32.mrf.mxu0  ;;  %v18543_v16 = vpop.f32.mrf.mxu1 }
 0x16b   :  { %24051 = vst [vmem:[#allocation78_spill] sm:$0xff] %v18539_v10  ;;  %24052 = vst [vmem:[#allocation79_spill] sm:$0xff] %v18543_v16 }
 0x16c   :  { %v16243_v40 = vpop.f32.mrf.mxu0  ;;  %v16317_v47 = vpop.f32.mrf.mxu1 }
 0x16d   :  { %v1121_v32 = vadd.f32 %v16243_v40, %v18450_v52  ;;  %v18546_v31 = vadd.f32 %v16317_v47, %v1093_v8 }
 0x16e   :  { %v18548_v54 = vpop.f32.mrf.mxu0  ;;  %v18550_v9 = vpop.f32.mrf.mxu1 }
 0x16f   :  { %24053 = vst [vmem:[#allocation80_spill] sm:$0xff] %v18546_v31  ;;  %24054 = vst [vmem:[#allocation81_spill] sm:$0xff] %v18550_v9 }
 0x170   :  { %v16246_v6 = vpop.f32.mrf.mxu0  ;;  %v16320_v13 = vpop.f32.mrf.mxu1 }
 0x171   :  { %v1135_v11 = vadd.f32 %v16246_v6, %v18456_v57  ;;  %v18553_v56 = vadd.f32 %v16320_v13, %v1107_v48 }
 0x172   :  { %v18555_v3 = vpop.f32.mrf.mxu0  ;;  %v18557_v23 = vpop.f32.mrf.mxu1 }
 0x173   :  { %24055 = vst [vmem:[#allocation82_spill] sm:$0xff] %v18553_v56  ;;  %24056 = vst [vmem:[#allocation83_spill] sm:$0xff] %v18557_v23 }
 0x174   :  { %v16249_v10 = vpop.f32.mrf.mxu0  ;;  %v16323_v16 = vpop.f32.mrf.mxu1 }
 0x175   :  { %v1149_v40 = vadd.f32 %v16249_v10, %v18462_v51  ;;  %v18560_v47 = vadd.f32 %v16323_v16, %v1121_v32 }
 0x176   :  { %v18562_v52 = vpop.f32.mrf.mxu0  ;;  %v18564_v8 = vpop.f32.mrf.mxu1 }
 0x177   :  { %24057 = vst [vmem:[#allocation84_spill] sm:$0xff] %v18560_v47  ;;  %24058 = vst [vmem:[#allocation85_spill] sm:$0xff] %v18564_v8 }
 0x178   :  { %v16252_v31 = vpop.f32.mrf.mxu0  ;;  %v16326_v9 = vpop.f32.mrf.mxu1 }
 0x179   :  { %v1163_v57 = vadd.f32 %v16252_v31, %v18468_v62  ;;  %v18567_v48 = vadd.f32 %v16326_v9, %v1135_v11 }
 0x17a   :  { %v18569_v13 = vpop.f32.mrf.mxu0  ;;  %v18571_v6 = vpop.f32.mrf.mxu1 }
 0x17b   :  { %24059 = vst [vmem:[#allocation86_spill] sm:$0xff] %v18567_v48  ;;  %24060 = vst [vmem:[#allocation87_spill] sm:$0xff] %v18571_v6 }
 0x17c   :  { %v16255_v56 = vpop.f32.mrf.mxu0  ;;  %v16329_v23 = vpop.f32.mrf.mxu1 }
 0x17d   :  { %v1177_v10 = vadd.f32 %v16255_v56, %v18474_v45  ;;  %v18574_v32 = vadd.f32 %v16329_v23, %v1149_v40 }
 0x17e   :  { %v18576_v51 = vpop.f32.mrf.mxu0  ;;  %v18578_v16 = vpop.f32.mrf.mxu1 }
 0x17f   :  { %24061 = vst [vmem:[#allocation88_spill] sm:$0xff] %v18574_v32  ;;  %24062 = vst [vmem:[#allocation89_spill] sm:$0xff] %v18578_v16 }
 0x180   :  { %v16258_v47 = vpop.f32.mrf.mxu0  ;;  %v16332_v8 = vpop.f32.mrf.mxu1 }
 0x181   :  { %v1191_v62 = vadd.f32 %v16258_v47, %v18480_v30  ;;  %v18581_v31 = vadd.f32 %v16332_v8, %v1163_v57 }
 0x182   :  { %v18583_v9 = vpop.f32.mrf.mxu0  ;;  %v18585_v11 = vpop.f32.mrf.mxu1 }
 0x183   :  { %24063 = vst [vmem:[#allocation90_spill] sm:$0xff] %v18581_v31  ;;  %24064 = vst [vmem:[#allocation91_spill] sm:$0xff] %v18585_v11 }
 0x184   :  { %v16261_v48 = vpop.f32.mrf.mxu0  ;;  %v16335_v6 = vpop.f32.mrf.mxu1 }
 0x185   :  { %v1205_v45 = vadd.f32 %v16261_v48, %v18486_v61  ;;  %v18588_v56 = vadd.f32 %v16335_v6, %v1177_v10 }
 0x186   :  { %v18590_v23 = vpop.f32.mrf.mxu0  ;;  %v18592_v40 = vpop.f32.mrf.mxu1 }
 0x187   :  { %24065 = vst [vmem:[#allocation92_spill] sm:$0xff] %v18588_v56  ;;  %24066 = vst [vmem:[#allocation93_spill] sm:$0xff] %v18590_v23 }
 0x188   :  { %24067 = vst [vmem:[#allocation94_spill] sm:$0xff] %v18592_v40  ;;  %v16264_v32 = vpop.f32.mrf.mxu0  ;;  %v16338_v16 = vpop.f32.mrf.mxu1 }
 0x189   :  { %v1219_v30 = vadd.f32 %v16264_v32, %v18494_v36  ;;  %v18595_v47 = vadd.f32 %v16338_v16, %v1191_v62  ;;  %v726_v16 = vadd.f32 %v18288_v5, %v18238_v35  ;;  %v1023_v62 = vadd.f32 %v18492_v33, %v18283_v63 }
 0x18a   :  { %v18597_v8 = vpop.f32.mrf.mxu0  ;;  %v18599_v57 = vpop.f32.mrf.mxu1  ;;  %v786_v35 = vadd.f32 %v18441_v49, %v18381_v21  ;;  %v1037_v21 = vadd.f32 %v18500_v28, %v18313_v2  ;;  %v18649_v49 = vadd.f32 %v18478_v41, %v18464_v27  ;;  %v24069_v27 = vld [vmem:[#allocation69_spill] sm:$0xff]  ;;  %v24072_v41 = vld [vmem:[#allocation66_spill] sm:$0xff] }
 0x18b   :  { %v1016_v5 = vadd.f32 %v18498_v59, %v726_v16  ;;  %v1330_v33 = vadd.f32 %v18510_v12, %v1023_v62  ;;  %v18642_v12 = vadd.f32 %v18472_v58, %v18458_v38  ;;  %v18661_v38 = vadd.f32 %v18496_v24, %v18482_v7  ;;  %v24071_v58 = vld [vmem:[#allocation33_spill] sm:$0xff]  ;;  %v24075_v24 = vld [vmem:[#allocation68_spill] sm:$0xff] }
 0x18c   :  { %v16267_v31 = vpop.f32.mrf.mxu0  ;;  %v16341_v11 = vpop.f32.mrf.mxu1  ;;  %v24074_v59 = vld [vmem:[#allocation41_spill] sm:$0xff] }
 0x18d   :  { %v1233_v61 = vadd.f32 %v16267_v31, %v18502_v43  ;;  %v18602_v48 = vadd.f32 %v16341_v11, %v1205_v45  ;;  %v738_v43 = vadd.f32 %v18323_v20, %v18257_v4  ;;  %v750_v31 = vadd.f32 %v18357_v1, %v18285_v25 }
 0x18e   :  { %v18604_v6 = vpop.f32.mrf.mxu0  ;;  %v18606_v10 = vpop.f32.mrf.mxu1  ;;  %v762_v11 = vadd.f32 %v18388_v53, %v18315_v44  ;;  %v774_v45 = vadd.f32 %v18423_v26, %v18346_v19  ;;  %v798_v4 = vadd.f32 %v18447_v29, %v18414_v50  ;;  %v810_v25 = vadd.f32 %v18454_v39, %v18437_v17  ;;  %v24068_v26 = vld [vmem:[#allocation59_spill] sm:$0xff] }
 0x18f   :  { %v822_v44 = vadd.f32 %v18460_v15, %v18445_v22  ;;  %v834_v20 = vadd.f32 %v18466_v18, %v18452_v60  ;;  %v1322_v53 = vadd.f32 %v18514_v46, %v1016_v5  ;;  %v18653_v60 = vadd.f32 %v18484_v0, %v18470_v42  ;;  %v24070_v42 = vld [vmem:[#allocation65_spill] sm:$0xff]  ;;  %v24073_v0 = vld [vmem:[#allocation67_spill] sm:$0xff] }
 0x190   :  { %v16344_v56 = vpop.f32.mrf.mxu1  ;;  %v16382_v40 = vpop.f32.mrf.mxu0  ;;  %v18657_v22 = vadd.f32 %v18490_v14, %v18476_v55  ;;  %v18665_v17 = vadd.f32 %v24068_v26, %v18488_v34  ;;  %v1346_v29 = vadd.f32 %v24069_v27, %v1037_v21  ;;  %v1030_v18 = vadd.f32 %v24070_v42, %v738_v43  ;;  %v24077_v5 = vld [vmem:[#allocation71_spill] sm:$0xff]  ;;  %v24079_v43 = vld [vmem:[#allocation73_spill] sm:$0xff] }
 0x191   :  { %v18608_v23 = vadd.f32 %v16344_v56, %v1219_v30  ;;  %v1695_v50 = vadd.f32 %v16382_v40, %v1330_v33  ;;  %v1051_v55 = vadd.f32 %v24072_v41, %v24071_v58  ;;  %v1044_v14 = vadd.f32 %v24073_v0, %v750_v31  ;;  %v24078_v33 = vld [vmem:[#allocation72_spill] sm:$0xff]  ;;  %v24081_v27 = vld [vmem:[#allocation75_spill] sm:$0xff] }
 0x192   :  { %v18610_v36 = vpop.f32.mrf.mxu1  ;;  %v1688_v32 = vpop.f32.mrf.mxu0  ;;  %v1065_v7 = vadd.f32 %v24075_v24, %v24074_v59  ;;  %v24082_v59 = vld [vmem:[#allocation76_spill] sm:$0xff] }
 0x193   :  { %v1689_v39 = vadd.f32 %v1688_v32, %v1322_v53  ;;  %v1338_v32 = vadd.f32 %v24077_v5, %v1030_v18  ;;  %v1362_v21 = vadd.f32 %v24078_v33, %v1051_v55  ;;  %v1072_v53 = vadd.f32 %v24079_v43, %v774_v45 }
 0x194   :  { %v16347_v56 = vpop.f32.mrf.mxu1  ;;  %v16385_v30 = vpop.f32.mrf.mxu0  ;;  %v1378_v42 = vadd.f32 %v24081_v27, %v1065_v7  ;;  %v1114_v7 = vadd.f32 %v18548_v54, %v810_v25  ;;  %v1142_v33 = vadd.f32 %v18562_v52, %v834_v20  ;;  %v1170_v52 = vadd.f32 %v18576_v51, %v18649_v49  ;;  %v24092_v49 = vld [vmem:[#allocation93_spill] sm:$0xff] }
 0x195   :  { %v18628_v63 = vadd.f32 %v16347_v56, %v1233_v61  ;;  %v24076_v61 = vld [vmem:[#allocation70_spill] sm:$0xff]  ;;  %v1707_v34 = vadd.f32 %v16385_v30, %v1346_v29  ;;  %v24083_v30 = vld [vmem:[#allocation77_spill] sm:$0xff] }
 0x196   :  { %v18638_v19 = vpop.f32.mrf.mxu1  ;;  %v1700_v1 = vpop.f32.mrf.mxu0  ;;  %v1058_v16 = vadd.f32 %v24076_v61, %v762_v11  ;;  %v1086_v11 = vadd.f32 %v24082_v59, %v786_v35 }
 0x198   :  { %v16388_v28 = vpop.f32.mrf.mxu0  ;;  %v16462_v2 = vpop.f32.mrf.mxu1  ;;  %v1370_v29 = vadd.f32 %v24083_v30, %v1058_v16 }
 0x199   :  { %v1968_v15 = vadd.f32 %v16462_v2, %v1695_v50  ;;  %v24080_v50 = vld [vmem:[#allocation74_spill] sm:$0xff]  ;;  %v1719_v24 = vadd.f32 %v16388_v28, %v1362_v21  ;;  %v24086_v28 = vld [vmem:[#allocation83_spill] sm:$0xff] }
 0x19a   :  { %v1712_v46 = vpop.f32.mrf.mxu0  ;;  %v1961_v40 = vpop.f32.mrf.mxu1  ;;  %v1354_v2 = vadd.f32 %v24080_v50, %v1044_v14 }
 0x19b   :  { %v2152_v62 = vsub.f32 0.0, %v1968_v15  ;;  %v1962_v56 = vadd.f32 %v1961_v40, %v1689_v39  ;;  %v1100_v39 = vadd.f32 %v18541_v37, %v798_v4  ;;  %v1701_v15 = vadd.f32 %v1700_v1, %v1338_v32  ;;  %v24084_v40 = vld [vmem:[#allocation79_spill] sm:$0xff] }
 0x19c   :  { %v16391_v26 = vpop.f32.mrf.mxu0  ;;  %v16465_v31 = vpop.f32.mrf.mxu1  ;;  %v1386_v61 = vadd.f32 %v24084_v40, %v1072_v53  ;;  %v1713_v16 = vadd.f32 %v1712_v46, %v1354_v2  ;;  %v1128_v1 = vadd.f32 %v18555_v3, %v822_v44  ;;  %v1156_v46 = vadd.f32 %v18569_v13, %v18642_v12  ;;  %v24088_v2 = vld [vmem:[#allocation87_spill] sm:$0xff]  ;;  %v24093_v40 = vld [vmem:[#allocation94_spill] sm:$0xff] }
 0x19d   :  { %v2185_v58 = vmul.f32 1.442695, %v2152_v62  ;;  %v2151_v41 = vsub.f32 0.0, %v1962_v56  ;;  %v1980_v0 = vadd.f32 %v16465_v31, %v1707_v34  ;;  %v24085_v62 = vld [vmem:[#allocation81_spill] sm:$0xff]  ;;  %v18690_v32 = vadd.f32 %v24086_v28, %v1100_v39  ;;  %v24090_v39 = vld [vmem:[#allocation78_spill] sm:$0xff] }
 0x19e   :  { %v1724_v18 = vpop.f32.mrf.mxu0  ;;  %v1973_v55 = vpop.f32.mrf.mxu1  ;;  %v18686_v56 = vadd.f32 %v24085_v62, %v1086_v11  ;;  %v1731_v25 = vadd.f32 %v16391_v26, %v1378_v42  ;;  %v24087_v31 = vld [vmem:[#allocation85_spill] sm:$0xff]  ;;  %v18699_v3 = vadd.f32 %v24088_v2, %v1128_v1  ;;  %v1184_v11 = vadd.f32 %v18583_v9, %v18653_v60  ;;  %v24094_v1 = vld [vmem:[#allocation80_spill] sm:$0xff] }
 0x19f   :  { %16998 = vpow2.f32 %v2185_v58  ;;  %v2183_v45 = vmul.f32 1.442695, %v2151_v41  ;;  %v2154_v14 = vsub.f32 0.0, %v1980_v0  ;;  %v1974_v34 = vadd.f32 %v1973_v55, %v1701_v15  ;;  %v24089_v0 = vld [vmem:[#allocation89_spill] sm:$0xff] }
 0x1a0   :  { %v16394_v35 = vpop.f32.mrf.mxu0  ;;  %v16468_v5 = vpop.f32.mrf.mxu1  ;;  %v18694_v27 = vadd.f32 %v24087_v31, %v1114_v7  ;;  %v18704_v59 = vadd.f32 %v24089_v0, %v1142_v33  ;;  %v1725_v30 = vadd.f32 %v1724_v18, %v1370_v29  ;;  %v18715_v7 = vadd.f32 %v24093_v40, %v1170_v52 }
 0x1a1   :  { %17000 = vpow2.f32 %v2183_v45  ;;  %v2189_v37 = vmul.f32 1.442695, %v2154_v14  ;;  %v1992_v4 = vadd.f32 %v16468_v5, %v1719_v24  ;;  %v2153_v21 = vsub.f32 0.0, %v1974_v34  ;;  %v24091_v45 = vld [vmem:[#allocation91_spill] sm:$0xff] }
 0x1a2   :  { %v1736_v43 = vpop.f32.mrf.mxu0  ;;  %v1985_v54 = vpop.f32.mrf.mxu1  ;;  %v1743_v15 = vadd.f32 %v16394_v35, %v24090_v39  ;;  %v18710_v51 = vadd.f32 %v24091_v45, %v1156_v46  ;;  %v1198_v14 = vadd.f32 %v24092_v49, %v18657_v22  ;;  %v1212_v35 = vadd.f32 %v18597_v8, %v18661_v38  ;;  %v24097_v46 = vld [vmem:[#allocation82_spill] sm:$0xff] }
 0x1a3   :  { %17002 = vpow2.f32 %v2189_v37  ;;  %v2156_v53 = vsub.f32 0.0, %v1992_v4  ;;  %v1986_v50 = vadd.f32 %v1985_v54, %v1713_v16  ;;  %v2187_v44 = vmul.f32 1.442695, %v2153_v21 }
 0x1a4   :  { %v16397_v58 = vpop.f32.mrf.mxu0  ;;  %v16471_v41 = vpop.f32.mrf.mxu1  ;;  %v1737_v29 = vadd.f32 %v1736_v43, %v1386_v61  ;;  %v18720_v5 = vadd.f32 %v18599_v57, %v1184_v11  ;;  %v1226_v16 = vadd.f32 %v18604_v6, %v18665_v17  ;;  %v18728_v43 = vadd.f32 %v18606_v10, %v1198_v14 }
 0x1a5   :  { %v2193_v20 = vmul.f32 1.442695, %v2156_v53  ;;  %v2155_v26 = vsub.f32 0.0, %v1986_v50  ;;  %v2004_v42 = vadd.f32 %v16471_v41, %v1731_v25  ;;  %17004 = vpow2.f32 %v2187_v44  ;;  %v24099_v41 = vld [vmem:[#allocation84_spill] sm:$0xff] }
 0x1a6   :  { %v1748_v13 = vpop.f32.mrf.mxu0  ;;  %v1997_v12 = vpop.f32.mrf.mxu1  ;;  %v1755_v28 = vadd.f32 %v16397_v58, %v24094_v1  ;;  %v18731_v8 = vadd.f32 %v18610_v36, %v1212_v35  ;;  %v18734_v57 = vadd.f32 %v18638_v19, %v1226_v16 }
 0x1a7   :  { %17006 = vpow2.f32 %v2193_v20  ;;  %v2191_v55 = vmul.f32 1.442695, %v2155_v26  ;;  %v2158_v24 = vsub.f32 0.0, %v2004_v42  ;;  %v1998_v62 = vadd.f32 %v1997_v12, %v1725_v30  ;;  %v24101_v12 = vld [vmem:[#allocation86_spill] sm:$0xff] }
 0x1a8   :  { %v16400_v9 = vpop.f32.mrf.mxu0  ;;  %v16474_v60 = vpop.f32.mrf.mxu1  ;;  %v1749_v54 = vadd.f32 %v1748_v13, %v18686_v56 }
 0x1a9   :  { %17008 = vpow2.f32 %v2191_v55  ;;  %v2197_v18 = vmul.f32 1.442695, %v2158_v24  ;;  %v2016_v34 = vadd.f32 %v16474_v60, %v1743_v15  ;;  %v2157_v22 = vsub.f32 0.0, %v1998_v62 }
 0x1aa   :  { %v1760_v37 = vpop.f32.mrf.mxu0  ;;  %v2009_v4 = vpop.f32.mrf.mxu1  ;;  %v1767_v10 = vadd.f32 %v16400_v9, %v24097_v46 }
 0x1ab   :  { %17010 = vpow2.f32 %v2197_v18  ;;  %v2160_v33 = vsub.f32 0.0, %v2016_v34  ;;  %v2010_v61 = vadd.f32 %v2009_v4, %v1737_v29  ;;  %v2195_v6 = vmul.f32 1.442695, %v2157_v22  ;;  %v24106_v4 = vld [vmem:[#allocation21_spill] sm:$0xff] }
 0x1ac   :  { %v18725_v21 = vpop.eup %16998  ;;  %v16403_v38 = vpop.f32.mrf.mxu0  ;;  %v1761_v2 = vadd.f32 %v1760_v37, %v18690_v32 }
 0x1ad   :  { %24095 = vst [vmem:[#allocation59_spill] sm:$0xff] %v18725_v21  ;;  %v16477_v17 = vpop.f32.mrf.mxu1  ;;  %v2201_v25 = vmul.f32 1.442695, %v2160_v33  ;;  %v2159_v53 = vsub.f32 0.0, %v2010_v61  ;;  %17012 = vpow2.f32 %v2195_v6  ;;  %v18742_v19 = vand.u32 4294901760, %v18725_v21  ;;  %v24108_v6 = vld [vmem:[#allocation35_spill] sm:$0xff] }
 0x1ae   :  { %v2028_v50 = vadd.f32 %v16477_v17, %v1755_v28  ;;  %v18737_v31 = vpop.eup %17000  ;;  %v1772_v36 = vpop.f32.mrf.mxu0  ;;  %v1779_v52 = vadd.f32 %v16403_v38, %v24099_v41  ;;  %v24107_v28 = vld [vmem:[#allocation88_spill] sm:$0xff] }
 0x1af   :  { %24096 = vst [vmem:[#allocation69_spill] sm:$0xff] %v18737_v31  ;;  %v2021_v44 = vpop.f32.mrf.mxu1  ;;  %24098 = vst [vmem:[#allocation65_spill] sm:$0xff] %v18742_v19  ;;  %17014 = vpow2.f32 %v2201_v25  ;;  %v2199_v58 = vmul.f32 1.442695, %v2159_v53  ;;  %v1773_v26 = vadd.f32 %v1772_v36, %v18694_v27  ;;  %v18749_v30 = vand.u32 4294901760, %v18737_v31  ;;  %v24111_v36 = vld [vmem:[#allocation45_spill] sm:$0xff] }
 0x1b0   :  { %v2162_v56 = vsub.f32 0.0, %v2028_v50  ;;  %v18745_v20 = vpop.eup %17002  ;;  %v2022_v42 = vadd.f32 %v2021_v44, %v1749_v54  ;;  %v16406_v0 = vpop.f32.mrf.mxu0  ;;  %v18753_v32 = vsub.f32 %v18725_v21, %v18742_v19 }
 0x1b1   :  { %24100 = vst [vmem:[#allocation33_spill] sm:$0xff] %v18745_v20  ;;  %v16480_v11 = vpop.f32.mrf.mxu1  ;;  %17016 = vpow2.f32 %v2199_v58  ;;  %v1791_v39 = vadd.f32 %v16406_v0, %v24101_v12  ;;  %16620 = vmatprep.mubr.f32.mxu1 %v18749_v30  ;;  %v18758_v45 = vand.u32 4294901760, %v18745_v20  ;;  %v18762_v49 = vsub.f32 %v18737_v31, %v18749_v30 }
 0x1b2   :  { %v2205_v13 = vmul.f32 1.442695, %v2162_v56  ;;  %v2040_v15 = vadd.f32 %v16480_v11, %v1767_v10  ;;  %v2161_v55 = vsub.f32 0.0, %v2022_v42  ;;  %v1784_v24 = vpop.f32.mrf.mxu0  ;;  %v23667_v14 = vand.u32 4294901760, %v18753_v32  ;;  %v18765_v40 = vpop.eup %17004  ;;  %16621 = vmatmul.mubr.f32.vlgmr.msra.gmra.mxu1 %v18742_v19  ;;  %v24114_v11 = vld [vmem:[#allocation90_spill] sm:$0xff] }
 0x1b3   :  { %v2033_v27 = vpop.f32.mrf.mxu1  ;;  %24102 = vst [vmem:[#allocation66_spill] sm:$0xff] %v18758_v45  ;;  %24103 = vst [vmem:[#allocation67_spill] sm:$0xff] %v18765_v40  ;;  %v1785_v9 = vadd.f32 %v1784_v24, %v18699_v3  ;;  %v18772_v16 = vand.u32 4294901760, %v18765_v40  ;;  %v23669_v22 = vand.u32 4294901760, %v18762_v49  ;;  %16749 = vmatpush3.msra.mxu1 %v24106_v4 }
 0x1b4   :  { %17018 = vpow2.f32 %v2205_v13  ;;  %v2164_v62 = vsub.f32 0.0, %v2040_v15  ;;  %v2034_v60 = vadd.f32 %v2033_v27, %v1761_v2  ;;  %v18769_v29 = vpop.eup %17006  ;;  %v2203_v18 = vmul.f32 1.442695, %v2161_v55  ;;  %v16409_v34 = vpop.f32.mrf.mxu0  ;;  %16750 = vmatprep.subr.mxu1 %v24108_v6  ;;  %v24115_v15 = vld [vmem:[#allocation31_spill] sm:$0xff] }
 0x1b5   :  { %24104 = vst [vmem:[#allocation41_spill] sm:$0xff] %v18769_v29  ;;  %v16483_v35 = vpop.f32.mrf.mxu1  ;;  %24105 = vst [vmem:[#allocation68_spill] sm:$0xff] %v18772_v16  ;;  %v2357_v37 = vsub.f32 %v18753_v32, %v23667_v14  ;;  %v1803_v33 = vadd.f32 %v16409_v34, %v24107_v28  ;;  %16623 = vmatprep.mubr.f32.mxu1 %v18772_v16  ;;  %v2347_v25 = vsub.f32 %v18762_v49, %v23669_v22 }
 0x1b6   :  { %v2209_v3 = vmul.f32 1.442695, %v2164_v62  ;;  %v2163_v1 = vsub.f32 0.0, %v2034_v60  ;;  %v2052_v61 = vadd.f32 %v16483_v35, %v1779_v52  ;;  %v18781_v38 = vpop.eup %17008  ;;  %17020 = vpow2.f32 %v2203_v18  ;;  %v1796_v17 = vpop.f32.mrf.mxu0  ;;  %16751 = vmatpush3.msra.mxu1 %v24108_v6 }
 0x1b7   :  { %24109 = vst [vmem:[#allocation70_spill] sm:$0xff] %v18781_v38  ;;  %v2045_v54 = vpop.f32.mrf.mxu1  ;;  %v2358_v53 = vand.u32 4294901760, %v2357_v37  ;;  %v18788_v50 = vand.u32 4294901760, %v18769_v29  ;;  %v18792_v2 = vadd.f32 %v1796_v17, %v18704_v59  ;;  %16624 = vmatmul.mubr.f32.gmra.mxu1 %v18758_v45  ;;  %16752 = vmatprep.subr.mxu1 %v24111_v36  ;;  %v2348_v56 = vand.u32 4294901760, %v2347_v25 }
 0x1b8   :  { %17022 = vpow2.f32 %v2209_v3  ;;  %v2207_v46 = vmul.f32 1.442695, %v2163_v1  ;;  %v2166_v10 = vsub.f32 0.0, %v2052_v61  ;;  %v18796_v44 = vpop.eup %17010  ;;  %v2046_v58 = vadd.f32 %v2045_v54, %v1773_v26  ;;  %v16412_v41 = vpop.f32.mrf.mxu0  ;;  %16753 = vmatpush3.msra.mxu1 %v24111_v36  ;;  %v24119_v1 = vld [vmem:[#allocation28_spill] sm:$0xff] }
 0x1b9   :  { %24110 = vst [vmem:[#allocation71_spill] sm:$0xff] %v18788_v50  ;;  %24112 = vst [vmem:[#allocation72_spill] sm:$0xff] %v18796_v44  ;;  %v16486_v52 = vpop.f32.mrf.mxu1  ;;  %v18799_v42 = vand.u32 4294901760, %v18781_v38  ;;  %v18803_v0 = vsub.f32 %v18765_v40, %v18772_v16  ;;  %v1815_v13 = vadd.f32 %v16412_v41, %v24114_v11  ;;  %16754 = vmatprep.subr.mxu1 %v24115_v15  ;;  %16540 = vmatprep.mubr.f32.mxu0 %v2348_v56  ;;  %v24123_v41 = vld [vmem:[#allocation14_spill] sm:$0xff] }
 0x1ba   :  { %17024 = vpow2.f32 %v2207_v46  ;;  %v2213_v59 = vmul.f32 1.442695, %v2166_v10  ;;  %v2064_v12 = vadd.f32 %v16486_v52, %v1791_v39  ;;  %v2165_v26 = vsub.f32 0.0, %v2046_v58  ;;  %v1808_v55 = vpop.f32.mrf.mxu0  ;;  %v18817_v18 = vpop.eup %17012  ;;  %16541 = vmatmul.mubr.f32.vlgmr.msra.gmra.mxu0 %v2358_v53  ;;  %16755 = vmatpush3.msra.mxu1 %v24115_v15  ;;  %v24121_v53 = vld [vmem:[#allocation92_spill] sm:$0xff] }
 0x1bb   :  { %24113 = vst [vmem:[#allocation73_spill] sm:$0xff] %v18799_v42  ;;  %16626 = vmatprep.mubr.f32.mxu1 %v18799_v42  ;;  %v2057_v24 = vpop.f32.mrf.mxu1  ;;  %v23666_v27 = vand.u32 4294901760, %v18803_v0  ;;  %v18812_v62 = vsub.f32 %v18745_v20, %v18758_v45  ;;  %v18815_v60 = vand.u32 4294901760, %v18796_v44  ;;  %24117 = vst [vmem:[#allocation75_spill] sm:$0xff] %v18817_v18  ;;  %v1809_v34 = vadd.f32 %v1808_v55, %v18710_v51  ;;  %v24122_v58 = vld [vmem:[#allocation40_spill] sm:$0xff] }
 0x1bc   :  { %17026 = vpow2.f32 %v2213_v59  ;;  %v2168_v39 = vsub.f32 0.0, %v2064_v12  ;;  %v2058_v35 = vadd.f32 %v2057_v24, %v1785_v9  ;;  %16627 = vmatmul.mubr.f32.gmra.mxu1 %v18788_v50  ;;  %v18821_v37 = vpop.eup %17014  ;;  %v2211_v3 = vmul.f32 1.442695, %v2165_v26  ;;  %16669 = vmatpush3.msra.mxu0 %v24119_v1  ;;  %v16415_v28 = vpop.f32.mrf.mxu0 }
 0x1bd   :  { %24116 = vst [vmem:[#allocation74_spill] sm:$0xff] %v18815_v60  ;;  %24118 = vst [vmem:[#allocation76_spill] sm:$0xff] %v18821_v37  ;;  %v16489_v61 = vpop.f32.mrf.mxu1  ;;  %v2367_v17 = vsub.f32 %v18803_v0, %v23666_v27  ;;  %v18828_v54 = vand.u32 4294901760, %v18817_v18  ;;  %v23664_v51 = vand.u32 4294901760, %v18812_v62  ;;  %v1827_v46 = vadd.f32 %v16415_v28, %v24121_v53  ;;  %16670 = vmatprep.subr.mxu0 %v24122_v58 }
 0x1be   :  { %v2217_v9 = vmul.f32 1.442695, %v2168_v39  ;;  %v2167_v25 = vsub.f32 0.0, %v2058_v35  ;;  %v2076_v10 = vadd.f32 %v16489_v61, %v1803_v33  ;;  %16756 = vmatprep.subr.mxu1 %v24123_v41  ;;  %v18835_v52 = vpop.eup %17016  ;;  %17028 = vpow2.f32 %v2211_v3  ;;  %v1820_v59 = vpop.f32.mrf.mxu0  ;;  %16671 = vmatpush3.msra.mxu0 %v24122_v58  ;;  %v24125_v39 = vld [vmem:[#allocation34_spill] sm:$0xff] }
 0x1bf   :  { %24120 = vst [vmem:[#allocation77_spill] sm:$0xff] %v18828_v54  ;;  %24124 = vst [vmem:[#allocation79_spill] sm:$0xff] %v18835_v52  ;;  %v2368_v56 = vand.u32 4294901760, %v2367_v17  ;;  %16629 = vmatprep.mubr.f32.mxu1 %v18828_v54  ;;  %v2069_v11 = vpop.f32.mrf.mxu1  ;;  %v2377_v12 = vsub.f32 %v18812_v62, %v23664_v51  ;;  %v18844_v33 = vsub.f32 %v18781_v38, %v18799_v42  ;;  %16672 = vmatprep.subr.mxu0 %v24125_v39  ;;  %v24148_v38 = vld [vmem:[#allocation23_spill] sm:$0xff] }
 0x1c0   :  { %17030 = vpow2.f32 %v2217_v9  ;;  %v2215_v26 = vmul.f32 1.442695, %v2167_v25  ;;  %v2170_v55 = vsub.f32 0.0, %v2076_v10  ;;  %v18847_v24 = vadd.f32 %v1820_v59, %v18715_v7  ;;  %16630 = vmatmul.mubr.f32.gmra.mxu1 %v18815_v60  ;;  %v16418_v28 = vpop.f32.mrf.mxu0  ;;  %16673 = vmatpush3.msra.mxu0 %v24125_v39  ;;  %v24128_v10 = vld [vmem:[#allocation42_spill] sm:$0xff]  ;;  %v24131_v39 = vld [vmem:[#allocation15_spill] sm:$0xff] }
 0x1c1   :  { %v18851_v35 = vpop.eup %17018  ;;  %16543 = vmatprep.mubr.f32.mxu0 %v2368_v56  ;;  %v2070_v3 = vadd.f32 %v2069_v11, %v18792_v2  ;;  %v2378_v1 = vand.u32 4294901760, %v2377_v12  ;;  %v16492_v61 = vpop.f32.mrf.mxu1  ;;  %v23663_v17 = vand.u32 4294901760, %v18844_v33  ;;  %v18856_v9 = vand.u32 4294901760, %v18835_v52  ;;  %16674 = vmatprep.subr.mxu0 %v24128_v10 }
 0x1c2   :  { %24126 = vst [vmem:[#allocation81_spill] sm:$0xff] %v18851_v35  ;;  %17032 = vpow2.f32 %v2215_v26  ;;  %v2221_v7 = vmul.f32 1.442695, %v2170_v55  ;;  %v18860_v25 = vadd.f32 %v16418_v28, %v18595_v47  ;;  %v2088_v53 = vadd.f32 %v16492_v61, %v1815_v13  ;;  %16757 = vmatpush3.msra.mxu1 %v24123_v41  ;;  %v1832_v56 = vpop.f32.mrf.mxu0  ;;  %16675 = vmatpush3.msra.mxu0 %v24128_v10 }
 0x1c3   :  { %24127 = vst [vmem:[#allocation83_spill] sm:$0xff] %v18856_v9  ;;  %v2169_v2 = vsub.f32 0.0, %v2070_v3  ;;  %16544 = vmatmul.mubr.f32.gmra.mxu0 %v2378_v1  ;;  %v2387_v58 = vsub.f32 %v18844_v33, %v23663_v17  ;;  %16632 = vmatprep.mubr.f32.mxu1 %v18856_v9  ;;  %v2081_v59 = vpop.f32.mrf.mxu1  ;;  %v18870_v11 = vsub.f32 %v18769_v29, %v18788_v50  ;;  %v18873_v47 = vand.u32 4294901760, %v18821_v37  ;;  %v18875_v13 = vpop.eup %17020  ;;  %v24145_v29 = vld [vmem:[#allocation18_spill] sm:$0xff] }
 0x1c4   :  { %24130 = vst [vmem:[#allocation87_spill] sm:$0xff] %v18875_v13  ;;  %17034 = vpow2.f32 %v2221_v7  ;;  %v2172_v12 = vsub.f32 0.0, %v2088_v53  ;;  %v18878_v26 = vadd.f32 %v1832_v56, %v18720_v5  ;;  %v2082_v55 = vadd.f32 %v2081_v59, %v1809_v34  ;;  %16758 = vmatprep.subr.mxu1 %v24131_v39  ;;  %v16421_v17 = vpop.f32.mrf.mxu0  ;;  %v24133_v5 = vld [vmem:[#allocation43_spill] sm:$0xff] }
 0x1c5   :  { %24129 = vst [vmem:[#allocation85_spill] sm:$0xff] %v18873_v47  ;;  %v18882_v3 = vpop.eup %17022  ;;  %v2219_v1 = vmul.f32 1.442695, %v2169_v2  ;;  %v2388_v28 = vand.u32 4294901760, %v2387_v58  ;;  %v23665_v61 = vand.u32 4294901760, %v18870_v11  ;;  %16633 = vmatmul.mubr.f32.gmra.mxu1 %v18873_v47  ;;  %v16495_v51 = vpop.f32.mrf.mxu1  ;;  %v18888_v7 = vsub.f32 %v18817_v18, %v18828_v54  ;;  %16676 = vmatprep.subr.mxu0 %v24133_v5  ;;  %v24191_v54 = vld [vmem:[#allocation54_spill] sm:$0xff] }
 0x1c6   :  { %24132 = vst [vmem:[#allocation89_spill] sm:$0xff] %v18882_v3  ;;  %v2225_v34 = vmul.f32 1.442695, %v2172_v12  ;;  %v2171_v53 = vsub.f32 0.0, %v2082_v55  ;;  %v18892_v10 = vadd.f32 %v16421_v17, %v18602_v48  ;;  %v2100_v56 = vadd.f32 %v16495_v51, %v1827_v46  ;;  %16677 = vmatpush3.msra.mxu0 %v24133_v5  ;;  %16759 = vmatpush3.msra.mxu1 %v24131_v39  ;;  %v1844_v48 = vpop.f32.mrf.mxu0  ;;  %v24136_v51 = vld [vmem:[#allocation52_spill] sm:$0xff] }
 0x1c7   :  { %v18896_v2 = vpop.eup %17024  ;;  %17036 = vpow2.f32 %v2219_v1  ;;  %16546 = vmatprep.mubr.f32.mxu0 %v2388_v28  ;;  %v2397_v58 = vsub.f32 %v18870_v11, %v23665_v61  ;;  %v23668_v59 = vand.u32 4294901760, %v18888_v7  ;;  %v18903_v12 = vand.u32 4294901760, %v18875_v13  ;;  %v2093_v17 = vpop.f32.mrf.mxu1  ;;  %16678 = vmatprep.subr.mxu0 %v24136_v51  ;;  %v24137_v1 = vld [vmem:[#allocation16_spill] sm:$0xff] }
 0x1c8   :  { %24134 = vst [vmem:[#allocation78_spill] sm:$0xff] %v18896_v2  ;;  %17038 = vpow2.f32 %v2225_v34  ;;  %v2223_v46 = vmul.f32 1.442695, %v2171_v53  ;;  %v2174_v55 = vsub.f32 0.0, %v2100_v56  ;;  %v18907_v5 = vadd.f32 %v1844_v48, %v18728_v43  ;;  %16679 = vmatpush3.msra.mxu0 %v24136_v51  ;;  %16760 = vmatprep.subr.mxu1 %v24137_v1  ;;  %v16424_v43 = vpop.f32.mrf.mxu0  ;;  %v24139_v48 = vld [vmem:[#allocation17_spill] sm:$0xff] }
 0x1c9   :  { %24135 = vst [vmem:[#allocation91_spill] sm:$0xff] %v18903_v12  ;;  %v18911_v28 = vpop.eup %17026  ;;  %v2398_v61 = vand.u32 4294901760, %v2397_v58  ;;  %v2407_v27 = vsub.f32 %v18888_v7, %v23668_v59  ;;  %16635 = vmatprep.mubr.f32.mxu1 %v18903_v12  ;;  %v2094_v34 = vadd.f32 %v2093_v17, %v18847_v24  ;;  %v18920_v53 = vsub.f32 %v18796_v44, %v18815_v60  ;;  %v16498_v56 = vpop.f32.mrf.mxu1 }
 0x1ca   :  { %24138 = vst [vmem:[#allocation93_spill] sm:$0xff] %v18911_v28  ;;  %16680 = vmatprep.subr.mxu0 %v24139_v48  ;;  %17040 = vpow2.f32 %v2223_v46  ;;  %v2229_v51 = vmul.f32 1.442695, %v2174_v55  ;;  %v18924_v58 = vand.u32 4294901760, %v18851_v35  ;;  %v18927_v14 = vadd.f32 %v16424_v43, %v18608_v23  ;;  %16761 = vmatpush3.msra.mxu1 %v24137_v1  ;;  %v1856_v44 = vpop.f32.mrf.mxu0  ;;  %v24141_v55 = vld [vmem:[#allocation19_spill] sm:$0xff] }
 0x1cb   :  { %16681 = vmatpush3.msra.mxu0 %v24139_v48  ;;  %v2408_v24 = vand.u32 4294901760, %v2407_v27  ;;  %v2173_v17 = vsub.f32 0.0, %v2094_v34  ;;  %v23678_v59 = vand.u32 4294901760, %v18920_v53  ;;  %v2112_v22 = vadd.f32 %v16498_v56, %v18860_v25  ;;  %v2105_v46 = vpop.f32.mrf.mxu1  ;;  %v18934_v18 = vpop.eup %17028  ;;  %16762 = vmatprep.subr.mxu1 %v24145_v29 }
 0x1cc   :  { %24140 = vst [vmem:[#allocation94_spill] sm:$0xff] %v18924_v58  ;;  %16547 = vmatmul.mubr.f32.gmra.mxu0 %v2398_v61  ;;  %16682 = vmatprep.subr.mxu0 %v24141_v55  ;;  %24142 = vst [vmem:[#allocation80_spill] sm:$0xff] %v18934_v18  ;;  %17042 = vpow2.f32 %v2229_v51  ;;  %v18939_v23 = vsub.f32 %v18835_v52, %v18856_v9  ;;  %v18942_v27 = vand.u32 4294901760, %v18896_v2  ;;  %v16427_v51 = vpop.f32.mrf.mxu0 }
 0x1cd   :  { %16636 = vmatmul.mubr.f32.gmra.mxu1 %v18924_v58  ;;  %v18945_v61 = vadd.f32 %v1856_v44, %v18731_v8  ;;  %16683 = vmatpush3.msra.mxu0 %v24141_v55  ;;  %v18948_v25 = vpop.eup %17030  ;;  %v2227_v34 = vmul.f32 1.442695, %v2173_v17  ;;  %v2417_v43 = vsub.f32 %v18920_v53, %v23678_v59  ;;  %v2176_v56 = vsub.f32 0.0, %v2112_v22  ;;  %v16501_v52 = vpop.f32.mrf.mxu1 }
 0x1ce   :  { %24143 = vst [vmem:[#allocation82_spill] sm:$0xff] %v18942_v27  ;;  %24144 = vst [vmem:[#allocation84_spill] sm:$0xff] %v18948_v25  ;;  %16549 = vmatprep.mubr.f32.mxu0 %v2408_v24  ;;  %v2106_v48 = vadd.f32 %v2105_v46, %v18878_v26  ;;  %16638 = vmatprep.mubr.f32.mxu1 %v18942_v27  ;;  %v18959_v44 = vsub.f32 %v18821_v37, %v18873_v47  ;;  %v18962_v24 = vand.u32 4294901760, %v18882_v3  ;;  %v1868_v59 = vpop.f32.mrf.mxu0  ;;  %v24149_v37 = vld [vmem:[#allocation20_spill] sm:$0xff] }
 0x1cf   :  { %v18965_v17 = vadd.f32 %v16427_v51, %v18628_v63  ;;  %16763 = vmatpush3.msra.mxu1 %v24145_v29  ;;  %v18968_v22 = vpop.eup %17032  ;;  %17044 = vpow2.f32 %v2227_v34  ;;  %v2418_v26 = vand.u32 4294901760, %v2417_v43  ;;  %v2233_v46 = vmul.f32 1.442695, %v2176_v56  ;;  %v2117_v8 = vpop.f32.mrf.mxu1  ;;  %16684 = vmatprep.subr.mxu0 %v24148_v38 }
 0x1d0   :  { %24146 = vst [vmem:[#allocation86_spill] sm:$0xff] %v18962_v24  ;;  %24147 = vst [vmem:[#allocation21_spill] sm:$0xff] %v18968_v22  ;;  %v2175_v55 = vsub.f32 0.0, %v2106_v48  ;;  %16764 = vmatprep.subr.mxu1 %v24149_v37  ;;  %v24150_v40 = vand.u32 4294901760, %v18939_v23  ;;  %v2124_v51 = vadd.f32 %v16501_v52, %v18892_v10  ;;  %v18980_v34 = vsub.f32 %v18875_v13, %v18903_v12 }
 0x1d1   :  { %16639 = vmatmul.mubr.f32.gmra.mxu1 %v18962_v24  ;;  %16685 = vmatpush3.msra.mxu0 %v24148_v38  ;;  %v18983_v43 = vpop.eup %17034  ;;  %17046 = vpow2.f32 %v2233_v46  ;;  %v18986_v48 = vand.u32 4294901760, %v18934_v18  ;;  %v16504_v63 = vpop.f32.mrf.mxu1  ;;  %v24153_v10 = vand.u32 4294901760, %v18959_v44  ;;  %v24155_v46 = vld [vmem:[#allocation62_spill] sm:$0xff] }
 0x1d2   :  { %v2427_v20 = vsub.f32 %v18939_v23, %v24150_v40  ;;  %24151 = vst [vmem:[#allocation88_spill] sm:$0xff] %v18983_v43  ;;  %16550 = vmatmul.mubr.f32.gmra.mxu0 %v2418_v26  ;;  %v2231_v56 = vmul.f32 1.442695, %v2175_v55  ;;  %v18989_v40 = vadd.f32 %v1868_v59, %v18734_v57  ;;  %16765 = vmatpush3.msra.mxu1 %v24149_v37  ;;  %v2178_v38 = vsub.f32 0.0, %v2124_v51  ;;  %v24154_v26 = vld [vmem:[#allocation63_spill] sm:$0xff] }
 0x1d3   :  { %24152 = vst [vmem:[#allocation35_spill] sm:$0xff] %v18986_v48  ;;  %v2437_v13 = vsub.f32 %v18959_v44, %v24153_v10  ;;  %16686 = vmatprep.subr.mxu0 %v24154_v26  ;;  %16766 = vmatprep.subr.mxu1 %v24155_v46  ;;  %v2118_v57 = vadd.f32 %v2117_v8, %v18907_v5  ;;  %v2129_v55 = vpop.f32.mrf.mxu1 }
 0x1d4   :  { %v2428_v52 = vand.u32 4294901760, %v2427_v20  ;;  %17048 = vpow2.f32 %v2231_v56  ;;  %16641 = vmatprep.mubr.f32.mxu1 %v18986_v48  ;;  %v19002_v59 = vsub.f32 %v18851_v35, %v18924_v58  ;;  %v19005_v20 = vand.u32 4294901760, %v18911_v28  ;;  %16687 = vmatpush3.msra.mxu0 %v24154_v26  ;;  %v19008_v51 = vpop.eup %17036  ;;  %v24161_v26 = vld [vmem:[#allocation27_spill] sm:$0xff] }
 0x1d5   :  { %24157 = vst [vmem:[#allocation90_spill] sm:$0xff] %v19008_v51  ;;  %v2438_v10 = vand.u32 4294901760, %v2437_v13  ;;  %v2237_v31 = vmul.f32 1.442695, %v2178_v38  ;;  %v24158_v56 = vand.u32 4294901760, %v18980_v34  ;;  %v2136_v5 = vadd.f32 %v16504_v63, %v18927_v14  ;;  %16767 = vmatpush3.msra.mxu1 %v24155_v46  ;;  %v19015_v8 = vpop.eup %17038  ;;  %v16507_v38 = vpop.f32.mrf.mxu1  ;;  %16688 = vmatprep.subr.mxu0 %v24161_v26 }
 0x1d6   :  { %24156 = vst [vmem:[#allocation45_spill] sm:$0xff] %v19005_v20  ;;  %16552 = vmatprep.mubr.f32.mxu0 %v2428_v52  ;;  %24159 = vst [vmem:[#allocation31_spill] sm:$0xff] %v19015_v8  ;;  %v2177_v35 = vsub.f32 0.0, %v2118_v57  ;;  %16642 = vmatmul.mubr.f32.gmra.mxu1 %v19005_v20  ;;  %v19021_v52 = vsub.f32 %v18896_v2, %v18942_v27  ;;  %v19024_v13 = vand.u32 4294901760, %v18968_v22  ;;  %v24164_v2 = vand.u32 4294901760, %v19002_v59 }
 0x1d7   :  { %v2447_v21 = vsub.f32 %v18980_v34, %v24158_v56  ;;  %16553 = vmatmul.mubr.f32.gmra.mxu0 %v2438_v10  ;;  %17050 = vpow2.f32 %v2237_v31  ;;  %v2180_v63 = vsub.f32 0.0, %v2136_v5  ;;  %v2130_v57 = vadd.f32 %v2129_v55, %v18945_v61  ;;  %v24162_v56 = vld [vmem:[#allocation26_spill] sm:$0xff]  ;;  %v19029_v58 = vpop.eup %17040  ;;  %v2141_v10 = vpop.f32.mrf.mxu1 }
 0x1d8   :  { %24160 = vst [vmem:[#allocation28_spill] sm:$0xff] %v19024_v13  ;;  %16768 = vmatprep.subr.mxu1 %v24162_v56  ;;  %24163 = vst [vmem:[#allocation92_spill] sm:$0xff] %v19029_v58  ;;  %v2235_v12 = vmul.f32 1.442695, %v2177_v35  ;;  %v2457_v27 = vsub.f32 %v19002_v59, %v24164_v2  ;;  %v23707_v47 = vand.u32 4294901760, %v19021_v52  ;;  %16644 = vmatprep.mubr.f32.mxu1 %v19024_v13  ;;  %v19042_v55 = vand.u32 4294901760, %v18948_v25 }
 0x1d9   :  { %v2448_v14 = vand.u32 4294901760, %v2447_v21  ;;  %v19038_v31 = vsub.f32 %v18882_v3, %v18962_v24  ;;  %16689 = vmatpush3.msra.mxu0 %v24161_v26  ;;  %v2241_v21 = vmul.f32 1.442695, %v2180_v63  ;;  %v2179_v61 = vsub.f32 0.0, %v2130_v57  ;;  %16769 = vmatpush3.msra.mxu1 %v24162_v56  ;;  %v19046_v2 = vpop.eup %17042  ;;  %v24168_v63 = vld [vmem:[#allocation29_spill] sm:$0xff] }
 0x1da   :  { %24165 = vst [vmem:[#allocation40_spill] sm:$0xff] %v19042_v55  ;;  %v2148_v35 = vadd.f32 %v16507_v38, %v18965_v17  ;;  %24166 = vst [vmem:[#allocation14_spill] sm:$0xff] %v19046_v2  ;;  %17052 = vpow2.f32 %v2235_v12  ;;  %v2458_v5 = vand.u32 4294901760, %v2457_v27  ;;  %v2467_v3 = vsub.f32 %v19021_v52, %v23707_v47  ;;  %16770 = vmatprep.subr.mxu1 %v24168_v63 }
 0x1db   :  { %16555 = vmatprep.mubr.f32.mxu0 %v2448_v14  ;;  %v23710_v26 = vand.u32 4294901760, %v19038_v31  ;;  %v24167_v14 = vld [vmem:[#allocation44_spill] sm:$0xff]  ;;  %17054 = vpow2.f32 %v2241_v21  ;;  %v2239_v57 = vmul.f32 1.442695, %v2179_v61  ;;  %16645 = vmatmul.mubr.f32.gmra.mxu1 %v19042_v55  ;;  %v19057_v38 = vsub.f32 %v18934_v18, %v18986_v48 }
 0x1dc   :  { %16690 = vmatprep.subr.mxu0 %v24167_v14  ;;  %v2182_v17 = vsub.f32 0.0, %v2148_v35  ;;  %16556 = vmatmul.mubr.f32.gmra.mxu0 %v2458_v5  ;;  %v2468_v12 = vand.u32 4294901760, %v2467_v3  ;;  %v19064_v47 = vand.u32 4294901760, %v19008_v51  ;;  %v2142_v21 = vadd.f32 %v2141_v10, %v18989_v40  ;;  %v19068_v61 = vpop.eup %17044  ;;  %v24171_v5 = vld [vmem:[#allocation32_spill] sm:$0xff] }
 0x1dd   :  { %16691 = vmatpush3.msra.mxu0 %v24167_v14  ;;  %v2477_v27 = vsub.f32 %v19038_v31, %v23710_v26  ;;  %16771 = vmatpush3.msra.mxu1 %v24168_v63  ;;  %24170 = vst [vmem:[#allocation42_spill] sm:$0xff] %v19068_v61  ;;  %17056 = vpow2.f32 %v2239_v57  ;;  %v23715_v18 = vand.u32 4294901760, %v19057_v38  ;;  %v19073_v3 = vsub.f32 %v18911_v28, %v19005_v20  ;;  %v24172_v14 = vld [vmem:[#allocation48_spill] sm:$0xff] }
 0x1de   :  { %24169 = vst [vmem:[#allocation34_spill] sm:$0xff] %v19064_v47  ;;  %v2245_v35 = vmul.f32 1.442695, %v2182_v17  ;;  %16692 = vmatprep.subr.mxu0 %v24171_v5  ;;  %16772 = vmatprep.subr.mxu1 %v24172_v14  ;;  %v2181_v40 = vsub.f32 0.0, %v2142_v21  ;;  %v19079_v10 = vand.u32 4294901760, %v18983_v43  ;;  %v19083_v57 = vsub.f32 %v18968_v22, %v19024_v13  ;;  %v19085_v17 = vpop.eup %17046  ;;  %v24180_v22 = vld [vmem:[#allocation39_spill] sm:$0xff] }
 0x1df   :  { %16558 = vmatprep.mubr.f32.mxu0 %v2468_v12  ;;  %v2478_v26 = vand.u32 4294901760, %v2477_v27  ;;  %16647 = vmatprep.mubr.f32.mxu1 %v19064_v47  ;;  %24174 = vst [vmem:[#allocation43_spill] sm:$0xff] %v19085_v17  ;;  %v2487_v28 = vsub.f32 %v19057_v38, %v23715_v18  ;;  %v19092_v27 = vand.u32 4294901760, %v19029_v58  ;;  %v19103_v18 = vand.u32 4294901760, %v19015_v8 }
 0x1e0   :  { %24173 = vst [vmem:[#allocation15_spill] sm:$0xff] %v19079_v10  ;;  %17058 = vpow2.f32 %v2245_v35  ;;  %16693 = vmatpush3.msra.mxu0 %v24171_v5  ;;  %16773 = vmatpush3.msra.mxu1 %v24172_v14  ;;  %v2243_v21 = vmul.f32 1.442695, %v2181_v40  ;;  %v19100_v35 = vsub.f32 %v18948_v25, %v19042_v55  ;;  %v24178_v5 = vand.u32 4294901760, %v19073_v3  ;;  %v24184_v55 = vld [vmem:[#allocation46_spill] sm:$0xff] }
 0x1e1   :  { %24175 = vst [vmem:[#allocation52_spill] sm:$0xff] %v19092_v27  ;;  %16559 = vmatmul.mubr.f32.gmra.mxu0 %v2478_v26  ;;  %16648 = vmatmul.mubr.f32.gmra.mxu1 %v19079_v10  ;;  %24176 = vst [vmem:[#allocation16_spill] sm:$0xff] %v19103_v18  ;;  %v19105_v12 = vpop.eup %17048  ;;  %v2488_v13 = vand.u32 4294901760, %v2487_v28  ;;  %v19113_v26 = vsub.f32 %v19008_v51, %v19064_v47  ;;  %v19116_v40 = vand.u32 4294901760, %v19068_v61  ;;  %v24181_v25 = vand.u32 4294901760, %v19083_v57  ;;  %v24182_v51 = vld [vmem:[#allocation50_spill] sm:$0xff] }
 0x1e2   :  { %24177 = vst [vmem:[#allocation17_spill] sm:$0xff] %v19105_v12  ;;  %v2497_v20 = vsub.f32 %v19073_v3, %v24178_v5  ;;  %16650 = vmatprep.mubr.f32.mxu1 %v19092_v27  ;;  %16774 = vmatprep.subr.mxu1 %v24180_v22  ;;  %17060 = vpow2.f32 %v2243_v21  ;;  %v19125_v5 = vsub.f32 %v18983_v43, %v19079_v10  ;;  %v19131_v21 = vand.u32 4294901760, %v19046_v2 }
 0x1e3   :  { %24179 = vst [vmem:[#allocation19_spill] sm:$0xff] %v19116_v40  ;;  %v2507_v28 = vsub.f32 %v19083_v57, %v24181_v25  ;;  %16775 = vmatpush3.msra.mxu1 %v24180_v22  ;;  %16694 = vmatprep.subr.mxu0 %v24182_v51  ;;  %v23740_v48 = vand.u32 4294901760, %v19113_v26  ;;  %v19135_v25 = vsub.f32 %v19029_v58, %v19092_v27  ;;  %v24186_v10 = vand.u32 4294901760, %v19100_v35 }
 0x1e4   :  { %16561 = vmatprep.mubr.f32.mxu0 %v2488_v13  ;;  %v2498_v47 = vand.u32 4294901760, %v2497_v20  ;;  %24183 = vst [vmem:[#allocation18_spill] sm:$0xff] %v19131_v21  ;;  %16776 = vmatprep.subr.mxu1 %v24184_v55  ;;  %v19138_v24 = vpop.eup %17050  ;;  %v23747_v20 = vand.u32 4294901760, %v19125_v5  ;;  %v19170_v58 = vsub.f32 %v19046_v2, %v19131_v21 }
 0x1e5   :  { %24185 = vst [vmem:[#allocation23_spill] sm:$0xff] %v19138_v24  ;;  %v2508_v43 = vand.u32 4294901760, %v2507_v28  ;;  %v2517_v9 = vsub.f32 %v19100_v35, %v24186_v10  ;;  %16651 = vmatmul.mubr.f32.gmra.mxu1 %v19103_v18  ;;  %16695 = vmatpush3.msra.mxu0 %v24182_v51  ;;  %v2527_v13 = vsub.f32 %v19113_v26, %v23740_v48  ;;  %v19152_v28 = vand.u32 4294901760, %v19105_v12 }
 0x1e6   :  { %16562 = vmatmul.mubr.f32.gmra.mxu0 %v2498_v47  ;;  %16653 = vmatprep.mubr.f32.mxu1 %v19116_v40  ;;  %v19156_v10 = vsub.f32 %v19015_v8, %v19103_v18  ;;  %v2537_v47 = vsub.f32 %v19125_v5, %v23747_v20  ;;  %v19162_v51 = vand.u32 4294901760, %v19085_v17  ;;  %v19166_v48 = vsub.f32 %v19068_v61, %v19116_v40  ;;  %v24192_v61 = vld [vmem:[#allocation51_spill] sm:$0xff] }
 0x1e7   :  { %24187 = vst [vmem:[#allocation20_spill] sm:$0xff] %v19152_v28  ;;  %16564 = vmatprep.mubr.f32.mxu0 %v2508_v43  ;;  %16777 = vmatpush3.msra.mxu1 %v24184_v55  ;;  %v19173_v8 = vpop.eup %17052  ;;  %v2518_v43 = vand.u32 4294901760, %v2517_v9  ;;  %v2528_v18 = vand.u32 4294901760, %v2527_v13  ;;  %v24190_v27 = vand.u32 4294901760, %v19135_v25  ;;  %v19196_v13 = vsub.f32 %v19105_v12, %v19152_v28 }
 0x1e8   :  { %24188 = vst [vmem:[#allocation63_spill] sm:$0xff] %v19162_v51  ;;  %24189 = vst [vmem:[#allocation62_spill] sm:$0xff] %v19173_v8  ;;  %16778 = vmatprep.subr.mxu1 %v24191_v54  ;;  %16696 = vmatprep.subr.mxu0 %v24192_v61  ;;  %v19181_v40 = vpop.eup %17054  ;;  %v19186_v50 = vand.u32 4294901760, %v19173_v8  ;;  %v2538_v2 = vand.u32 4294901760, %v2537_v47  ;;  %v24197_v42 = vand.u32 4294901760, %v19166_v48  ;;  %v24198_v9 = vand.u32 4294901760, %v19156_v10 }
 0x1e9   :  { %v2547_v20 = vsub.f32 %v19135_v25, %v24190_v27  ;;  %24193 = vst [vmem:[#allocation27_spill] sm:$0xff] %v19181_v40  ;;  %16654 = vmatmul.mubr.f32.gmra.mxu1 %v19131_v21  ;;  %16697 = vmatpush3.msra.mxu0 %v24192_v61  ;;  %v19192_v27 = vand.u32 4294901760, %v19138_v24 }
 0x1ea   :  { %24194 = vst [vmem:[#allocation26_spill] sm:$0xff] %v19186_v50  ;;  %16565 = vmatmul.mubr.f32.gmra.mxu0 %v2518_v43  ;;  %16656 = vmatprep.mubr.f32.mxu1 %v19152_v28  ;;  %v19198_v60 = vpop.eup %17056  ;;  %v2567_v61 = vsub.f32 %v19166_v48, %v24197_v42  ;;  %v19205_v43 = vsub.f32 %v19173_v8, %v19186_v50  ;;  %v24200_v42 = vld [vmem:[#allocation57_spill] sm:$0xff] }
 0x1eb   :  { %24195 = vst [vmem:[#allocation44_spill] sm:$0xff] %v19192_v27  ;;  %24196 = vst [vmem:[#allocation29_spill] sm:$0xff] %v19198_v60  ;;  %16567 = vmatprep.mubr.f32.mxu0 %v2528_v18  ;;  %v2548_v21 = vand.u32 4294901760, %v2547_v20  ;;  %16779 = vmatpush3.msra.mxu1 %v24191_v54  ;;  %v2557_v12 = vsub.f32 %v19156_v10, %v24198_v9  ;;  %v19213_v18 = vand.u32 4294901760, %v19198_v60  ;;  %v24202_v9 = vand.u32 4294901760, %v19170_v58 }
 0x1ec   :  { %v19217_v20 = vsub.f32 %v19085_v17, %v19162_v51  ;;  %16698 = vmatprep.subr.mxu0 %v24200_v42  ;;  %16908 = vmatprep.subr.mxu1 %v24106_v4  ;;  %v2568_v8 = vand.u32 4294901760, %v2567_v61  ;;  %v24203_v17 = vand.u32 4294901760, %v19196_v13  ;;  %v23789_v16 = vand.u32 4294901760, %v19205_v43 }
 0x1ed   :  { %24199 = vst [vmem:[#allocation32_spill] sm:$0xff] %v19213_v18  ;;  %v19221_v47 = vpop.eup %17058  ;;  %16657 = vmatmul.mubr.f32.gmra.mxu1 %v19162_v51  ;;  %16699 = vmatpush3.msra.mxu0 %v24200_v42  ;;  %v2577_v28 = vsub.f32 %v19170_v58, %v24202_v9  ;;  %v19235_v51 = vsub.f32 %v19198_v60, %v19213_v18  ;;  %v24204_v42 = vld [vmem:[#allocation22_spill] sm:$0xff] }
 0x1ee   :  { %24201 = vst [vmem:[#allocation48_spill] sm:$0xff] %v19221_v47  ;;  %16568 = vmatmul.mubr.f32.gmra.mxu0 %v2538_v2  ;;  %16659 = vmatprep.mubr.f32.mxu1 %v19186_v50  ;;  %v2587_v45 = vsub.f32 %v19196_v13, %v24203_v17  ;;  %v2558_v50 = vand.u32 4294901760, %v2557_v12  ;;  %v19246_v61 = vsub.f32 %v19138_v24, %v19192_v27 }
 0x1ef   :  { %16570 = vmatprep.mubr.f32.mxu0 %v2548_v21  ;;  %16828 = vmatprep.subr.mxu0 %v24204_v42  ;;  %v19238_v2 = vpop.eup %17060  ;;  %v19242_v21 = vand.u32 4294901760, %v19181_v40  ;;  %v2578_v9 = vand.u32 4294901760, %v2577_v28  ;;  %v2607_v19 = vsub.f32 %v19205_v43, %v23789_v16  ;;  %v23796_v60 = vand.u32 4294901760, %v19235_v51 }
 0x1f0   :  { %24205 = vst [vmem:[#allocation39_spill] sm:$0xff] %v19238_v2  ;;  %v19250_v17 = vand.u32 4294901760, %v19238_v2  ;;  %v2588_v12 = vand.u32 4294901760, %v2587_v45  ;;  %v19266_v28 = vand.u32 4294901760, %v19221_v47 }
 0x1f1   :  { %16660 = vmatmul.mubr.f32.gmra.mxu1 %v19192_v27  ;;  %v24207_v27 = vand.u32 4294901760, %v19217_v20  ;;  %v19270_v45 = vsub.f32 %v19181_v40, %v19242_v21 }
 0x1f2   :  { %24206 = vst [vmem:[#allocation50_spill] sm:$0xff] %v19250_v17  ;;  %16571 = vmatmul.mubr.f32.gmra.mxu0 %v2558_v50  ;;  %16662 = vmatprep.mubr.f32.mxu1 %v19213_v18  ;;  %v19259_v24 = vsub.f32 %v19238_v2, %v19250_v17  ;;  %v24208_v2 = vand.u32 4294901760, %v19246_v61 }
 0x1f3   :  { %16573 = vmatprep.mubr.f32.mxu0 %v2568_v8  ;;  %v2597_v54 = vsub.f32 %v19217_v20, %v24207_v27  ;;  %v2608_v8 = vand.u32 4294901760, %v2607_v19  ;;  %v2627_v27 = vsub.f32 %v19235_v51, %v23796_v60  ;;  %v2636_v40 = vand.u32 4294901760, %v19270_v45 }
 0x1f4   :  { %v2646_v16 = vand.u32 4294901760, %v19259_v24  ;;  %v2617_v18 = vsub.f32 %v19246_v61, %v24208_v2  ;;  %v24209_v19 = vand.u32 4294901760, %v18762_v49 }
 0x1f5   :  { %16663 = vmatmul.mubr.f32.gmra.mxu1 %v19242_v21  ;;  %v2598_v50 = vand.u32 4294901760, %v2597_v54  ;;  %v2637_v2 = vsub.f32 %v19270_v45, %v2636_v40 }
 0x1f6   :  { %16574 = vmatmul.mubr.f32.gmra.mxu0 %v2578_v9  ;;  %16665 = vmatprep.mubr.f32.mxu1 %v19250_v17  ;;  %v19284_v9 = vsub.f32 %v19221_v47, %v19266_v28  ;;  %v2647_v54 = vsub.f32 %v19259_v24, %v2646_v16  ;;  %v2618_v60 = vand.u32 4294901760, %v2617_v18  ;;  %v24210_v17 = vand.u32 4294901760, %v18753_v32 }
 0x1f7   :  { %16576 = vmatprep.mubr.f32.mxu0 %v2588_v12  ;;  %v2628_v12 = vand.u32 4294901760, %v2627_v27  ;;  %v2638_v27 = vand.u32 4294901760, %v2637_v2  ;;  %v24218_v2 = vld [vmem:[#allocation25_spill] sm:$0xff] }
 0x1f8   :  { %v2656_v47 = vand.u32 4294901760, %v19284_v9 }
 0x1f9   :  { %16666 = vmatmul.mubr.f32.gmra.mxu1 %v19266_v28 }
 0x1fa   :  { %16577 = vmatmul.mubr.f32.gmra.mxu0 %v2598_v50  ;;  %16780 = vmatprep.mubr.f32.mxu1 %v24209_v19  ;;  %v24211_v50 = vand.u32 4294901760, %v18803_v0  ;;  %v2657_v18 = vsub.f32 %v19284_v9, %v2656_v47  ;;  %v24212_v19 = vand.u32 4294901760, %v18812_v62 }
 0x1fb   :  { %16579 = vmatprep.mubr.f32.mxu0 %v2608_v8  ;;  %v2648_v8 = vand.u32 4294901760, %v2647_v54  ;;  %v24216_v54 = vand.u32 4294901760, %v18920_v53 }
 0x1fd   :  { %16781 = vmatmul.mubr.f32.vlgmr.msra.gmra.mxu1 %v24210_v17  ;;  %v2658_v17 = vand.u32 4294901760, %v2657_v18  ;;  %v24272_v18 = vld [vmem:[#allocation15_spill] sm:$0xff] }
 0x1fe   :  { %16580 = vmatmul.mubr.f32.gmra.mxu0 %v2618_v60  ;;  %16783 = vmatprep.mubr.f32.mxu1 %v24211_v50  ;;  %v24213_v60 = vand.u32 4294901760, %v18844_v33  ;;  %v24228_v50 = vld [vmem:[#allocation53_spill] sm:$0xff] }
 0x1ff   :  { %16582 = vmatprep.mubr.f32.mxu0 %v2628_v12  ;;  %16909 = vmatpush3.msra.mxu1 %v24106_v4  ;;  %v24214_v4 = vand.u32 4294901760, %v18870_v11  ;;  %v24215_v12 = vand.u32 4294901760, %v18888_v7 }
 0x200   :  { %16910 = vmatprep.subr.mxu1 %v24108_v6 }
 0x201   :  { %16784 = vmatmul.mubr.f32.gmra.mxu1 %v24212_v19  ;;  %v24273_v19 = vld [vmem:[#allocation52_spill] sm:$0xff] }
 0x202   :  { %16583 = vmatmul.mubr.f32.gmra.mxu0 %v2638_v27  ;;  %16786 = vmatprep.mubr.f32.mxu1 %v24213_v60  ;;  %v24271_v27 = vld [vmem:[#allocation34_spill] sm:$0xff]  ;;  %v24274_v60 = vld [vmem:[#allocation16_spill] sm:$0xff] }
 0x203   :  { %16585 = vmatprep.mubr.f32.mxu0 %v2648_v8  ;;  %16911 = vmatpush3.msra.mxu1 %v24108_v6  ;;  %v24217_v6 = vand.u32 4294901760, %v18939_v23  ;;  %v24233_v8 = vld [vmem:[#allocation61_spill] sm:$0xff] }
 0x204   :  { %16912 = vmatprep.subr.mxu1 %v24111_v36 }
 0x205   :  { %16787 = vmatmul.mubr.f32.gmra.mxu1 %v24214_v4  ;;  %v24276_v4 = vld [vmem:[#allocation18_spill] sm:$0xff] }
 0x206   :  { %16586 = vmatmul.mubr.f32.gmra.mxu0 %v2658_v17  ;;  %16789 = vmatprep.mubr.f32.mxu1 %v24215_v12  ;;  %v24275_v17 = vld [vmem:[#allocation19_spill] sm:$0xff]  ;;  %v24277_v12 = vld [vmem:[#allocation20_spill] sm:$0xff] }
 0x207   :  { %16700 = vmatprep.mubr.f32.mxu0 %v18762_v49  ;;  %16913 = vmatpush3.msra.mxu1 %v24111_v36  ;;  %v24219_v49 = vand.u32 4294901760, %v18959_v44  ;;  %v24220_v36 = vld [vmem:[#allocation37_spill] sm:$0xff] }
 0x208   :  { %16914 = vmatprep.subr.mxu1 %v24115_v15 }
 0x209   :  { %16790 = vmatmul.mubr.f32.gmra.mxu1 %v24216_v54  ;;  %v24278_v54 = vld [vmem:[#allocation63_spill] sm:$0xff] }
 0x20a   :  { %16701 = vmatmul.mubr.f32.vlgmr.msra.gmra.mxu0 %v18753_v32  ;;  %16792 = vmatprep.mubr.f32.mxu1 %v24217_v6  ;;  %v24221_v32 = vand.u32 4294901760, %v18980_v34  ;;  %v24279_v6 = vld [vmem:[#allocation26_spill] sm:$0xff] }
 0x20b   :  { %16703 = vmatprep.mubr.f32.mxu0 %v18803_v0  ;;  %16829 = vmatpush3.msra.mxu0 %v24204_v42  ;;  %v24222_v0 = vand.u32 4294901760, %v19002_v59  ;;  %v24226_v42 = vand.u32 4294901760, %v19038_v31 }
 0x20c   :  { %16830 = vmatprep.subr.mxu0 %v24218_v2  ;;  %16915 = vmatpush3.msra.mxu1 %v24115_v15  ;;  %v24223_v15 = vld [vmem:[#allocation36_spill] sm:$0xff] }
 0x20d   :  { %16831 = vmatpush3.msra.mxu0 %v24218_v2  ;;  %16793 = vmatmul.mubr.f32.gmra.mxu1 %v24219_v49  ;;  %v24280_v2 = vld [vmem:[#allocation44_spill] sm:$0xff] }
 0x20e   :  { %16704 = vmatmul.mubr.f32.gmra.mxu0 %v18812_v62  ;;  %16832 = vmatprep.subr.mxu0 %v24220_v36  ;;  %v24224_v62 = vand.u32 4294901760, %v19021_v52  ;;  %v24281_v49 = vld [vmem:[#allocation32_spill] sm:$0xff] }
 0x20f   :  { %16706 = vmatprep.mubr.f32.mxu0 %v18844_v33  ;;  %16795 = vmatprep.mubr.f32.mxu1 %v24221_v32  ;;  %v24225_v33 = vld [vmem:[#allocation47_spill] sm:$0xff]  ;;  %v24282_v32 = vld [vmem:[#allocation50_spill] sm:$0xff] }
 0x210   :  { %16833 = vmatpush3.msra.mxu0 %v24220_v36  ;;  %16916 = vmatprep.subr.mxu1 %v24123_v41 }
 0x211   :  { %16796 = vmatmul.mubr.f32.gmra.mxu1 %v24222_v0  ;;  %16834 = vmatprep.subr.mxu0 %v24223_v15 }
 0x212   :  { %16707 = vmatmul.mubr.f32.gmra.mxu0 %v18870_v11  ;;  %16798 = vmatprep.mubr.f32.mxu1 %v24224_v62  ;;  %v24227_v11 = vand.u32 4294901760, %v19057_v38 }
 0x213   :  { %16709 = vmatprep.mubr.f32.mxu0 %v18888_v7  ;;  %16835 = vmatpush3.msra.mxu0 %v24223_v15  ;;  %v24230_v7 = vld [vmem:[#allocation60_spill] sm:$0xff] }
 0x214   :  { %16836 = vmatprep.subr.mxu0 %v24225_v33  ;;  %16917 = vmatpush3.msra.mxu1 %v24123_v41  ;;  %v24229_v41 = vand.u32 4294901760, %v19073_v3 }
 0x215   :  { %16799 = vmatmul.mubr.f32.gmra.mxu1 %v24226_v42  ;;  %16837 = vmatpush3.msra.mxu0 %v24225_v33 }
 0x216   :  { %16710 = vmatmul.mubr.f32.gmra.mxu0 %v18920_v53  ;;  %16801 = vmatprep.mubr.f32.mxu1 %v24227_v11  ;;  %v24231_v53 = vand.u32 4294901760, %v19083_v57 }
 0x217   :  { %16712 = vmatprep.mubr.f32.mxu0 %v18939_v23  ;;  %16838 = vmatprep.subr.mxu0 %v24228_v50  ;;  %v24232_v23 = vand.u32 4294901760, %v19100_v35 }
 0x218   :  { %16839 = vmatpush3.msra.mxu0 %v24228_v50  ;;  %16918 = vmatprep.subr.mxu1 %v24131_v39 }
 0x219   :  { %16802 = vmatmul.mubr.f32.gmra.mxu1 %v24229_v41  ;;  %16840 = vmatprep.subr.mxu0 %v24230_v7 }
 0x21a   :  { %16713 = vmatmul.mubr.f32.gmra.mxu0 %v18959_v44  ;;  %16804 = vmatprep.mubr.f32.mxu1 %v24231_v53  ;;  %v24234_v44 = vand.u32 4294901760, %v19113_v26 }
 0x21b   :  { %16715 = vmatprep.mubr.f32.mxu0 %v18980_v34  ;;  %16919 = vmatpush3.msra.mxu1 %v24131_v39  ;;  %v24235_v39 = vand.u32 4294901760, %v19125_v5  ;;  %v24236_v34 = vld [vmem:[#allocation24_spill] sm:$0xff] }
 0x21c   :  { %16841 = vmatpush3.msra.mxu0 %v24230_v7  ;;  %16920 = vmatprep.subr.mxu1 %v24137_v1 }
 0x21d   :  { %16805 = vmatmul.mubr.f32.gmra.mxu1 %v24232_v23  ;;  %16842 = vmatprep.subr.mxu0 %v24233_v8 }
 0x21e   :  { %16716 = vmatmul.mubr.f32.gmra.mxu0 %v19002_v59  ;;  %16807 = vmatprep.mubr.f32.mxu1 %v24234_v44  ;;  %v24237_v59 = vand.u32 4294901760, %v19135_v25 }
 0x21f   :  { %16718 = vmatprep.mubr.f32.mxu0 %v19021_v52  ;;  %16921 = vmatpush3.msra.mxu1 %v24137_v1  ;;  %v24238_v1 = vand.u32 4294901760, %v19156_v10  ;;  %v24239_v52 = vld [vmem:[#allocation64_spill] sm:$0xff] }
 0x220   :  { %16843 = vmatpush3.msra.mxu0 %v24233_v8  ;;  %16922 = vmatprep.subr.mxu1 %v24145_v29 }
 0x221   :  { %16808 = vmatmul.mubr.f32.gmra.mxu1 %v24235_v39  ;;  %16844 = vmatprep.subr.mxu0 %v24236_v34 }
 0x222   :  { %16719 = vmatmul.mubr.f32.gmra.mxu0 %v19038_v31  ;;  %16810 = vmatprep.mubr.f32.mxu1 %v24237_v59  ;;  %v24240_v31 = vand.u32 4294901760, %v19166_v48 }
 0x223   :  { %16721 = vmatprep.mubr.f32.mxu0 %v19057_v38  ;;  %16923 = vmatpush3.msra.mxu1 %v24145_v29  ;;  %v24241_v29 = vand.u32 4294901760, %v19170_v58  ;;  %v24242_v38 = vld [vmem:[#allocation38_spill] sm:$0xff] }
 0x224   :  { %16845 = vmatpush3.msra.mxu0 %v24236_v34  ;;  %16924 = vmatprep.subr.mxu1 %v24149_v37 }
 0x225   :  { %16811 = vmatmul.mubr.f32.gmra.mxu1 %v24238_v1  ;;  %16846 = vmatprep.subr.mxu0 %v24239_v52 }
 0x226   :  { %16722 = vmatmul.mubr.f32.gmra.mxu0 %v19073_v3  ;;  %16813 = vmatprep.mubr.f32.mxu1 %v24240_v31  ;;  %v24243_v3 = vand.u32 4294901760, %v19196_v13 }
 0x227   :  { %16724 = vmatprep.mubr.f32.mxu0 %v19083_v57  ;;  %16925 = vmatpush3.msra.mxu1 %v24149_v37  ;;  %v24244_v37 = vand.u32 4294901760, %v19217_v20  ;;  %v24245_v57 = vld [vmem:[#allocation30_spill] sm:$0xff] }
 0x228   :  { %16847 = vmatpush3.msra.mxu0 %v24239_v52  ;;  %16926 = vmatprep.subr.mxu1 %v24155_v46 }
 0x229   :  { %16814 = vmatmul.mubr.f32.gmra.mxu1 %v24241_v29  ;;  %16848 = vmatprep.subr.mxu0 %v24242_v38 }
 0x22a   :  { %16725 = vmatmul.mubr.f32.gmra.mxu0 %v19100_v35  ;;  %16816 = vmatprep.mubr.f32.mxu1 %v24243_v3  ;;  %v24246_v35 = vand.u32 4294901760, %v19205_v43 }
 0x22b   :  { %16727 = vmatprep.mubr.f32.mxu0 %v19113_v26  ;;  %16927 = vmatpush3.msra.mxu1 %v24155_v46  ;;  %v24247_v46 = vand.u32 4294901760, %v19246_v61  ;;  %v24248_v26 = vld [vmem:[#allocation49_spill] sm:$0xff] }
 0x22c   :  { %16849 = vmatpush3.msra.mxu0 %v24242_v38  ;;  %16928 = vmatprep.subr.mxu1 %v24162_v56 }
 0x22d   :  { %16817 = vmatmul.mubr.f32.gmra.mxu1 %v24244_v37  ;;  %16850 = vmatprep.subr.mxu0 %v24245_v57 }
 0x22e   :  { %16728 = vmatmul.mubr.f32.gmra.mxu0 %v19125_v5  ;;  %16819 = vmatprep.mubr.f32.mxu1 %v24246_v35  ;;  %v24249_v5 = vand.u32 4294901760, %v19235_v51 }
 0x22f   :  { %16730 = vmatprep.mubr.f32.mxu0 %v19135_v25  ;;  %16929 = vmatpush3.msra.mxu1 %v24162_v56  ;;  %v24250_v56 = vld [vmem:[#allocation55_spill] sm:$0xff]  ;;  %v24259_v25 = vld [vmem:[#allocation77_spill] sm:$0xff] }
 0x230   :  { %16851 = vmatpush3.msra.mxu0 %v24245_v57  ;;  %16930 = vmatprep.subr.mxu1 %v24168_v63 }
 0x231   :  { %16820 = vmatmul.mubr.f32.gmra.mxu1 %v24247_v46  ;;  %16852 = vmatprep.subr.mxu0 %v24248_v26 }
 0x232   :  { %16731 = vmatmul.mubr.f32.gmra.mxu0 %v19156_v10  ;;  %16822 = vmatprep.mubr.f32.mxu1 %v24249_v5  ;;  %v24260_v10 = vld [vmem:[#allocation74_spill] sm:$0xff] }
 0x233   :  { %16733 = vmatprep.mubr.f32.mxu0 %v19166_v48  ;;  %16931 = vmatpush3.msra.mxu1 %v24168_v63  ;;  %v24251_v48 = vld [vmem:[#allocation56_spill] sm:$0xff]  ;;  %v24255_v63 = vld [vmem:[#allocation58_spill] sm:$0xff] }
 0x234   :  { %16932 = vmatprep.subr.mxu1 %v24172_v14  ;;  %16853 = vmatpush3.msra.mxu0 %v24248_v26 }
 0x235   :  { %16823 = vmatmul.mubr.f32.gmra.mxu1 %v2636_v40  ;;  %16854 = vmatprep.subr.mxu0 %v24250_v56  ;;  %v24258_v40 = vld [vmem:[#allocation71_spill] sm:$0xff] }
 0x236   :  { %16734 = vmatmul.mubr.f32.gmra.mxu0 %v19170_v58  ;;  %16825 = vmatprep.mubr.f32.mxu1 %v2646_v16  ;;  %v24252_v16 = vld [vmem:[#allocation54_spill] sm:$0xff]  ;;  %v24253_v58 = vld [vmem:[#allocation65_spill] sm:$0xff] }
 0x237   :  { %16736 = vmatprep.mubr.f32.mxu0 %v19196_v13  ;;  %16933 = vmatpush3.msra.mxu1 %v24172_v14  ;;  %v24257_v14 = vld [vmem:[#allocation73_spill] sm:$0xff]  ;;  %v24263_v13 = vld [vmem:[#allocation91_spill] sm:$0xff] }
 0x238   :  { %16934 = vmatprep.subr.mxu1 %v24180_v22  ;;  %16855 = vmatpush3.msra.mxu0 %v24250_v56 }
 0x239   :  { %16935 = vmatpush3.msra.mxu1 %v24180_v22  ;;  %16856 = vmatprep.subr.mxu0 %v24251_v48  ;;  %v24254_v22 = vld [vmem:[#allocation68_spill] sm:$0xff] }
 0x23a   :  { %16737 = vmatmul.mubr.f32.gmra.mxu0 %v19217_v20  ;;  %16826 = vmatmul.mubr.f32.gmra.mxu1 %v2656_v47  ;;  %v24266_v20 = vld [vmem:[#allocation86_spill] sm:$0xff]  ;;  %v24267_v47 = vld [vmem:[#allocation35_spill] sm:$0xff] }
 0x23b   :  { %16739 = vmatprep.mubr.f32.mxu0 %v19205_v43  ;;  %16936 = vmatprep.subr.mxu1 %v24184_v55  ;;  %v24265_v43 = vld [vmem:[#allocation82_spill] sm:$0xff] }
 0x23c   :  { %16937 = vmatpush3.msra.mxu1 %v24184_v55  ;;  %16940 = vmatprep.mubr.f32.mxu1 %v18749_v30  ;;  %v24256_v55 = vld [vmem:[#allocation66_spill] sm:$0xff] }
 0x23d   :  { %16938 = vmatprep.subr.mxu1 %v24252_v16  ;;  %16857 = vmatpush3.msra.mxu0 %v24251_v48 }
 0x23e   :  { %16740 = vmatmul.mubr.f32.gmra.mxu0 %v19246_v61  ;;  %16939 = vmatpush3.msra.mxu1 %v24252_v16  ;;  %v24268_v61 = vld [vmem:[#allocation45_spill] sm:$0xff] }
 0x23f   :  { %16742 = vmatprep.mubr.f32.mxu0 %v19235_v51  ;;  %16941 = vmatmul.mubr.f32.vlgmr.msra.gmra.mxu1 %v24253_v58  ;;  %v24261_v51 = vld [vmem:[#allocation83_spill] sm:$0xff] }
 0x240   :  { %16943 = vmatprep.mubr.f32.mxu1 %v24254_v22  ;;  %16858 = vmatprep.subr.mxu0 %v24255_v63 }
 0x241   :  { %16859 = vmatpush3.msra.mxu0 %v24255_v63 }
 0x242   :  { %16743 = vmatmul.mubr.f32.gmra.mxu0 %v19270_v45  ;;  %v24269_v45 = vld [vmem:[#allocation28_spill] sm:$0xff] }
 0x243   :  { %16745 = vmatprep.mubr.f32.mxu0 %v19259_v24  ;;  %16944 = vmatmul.mubr.f32.gmra.mxu1 %v24256_v55  ;;  %v24262_v24 = vld [vmem:[#allocation85_spill] sm:$0xff] }
 0x244   :  { %16946 = vmatprep.mubr.f32.mxu1 %v24257_v14 }
 0x246   :  { %16746 = vmatmul.mubr.f32.gmra.mxu0 %v19284_v9  ;;  %v24270_v9 = vld [vmem:[#allocation40_spill] sm:$0xff] }
 0x247   :  { %16860 = vmatprep.mubr.f32.mxu0 %v18749_v30  ;;  %16947 = vmatmul.mubr.f32.gmra.mxu1 %v24258_v40  ;;  %v24264_v30 = vld [vmem:[#allocation94_spill] sm:$0xff] }
 0x248   :  { %16949 = vmatprep.mubr.f32.mxu1 %v24259_v25 }
 0x24a   :  { %16861 = vmatmul.mubr.f32.vlgmr.msra.gmra.mxu0 %v24253_v58 }
 0x24b   :  { %16863 = vmatprep.mubr.f32.mxu0 %v24254_v22  ;;  %16950 = vmatmul.mubr.f32.gmra.mxu1 %v24260_v10 }
 0x24c   :  { %16952 = vmatprep.mubr.f32.mxu1 %v24261_v51 }
 0x24e   :  { %16864 = vmatmul.mubr.f32.gmra.mxu0 %v24256_v55 }
 0x24f   :  { %16866 = vmatprep.mubr.f32.mxu0 %v24257_v14  ;;  %16953 = vmatmul.mubr.f32.gmra.mxu1 %v24262_v24 }
 0x250   :  { %16955 = vmatprep.mubr.f32.mxu1 %v24263_v13 }
 0x252   :  { %16867 = vmatmul.mubr.f32.gmra.mxu0 %v24258_v40 }
 0x253   :  { %16869 = vmatprep.mubr.f32.mxu0 %v24259_v25  ;;  %16956 = vmatmul.mubr.f32.gmra.mxu1 %v24264_v30 }
 0x254   :  { %16958 = vmatprep.mubr.f32.mxu1 %v24265_v43 }
 0x256   :  { %16870 = vmatmul.mubr.f32.gmra.mxu0 %v24260_v10 }
 0x257   :  { %16872 = vmatprep.mubr.f32.mxu0 %v24261_v51  ;;  %16959 = vmatmul.mubr.f32.gmra.mxu1 %v24266_v20 }
 0x258   :  { %16961 = vmatprep.mubr.f32.mxu1 %v24267_v47 }
 0x25a   :  { %16873 = vmatmul.mubr.f32.gmra.mxu0 %v24262_v24 }
 0x25b   :  { %16875 = vmatprep.mubr.f32.mxu0 %v24263_v13  ;;  %16962 = vmatmul.mubr.f32.gmra.mxu1 %v24268_v61 }
 0x25c   :  { %16964 = vmatprep.mubr.f32.mxu1 %v24269_v45 }
 0x25e   :  { %16876 = vmatmul.mubr.f32.gmra.mxu0 %v24264_v30 }
 0x25f   :  { %16878 = vmatprep.mubr.f32.mxu0 %v24265_v43  ;;  %16965 = vmatmul.mubr.f32.gmra.mxu1 %v24270_v9 }
 0x260   :  { %16967 = vmatprep.mubr.f32.mxu1 %v24271_v27 }
 0x262   :  { %16879 = vmatmul.mubr.f32.gmra.mxu0 %v24266_v20 }
 0x263   :  { %16881 = vmatprep.mubr.f32.mxu0 %v24267_v47  ;;  %16968 = vmatmul.mubr.f32.gmra.mxu1 %v24272_v18 }
 0x264   :  { %16970 = vmatprep.mubr.f32.mxu1 %v24273_v19 }
 0x266   :  { %16882 = vmatmul.mubr.f32.gmra.mxu0 %v24268_v61 }
 0x267   :  { %16884 = vmatprep.mubr.f32.mxu0 %v24269_v45  ;;  %16971 = vmatmul.mubr.f32.gmra.mxu1 %v24274_v60 }
 0x268   :  { %16973 = vmatprep.mubr.f32.mxu1 %v24275_v17 }
 0x26a   :  { %16885 = vmatmul.mubr.f32.gmra.mxu0 %v24270_v9 }
 0x26b   :  { %16887 = vmatprep.mubr.f32.mxu0 %v24271_v27  ;;  %16974 = vmatmul.mubr.f32.gmra.mxu1 %v24276_v4 }
 0x26c   :  { %16976 = vmatprep.mubr.f32.mxu1 %v24277_v12 }
 0x26e   :  { %16888 = vmatmul.mubr.f32.gmra.mxu0 %v24272_v18 }
 0x26f   :  { %16890 = vmatprep.mubr.f32.mxu0 %v24273_v19  ;;  %16977 = vmatmul.mubr.f32.gmra.mxu1 %v24278_v54 }
 0x270   :  { %16979 = vmatprep.mubr.f32.mxu1 %v24279_v6 }
 0x272   :  { %16891 = vmatmul.mubr.f32.gmra.mxu0 %v24274_v60  ;;  %v16622_v36 = vpop.f32.mrf.mxu1 }
 0x273   :  { %16893 = vmatprep.mubr.f32.mxu0 %v24275_v17  ;;  %16980 = vmatmul.mubr.f32.gmra.mxu1 %v24280_v2 }
 0x274   :  { %16982 = vmatprep.mubr.f32.mxu1 %v24281_v49  ;;  %v2811_v0 = vpop.f32.mrf.mxu1 }
 0x276   :  { %16894 = vmatmul.mubr.f32.gmra.mxu0 %v24276_v4 }
 0x277   :  { %16896 = vmatprep.mubr.f32.mxu0 %v24277_v12  ;;  %16983 = vmatmul.mubr.f32.gmra.mxu1 %v19242_v21  ;;  %v16625_v15 = vpop.f32.mrf.mxu1 }
 0x278   :  { %16985 = vmatprep.mubr.f32.mxu1 %v24282_v32 }
 0x279   :  { %v2823_v62 = vpop.f32.mrf.mxu1 }
 0x27a   :  { %16897 = vmatmul.mubr.f32.gmra.mxu0 %v24278_v54  ;;  %v16542_v33 = vpop.f32.mrf.mxu0 }
 0x27b   :  { %16899 = vmatprep.mubr.f32.mxu0 %v24279_v6  ;;  %16986 = vmatmul.mubr.f32.gmra.mxu1 %v19266_v28  ;;  %v19516_v11 = vadd.f32 %v16622_v36, %v16542_v33 }
 0x27c   :  { %v16628_v42 = vpop.f32.mrf.mxu1  ;;  %v2350_v50 = vpop.f32.mrf.mxu0 }
 0x27d   :  { %v19518_v7 = vadd.f32 %v2811_v0, %v2350_v50 }
 0x27e   :  { %16900 = vmatmul.mubr.f32.gmra.mxu0 %v24280_v2  ;;  %v2835_v41 = vpop.f32.mrf.mxu1 }
 0x27f   :  { %16902 = vmatprep.mubr.f32.mxu0 %v24281_v49 }
 0x280   :  { %v16631_v53 = vpop.f32.mrf.mxu1 }
 0x282   :  { %16903 = vmatmul.mubr.f32.gmra.mxu0 %v19242_v21  ;;  %v2847_v23 = vpop.f32.mrf.mxu1 }
 0x283   :  { %16905 = vmatprep.mubr.f32.mxu0 %v24282_v32  ;;  %v16545_v8 = vpop.f32.mrf.mxu0 }
 0x284   :  { %v19523_v44 = vadd.f32 %v16625_v15, %v16545_v8 }
 0x285   :  { %v2370_v39 = vpop.f32.mrf.mxu0  ;;  %v16634_v34 = vpop.f32.mrf.mxu1 }
 0x286   :  { %16906 = vmatmul.mubr.f32.gmra.mxu0 %v19266_v28  ;;  %v19525_v59 = vadd.f32 %v2823_v62, %v2370_v39 }
 0x287   :  { %v2859_v1 = vpop.f32.mrf.mxu1 }
 0x28c   :  { %v16548_v52 = vpop.f32.mrf.mxu0 }
 0x28d   :  { %v19527_v31 = vadd.f32 %v16628_v42, %v16548_v52  ;;  %v16637_v29 = vpop.f32.mrf.mxu1 }
 0x28e   :  { %v2390_v38 = vpop.f32.mrf.mxu0 }
 0x28f   :  { %v19529_v21 = vadd.f32 %v2835_v41, %v2390_v38  ;;  %v2871_v3 = vpop.f32.mrf.mxu1 }
 0x291   :  { %v16640_v37 = vpop.f32.mrf.mxu1 }
 0x292   :  { %v16551_v57 = vpop.f32.mrf.mxu0 }
 0x293   :  { %v19531_v35 = vadd.f32 %v16631_v53, %v16551_v57  ;;  %v2883_v28 = vpop.f32.mrf.mxu1 }
 0x294   :  { %v2410_v46 = vpop.f32.mrf.mxu0 }
 0x295   :  { %v19533_v26 = vadd.f32 %v2847_v23, %v2410_v46 }
 0x296   :  { %v16643_v5 = vpop.f32.mrf.mxu1 }
 0x297   :  { %v16554_v56 = vpop.f32.mrf.mxu0 }
 0x298   :  { %v19535_v48 = vadd.f32 %v16634_v34, %v16554_v56  ;;  %v2895_v16 = vpop.f32.mrf.mxu1 }
 0x299   :  { %v2430_v58 = vpop.f32.mrf.mxu0 }
 0x29a   :  { %v19537_v22 = vadd.f32 %v2859_v1, %v2430_v58 }
 0x29b   :  { %v16646_v63 = vpop.f32.mrf.mxu1 }
 0x29c   :  { %v16557_v55 = vpop.f32.mrf.mxu0 }
 0x29d   :  { %v19539_v14 = vadd.f32 %v16637_v29, %v16557_v55  ;;  %v2907_v40 = vpop.f32.mrf.mxu1 }
 0x29e   :  { %v2450_v25 = vpop.f32.mrf.mxu0 }
 0x29f   :  { %v19541_v10 = vadd.f32 %v2871_v3, %v2450_v25 }
 0x2a1   :  { %v16560_v51 = vpop.f32.mrf.mxu0  ;;  %v16649_v24 = vpop.f32.mrf.mxu1 }
 0x2a2   :  { %v19543_v13 = vadd.f32 %v16640_v37, %v16560_v51 }
 0x2a3   :  { %v2470_v30 = vpop.f32.mrf.mxu0  ;;  %v2919_v43 = vpop.f32.mrf.mxu1 }
 0x2a4   :  { %v19545_v20 = vadd.f32 %v2883_v28, %v2470_v30 }
 0x2a5   :  { %v16652_v47 = vpop.f32.mrf.mxu1 }
 0x2a6   :  { %v16563_v61 = vpop.f32.mrf.mxu0 }
 0x2a7   :  { %v19547_v45 = vadd.f32 %v16643_v5, %v16563_v61  ;;  %v2931_v9 = vpop.f32.mrf.mxu1 }
 0x2a8   :  { %v2490_v27 = vpop.f32.mrf.mxu0 }
 0x2a9   :  { %v19549_v18 = vadd.f32 %v2895_v16, %v2490_v27  ;;  %v16655_v19 = vpop.f32.mrf.mxu1 }
 0x2aa   :  { %v16566_v60 = vpop.f32.mrf.mxu0 }
 0x2ab   :  { %v19551_v17 = vadd.f32 %v16646_v63, %v16566_v60  ;;  %v2943_v4 = vpop.f32.mrf.mxu1 }
 0x2ac   :  { %v2510_v12 = vpop.f32.mrf.mxu0 }
 0x2ad   :  { %v19553_v54 = vadd.f32 %v2907_v40, %v2510_v12  ;;  %v16658_v6 = vpop.f32.mrf.mxu1 }
 0x2ae   :  { %v16569_v2 = vpop.f32.mrf.mxu0 }
 0x2af   :  { %v19555_v49 = vadd.f32 %v16649_v24, %v16569_v2  ;;  %v2955_v36 = vpop.f32.mrf.mxu1 }
 0x2b0   :  { %v2530_v32 = vpop.f32.mrf.mxu0 }
 0x2b1   :  { %v19557_v0 = vadd.f32 %v2919_v43, %v2530_v32  ;;  %v16661_v15 = vpop.f32.mrf.mxu1 }
 0x2b2   :  { %v16572_v62 = vpop.f32.mrf.mxu0 }
 0x2b3   :  { %v19559_v33 = vadd.f32 %v16652_v47, %v16572_v62  ;;  %v2967_v42 = vpop.f32.mrf.mxu1 }
 0x2b4   :  { %v2550_v50 = vpop.f32.mrf.mxu0 }
 0x2b5   :  { %v19561_v41 = vadd.f32 %v2931_v9, %v2550_v50  ;;  %v16664_v53 = vpop.f32.mrf.mxu1 }
 0x2b6   :  { %v16575_v23 = vpop.f32.mrf.mxu0 }
 0x2b7   :  { %v19563_v8 = vadd.f32 %v16655_v19, %v16575_v23  ;;  %v2979_v39 = vpop.f32.mrf.mxu1 }
 0x2b8   :  { %v2570_v34 = vpop.f32.mrf.mxu0 }
 0x2b9   :  { %v19565_v1 = vadd.f32 %v2943_v4, %v2570_v34  ;;  %v16667_v52 = vpop.f32.mrf.mxu1 }
 0x2ba   :  { %v16578_v29 = vpop.f32.mrf.mxu0 }
 0x2bb   :  { %v19567_v38 = vadd.f32 %v16658_v6, %v16578_v29  ;;  %v2991_v3 = vpop.f32.mrf.mxu1 }
 0x2bc   :  { %v2590_v37 = vpop.f32.mrf.mxu0 }
 0x2bd   :  { %v19569_v57 = vadd.f32 %v2955_v36, %v2590_v37  ;;  %v19571_v28 = vpop.f32.mrf.mxu1 }
 0x2be   :  { %v16581_v46 = vpop.f32.mrf.mxu0 }
 0x2bf   :  { %v19573_v5 = vadd.f32 %v16661_v15, %v16581_v46  ;;  %v19575_v56 = vpop.f32.mrf.mxu1 }
 0x2c0   :  { %v2610_v16 = vpop.f32.mrf.mxu0 }
 0x2c1   :  { %v19577_v58 = vadd.f32 %v2967_v42, %v2610_v16  ;;  %v16785_v63 = vpop.f32.mrf.mxu1 }
 0x2c2   :  { %v16584_v55 = vpop.f32.mrf.mxu0 }
 0x2c3   :  { %v19579_v40 = vadd.f32 %v16664_v53, %v16584_v55  ;;  %v3423_v25 = vpop.f32.mrf.mxu1 }
 0x2c4   :  { %v2630_v51 = vpop.f32.mrf.mxu0 }
 0x2c5   :  { %v19581_v24 = vadd.f32 %v2979_v39, %v2630_v51  ;;  %v16788_v30 = vpop.f32.mrf.mxu1 }
 0x2c6   :  { %v16587_v43 = vpop.f32.mrf.mxu0 }
 0x2c7   :  { %v19583_v47 = vadd.f32 %v16667_v52, %v16587_v43  ;;  %v3439_v61 = vpop.f32.mrf.mxu1 }
 0x2c8   :  { %v2650_v9 = vpop.f32.mrf.mxu0 }
 0x2c9   :  { %v19585_v27 = vadd.f32 %v2991_v3, %v2650_v9  ;;  %v16791_v19 = vpop.f32.mrf.mxu1 }
 0x2ca   :  { %v19587_v60 = vpop.f32.mrf.mxu0 }
 0x2cb   :  { %v3455_v4 = vpop.f32.mrf.mxu1 }
 0x2cc   :  { %v19589_v12 = vpop.f32.mrf.mxu0 }
 0x2cd   :  { %v16794_v6 = vpop.f32.mrf.mxu1 }
 0x2ce   :  { %v16705_v2 = vpop.f32.mrf.mxu0 }
 0x2cf   :  { %v3123_v36 = vadd.f32 %v16705_v2, %v19523_v44  ;;  %v3471_v32 = vpop.f32.mrf.mxu1 }
 0x2d0   :  { %v3115_v15 = vpop.f32.mrf.mxu0 }
 0x2d1   :  { %v3116_v62 = vadd.f32 %v3115_v15, %v19525_v59  ;;  %v16797_v42 = vpop.f32.mrf.mxu1  ;;  %v19593_v50 = vadd.f32 %v16785_v63, %v3123_v36 }
 0x2d2   :  { %v16708_v53 = vpop.f32.mrf.mxu0 }
 0x2d3   :  { %v3137_v23 = vadd.f32 %v16708_v53, %v19527_v31  ;;  %v3487_v39 = vpop.f32.mrf.mxu1  ;;  %v19596_v34 = vadd.f32 %v3423_v25, %v3116_v62 }
 0x2d4   :  { %v3129_v52 = vpop.f32.mrf.mxu0 }
 0x2d5   :  { %v3130_v29 = vadd.f32 %v3129_v52, %v19529_v21  ;;  %v16800_v3 = vpop.f32.mrf.mxu1  ;;  %v19599_v37 = vadd.f32 %v16788_v30, %v3137_v23 }
 0x2d6   :  { %v16711_v44 = vpop.f32.mrf.mxu0 }
 0x2d7   :  { %v3151_v46 = vadd.f32 %v16711_v44, %v19531_v35  ;;  %v3503_v16 = vpop.f32.mrf.mxu1  ;;  %v19602_v59 = vadd.f32 %v3439_v61, %v3130_v29 }
 0x2d8   :  { %v3143_v63 = vpop.f32.mrf.mxu0 }
 0x2d9   :  { %v3144_v55 = vadd.f32 %v3143_v63, %v19533_v26  ;;  %v16803_v51 = vpop.f32.mrf.mxu1  ;;  %v19605_v31 = vadd.f32 %v16791_v19, %v3151_v46 }
 0x2da   :  { %v16714_v25 = vpop.f32.mrf.mxu0 }
 0x2db   :  { %v3165_v43 = vadd.f32 %v16714_v25, %v19535_v48  ;;  %v3519_v9 = vpop.f32.mrf.mxu1  ;;  %v19608_v21 = vadd.f32 %v3455_v4, %v3144_v55 }
 0x2dc   :  { %v3157_v30 = vpop.f32.mrf.mxu0 }
 0x2dd   :  { %v3158_v2 = vadd.f32 %v3157_v30, %v19537_v22  ;;  %v16806_v36 = vpop.f32.mrf.mxu1  ;;  %v19611_v35 = vadd.f32 %v16794_v6, %v3165_v43 }
 0x2de   :  { %v16717_v61 = vpop.f32.mrf.mxu0 }
 0x2df   :  { %v3179_v15 = vadd.f32 %v16717_v61, %v19539_v14  ;;  %v3535_v62 = vpop.f32.mrf.mxu1  ;;  %v19614_v26 = vadd.f32 %v3471_v32, %v3158_v2 }
 0x2e0   :  { %v3171_v19 = vpop.f32.mrf.mxu0 }
 0x2e1   :  { %v3172_v53 = vadd.f32 %v3171_v19, %v19541_v10  ;;  %v16809_v23 = vpop.f32.mrf.mxu1  ;;  %v19617_v48 = vadd.f32 %v16797_v42, %v3179_v15 }
 0x2e2   :  { %v16720_v4 = vpop.f32.mrf.mxu0 }
 0x2e3   :  { %v3193_v52 = vadd.f32 %v16720_v4, %v19543_v13  ;;  %v3551_v29 = vpop.f32.mrf.mxu1  ;;  %v19620_v22 = vadd.f32 %v3487_v39, %v3172_v53 }
 0x2e4   :  { %v3185_v6 = vpop.f32.mrf.mxu0 }
 0x2e5   :  { %v3186_v44 = vadd.f32 %v3185_v6, %v19545_v20  ;;  %v16812_v46 = vpop.f32.mrf.mxu1  ;;  %v19623_v14 = vadd.f32 %v16800_v3, %v3193_v52 }
 0x2e6   :  { %v16723_v32 = vpop.f32.mrf.mxu0 }
 0x2e7   :  { %v3207_v63 = vadd.f32 %v16723_v32, %v19547_v45  ;;  %v3567_v55 = vpop.f32.mrf.mxu1  ;;  %v19626_v10 = vadd.f32 %v3503_v16, %v3186_v44 }
 0x2e8   :  { %v3199_v42 = vpop.f32.mrf.mxu0 }
 0x2e9   :  { %v3200_v25 = vadd.f32 %v3199_v42, %v19549_v18  ;;  %v16815_v43 = vpop.f32.mrf.mxu1  ;;  %v19629_v13 = vadd.f32 %v16803_v51, %v3207_v63 }
 0x2ea   :  { %v16726_v39 = vpop.f32.mrf.mxu0 }
 0x2eb   :  { %v3221_v30 = vadd.f32 %v16726_v39, %v19551_v17  ;;  %v3583_v2 = vpop.f32.mrf.mxu1  ;;  %v19632_v20 = vadd.f32 %v3519_v9, %v3200_v25 }
 0x2ec   :  { %v3213_v3 = vpop.f32.mrf.mxu0 }
 0x2ed   :  { %v3214_v61 = vadd.f32 %v3213_v3, %v19553_v54  ;;  %v16818_v15 = vpop.f32.mrf.mxu1  ;;  %v19635_v45 = vadd.f32 %v16806_v36, %v3221_v30 }
 0x2ee   :  { %v16729_v16 = vpop.f32.mrf.mxu0 }
 0x2ef   :  { %v3235_v19 = vadd.f32 %v16729_v16, %v19555_v49  ;;  %v3599_v53 = vpop.f32.mrf.mxu1  ;;  %v19638_v18 = vadd.f32 %v3535_v62, %v3214_v61 }
 0x2f0   :  { %v3227_v51 = vpop.f32.mrf.mxu0 }
 0x2f1   :  { %v3228_v4 = vadd.f32 %v3227_v51, %v19557_v0  ;;  %v16821_v52 = vpop.f32.mrf.mxu1  ;;  %v19641_v17 = vadd.f32 %v16809_v23, %v3235_v19 }
 0x2f2   :  { %v16732_v9 = vpop.f32.mrf.mxu0 }
 0x2f3   :  { %v3249_v6 = vadd.f32 %v16732_v9, %v19559_v33  ;;  %v3615_v44 = vpop.f32.mrf.mxu1  ;;  %v19644_v54 = vadd.f32 %v3551_v29, %v3228_v4 }
 0x2f4   :  { %v3241_v36 = vpop.f32.mrf.mxu0 }
 0x2f5   :  { %v3242_v32 = vadd.f32 %v3241_v36, %v19561_v41  ;;  %v16824_v63 = vpop.f32.mrf.mxu1  ;;  %v19647_v49 = vadd.f32 %v16812_v46, %v3249_v6 }
 0x2f6   :  { %v16735_v62 = vpop.f32.mrf.mxu0 }
 0x2f7   :  { %v3263_v42 = vadd.f32 %v16735_v62, %v19563_v8  ;;  %v3631_v25 = vpop.f32.mrf.mxu1  ;;  %v19650_v0 = vadd.f32 %v3567_v55, %v3242_v32 }
 0x2f8   :  { %v3255_v23 = vpop.f32.mrf.mxu0 }
 0x2f9   :  { %v3256_v39 = vadd.f32 %v3255_v23, %v19565_v1  ;;  %v19653_v30 = vadd.f32 %v16815_v43, %v3263_v42 }
 0x2fa   :  { %v16738_v33 = vpop.f32.mrf.mxu0  ;;  %v16827_v29 = vpop.f32.mrf.mxu1 }
 0x2fb   :  { %v3277_v3 = vadd.f32 %v16738_v33, %v19567_v38  ;;  %v19656_v61 = vadd.f32 %v3583_v2, %v3256_v39 }
 0x2fc   :  { %v3269_v41 = vpop.f32.mrf.mxu0  ;;  %v3647_v46 = vpop.f32.mrf.mxu1 }
 0x2fd   :  { %v3270_v16 = vadd.f32 %v3269_v41, %v19569_v57  ;;  %v19659_v19 = vadd.f32 %v16818_v15, %v3277_v3  ;;  %v3109_v15 = vadd.f32 %v19587_v60, %v19516_v11 }
 0x2fe   :  { %v16741_v8 = vpop.f32.mrf.mxu0 }
 0x2ff   :  { %v3291_v55 = vadd.f32 %v16741_v8, %v19573_v5  ;;  %v16942_v51 = vpop.f32.mrf.mxu1  ;;  %v19662_v4 = vadd.f32 %v3599_v53, %v3270_v16  ;;  %v3416_v11 = vadd.f32 %v19571_v28, %v3109_v15  ;;  %v7972_v15 = vld [vmem:[#allocation6 + $0x100] sm:$0xff] }
 0x300   :  { %v3283_v1 = vpop.f32.mrf.mxu0 }
 0x301   :  { %v3284_v43 = vadd.f32 %v3283_v1, %v19577_v58  ;;  %v4047_v9 = vpop.f32.mrf.mxu1  ;;  %v19665_v6 = vadd.f32 %v16821_v52, %v3291_v55  ;;  %v23801_v58 = vlaneseq  ;;  %v3102_v52 = vadd.f32 %v19589_v12, %v19518_v7 }
 0x302   :  { %v16744_v38 = vpop.f32.mrf.mxu0 }
 0x303   :  { %v3305_v2 = vadd.f32 %v16744_v38, %v19579_v40  ;;  %v16945_v36 = vpop.f32.mrf.mxu1  ;;  %v19668_v32 = vadd.f32 %v3615_v44, %v3284_v43  ;;  %v19689_v3 = vand.u32 127, %v23801_v58  ;;  %v4305_v38 = vld [vmem:[#allocation6 + $0x8] sm:$0xff] }
 0x304   :  { %v3297_v57 = vpop.f32.mrf.mxu0 }
 0x305   :  { %v3298_v5 = vadd.f32 %v3297_v57, %v19581_v24  ;;  %v4059_v53 = vpop.f32.mrf.mxu1  ;;  %v19673_v62 = vadd.f32 %v16824_v63, %v3305_v2  ;;  %24285 = vst [vmem:[#allocation57_spill] sm:$0xff] %v19689_v3  ;;  %vm4239_vm0 = vcmp.eq.s32.totalorder %v19689_v3, 0 }
 0x306   :  { %v16747_v42 = vpop.f32.mrf.mxu0 }
 0x307   :  { %v3319_v23 = vadd.f32 %v16747_v42, %v19583_v47  ;;  %v19678_v40 = vpop.f32.mrf.mxu1  ;;  %v19680_v44 = vadd.f32 %v3631_v25, %v3298_v5  ;;  %v3408_v47 = vadd.f32 %v19575_v56, %v3102_v52 }
 0x308   :  { %v3311_v39 = vpop.f32.mrf.mxu0 }
 0x309   :  { %24283 = vst [vmem:[#allocation46_spill] sm:$0xff] %v19680_v44  ;;  %v3312_v33 = vadd.f32 %v3311_v39, %v19585_v27  ;;  %v19684_v24 = vpop.f32.mrf.mxu1  ;;  %v19686_v60 = vadd.f32 %v16827_v29, %v3319_v23 }
 0x30a   :  { %v16862_v63 = vpop.f32.mrf.mxu0 }
 0x30b   :  { %24284 = vst [vmem:[#allocation51_spill] sm:$0xff] %v19686_v60  ;;  %v3781_v7 = vadd.f32 %v16862_v63, %v3416_v11  ;;  %v19692_v12 = vpop.f32.mrf.mxu1  ;;  %v19694_v25 = vadd.f32 %v3647_v46, %v3312_v33  ;;  %v11607_v63 = vld [vmem:[#allocation6 + $0x200] sm:$0xff] }
 0x30c   :  { %v3774_v41 = vpop.f32.mrf.mxu0 }
 0x30d   :  { %24286 = vst [vmem:[#allocation22_spill] sm:$0xff] %v19694_v25  ;;  %v4054_v16 = vadd.f32 %v16942_v51, %v3781_v7  ;;  %v3775_v27 = vadd.f32 %v3774_v41, %v3408_v47  ;;  %v19696_v8 = vpop.f32.mrf.mxu1  ;;  %v4306_v25 = vld [vmem:[#allocation6 + $0x10] sm:$0xff] }
 0x30e   :  { %v16865_v28 = vpop.f32.mrf.mxu0 }
 0x30f   :  { %v4241_v29 = vadd.f32 1.0, %v4054_v16  ;;  %v4048_v55 = vadd.f32 %v4047_v9, %v3775_v27  ;;  %v3793_v1 = vadd.f32 %v16865_v28, %v19593_v50  ;;  %v19700_v43 = vpop.f32.mrf.mxu1  ;;  %v7973_v9 = vld [vmem:[#allocation6 + $0x108] sm:$0xff] }
 0x310   :  { %v3786_v56 = vpop.f32.mrf.mxu0 }
 0x311   :  { %v4240_v2 = vadd.f32 1.0, %v4048_v55  ;;  %v4066_v57 = vadd.f32 %v16945_v36, %v3793_v1  ;;  %v19702_v46 = vpop.f32.mrf.mxu1  ;;  %v4273_v51 = vsel %vm4239_vm0, %v4241_v29, %v4054_v16  ;;  %v3787_v52 = vadd.f32 %v3786_v56, %v19596_v34  ;;  %v11608_v34 = vld [vmem:[#allocation6 + $0x208] sm:$0xff]  ;;  %v4307_v1 = vld [vmem:[#allocation6 + $0x18] sm:$0xff] }
 0x312   :  { %v16868_v5 = vpop.f32.mrf.mxu0  ;;  %v4337_v42 = vmul.f32 %v4305_v38, %v4273_v51  ;;  %v8005_v47 = vmul.f32 %v7973_v9, %v4273_v51  ;;  %v11640_v56 = vmul.f32 %v11608_v34, %v4273_v51  ;;  %v4304_v9 = vld [vmem:[#allocation6] sm:$0xff] }
 0x313   :  { %v19707_v23 = vpop.f32.mrf.mxu1  ;;  %v4272_v50 = vsel %vm4239_vm0, %v4240_v2, %v4048_v55  ;;  %v4243_v36 = vadd.f32 1.0, %v4066_v57  ;;  %v4060_v41 = vadd.f32 %v4059_v53, %v3787_v52  ;;  %v3805_v53 = vadd.f32 %v16868_v5, %v19599_v37 }
 0x314   :  { %24287 = vst [vmem:[#allocation25_spill] sm:$0xff] %v19707_v23  ;;  %4370 = vadd.xlane.f32.xlu0 %v4337_v42  ;;  %v3798_v39 = vpop.f32.mrf.mxu0  ;;  %v8004_v33 = vmul.f32 %v7972_v15, %v4272_v50  ;;  %v11639_v28 = vmul.f32 %v11607_v63, %v4272_v50 }
 0x315   :  { %v19711_v11 = vpop.f32.mrf.mxu1  ;;  %v4275_v55 = vsel %vm4239_vm0, %v4243_v36, %v4066_v57  ;;  %v4242_v2 = vadd.f32 1.0, %v4060_v41  ;;  %v3799_v15 = vadd.f32 %v3798_v39, %v19602_v59  ;;  %v4336_v57 = vmul.f32 %v4304_v9, %v4272_v50  ;;  %v7974_v39 = vld [vmem:[#allocation6 + $0x110] sm:$0xff] }
 0x316   :  { %v19713_v7 = vpop.f32.mrf.mxu0  ;;  %8036 = vadd.xlane.f32.xlu1 %v8004_v33  ;;  %v4339_v33 = vmul.f32 %v4307_v1, %v4275_v55  ;;  %v4078_v34 = vadd.f32 %v19678_v40, %v3805_v53  ;;  %v11610_v1 = vld [vmem:[#allocation6 + $0x218] sm:$0xff]  ;;  %v11609_v9 = vld [vmem:[#allocation6 + $0x210] sm:$0xff] }
 0x317   :  { %v16960_v16 = vpop.f32.mrf.mxu1  ;;  %v4072_v36 = vadd.f32 %v19684_v24, %v3799_v15  ;;  %v4274_v59 = vsel %vm4239_vm0, %v4242_v2, %v4060_v41  ;;  %v11642_v40 = vmul.f32 %v11610_v1, %v4275_v55 }
 0x318   :  { %8038 = vadd.xlane.f32.xlu0 %v8005_v47  ;;  %v3810_v27 = vpop.f32.mrf.mxu0  ;;  %v7975_v47 = vld [vmem:[#allocation6 + $0x118] sm:$0xff]  ;;  %v4245_v41 = vadd.f32 1.0, %v4078_v34 }
 0x319   :  { %v4119_v29 = vpop.f32.mrf.mxu1  ;;  %v8007_v5 = vmul.f32 %v7975_v47, %v4275_v55  ;;  %v4244_v50 = vadd.f32 1.0, %v4072_v36  ;;  %v3811_v60 = vadd.f32 %v3810_v27, %v19608_v21 }
 0x31a   :  { %v19717_v38 = vpop.f32.mrf.mxu0  ;;  %11671 = vadd.xlane.f32.xlu1 %v11639_v28  ;;  %v4277_v21 = vsel %vm4239_vm0, %v4245_v41, %v4078_v34 }
 0x31b   :  { %v16963_v42 = vpop.f32.mrf.mxu1  ;;  %v4276_v55 = vsel %vm4239_vm0, %v4244_v50, %v4072_v36  ;;  %v4084_v50 = vadd.f32 %v19696_v8, %v3811_v60 }
 0x31c   :  { %11673 = vadd.xlane.f32.xlu0 %v11640_v56  ;;  %v19721_v52 = vpop.f32.mrf.mxu0 }
 0x31d   :  { %v4131_v63 = vpop.f32.mrf.mxu1 }
 0x31e   :  { %v19723_v58 = vpop.f32.mrf.mxu0  ;;  %4374 = vadd.xlane.f32.xlu1 %v4339_v33  ;;  %v8006_v33 = vmul.f32 %v7974_v39, %v4274_v59  ;;  %v11641_v39 = vmul.f32 %v11609_v9, %v4274_v59  ;;  %v4309_v9 = vld [vmem:[#allocation6 + $0x28] sm:$0xff] }
 0x31f   :  { %v16966_v51 = vpop.f32.mrf.mxu1 }
 0x320   :  { %v19729_v37 = vpop.f32.mrf.mxu0  ;;  %4368 = vadd.xlane.f32.xlu0 %v4336_v57 }
 0x321   :  { %v19731_v28 = vpop.f32.mrf.mxu1 }
 0x322   :  { %v16880_v56 = vpop.f32.mrf.mxu0  ;;  %8042 = vadd.xlane.f32.xlu1 %v8007_v5 }
 0x323   :  { %v3853_v24 = vadd.f32 %v16880_v56, %v19623_v14  ;;  %v19734_v15 = vpop.f32.mrf.mxu1 }
 0x324   :  { %v3846_v2 = vpop.f32.mrf.mxu0  ;;  %8040 = vadd.xlane.f32.xlu0 %v8006_v33  ;;  %v4338_v33 = vmul.f32 %v4306_v25, %v4274_v59 }
 0x325   :  { %v4126_v53 = vadd.f32 %v16960_v16, %v3853_v24  ;;  %v3847_v57 = vadd.f32 %v3846_v2, %v19626_v10  ;;  %v19737_v47 = vpop.f32.mrf.mxu1  ;;  %v4308_v16 = vld [vmem:[#allocation6 + $0x20] sm:$0xff]  ;;  %v3817_v10 = vadd.f32 %v19713_v7, %v19605_v31 }
 0x326   :  { %v16883_v5 = vpop.f32.mrf.mxu0  ;;  %11677 = vadd.xlane.f32.xlu1 %v11642_v40  ;;  %v4340_v7 = vmul.f32 %v4308_v16, %v4276_v55  ;;  %v4341_v40 = vmul.f32 %v4309_v9, %v4277_v21 }
 0x327   :  { %v4253_v44 = vadd.f32 1.0, %v4126_v53  ;;  %v4120_v14 = vadd.f32 %v4119_v29, %v3847_v57  ;;  %v3865_v56 = vadd.f32 %v16883_v5, %v19629_v13  ;;  %v19741_v23 = vpop.f32.mrf.mxu1  ;;  %v4090_v2 = vadd.f32 %v19692_v12, %v3817_v10 }
 0x328   :  { %v3858_v1 = vpop.f32.mrf.mxu0  ;;  %11675 = vadd.xlane.f32.xlu0 %v11641_v39  ;;  %v4246_v5 = vadd.f32 1.0, %v4084_v50 }
 0x329   :  { %v4252_v27 = vadd.f32 1.0, %v4120_v14  ;;  %v4138_v24 = vadd.f32 %v16963_v42, %v3865_v56  ;;  %v3859_v29 = vadd.f32 %v3858_v1, %v19632_v20  ;;  %v19750_v13 = vpop.f32.mrf.mxu1  ;;  %v19754_v36 = vsel %vm4239_vm0, %v4253_v44, %v4126_v53  ;;  %v7976_v42 = vld [vmem:[#allocation6 + $0x120] sm:$0xff] }
 0x32a   :  { %v16886_v31 = vpop.f32.mrf.mxu0  ;;  %4372 = vadd.xlane.f32.xlu1 %v4338_v33  ;;  %v4247_v1 = vadd.f32 1.0, %v4090_v2 }
 0x32b   :  { %v4255_v25 = vadd.f32 1.0, %v4138_v24  ;;  %v4132_v59 = vadd.f32 %v4131_v63, %v3859_v29  ;;  %v3877_v34 = vadd.f32 %v16886_v31, %v19635_v45  ;;  %v19758_v41 = vpop.f32.mrf.mxu1  ;;  %v19762_v20 = vsel %vm4239_vm0, %v4252_v27, %v4120_v14  ;;  %v7977_v63 = vld [vmem:[#allocation6 + $0x128] sm:$0xff] }
 0x32c   :  { %v3870_v44 = vpop.f32.mrf.mxu0  ;;  %4376 = vadd.xlane.f32.xlu0 %v4340_v7  ;;  %v8008_v14 = vmul.f32 %v7976_v42, %v4276_v55  ;;  %v8009_v27 = vmul.f32 %v7977_v63, %v4277_v21  ;;  %v11612_v31 = vld [vmem:[#allocation6 + $0x228] sm:$0xff] }
 0x32d   :  { %v4254_v60 = vadd.f32 1.0, %v4132_v59  ;;  %v4150_v8 = vadd.f32 %v16966_v51, %v3877_v34  ;;  %v3871_v53 = vadd.f32 %v3870_v44, %v19638_v18  ;;  %v19766_v57 = vpop.f32.mrf.mxu1  ;;  %v19770_v45 = vsel %vm4239_vm0, %v4255_v25, %v4138_v24  ;;  %v11611_v51 = vld [vmem:[#allocation6 + $0x220] sm:$0xff]  ;;  %v4310_v44 = vld [vmem:[#allocation6 + $0x30] sm:$0xff] }
 0x32e   :  { %v16889_v39 = vpop.f32.mrf.mxu0  ;;  %4378 = vadd.xlane.f32.xlu1 %v4341_v40  ;;  %v4278_v34 = vsel %vm4239_vm0, %v4246_v5, %v4084_v50 }
 0x32f   :  { %v4257_v56 = vadd.f32 1.0, %v4150_v8  ;;  %v4144_v12 = vadd.f32 %v19731_v28, %v3871_v53  ;;  %v3889_v16 = vadd.f32 %v16889_v39, %v19641_v17  ;;  %v19774_v10 = vpop.f32.mrf.mxu1  ;;  %v19778_v18 = vsel %vm4239_vm0, %v4254_v60, %v4132_v59 }
 0x330   :  { %v3882_v33 = vpop.f32.mrf.mxu0  ;;  %8044 = vadd.xlane.f32.xlu0 %v8008_v14  ;;  %v3823_v28 = vadd.f32 %v19721_v52, %v19614_v26  ;;  %v11643_v59 = vmul.f32 %v11611_v51, %v4276_v55  ;;  %v3829_v26 = vadd.f32 %v19717_v38, %v19611_v35  ;;  %v11644_v60 = vmul.f32 %v11612_v31, %v4277_v21  ;;  %v7978_v14 = vld [vmem:[#allocation6 + $0x130] sm:$0xff] }
 0x331   :  { %v4256_v24 = vadd.f32 1.0, %v4144_v12  ;;  %v4162_v29 = vadd.f32 %v19734_v15, %v3889_v16  ;;  %v3883_v9 = vadd.f32 %v3882_v33, %v19644_v54  ;;  %v19784_v17 = vsel %vm4239_vm0, %v4257_v56, %v4150_v8  ;;  %v19788_v25 = vpop.f32.mrf.mxu1  ;;  %v11613_v31 = vld [vmem:[#allocation6 + $0x230] sm:$0xff] }
 0x332   :  { %v16892_v7 = vpop.f32.mrf.mxu0  ;;  %8046 = vadd.xlane.f32.xlu1 %v8009_v27  ;;  %v4279_v55 = vsel %vm4239_vm0, %v4247_v1, %v4090_v2  ;;  %v4096_v63 = vadd.f32 %v19702_v46, %v3823_v28  ;;  %v4342_v38 = vmul.f32 %v4310_v44, %v4278_v34  ;;  %v7979_v1 = vld [vmem:[#allocation6 + $0x138] sm:$0xff] }
 0x333   :  { %v4259_v42 = vadd.f32 1.0, %v4162_v29  ;;  %v4156_v15 = vadd.f32 %v19737_v47, %v3883_v9  ;;  %v3901_v54 = vadd.f32 %v16892_v7, %v19647_v49  ;;  %v19796_v40 = vsel %vm4239_vm0, %v4256_v24, %v4144_v12  ;;  %v4311_v49 = vld [vmem:[#allocation6 + $0x38] sm:$0xff]  ;;  %v16981_v35 = vpop.f32.mrf.mxu1 }
 0x334   :  { %v3894_v52 = vpop.f32.mrf.mxu0  ;;  %11679 = vadd.xlane.f32.xlu0 %v11643_v59  ;;  %v4343_v12 = vmul.f32 %v4311_v49, %v4279_v55  ;;  %v8010_v24 = vmul.f32 %v7978_v14, %v4278_v34  ;;  %v8011_v7 = vmul.f32 %v7979_v1, %v4279_v55 }
 0x335   :  { %v4258_v50 = vadd.f32 1.0, %v4156_v15  ;;  %v4174_v8 = vadd.f32 %v19741_v23, %v3901_v54  ;;  %v3895_v47 = vadd.f32 %v3894_v52, %v19650_v0  ;;  %v19806_v53 = vsel %vm4239_vm0, %v4259_v42, %v4162_v29  ;;  %v4203_v33 = vpop.f32.mrf.mxu1  ;;  %v11614_v54 = vld [vmem:[#allocation6 + $0x238] sm:$0xff] }
 0x336   :  { %v16895_v5 = vpop.f32.mrf.mxu0  ;;  %11681 = vadd.xlane.f32.xlu1 %v11644_v60  ;;  %v4102_v23 = vadd.f32 %v19700_v43, %v3829_v26  ;;  %v11645_v52 = vmul.f32 %v11613_v31, %v4278_v34  ;;  %v11646_v49 = vmul.f32 %v11614_v54, %v4279_v55  ;;  %v24290_v31 = vld [vmem:[#allocation51_spill] sm:$0xff] }
 0x337   :  { %v4261_v21 = vadd.f32 1.0, %v4174_v8  ;;  %v4168_v39 = vadd.f32 %v19750_v13, %v3895_v47  ;;  %v3913_v2 = vadd.f32 %v16895_v5, %v19653_v30  ;;  %v19813_v0 = vsel %vm4239_vm0, %v4258_v50, %v4156_v15  ;;  %v16984_v44 = vpop.f32.mrf.mxu1 }
 0x338   :  { %v3906_v56 = vpop.f32.mrf.mxu0  ;;  %4380 = vadd.xlane.f32.xlu0 %v4342_v38  ;;  %v4248_v30 = vadd.f32 1.0, %v4096_v63  ;;  %v4313_v38 = vld [vmem:[#allocation6 + $0x48] sm:$0xff] }
 0x339   :  { %v4260_v46 = vadd.f32 1.0, %v4168_v39  ;;  %v4186_v16 = vadd.f32 %v19758_v41, %v3913_v2  ;;  %v3907_v51 = vadd.f32 %v3906_v56, %v19656_v61  ;;  %v19820_v13 = vsel %vm4239_vm0, %v4261_v21, %v4174_v8  ;;  %v4312_v8 = vld [vmem:[#allocation6 + $0x40] sm:$0xff] }
 0x33a   :  { %v16898_v27 = vpop.f32.mrf.mxu0  ;;  %4382 = vadd.xlane.f32.xlu1 %v4343_v12  ;;  %v4249_v61 = vadd.f32 1.0, %v4102_v23  ;;  %v4280_v60 = vsel %vm4239_vm0, %v4248_v30, %v4096_v63  ;;  %v7981_v30 = vld [vmem:[#allocation6 + $0x148] sm:$0xff] }
 0x33b   :  { %v4263_v29 = vadd.f32 1.0, %v4186_v16  ;;  %v4180_v43 = vadd.f32 %v19766_v57, %v3907_v51  ;;  %v3925_v9 = vadd.f32 %v16898_v27, %v19659_v19  ;;  %v19826_v41 = vsel %vm4239_vm0, %v4260_v46, %v4168_v39  ;;  %v4215_v39 = vpop.f32.mrf.mxu1  ;;  %v24289_v51 = vld [vmem:[#allocation46_spill] sm:$0xff] }
 0x33c   :  { %v3918_v28 = vpop.f32.mrf.mxu0  ;;  %8048 = vadd.xlane.f32.xlu0 %v8010_v24  ;;  %v3835_v19 = vadd.f32 %v19729_v37, %v19620_v22  ;;  %v3841_v22 = vadd.f32 %v19723_v58, %v19617_v48  ;;  %v4281_v34 = vsel %vm4239_vm0, %v4249_v61, %v4102_v23  ;;  %v4344_v48 = vmul.f32 %v4312_v8, %v4280_v60  ;;  %v7980_v23 = vld [vmem:[#allocation6 + $0x140] sm:$0xff] }
 0x33d   :  { %v4262_v59 = vadd.f32 1.0, %v4180_v43  ;;  %v4198_v42 = vadd.f32 %v19774_v10, %v3925_v9  ;;  %v3919_v15 = vadd.f32 %v3918_v28, %v19662_v4  ;;  %v19832_v57 = vsel %vm4239_vm0, %v4263_v29, %v4186_v16  ;;  %v16987_v27 = vpop.f32.mrf.mxu1  ;;  %v11615_v28 = vld [vmem:[#allocation6 + $0x240] sm:$0xff] }
 0x33e   :  { %v16901_v26 = vpop.f32.mrf.mxu0  ;;  %8050 = vadd.xlane.f32.xlu1 %v8011_v7  ;;  %v4108_v21 = vadd.f32 %v19711_v11, %v3835_v19  ;;  %v4345_v46 = vmul.f32 %v4313_v38, %v4281_v34  ;;  %v8012_v29 = vmul.f32 %v7980_v23, %v4280_v60 }
 0x33f   :  { %v4265_v50 = vadd.f32 1.0, %v4198_v42  ;;  %v4192_v10 = vadd.f32 %v19788_v25, %v3919_v15  ;;  %v3937_v4 = vadd.f32 %v16901_v26, %v19665_v6  ;;  %v19842_v47 = vsel %vm4239_vm0, %v4262_v59, %v4180_v43 }
 0x340   :  { %v3930_v37 = vpop.f32.mrf.mxu0  ;;  %11683 = vadd.xlane.f32.xlu0 %v11645_v52  ;;  %v8013_v15 = vmul.f32 %v7981_v30, %v4281_v34  ;;  %v11616_v52 = vld [vmem:[#allocation6 + $0x248] sm:$0xff] }
 0x341   :  { %v4264_v63 = vadd.f32 1.0, %v4192_v10  ;;  %v4210_v5 = vadd.f32 %v16981_v35, %v3937_v4  ;;  %v3931_v25 = vadd.f32 %v3930_v37, %v19668_v32  ;;  %v19851_v6 = vsel %vm4239_vm0, %v4265_v50, %v4198_v42  ;;  %v24288_v32 = vld [vmem:[#allocation25_spill] sm:$0xff]  ;;  %v7985_v30 = vld [vmem:[#allocation6 + $0x168] sm:$0xff] }
 0x342   :  { %v16904_v2 = vpop.f32.mrf.mxu0  ;;  %11685 = vadd.xlane.f32.xlu1 %v11646_v49  ;;  %v4114_v56 = vadd.f32 %v24288_v32, %v3841_v22  ;;  %v11647_v4 = vmul.f32 %v11615_v28, %v4280_v60  ;;  %v4314_v49 = vld [vmem:[#allocation6 + $0x50] sm:$0xff]  ;;  %v11618_v32 = vld [vmem:[#allocation6 + $0x258] sm:$0xff] }
 0x343   :  { %v4267_v58 = vadd.f32 1.0, %v4210_v5  ;;  %v4204_v55 = vadd.f32 %v4203_v33, %v3931_v25  ;;  %v3949_v14 = vadd.f32 %v16904_v2, %v19673_v62  ;;  %v19857_v35 = vsel %vm4239_vm0, %v4264_v63, %v4192_v10  ;;  %v4227_v10 = vpop.f32.mrf.mxu1 }
 0x344   :  { %v3942_v12 = vpop.f32.mrf.mxu0  ;;  %4384 = vadd.xlane.f32.xlu0 %v4344_v48  ;;  %v4250_v62 = vadd.f32 1.0, %v4108_v21  ;;  %v4251_v59 = vadd.f32 1.0, %v4114_v56  ;;  %v7982_v48 = vld [vmem:[#allocation6 + $0x150] sm:$0xff] }
 0x345   :  { %v4266_v16 = vadd.f32 1.0, %v4204_v55  ;;  %v4222_v11 = vadd.f32 %v16984_v44, %v3949_v14  ;;  %v3943_v1 = vadd.f32 %v3942_v12, %v24289_v51  ;;  %v19863_v33 = vsel %vm4239_vm0, %v4267_v58, %v4210_v5  ;;  %v24291_v44 = vld [vmem:[#allocation22_spill] sm:$0xff]  ;;  %v11617_v14 = vld [vmem:[#allocation6 + $0x250] sm:$0xff]  ;;  %v4316_v12 = vld [vmem:[#allocation6 + $0x60] sm:$0xff] }
 0x346   :  { %v16907_v24 = vpop.f32.mrf.mxu0  ;;  %4386 = vadd.xlane.f32.xlu1 %v4345_v46  ;;  %v4282_v37 = vsel %vm4239_vm0, %v4250_v62, %v4108_v21  ;;  %v11648_v5 = vmul.f32 %v11616_v52, %v4281_v34  ;;  %v4283_v38 = vsel %vm4239_vm0, %v4251_v59, %v4114_v56  ;;  %v7984_v51 = vld [vmem:[#allocation6 + $0x160] sm:$0xff]  ;;  %v7986_v59 = vld [vmem:[#allocation6 + $0x170] sm:$0xff] }
 0x347   :  { %v4269_v43 = vadd.f32 1.0, %v4222_v11  ;;  %v4216_v9 = vadd.f32 %v4215_v39, %v3943_v1  ;;  %v3961_v61 = vadd.f32 %v16907_v24, %v24290_v31  ;;  %v19868_v7 = vsel %vm4239_vm0, %v4266_v16, %v4204_v55  ;;  %v4315_v39 = vld [vmem:[#allocation6 + $0x58] sm:$0xff]  ;;  %v4317_v16 = vld [vmem:[#allocation6 + $0x68] sm:$0xff] }
 0x348   :  { %v3954_v42 = vpop.f32.mrf.mxu0  ;;  %8052 = vadd.xlane.f32.xlu0 %v8012_v29  ;;  %v4346_v2 = vmul.f32 %v4314_v49, %v4282_v37  ;;  %v4347_v58 = vmul.f32 %v4315_v39, %v4283_v38  ;;  %v7983_v55 = vld [vmem:[#allocation6 + $0x158] sm:$0xff]  ;;  %v8014_v34 = vmul.f32 %v7982_v48, %v4282_v37  ;;  %v11649_v56 = vmul.f32 %v11617_v14, %v4282_v37  ;;  %v11620_v29 = vld [vmem:[#allocation6 + $0x268] sm:$0xff] }
 0x349   :  { %v4268_v54 = vadd.f32 1.0, %v4216_v9  ;;  %v4234_v19 = vadd.f32 %v16987_v27, %v3961_v61  ;;  %v3955_v26 = vadd.f32 %v3954_v42, %v24291_v44  ;;  %v19873_v50 = vsel %vm4239_vm0, %v4269_v43, %v4222_v11  ;;  %v11619_v27 = vld [vmem:[#allocation6 + $0x260] sm:$0xff]  ;;  %v4319_v61 = vld [vmem:[#allocation6 + $0x78] sm:$0xff]  ;;  %v7989_v37 = vld [vmem:[#allocation6 + $0x188] sm:$0xff] }
 0x34a   :  { %8054 = vadd.xlane.f32.xlu1 %v8013_v15  ;;  %v8015_v23 = vmul.f32 %v7983_v55, %v4283_v38  ;;  %v11650_v46 = vmul.f32 %v11618_v32, %v4283_v38  ;;  %v4348_v11 = vmul.f32 %v4316_v12, %v19762_v20  ;;  %v4349_v1 = vmul.f32 %v4317_v16, %v19754_v36  ;;  %v7987_v15 = vld [vmem:[#allocation6 + $0x178] sm:$0xff]  ;;  %v4322_v38 = vld [vmem:[#allocation6 + $0x90] sm:$0xff]  ;;  %v24293_v16 = vld [vmem:[#allocation69_spill] sm:$0xff] }
 0x34b   :  { %v4271_v8 = vadd.f32 1.0, %v4234_v19  ;;  %v4228_v22 = vadd.f32 %v4227_v10, %v3955_v26  ;;  %v19879_v63 = vsel %vm4239_vm0, %v4268_v54, %v4216_v9  ;;  %v8016_v62 = vmul.f32 %v7984_v51, %v19762_v20  ;;  %v4318_v9 = vld [vmem:[#allocation6 + $0x70] sm:$0xff]  ;;  %v11622_v44 = vld [vmem:[#allocation6 + $0x278] sm:$0xff]  ;;  %v4320_v26 = vld [vmem:[#allocation6 + $0x80] sm:$0xff] }
 0x34c   :  { %11687 = vadd.xlane.f32.xlu0 %v11647_v4  ;;  %v8017_v24 = vmul.f32 %v7985_v30, %v19754_v36  ;;  %v11651_v43 = vmul.f32 %v11619_v27, %v19762_v20  ;;  %v11652_v31 = vmul.f32 %v11620_v29, %v19754_v36  ;;  %v4350_v28 = vmul.f32 %v4318_v9, %v19778_v18  ;;  %v4321_v10 = vld [vmem:[#allocation6 + $0x88] sm:$0xff]  ;;  %v7991_v14 = vld [vmem:[#allocation6 + $0x198] sm:$0xff]  ;;  %v24294_v27 = vld [vmem:[#allocation33_spill] sm:$0xff] }
 0x34d   :  { %v4270_v25 = vadd.f32 1.0, %v4228_v22  ;;  %v19885_v60 = vsel %vm4239_vm0, %v4271_v8, %v4234_v19  ;;  %v4351_v42 = vmul.f32 %v4319_v61, %v19770_v45  ;;  %v8018_v54 = vmul.f32 %v7986_v59, %v19778_v18  ;;  %v11621_v19 = vld [vmem:[#allocation6 + $0x270] sm:$0xff]  ;;  %v7988_v8 = vld [vmem:[#allocation6 + $0x180] sm:$0xff]  ;;  %v11626_v30 = vld [vmem:[#allocation6 + $0x298] sm:$0xff] }
 0x34e   :  { %11689 = vadd.xlane.f32.xlu1 %v11648_v5  ;;  %v8019_v20 = vmul.f32 %v7987_v15, %v19770_v45  ;;  %v11653_v36 = vmul.f32 %v11621_v19, %v19778_v18  ;;  %v11654_v52 = vmul.f32 %v11622_v44, %v19770_v45  ;;  %v4352_v4 = vmul.f32 %v4320_v26, %v19796_v40  ;;  %v11623_v5 = vld [vmem:[#allocation6 + $0x280] sm:$0xff] }
 0x34f   :  { %v19889_v21 = vsel %vm4239_vm0, %v4270_v25, %v4228_v22  ;;  %v4353_v22 = vmul.f32 %v4321_v10, %v19784_v17  ;;  %v8020_v49 = vmul.f32 %v7988_v8, %v19796_v40  ;;  %v8021_v18 = vmul.f32 %v7989_v37, %v19784_v17  ;;  %v11624_v25 = vld [vmem:[#allocation6 + $0x288] sm:$0xff]  ;;  %v24297_v19 = vld [vmem:[#allocation41_spill] sm:$0xff]  ;;  %v24298_v8 = vld [vmem:[#allocation75_spill] sm:$0xff] }
 0x350   :  { %4388 = vadd.xlane.f32.xlu0 %v4346_v2  ;;  %v11655_v45 = vmul.f32 %v11623_v5, %v19796_v40  ;;  %v11656_v39 = vmul.f32 %v11624_v25, %v19784_v17  ;;  %v4323_v2 = vld [vmem:[#allocation6 + $0x98] sm:$0xff]  ;;  %v4354_v48 = vmul.f32 %v4322_v38, %v19813_v0  ;;  %v19916_v32 = vstv %s15387_s26  ;;  %v24292_v17 = vld [vmem:[#allocation59_spill] sm:$0xff] }
 0x351   :  { %v4355_v55 = vmul.f32 %v4323_v2, %v19806_v53  ;;  %v19991_v10 = vmul.f32 %v24297_v19, %v19916_v32  ;;  %v24299_v37 = vld [vmem:[#allocation72_spill] sm:$0xff]  ;;  %v20012_v25 = vmul.f32 %v24298_v8, %v19916_v32  ;;  %v24302_v38 = vld [vmem:[#allocation79_spill] sm:$0xff]  ;;  %v7992_v2 = vld [vmem:[#allocation6 + $0x1a0] sm:$0xff] }
 0x352   :  { %4390 = vadd.xlane.f32.xlu1 %v4347_v58  ;;  %v7990_v58 = vld [vmem:[#allocation6 + $0x190] sm:$0xff] }
 0x353   :  { %v8022_v40 = vmul.f32 %v7990_v58, %v19813_v0  ;;  %24300 = vst [vmem:[#allocation37_spill] sm:$0xff] %v20012_v25 }
 0x354   :  { %8056 = vadd.xlane.f32.xlu0 %v8014_v34  ;;  %v19911_v34 = vstv %s4432_s4 }
 0x355   :  { %v19920_v12 = vmul.f32 %v24292_v17, %v19911_v34  ;;  %v19945_v29 = vmul.f32 %v24293_v16, %v19911_v34 }
 0x356   :  { %8058 = vadd.xlane.f32.xlu1 %v8015_v23  ;;  %v19913_v23 = vstv %s15322_s25 }
 0x357   :  { %v19929_v51 = vmul.f32 %v24292_v17, %v19913_v23  ;;  %v19983_v26 = vmul.f32 %v24297_v19, %v19913_v23  ;;  %v20007_v5 = vmul.f32 %v24299_v37, %v19913_v23 }
 0x358   :  { %11691 = vadd.xlane.f32.xlu0 %v11649_v56  ;;  %v11625_v56 = vld [vmem:[#allocation6 + $0x290] sm:$0xff] }
 0x359   :  { %v11657_v9 = vmul.f32 %v11625_v56, %v19813_v0 }
 0x35a   :  { %11693 = vadd.xlane.f32.xlu1 %v11650_v46  ;;  %v8023_v46 = vmul.f32 %v7991_v14, %v19806_v53 }
 0x35c   :  { %4392 = vadd.xlane.f32.xlu0 %v4348_v11  ;;  %v19925_v11 = vmul.f32 %v24293_v16, %v19913_v23 }
 0x35e   :  { %4394 = vadd.xlane.f32.xlu1 %v4349_v1  ;;  %v19933_v1 = vmul.f32 %v24293_v16, %v19916_v32 }
 0x360   :  { %8060 = vadd.xlane.f32.xlu0 %v8016_v62  ;;  %v19937_v62 = vmul.f32 %v24292_v17, %v19916_v32 }
 0x362   :  { %8062 = vadd.xlane.f32.xlu1 %v8017_v24  ;;  %v19941_v24 = vmul.f32 %v24294_v27, %v19911_v34 }
 0x364   :  { %11695 = vadd.xlane.f32.xlu0 %v11651_v43  ;;  %v19949_v43 = vmul.f32 %v24294_v27, %v19913_v23 }
 0x366   :  { %11697 = vadd.xlane.f32.xlu1 %v11652_v31  ;;  %v24295_v31 = vld [vmem:[#allocation67_spill] sm:$0xff] }
 0x367   :  { %v19954_v61 = vmul.f32 %v24295_v31, %v19913_v23  ;;  %v19962_v59 = vmul.f32 %v24295_v31, %v19916_v32  ;;  %v19966_v15 = vmul.f32 %v24295_v31, %v19911_v34 }
 0x368   :  { %4396 = vadd.xlane.f32.xlu0 %v4350_v28  ;;  %v19958_v28 = vmul.f32 %v24294_v27, %v19916_v32 }
 0x36a   :  { %4398 = vadd.xlane.f32.xlu1 %v4351_v42  ;;  %v4324_v42 = vld [vmem:[#allocation6 + $0xa0] sm:$0xff] }
 0x36c   :  { %8064 = vadd.xlane.f32.xlu0 %v8018_v54  ;;  %v24296_v54 = vld [vmem:[#allocation70_spill] sm:$0xff] }
 0x36d   :  { %v19970_v0 = vmul.f32 %v24296_v54, %v19911_v34  ;;  %v19978_v44 = vmul.f32 %v24296_v54, %v19913_v23 }
 0x36e   :  { %8066 = vadd.xlane.f32.xlu1 %v8019_v20  ;;  %v19974_v20 = vmul.f32 %v24297_v19, %v19911_v34 }
 0x370   :  { %11699 = vadd.xlane.f32.xlu0 %v11653_v36  ;;  %v11658_v36 = vmul.f32 %v11626_v30, %v19806_v53  ;;  %v19999_v53 = vmul.f32 %v24299_v37, %v19911_v34  ;;  %v24312_v30 = vld [vmem:[#allocation81_spill] sm:$0xff] }
 0x371   :  { %v20049_v27 = vmul.f32 %v24312_v30, %v19911_v34  ;;  %v20065_v19 = vmul.f32 %v24312_v30, %v19916_v32 }
 0x372   :  { %11701 = vadd.xlane.f32.xlu1 %v11654_v52  ;;  %v19987_v52 = vmul.f32 %v24296_v54, %v19916_v32 }
 0x373   :  { %24313 = vst [vmem:[#allocation30_spill] sm:$0xff] %v20049_v27  ;;  %24317 = vst [vmem:[#allocation54_spill] sm:$0xff] %v20065_v19  ;;  %v7997_v19 = vld [vmem:[#allocation6 + $0x1c8] sm:$0xff]  ;;  %v11634_v27 = vld [vmem:[#allocation6 + $0x2d8] sm:$0xff] }
 0x374   :  { %4400 = vadd.xlane.f32.xlu0 %v4352_v4  ;;  %v4325_v4 = vld [vmem:[#allocation6 + $0xa8] sm:$0xff] }
 0x375   :  { %v4357_v56 = vmul.f32 %v4325_v4, %v19820_v13  ;;  %v24318_v4 = vld [vmem:[#allocation78_spill] sm:$0xff] }
 0x376   :  { %4402 = vadd.xlane.f32.xlu1 %v4353_v22  ;;  %v19995_v22 = vmul.f32 %v24298_v8, %v19911_v34 }
 0x378   :  { %8068 = vadd.xlane.f32.xlu0 %v8020_v49  ;;  %v20003_v49 = vmul.f32 %v24298_v8, %v19913_v23  ;;  %v20070_v8 = vmul.f32 %v24318_v4, %v19911_v34 }
 0x37a   :  { %8070 = vadd.xlane.f32.xlu1 %v8021_v18  ;;  %v4356_v18 = vmul.f32 %v4324_v42, %v19826_v41  ;;  %v20057_v42 = vmul.f32 %v24312_v30, %v19913_v23  ;;  %24319 = vst [vmem:[#allocation65_spill] sm:$0xff] %v20070_v8  ;;  %v24326_v30 = vld [vmem:[#allocation80_spill] sm:$0xff] }
 0x37b   :  { %v20094_v3 = vmul.f32 %v24326_v30, %v19911_v34 }
 0x37c   :  { %11703 = vadd.xlane.f32.xlu0 %v11655_v45  ;;  %v20016_v45 = vmul.f32 %v24299_v37, %v19916_v32  ;;  %24315 = vst [vmem:[#allocation55_spill] sm:$0xff] %v20057_v42  ;;  %v24320_v37 = vld [vmem:[#allocation89_spill] sm:$0xff] }
 0x37d   :  { %24327 = vst [vmem:[#allocation77_spill] sm:$0xff] %v20094_v3  ;;  %v24336_v3 = vld [vmem:[#allocation21_spill] sm:$0xff] }
 0x37e   :  { %11705 = vadd.xlane.f32.xlu1 %v11656_v39  ;;  %24301 = vst [vmem:[#allocation36_spill] sm:$0xff] %v20016_v45  ;;  %v20020_v39 = vmul.f32 %v24302_v38, %v19911_v34 }
 0x380   :  { %4404 = vadd.xlane.f32.xlu0 %v4354_v48  ;;  %24303 = vst [vmem:[#allocation47_spill] sm:$0xff] %v20020_v39  ;;  %v24304_v48 = vld [vmem:[#allocation76_spill] sm:$0xff] }
 0x381   :  { %v20024_v58 = vmul.f32 %v24304_v48, %v19911_v34  ;;  %v20032_v14 = vmul.f32 %v24304_v48, %v19913_v23  ;;  %v20041_v17 = vmul.f32 %v24304_v48, %v19916_v32  ;;  %v11627_v48 = vld [vmem:[#allocation6 + $0x2a0] sm:$0xff] }
 0x382   :  { %4406 = vadd.xlane.f32.xlu1 %v4355_v55  ;;  %v20028_v55 = vmul.f32 %v24302_v38, %v19913_v23 }
 0x383   :  { %24305 = vst [vmem:[#allocation53_spill] sm:$0xff] %v20024_v58  ;;  %24307 = vst [vmem:[#allocation61_spill] sm:$0xff] %v20032_v14  ;;  %v11637_v58 = vld [vmem:[#allocation6 + $0x2f0] sm:$0xff] }
 0x384   :  { %8072 = vadd.xlane.f32.xlu0 %v8022_v40  ;;  %24306 = vst [vmem:[#allocation60_spill] sm:$0xff] %v20028_v55  ;;  %v20036_v40 = vmul.f32 %v24302_v38, %v19916_v32  ;;  %24309 = vst [vmem:[#allocation64_spill] sm:$0xff] %v20041_v17  ;;  %v20078_v38 = vmul.f32 %v24318_v4, %v19913_v23  ;;  %v4335_v17 = vld [vmem:[#allocation6 + $0xf8] sm:$0xff]  ;;  %v8002_v55 = vld [vmem:[#allocation6 + $0x1f0] sm:$0xff]  ;;  %v20401_v45 = vmul.f32 %v11637_v58, %v19889_v21 }
 0x386   :  { %8074 = vadd.xlane.f32.xlu1 %v8023_v46  ;;  %24308 = vst [vmem:[#allocation24_spill] sm:$0xff] %v20036_v40  ;;  %v24310_v46 = vld [vmem:[#allocation87_spill] sm:$0xff]  ;;  %24322 = vst [vmem:[#allocation58_spill] sm:$0xff] %v20078_v38 }
 0x387   :  { %v20045_v16 = vmul.f32 %v24310_v46, %v19911_v34  ;;  %v20053_v31 = vmul.f32 %v24310_v46, %v19913_v23  ;;  %v20061_v54 = vmul.f32 %v24310_v46, %v19916_v32  ;;  %v20082_v46 = vmul.f32 %v24320_v37, %v19913_v23 }
 0x388   :  { %11707 = vadd.xlane.f32.xlu0 %v11657_v9  ;;  %v7993_v9 = vld [vmem:[#allocation6 + $0x1a8] sm:$0xff] }
 0x389   :  { %24311 = vst [vmem:[#allocation38_spill] sm:$0xff] %v20045_v16  ;;  %24314 = vst [vmem:[#allocation49_spill] sm:$0xff] %v20053_v31  ;;  %v8025_v38 = vmul.f32 %v7993_v9, %v19820_v13  ;;  %v7999_v31 = vld [vmem:[#allocation6 + $0x1d8] sm:$0xff]  ;;  %v11635_v16 = vld [vmem:[#allocation6 + $0x2e0] sm:$0xff] }
 0x38a   :  { %11709 = vadd.xlane.f32.xlu1 %v11658_v36  ;;  %24316 = vst [vmem:[#allocation56_spill] sm:$0xff] %v20061_v54  ;;  %v8024_v36 = vmul.f32 %v7992_v2, %v19826_v41  ;;  %24323 = vst [vmem:[#allocation66_spill] sm:$0xff] %v20082_v46  ;;  %v20086_v2 = vmul.f32 %v24318_v4, %v19916_v32  ;;  %v20103_v46 = vmul.f32 %v24326_v30, %v19913_v23  ;;  %v11631_v54 = vld [vmem:[#allocation6 + $0x2c0] sm:$0xff] }
 0x38c   :  { %4408 = vadd.xlane.f32.xlu0 %v4356_v18  ;;  %v20074_v18 = vmul.f32 %v24320_v37, %v19911_v34  ;;  %24324 = vst [vmem:[#allocation73_spill] sm:$0xff] %v20086_v2  ;;  %24330 = vst [vmem:[#allocation83_spill] sm:$0xff] %v20103_v46  ;;  %v11659_v46 = vmul.f32 %v11627_v48, %v19826_v41  ;;  %v20124_v2 = vmul.f32 %v24336_v3, %v19911_v34 }
 0x38e   :  { %4410 = vadd.xlane.f32.xlu1 %v4357_v56  ;;  %24321 = vst [vmem:[#allocation68_spill] sm:$0xff] %v20074_v18  ;;  %v20090_v56 = vmul.f32 %v24320_v37, %v19916_v32  ;;  %v24328_v18 = vld [vmem:[#allocation93_spill] sm:$0xff]  ;;  %v11628_v37 = vld [vmem:[#allocation6 + $0x2a8] sm:$0xff]  ;;  %24337 = vst [vmem:[#allocation86_spill] sm:$0xff] %v20124_v2  ;;  %v17147_v2 = vmov 1966171168  }
 0x38f   :  { %v20099_v8 = vmul.f32 %v24328_v18, %v19911_v34  ;;  %v20107_v4 = vmul.f32 %v24328_v18, %v19913_v23  ;;  %v20115_v9 = vmul.f32 %v24328_v18, %v19916_v32  ;;  %v4326_v18 = vld [vmem:[#allocation6 + $0xb0] sm:$0xff] }
 0x390   :  { %24325 = vst [vmem:[#allocation71_spill] sm:$0xff] %v20090_v56  ;;  %8076 = vadd.xlane.f32.xlu0 %v8024_v36  ;;  %v20111_v56 = vmul.f32 %v24326_v30, %v19916_v32  ;;  %v24334_v36 = vld [vmem:[#allocation84_spill] sm:$0xff] }
 0x391   :  { %24329 = vst [vmem:[#allocation74_spill] sm:$0xff] %v20099_v8  ;;  %24331 = vst [vmem:[#allocation85_spill] sm:$0xff] %v20107_v4  ;;  %v20119_v8 = vmul.f32 %v24334_v36, %v19911_v34  ;;  %v20128_v4 = vmul.f32 %v24336_v3, %v19913_v23  ;;  %v20132_v30 = vmul.f32 %v24334_v36, %v19913_v23 }
 0x392   :  { %24332 = vst [vmem:[#allocation91_spill] sm:$0xff] %v20111_v56  ;;  %24333 = vst [vmem:[#allocation94_spill] sm:$0xff] %v20115_v9  ;;  %8078 = vadd.xlane.f32.xlu1 %v8025_v38  ;;  %v20136_v9 = vmul.f32 %v24336_v3, %v19916_v32  ;;  %v20140_v41 = vmul.f32 %v24334_v36, %v19916_v32  ;;  %v24342_v38 = vld [vmem:[#allocation90_spill] sm:$0xff]  ;;  %v4532_v56 = vunpack.c.l.s4 %v17147_v2 }
 0x393   :  { %24335 = vst [vmem:[#allocation82_spill] sm:$0xff] %v20119_v8  ;;  %24338 = vst [vmem:[#allocation35_spill] sm:$0xff] %v20128_v4  ;;  %v20144_v48 = vmul.f32 %v24342_v38, %v19911_v34  ;;  %v24344_v8 = vld [vmem:[#allocation88_spill] sm:$0xff]  ;;  %v20153_v3 = vmul.f32 %v24342_v38, %v19913_v23 }
 0x394   :  { %24339 = vst [vmem:[#allocation45_spill] sm:$0xff] %v20132_v30  ;;  %24340 = vst [vmem:[#allocation28_spill] sm:$0xff] %v20136_v9  ;;  %v20148_v4 = vmul.f32 %v24344_v8, %v19911_v34  ;;  %11711 = vadd.xlane.f32.xlu0 %v11659_v46  ;;  %v11660_v30 = vmul.f32 %v11628_v37, %v19820_v13  ;;  %v20157_v36 = vmul.f32 %v24344_v8, %v19913_v23  ;;  %v24350_v13 = vld [vmem:[#allocation92_spill] sm:$0xff]  ;;  %v24352_v37 = vld [vmem:[#allocation31_spill] sm:$0xff] }
 0x395   :  { %24341 = vst [vmem:[#allocation40_spill] sm:$0xff] %v20140_v41  ;;  %24343 = vst [vmem:[#allocation34_spill] sm:$0xff] %v20144_v48  ;;  %v4327_v41 = vld [vmem:[#allocation6 + $0xb8] sm:$0xff]  ;;  %v20161_v48 = vmul.f32 %v24342_v38, %v19916_v32  ;;  %v20165_v46 = vmul.f32 %v24344_v8, %v19916_v32  ;;  %v20169_v2 = vmul.f32 %v24350_v13, %v19911_v34 }
 0x396   :  { %24345 = vst [vmem:[#allocation15_spill] sm:$0xff] %v20148_v4  ;;  %24346 = vst [vmem:[#allocation52_spill] sm:$0xff] %v20153_v3  ;;  %v20173_v3 = vmul.f32 %v24352_v37, %v19911_v34  ;;  %11713 = vadd.xlane.f32.xlu1 %v11660_v30  ;;  %v20178_v4 = vmul.f32 %v24350_v13, %v19913_v23  ;;  %v20182_v38 = vmul.f32 %v24352_v37, %v19913_v23  ;;  %v24358_v30 = vld [vmem:[#allocation42_spill] sm:$0xff] }
 0x397   :  { %24347 = vst [vmem:[#allocation16_spill] sm:$0xff] %v20157_v36  ;;  %24348 = vst [vmem:[#allocation19_spill] sm:$0xff] %v20161_v48  ;;  %v4358_v36 = vmul.f32 %v4326_v18, %v19842_v47  ;;  %v20186_v8 = vmul.f32 %v24352_v37, %v19916_v32  ;;  %v20194_v18 = vmul.f32 %v24358_v30, %v19911_v34  ;;  %v24363_v48 = vlaneseq }
 0x398   :  { %24349 = vst [vmem:[#allocation18_spill] sm:$0xff] %v20165_v46  ;;  %24351 = vst [vmem:[#allocation20_spill] sm:$0xff] %v20169_v2  ;;  %v7994_v2 = vld [vmem:[#allocation6 + $0x1b0] sm:$0xff]  ;;  %v20190_v46 = vmul.f32 %v24350_v13, %v19916_v32  ;;  %v4533_v13 = vunpack.c.0.s8 %v4532_v56  ;;  %v20214_v9 = vmul.f32 %v24358_v30, %v19916_v32 }
 0x399   :  { %24353 = vst [vmem:[#allocation63_spill] sm:$0xff] %v20173_v3  ;;  %24354 = vst [vmem:[#allocation26_spill] sm:$0xff] %v20178_v4  ;;  %v24360_v3 = vld [vmem:[#allocation14_spill] sm:$0xff]  ;;  %v20205_v37 = vshrl.u32 %v24363_v48, 7  ;;  %4412 = vadd.xlane.f32.xlu0 %v4358_v36  ;;  %v24368_v48 = vld [vmem:[#allocation17_spill] sm:$0xff]  ;;  %v8026_v36 = vmul.f32 %v7994_v2, %v19842_v47 }
 0x39a   :  { %24355 = vst [vmem:[#allocation44_spill] sm:$0xff] %v20182_v38  ;;  %24356 = vst [vmem:[#allocation32_spill] sm:$0xff] %v20186_v8  ;;  %v20198_v4 = vmul.f32 %v24360_v3, %v19911_v34  ;;  %v20202_v38 = vmul.f32 %v24360_v3, %v19913_v23  ;;  %v4359_v8 = vmul.f32 %v4327_v41, %v19832_v57  ;;  %v24370_v41 = vld [vmem:[#allocation43_spill] sm:$0xff] }
 0x39b   :  { %24357 = vst [vmem:[#allocation50_spill] sm:$0xff] %v20190_v46  ;;  %24359 = vst [vmem:[#allocation25_spill] sm:$0xff] %v20194_v18  ;;  %v20210_v46 = vmul.f32 %v24358_v30, %v19913_v23  ;;  %v7995_v18 = vld [vmem:[#allocation6 + $0x1b8] sm:$0xff]  ;;  %v20226_v56 = vmul.f32 %v24370_v41, %v19911_v34  ;;  %v20235_v30 = vmul.f32 %v24370_v41, %v19913_v23 }
 0x39c   :  { %24361 = vst [vmem:[#allocation46_spill] sm:$0xff] %v20198_v4  ;;  %24362 = vst [vmem:[#allocation51_spill] sm:$0xff] %v20202_v38  ;;  %v20218_v4 = vmul.f32 %v24360_v3, %v19916_v32  ;;  %v20222_v38 = vmul.f32 %v24368_v48, %v19911_v34  ;;  %4414 = vadd.xlane.f32.xlu1 %v4359_v8  ;;  %v20239_v3 = vmul.f32 %v24370_v41, %v19916_v32  ;;  %v24376_v8 = vld [vmem:[#allocation62_spill] sm:$0xff] }
 0x39d   :  { %24364 = vst [vmem:[#allocation22_spill] sm:$0xff] %v20205_v37  ;;  %24365 = vst [vmem:[#allocation59_spill] sm:$0xff] %v20210_v46  ;;  %v20231_v46 = vmul.f32 %v24368_v48, %v19913_v23  ;;  %v20247_v2 = vmul.f32 %v24376_v8, %v19911_v34  ;;  %8080 = vadd.xlane.f32.xlu0 %v8026_v36  ;;  %v20258_v41 = vsub.s32 %v4533_v13, %v20205_v37  ;;  %v24384_v36 = vld [vmem:[#allocation29_spill] sm:$0xff] }
 0x39e   :  { %24366 = vst [vmem:[#allocation69_spill] sm:$0xff] %v20214_v9  ;;  %24367 = vst [vmem:[#allocation33_spill] sm:$0xff] %v20218_v4  ;;  %v20243_v4 = vmul.f32 %v24368_v48, %v19916_v32  ;;  %v20263_v48 = vmul.f32 %v24376_v8, %v19913_v23  ;;  %v20271_v9 = vmul.f32 %v24376_v8, %v19916_v32 }
 0x39f   :  { %24369 = vst [vmem:[#allocation67_spill] sm:$0xff] %v20222_v38  ;;  %24371 = vst [vmem:[#allocation70_spill] sm:$0xff] %v20226_v56  ;;  %v11629_v38 = vld [vmem:[#allocation6 + $0x2b0] sm:$0xff]  ;;  %v20275_v13 = vmul.f32 %v24384_v36, %v19911_v34  ;;  %v20289_v8 = vmul.f32 %v24384_v36, %v19913_v23 }
 0x3a0   :  { %24372 = vst [vmem:[#allocation41_spill] sm:$0xff] %v20231_v46  ;;  %24373 = vst [vmem:[#allocation75_spill] sm:$0xff] %v20235_v30  ;;  %v24378_v56 = vld [vmem:[#allocation23_spill] sm:$0xff] }
 0x3a1   :  { %24374 = vst [vmem:[#allocation72_spill] sm:$0xff] %v20239_v3  ;;  %24375 = vst [vmem:[#allocation79_spill] sm:$0xff] %v20243_v4  ;;  %v20251_v46 = vmul.f32 %v24378_v56, %v19911_v34  ;;  %v20255_v30 = vmul.f32 %v24378_v56, %v19913_v23  ;;  %v8027_v3 = vmul.f32 %v7995_v18, %v19832_v57  ;;  %v4371_v4 = vpop.xlane.xlu0 %4370  ;;  %v24386_v18 = vld [vmem:[#allocation27_spill] sm:$0xff] }
 0x3a2   :  { %24377 = vst [vmem:[#allocation76_spill] sm:$0xff] %v20247_v2  ;;  %24381 = vst [vmem:[#allocation78_spill] sm:$0xff] %v20263_v48  ;;  %v20267_v2 = vmul.f32 %v24378_v56, %v19916_v32  ;;  %v20279_v37 = vmul.f32 %v24386_v18, %v19911_v34  ;;  %v4467_v56 = vadd.f32 %v19920_v12, %v4371_v4  ;;  %v4329_v48 = vld [vmem:[#allocation6 + $0xc8] sm:$0xff]  ;;  %v24392_v12 = vld [vmem:[#allocation39_spill] sm:$0xff] }
 0x3a3   :  { %24379 = vst [vmem:[#allocation87_spill] sm:$0xff] %v20251_v46  ;;  %24380 = vst [vmem:[#allocation81_spill] sm:$0xff] %v20255_v30  ;;  %v11630_v46 = vld [vmem:[#allocation6 + $0x2b8] sm:$0xff]  ;;  %v20283_v30 = vmul.f32 %v24386_v18, %v19913_v23  ;;  %8082 = vadd.xlane.f32.xlu1 %v8027_v3  ;;  %v20301_v4 = vmul.f32 %v24392_v12, %v19911_v34 }
 0x3a4   :  { %24382 = vst [vmem:[#allocation89_spill] sm:$0xff] %v20267_v2  ;;  %24383 = vst [vmem:[#allocation80_spill] sm:$0xff] %v20271_v9  ;;  %v11661_v2 = vmul.f32 %v11629_v38, %v19842_v47  ;;  %v8037_v9 = vpop.xlane.xlu1 %8036  ;;  %v24394_v47 = vld [vmem:[#allocation48_spill] sm:$0xff] }
 0x3a5   :  { %24385 = vst [vmem:[#allocation93_spill] sm:$0xff] %v20275_v13  ;;  %24387 = vst [vmem:[#allocation84_spill] sm:$0xff] %v20279_v37  ;;  %v20293_v13 = vmul.f32 %v24386_v18, %v19916_v32  ;;  %v4328_v37 = vld [vmem:[#allocation6 + $0xc0] sm:$0xff]  ;;  %v20305_v38 = vmul.f32 %v24394_v47, %v19911_v34  ;;  %v20309_v3 = vmul.f32 %v24394_v47, %v19913_v23  ;;  %v8039_v42 = vpop.xlane.xlu0 %8038 }
 0x3a6   :  { %24388 = vst [vmem:[#allocation21_spill] sm:$0xff] %v20283_v30  ;;  %24389 = vst [vmem:[#allocation90_spill] sm:$0xff] %v20289_v8  ;;  %v20297_v30 = vmul.f32 %v24384_v36, %v19916_v32  ;;  %v4579_v18 = vcombine.high %v4467_v56, %v4467_v56  ;;  %v8134_v8 = vadd.f32 %v19925_v11, %v8037_v9  ;;  %11715 = vadd.xlane.f32.xlu0 %v11661_v2 }
 0x3a7   :  { %24390 = vst [vmem:[#allocation88_spill] sm:$0xff] %v20293_v13  ;;  %24393 = vst [vmem:[#allocation31_spill] sm:$0xff] %v20301_v4  ;;  %v20312_v13 = vrot.slane %v4467_v56, %v20258_v41  ;;  %v11662_v36 = vmul.f32 %v11630_v46, %v19832_v57  ;;  %v11632_v4 = vld [vmem:[#allocation6 + $0x2c8] sm:$0xff]  ;;  %v4361_v34 = vmul.f32 %v4329_v48, %v19851_v6  ;;  %v4330_v48 = vld [vmem:[#allocation6 + $0xd0] sm:$0xff] }
 0x3a8   :  { %24391 = vst [vmem:[#allocation92_spill] sm:$0xff] %v20297_v30  ;;  %24395 = vst [vmem:[#allocation42_spill] sm:$0xff] %v20305_v38  ;;  %v7996_v30 = vld [vmem:[#allocation6 + $0x1c0] sm:$0xff]  ;;  %v4331_v38 = vld [vmem:[#allocation6 + $0xd8] sm:$0xff]  ;;  %v20323_v56 = vmul.f32 %v24392_v12, %v19916_v32  ;;  %v20327_v57 = vmul.f32 %v24394_v47, %v19916_v32  ;;  %v4593_v11 = vrot.slane %v4579_v18, %v20258_v41  ;;  %v11672_v40 = vpop.xlane.xlu1 %11671 }
 0x3a9   :  { %24396 = vst [vmem:[#allocation14_spill] sm:$0xff] %v20309_v3  ;;  %v20319_v3 = vmul.f32 %v24392_v12, %v19913_v23  ;;  %v8198_v9 = vcombine.high %v8134_v8, %v8134_v8  ;;  %11717 = vadd.xlane.f32.xlu1 %v11662_v36  ;;  %v4360_v46 = vmul.f32 %v4328_v37, %v19857_v35  ;;  %v7998_v32 = vld [vmem:[#allocation6 + $0x1d0] sm:$0xff] }
 0x3aa   :  { %24398 = vst [vmem:[#allocation43_spill] sm:$0xff] %v20323_v56  ;;  %24399 = vst [vmem:[#allocation62_spill] sm:$0xff] %v20327_v57  ;;  %v8029_v2 = vmul.f32 %v7997_v19, %v19851_v6  ;;  %v8135_v23 = vadd.f32 %v19929_v51, %v8039_v42  ;;  %v11663_v12 = vmul.f32 %v11631_v54, %v19857_v35  ;;  %v11633_v47 = vld [vmem:[#allocation6 + $0x2d0] sm:$0xff]  ;;  %v4333_v57 = vld [vmem:[#allocation6 + $0xe8] sm:$0xff] }
 0x3ab   :  { %24397 = vst [vmem:[#allocation17_spill] sm:$0xff] %v20319_v3  ;;  %v8028_v3 = vmul.f32 %v7996_v30, %v19857_v35  ;;  %v20336_v56 = vmul.f32 %v11632_v4, %v19851_v6  ;;  %v4594_v18 = vcombine.high %v20312_v13, %v20312_v13  ;;  %4416 = vadd.xlane.f32.xlu0 %v4360_v46  ;;  %v4332_v35 = vld [vmem:[#allocation6 + $0xe0] sm:$0xff]  ;;  %v8001_v42 = vld [vmem:[#allocation6 + $0x1e8] sm:$0xff] }
 0x3ac   :  { %v20341_v37 = vmul.f32 %v4331_v38, %v19863_v33  ;;  %v20344_v19 = vmul.f32 %v7999_v31, %v19863_v33  ;;  %v20347_v51 = vmul.f32 %v11634_v27, %v19863_v33  ;;  %v11636_v6 = vld [vmem:[#allocation6 + $0x2e8] sm:$0xff]  ;;  %v8205_v54 = vrot.slane %v8134_v8, %v20258_v41  ;;  %v8000_v46 = vld [vmem:[#allocation6 + $0x1e0] sm:$0xff]  ;;  %v8003_v8 = vld [vmem:[#allocation6 + $0x1f8] sm:$0xff] }
 0x3ad   :  { %v8212_v30 = vrot.slane %v8198_v9, %v20258_v41  ;;  %v8247_v4 = vcombine.high %v8135_v23, %v8135_v23  ;;  %v4362_v36 = vmul.f32 %v4330_v48, %v19868_v7  ;;  %v4595_v38 = vcombine.high %v4593_v11, %v4593_v11  ;;  %4418 = vadd.xlane.f32.xlu1 %v4361_v34 }
 0x3ae   :  { %v20353_v31 = vmul.f32 %v7998_v32, %v19868_v7  ;;  %v20356_v33 = vmul.f32 %v11633_v47, %v19868_v7  ;;  %v20359_v27 = vmul.f32 %v4333_v57, %v19873_v50  ;;  %v8254_v9 = vrot.slane %v8135_v23, %v20258_v41  ;;  %v11638_v32 = vld [vmem:[#allocation6 + $0x2f8] sm:$0xff] }
 0x3af   :  { %v20363_v48 = vmul.f32 %v4332_v35, %v19879_v63  ;;  %v20366_v14 = vmul.f32 %v8001_v42, %v19873_v50  ;;  %v20369_v34 = vmul.f32 %v11636_v6, %v19873_v50  ;;  %v4616_v7 = vrot.slane %v4594_v18, %v20258_v41  ;;  %8084 = vadd.xlane.f32.xlu0 %v8028_v3  ;;  %v4334_v35 = vld [vmem:[#allocation6 + $0xf0] sm:$0xff] }
 0x3b0   :  { %v8261_v57 = vrot.slane %v8247_v4, %v20258_v41  ;;  %v20374_v47 = vmul.f32 %v8000_v46, %v19879_v63  ;;  %v20377_v23 = vmul.f32 %v11635_v16, %v19879_v63  ;;  %v8213_v42 = vcombine.high %v8205_v54, %v8205_v54  ;;  %v11674_v16 = vpop.xlane.xlu0 %11673 }
 0x3b1   :  { %v8214_v39 = vcombine.high %v8212_v30, %v8212_v30  ;;  %v20380_v50 = vmul.f32 %v4335_v17, %v19885_v60  ;;  %v20383_v6 = vmul.f32 %v8003_v8, %v19885_v60  ;;  %v4602_v3 = vrot.slane %v20312_v13, %v20258_v41  ;;  %8086 = vadd.xlane.f32.xlu1 %v8029_v2 }
 0x3b2   :  { %v20388_v18 = vrot.slane %v4595_v38, %v20258_v41  ;;  %v11769_v63 = vadd.f32 %v19933_v1, %v11672_v40  ;;  %v20392_v4 = vmul.f32 %v11638_v32, %v19885_v60  ;;  %v8262_v46 = vcombine.high %v8254_v9, %v8254_v9 }
 0x3b3   :  { %v20395_v17 = vmul.f32 %v4334_v35, %v19889_v21  ;;  %v20398_v8 = vmul.f32 %v8002_v55, %v19889_v21  ;;  %v20404_v13 = vrot.slane %v4593_v11, %v20258_v41  ;;  %v6147_v38 = vcombine.low %v4602_v3, %v4616_v7  ;;  %11719 = vadd.xlane.f32.xlu0 %v11663_v12  ;;  %v4375_v55 = vpop.xlane.xlu1 %4374 }
 0x3b4   :  { %24400 = vst [vmem:[#allocation23_spill] sm:$0xff] %v20388_v18  ;;  %v8263_v1 = vcombine.high %v8261_v57, %v8261_v57  ;;  %v11833_v40 = vcombine.high %v11769_v63, %v11769_v63  ;;  %v8235_v60 = vrot.slane %v8213_v42, %v20258_v41  ;;  %v8242_v2 = vrot.slane %v8214_v39, %v20258_v41 }
 0x3b5   :  { %24401 = vst [vmem:[#allocation29_spill] sm:$0xff] %v20404_v13  ;;  %v11840_v32 = vrot.slane %v11769_v63, %v20258_v41  ;;  %v11770_v35 = vadd.f32 %v19937_v62, %v11674_v16  ;;  %v15260_v25 = vcombine.high %v4602_v3, %v4616_v7  ;;  %v8221_v58 = vrot.slane %v8205_v54, %v20258_v41  ;;  %v4369_v13 = vpop.xlane.xlu0 %4368 }
 0x3b6   :  { %v8228_v11 = vrot.slane %v8212_v30, %v20258_v41  ;;  %11721 = vadd.xlane.f32.xlu1 %v20336_v56  ;;  %v8284_v39 = vrot.slane %v8262_v46, %v20258_v41  ;;  %v11847_v42 = vrot.slane %v11833_v40, %v20258_v41  ;;  %v20420_v62 = vrot.slane %v6147_v38, %v20258_v41 }
 0x3b7   :  { %v11882_v63 = vcombine.high %v11770_v35, %v11770_v35  ;;  %v8291_v7 = vrot.slane %v8263_v1, %v20258_v41  ;;  %v11848_v3 = vcombine.high %v11840_v32, %v11840_v32  ;;  %v4469_v54 = vadd.f32 %v19941_v24, %v4375_v55  ;;  %4420 = vadd.xlane.f32.xlu0 %v4362_v36 }
 0x3b8   :  { %24402 = vst [vmem:[#allocation27_spill] sm:$0xff] %v20420_v62  ;;  %v9766_v30 = vcombine.low %v8221_v58, %v8235_v60  ;;  %v15323_v16 = vcombine.high %v8221_v58, %v8235_v60  ;;  %v9768_v56 = vcombine.low %v8228_v11, %v8242_v2  ;;  %v8270_v21 = vrot.slane %v8254_v9, %v20258_v41 }
 0x3b9   :  { %v8277_v12 = vrot.slane %v8261_v57, %v20258_v41  ;;  %v11849_v46 = vcombine.high %v11847_v42, %v11847_v42  ;;  %v11889_v40 = vrot.slane %v11770_v35, %v20258_v41  ;;  %v4677_v18 = vcombine.high %v4469_v54, %v4469_v54 }
 0x3ba   :  { %4422 = vadd.xlane.f32.xlu1 %v20341_v37  ;;  %v15324_v38 = vcombine.high %v8228_v11, %v8242_v2  ;;  %v9815_v1 = vcombine.low %v8270_v21, %v8284_v39  ;;  %v15325_v62 = vcombine.high %v8270_v21, %v8284_v39  ;;  %v11896_v24 = vrot.slane %v11882_v63, %v20258_v41  ;;  %v8043_v39 = vpop.xlane.xlu1 %8042 }
 0x3bb   :  { %v20430_v36 = vrot.slane %v15260_v25, %v20258_v41  ;;  %v9817_v60 = vcombine.low %v8277_v12, %v8291_v7  ;;  %v11870_v9 = vrot.slane %v11848_v3, %v20258_v41  ;;  %v4684_v57 = vrot.slane %v4469_v54, %v20258_v41  ;;  %8088 = vadd.xlane.f32.xlu0 %v20353_v31 }
 0x3bc   :  { %v20436_v35 = vrot.slane %v9766_v30, %v20258_v41  ;;  %v20439_v37 = vrot.slane %v15323_v16, %v20258_v41  ;;  %v20442_v2 = vrot.slane %v9768_v56, %v20258_v41  ;;  %v4691_v55 = vrot.slane %v4677_v18, %v20258_v41  ;;  %v8041_v30 = vpop.xlane.xlu0 %8040 }
 0x3bd   :  { %v15326_v25 = vcombine.high %v8277_v12, %v8291_v7  ;;  %v11856_v21 = vrot.slane %v11840_v32, %v20258_v41  ;;  %v11877_v58 = vrot.slane %v11849_v46, %v20258_v41  ;;  %v11897_v11 = vcombine.high %v11889_v40, %v11889_v40 }
 0x3be   :  { %24403 = vst [vmem:[#allocation39_spill] sm:$0xff] %v20442_v2  ;;  %8090 = vadd.xlane.f32.xlu1 %v20344_v19  ;;  %v20449_v31 = vrot.slane %v15324_v38, %v20258_v41  ;;  %v20452_v63 = vrot.slane %v9815_v1, %v20258_v41  ;;  %v20455_v3 = vrot.slane %v15325_v62, %v20258_v41 }
 0x3bf   :  { %v11898_v54 = vcombine.high %v11896_v24, %v11896_v24  ;;  %v20458_v18 = vrot.slane %v9817_v60, %v20258_v41  ;;  %v11863_v32 = vrot.slane %v11847_v42, %v20258_v41  ;;  %v13401_v12 = vcombine.low %v11856_v21, %v11870_v9  ;;  %11723 = vadd.xlane.f32.xlu0 %v20356_v33 }
 0x3c0   :  { %v4692_v7 = vcombine.high %v4684_v57, %v4684_v57  ;;  %v15388_v19 = vcombine.high %v11856_v21, %v11870_v9  ;;  %v4693_v16 = vcombine.high %v4691_v55, %v4691_v55  ;;  %v4466_v56 = vadd.f32 %v19945_v29, %v4369_v13 }
 0x3c1   :  { %v8137_v46 = vadd.f32 %v19949_v43, %v8043_v39  ;;  %v20465_v62 = vrot.slane %v15326_v25, %v20258_v41  ;;  %v13403_v38 = vcombine.low %v11863_v32, %v11877_v58  ;;  %v11905_v1 = vrot.slane %v11889_v40, %v20258_v41 }
 0x3c2   :  { %v11919_v60 = vrot.slane %v11897_v11, %v20258_v41  ;;  %11725 = vadd.xlane.f32.xlu1 %v20347_v51  ;;  %v15389_v42 = vcombine.high %v11863_v32, %v11877_v58  ;;  %v11912_v2 = vrot.slane %v11896_v24, %v20258_v41  ;;  %v11926_v33 = vrot.slane %v11898_v54, %v20258_v41 }
 0x3c3   :  { %v8136_v9 = vadd.f32 %v19954_v61, %v8041_v30  ;;  %v20474_v29 = vrot.slane %v13401_v12, %v20258_v41  ;;  %v4714_v43 = vrot.slane %v4692_v7, %v20258_v41  ;;  %v4530_v13 = vcombine.high %v4466_v56, %v4466_v56  ;;  %4424 = vadd.xlane.f32.xlu0 %v20363_v48  ;;  %v11678_v7 = vpop.xlane.xlu1 %11677 }
 0x3c4   :  { %v4537_v25 = vrot.slane %v4466_v56, %v20258_v41  ;;  %v20480_v40 = vrot.slane %v15388_v19, %v20258_v41  ;;  %v4721_v51 = vrot.slane %v4693_v16, %v20258_v41  ;;  %v8345_v24 = vcombine.high %v8137_v46, %v8137_v46 }
 0x3c5   :  { %v8352_v21 = vrot.slane %v8137_v46, %v20258_v41  ;;  %v20485_v61 = vrot.slane %v13403_v38, %v20258_v41  ;;  %v13450_v58 = vcombine.low %v11905_v1, %v11919_v60  ;;  %v15390_v11 = vcombine.high %v11905_v1, %v11919_v60 }
 0x3c6   :  { %v4700_v39 = vrot.slane %v4684_v57, %v20258_v41  ;;  %4426 = vadd.xlane.f32.xlu1 %v20359_v27  ;;  %v13452_v54 = vcombine.low %v11912_v2, %v11926_v33  ;;  %v4707_v48 = vrot.slane %v4691_v55, %v20258_v41  ;;  %v4544_v32 = vrot.slane %v4530_v13, %v20258_v41 }
 0x3c7   :  { %v8296_v12 = vcombine.high %v8136_v9, %v8136_v9  ;;  %v15391_v30 = vcombine.high %v11912_v2, %v11926_v33  ;;  %v4545_v56 = vcombine.high %v4537_v25, %v4537_v25  ;;  %8092 = vadd.xlane.f32.xlu0 %v20374_v47  ;;  %v8359_v1 = vrot.slane %v8345_v24, %v20258_v41 }
 0x3c8   :  { %v6245_v19 = vcombine.low %v4700_v39, %v4714_v43  ;;  %v15264_v16 = vcombine.high %v4700_v39, %v4714_v43  ;;  %v6247_v46 = vcombine.low %v4707_v48, %v4721_v51  ;;  %v15265_v38 = vcombine.high %v4707_v48, %v4721_v51 }
 0x3c9   :  { %v8360_v57 = vcombine.high %v8352_v21, %v8352_v21  ;;  %v20494_v27 = vrot.slane %v15389_v42, %v20258_v41  ;;  %v20497_v55 = vrot.slane %v13450_v58, %v20258_v41  ;;  %v8303_v60 = vrot.slane %v8136_v9, %v20258_v41 }
 0x3ca   :  { %v11772_v2 = vadd.f32 %v19958_v28, %v11678_v7  ;;  %8094 = vadd.xlane.f32.xlu1 %v20366_v14  ;;  %v20503_v33 = vrot.slane %v15390_v11, %v20258_v41  ;;  %v20506_v47 = vrot.slane %v13452_v54, %v20258_v41  ;;  %v4546_v43 = vcombine.high %v4544_v32, %v4544_v32  ;;  %v11676_v14 = vpop.xlane.xlu0 %11675 }
 0x3cb   :  { %v8310_v13 = vrot.slane %v8296_v12, %v20258_v41  ;;  %v20510_v42 = vrot.slane %v15391_v30, %v20258_v41  ;;  %v20513_v51 = vrot.slane %v6245_v19, %v20258_v41  ;;  %v20516_v9 = vrot.slane %v15264_v16, %v20258_v41  ;;  %11727 = vadd.xlane.f32.xlu0 %v20377_v23 }
 0x3cc   :  { %v4567_v28 = vrot.slane %v4545_v56, %v20258_v41  ;;  %v20521_v24 = vrot.slane %v6247_v46, %v20258_v41  ;;  %v20524_v58 = vrot.slane %v15265_v38, %v20258_v41  ;;  %v8361_v11 = vcombine.high %v8359_v1, %v8359_v1 }
 0x3cd   :  { %v8382_v39 = vrot.slane %v8360_v57, %v20258_v41  ;;  %v4553_v54 = vrot.slane %v4537_v25, %v20258_v41  ;;  %v8368_v48 = vrot.slane %v8352_v21, %v20258_v41  ;;  %v8311_v12 = vcombine.high %v8303_v60, %v8303_v60 }
 0x3ce   :  { %24404 = vst [vmem:[#allocation48_spill] sm:$0xff] %v20521_v24  ;;  %24405 = vst [vmem:[#allocation95_spill] sm:$0xff] %v20524_v58  ;;  %v11980_v7 = vcombine.high %v11772_v2, %v11772_v2  ;;  %11729 = vadd.xlane.f32.xlu1 %v20369_v34  ;;  %v20531_v30 = vrot.slane %v4546_v43, %v20258_v41  ;;  %v8312_v23 = vcombine.high %v8310_v13, %v8310_v13  ;;  %v4373_v24 = vpop.xlane.xlu1 %4372 }
 0x3cf   :  { %v11987_v19 = vrot.slane %v11772_v2, %v20258_v41  ;;  %v11771_v16 = vadd.f32 %v19962_v59, %v11676_v14  ;;  %v20536_v56 = vrot.slane %v4544_v32, %v20258_v41  ;;  %v6098_v46 = vcombine.low %v4553_v54, %v4567_v28  ;;  %4428 = vadd.xlane.f32.xlu0 %v20395_v17 }
 0x3d0   :  { %v15258_v38 = vcombine.high %v4553_v54, %v4567_v28  ;;  %v8375_v25 = vrot.slane %v8359_v1, %v20258_v41  ;;  %v8389_v21 = vrot.slane %v8361_v11, %v20258_v41  ;;  %v9913_v34 = vcombine.low %v8368_v48, %v8382_v39 }
 0x3d1   :  { %v11994_v57 = vrot.slane %v11980_v7, %v20258_v41  ;;  %v11931_v43 = vcombine.high %v11771_v16, %v11771_v16  ;;  %v15329_v58 = vcombine.high %v8368_v48, %v8382_v39  ;;  %v8319_v2 = vrot.slane %v8303_v60, %v20258_v41 }
 0x3d2   :  { %v8333_v59 = vrot.slane %v8311_v12, %v20258_v41  ;;  %v11995_v32 = vcombine.high %v11987_v19, %v11987_v19  ;;  %4430 = vadd.xlane.f32.xlu1 %v20380_v50  ;;  %v8340_v28 = vrot.slane %v8312_v23, %v20258_v41  ;;  %v11938_v14 = vrot.slane %v11771_v16, %v20258_v41  ;;  %v4377_v23 = vpop.xlane.xlu0 %4376 }
 0x3d3   :  { %v20552_v11 = vrot.slane %v6098_v46, %v20258_v41  ;;  %v20555_v60 = vrot.slane %v15258_v38, %v20258_v41  ;;  %v11945_v39 = vrot.slane %v11931_v43, %v20258_v41  ;;  %v4468_v50 = vadd.f32 %v19966_v15, %v4373_v24  ;;  %8096 = vadd.xlane.f32.xlu0 %v20398_v8 }
 0x3d4   :  { %v9915_v54 = vcombine.low %v8375_v25, %v8389_v21  ;;  %v15330_v48 = vcombine.high %v8375_v25, %v8389_v21  ;;  %v8326_v12 = vrot.slane %v8310_v13, %v20258_v41  ;;  %v11996_v7 = vcombine.high %v11994_v57, %v11994_v57 }
 0x3d5   :  { %v9864_v17 = vcombine.low %v8319_v2, %v8333_v59  ;;  %v15327_v16 = vcombine.high %v8319_v2, %v8333_v59  ;;  %v12017_v46 = vrot.slane %v11995_v32, %v20258_v41  ;;  %v4628_v1 = vcombine.high %v4468_v50, %v4468_v50  ;;  %v4379_v2 = vpop.xlane.xlu1 %4378 }
 0x3d6   :  { %8098 = vadd.xlane.f32.xlu1 %v20383_v6  ;;  %v20564_v38 = vrot.slane %v9913_v34, %v20258_v41  ;;  %v20567_v15 = vrot.slane %v15329_v58, %v20258_v41  ;;  %v9866_v8 = vcombine.low %v8326_v12, %v8340_v28  ;;  %v11946_v24 = vcombine.high %v11938_v14, %v11938_v14 }
 0x3d7   :  { %v12003_v25 = vrot.slane %v11987_v19, %v20258_v41  ;;  %v11947_v13 = vcombine.high %v11945_v39, %v11945_v39  ;;  %v4635_v21 = vrot.slane %v4468_v50, %v20258_v41  ;;  %v4470_v43 = vadd.f32 %v19970_v0, %v4377_v23  ;;  %11731 = vadd.xlane.f32.xlu0 %v20401_v45  ;;  %v8045_v23 = vpop.xlane.xlu0 %8044 }
 0x3d8   :  { %v20574_v6 = vrot.slane %v9915_v54, %v20258_v41  ;;  %v20577_v34 = vrot.slane %v15330_v48, %v20258_v41  ;;  %v12024_v58 = vrot.slane %v11996_v7, %v20258_v41  ;;  %v4642_v59 = vrot.slane %v4628_v1, %v20258_v41 }
 0x3d9   :  { %v15328_v32 = vcombine.high %v8326_v12, %v8340_v28  ;;  %v20582_v19 = vrot.slane %v9864_v17, %v20258_v41  ;;  %v20585_v50 = vrot.slane %v15327_v16, %v20258_v41  ;;  %v13548_v0 = vcombine.low %v12003_v25, %v12017_v46 }
 0x3da   :  { %24406 = vst [vmem:[#allocation96_spill] sm:$0xff] %v20574_v6  ;;  %11733 = vadd.xlane.f32.xlu1 %v20392_v4  ;;  %v20589_v45 = vrot.slane %v9866_v8, %v20258_v41  ;;  %v12010_v54 = vrot.slane %v11994_v57, %v20258_v41  ;;  %v11968_v48 = vrot.slane %v11946_v24, %v20258_v41 }
 0x3db   :  { %24407 = vst [vmem:[#allocation97_spill] sm:$0xff] %v20582_v19  ;;  %24408 = vst [vmem:[#allocation98_spill] sm:$0xff] %v20585_v50  ;;  %v4471_v7 = vadd.f32 %v19974_v20, %v4379_v2  ;;  %v11975_v1 = vrot.slane %v11947_v13, %v20258_v41  ;;  %v4643_v28 = vcombine.high %v4635_v21, %v4635_v21 }
 0x3dc   :  { %24409 = vst [vmem:[#allocation99_spill] sm:$0xff] %v20589_v45  ;;  %v4726_v17 = vcombine.high %v4470_v43, %v4470_v43  ;;  %v4733_v12 = vrot.slane %v4470_v43, %v20258_v41  ;;  %v15394_v16 = vcombine.high %v12003_v25, %v12017_v46  ;;  %v13550_v19 = vcombine.low %v12010_v54, %v12024_v58 }
 0x3dd   :  { %v11954_v4 = vrot.slane %v11938_v14, %v20258_v41  ;;  %v4644_v50 = vcombine.high %v4642_v59, %v4642_v59  ;;  %v20598_v8 = vrot.slane %v15328_v32, %v20258_v41  ;;  %v15395_v57 = vcombine.high %v12010_v54, %v12024_v58 }
 0x3de   :  { %v20601_v24 = vrot.slane %v13548_v0, %v20258_v41  ;;  %v11961_v20 = vrot.slane %v11945_v39, %v20258_v41  ;;  %v4775_v45 = vcombine.high %v4471_v7, %v4471_v7  ;;  %v8138_v43 = vadd.f32 %v19978_v44, %v8045_v23 }
 0x3df   :  { %24410 = vst [vmem:[#allocation100_spill] sm:$0xff] %v20598_v8  ;;  %v13499_v13 = vcombine.low %v11954_v4, %v11968_v48  ;;  %v15392_v2 = vcombine.high %v11954_v4, %v11968_v48  ;;  %v4665_v46 = vrot.slane %v4643_v28, %v20258_v41  ;;  %v4740_v14 = vrot.slane %v4726_v17, %v20258_v41 }
 0x3e0   :  { %24411 = vst [vmem:[#allocation101_spill] sm:$0xff] %v20601_v24  ;;  %v13501_v6 = vcombine.low %v11961_v20, %v11975_v1  ;;  %v4741_v25 = vcombine.high %v4733_v12, %v4733_v12  ;;  %v20608_v32 = vrot.slane %v15394_v16, %v20258_v41  ;;  %v20611_v58 = vrot.slane %v13550_v19, %v20258_v41 }
 0x3e1   :  { %v4672_v0 = vrot.slane %v4644_v50, %v20258_v41  ;;  %v4782_v39 = vrot.slane %v4471_v7, %v20258_v41  ;;  %v20616_v54 = vrot.slane %v15395_v57, %v20258_v41  ;;  %v15393_v44 = vcombine.high %v11961_v20, %v11975_v1  ;;  %v8047_v50 = vpop.xlane.xlu1 %8046 }
 0x3e2   :  { %24412 = vst [vmem:[#allocation102_spill] sm:$0xff] %v20608_v32  ;;  %24413 = vst [vmem:[#allocation103_spill] sm:$0xff] %v20611_v58  ;;  %v4651_v48 = vrot.slane %v4635_v21, %v20258_v41  ;;  %v4658_v28 = vrot.slane %v4642_v59, %v20258_v41  ;;  %v20621_v17 = vrot.slane %v13499_v13, %v20258_v41  ;;  %v11680_v21 = vpop.xlane.xlu0 %11679 }
 0x3e3   :  { %24414 = vst [vmem:[#allocation104_spill] sm:$0xff] %v20616_v54  ;;  %v20624_v23 = vrot.slane %v15392_v2, %v20258_v41  ;;  %v4789_v19 = vrot.slane %v4775_v45, %v20258_v41  ;;  %v8394_v16 = vcombine.high %v8138_v43, %v8138_v43  ;;  %v20628_v7 = vrot.slane %v13501_v6, %v20258_v41 }
 0x3e4   :  { %24415 = vst [vmem:[#allocation105_spill] sm:$0xff] %v20621_v17  ;;  %v6196_v4 = vcombine.low %v4651_v48, %v4665_v46  ;;  %v4742_v57 = vcombine.high %v4740_v14, %v4740_v14  ;;  %v4763_v1 = vrot.slane %v4741_v25, %v20258_v41  ;;  %v15262_v20 = vcombine.high %v4651_v48, %v4665_v46 }
 0x3e5   :  { %24416 = vst [vmem:[#allocation106_spill] sm:$0xff] %v20624_v23  ;;  %24417 = vst [vmem:[#allocation107_spill] sm:$0xff] %v20628_v7  ;;  %v6198_v59 = vcombine.low %v4658_v28, %v4672_v0  ;;  %v4790_v8 = vcombine.high %v4782_v39, %v4782_v39  ;;  %v8401_v13 = vrot.slane %v8138_v43, %v20258_v41 }
 0x3e6   :  { %v15263_v17 = vcombine.high %v4658_v28, %v4672_v0  ;;  %v4749_v2 = vrot.slane %v4733_v12, %v20258_v41  ;;  %v8408_v45 = vrot.slane %v8394_v16, %v20258_v41  ;;  %v8139_v23 = vadd.f32 %v19983_v26, %v8047_v50 }
 0x3e7   :  { %v20636_v6 = vrot.slane %v15393_v44, %v20258_v41  ;;  %v4756_v7 = vrot.slane %v4740_v14, %v20258_v41  ;;  %v4791_v58 = vcombine.high %v4789_v19, %v4789_v19  ;;  %v11773_v25 = vadd.f32 %v19987_v52, %v11680_v21 }
 0x3e8   :  { %v20641_v46 = vrot.slane %v6196_v4, %v20258_v41  ;;  %v4770_v43 = vrot.slane %v4742_v57, %v20258_v41  ;;  %v6294_v0 = vcombine.low %v4749_v2, %v4763_v1  ;;  %v15266_v48 = vcombine.high %v4749_v2, %v4763_v1 }
 0x3e9   :  { %24418 = vst [vmem:[#allocation108_spill] sm:$0xff] %v20636_v6  ;;  %v20645_v12 = vrot.slane %v15262_v20, %v20258_v41  ;;  %v20648_v26 = vrot.slane %v6198_v59, %v20258_v41  ;;  %v4812_v44 = vrot.slane %v4790_v8, %v20258_v41  ;;  %v8409_v28 = vcombine.high %v8401_v13, %v8401_v13  ;;  %v11682_v20 = vpop.xlane.xlu1 %11681 }
 0x3ea   :  { %v20652_v14 = vrot.slane %v15263_v17, %v20258_v41  ;;  %v4798_v52 = vrot.slane %v4782_v39, %v20258_v41  ;;  %v8410_v16 = vcombine.high %v8408_v45, %v8408_v45  ;;  %v8443_v50 = vcombine.high %v8139_v23, %v8139_v23 }
 0x3eb   :  { %v4805_v4 = vrot.slane %v4789_v19, %v20258_v41  ;;  %v4819_v57 = vrot.slane %v4791_v58, %v20258_v41  ;;  %v8450_v1 = vrot.slane %v8139_v23, %v20258_v41  ;;  %v12029_v21 = vcombine.high %v11773_v25, %v11773_v25  ;;  %v4381_v58 = vpop.xlane.xlu0 %4380 }
 0x3ec   :  { %v6296_v59 = vcombine.low %v4756_v7, %v4770_v43  ;;  %v15267_v2 = vcombine.high %v4756_v7, %v4770_v43  ;;  %v20659_v8 = vrot.slane %v6294_v0, %v20258_v41  ;;  %v20662_v17 = vrot.slane %v15266_v48, %v20258_v41 }
 0x3ed   :  { %v6343_v6 = vcombine.low %v4798_v52, %v4812_v44  ;;  %v8431_v39 = vrot.slane %v8409_v28, %v20258_v41  ;;  %v8457_v54 = vrot.slane %v8443_v50, %v20258_v41  ;;  %v12036_v19 = vrot.slane %v11773_v25, %v20258_v41 }
 0x3ee   :  { %24419 = vst [vmem:[#allocation109_spill] sm:$0xff] %v20659_v8  ;;  %24420 = vst [vmem:[#allocation110_spill] sm:$0xff] %v20662_v17  ;;  %v15268_v24 = vcombine.high %v4798_v52, %v4812_v44  ;;  %v8438_v23 = vrot.slane %v8410_v16, %v20258_v41  ;;  %v12043_v32 = vrot.slane %v12029_v21, %v20258_v41 }
 0x3ef   :  { %v11774_v7 = vadd.f32 %v19991_v10, %v11682_v20  ;;  %v6345_v43 = vcombine.low %v4805_v4, %v4819_v57  ;;  %v15269_v0 = vcombine.high %v4805_v4, %v4819_v57  ;;  %v8417_v48 = vrot.slane %v8401_v13, %v20258_v41 }
 0x3f0   :  { %v8458_v8 = vcombine.high %v8450_v1, %v8450_v1  ;;  %v20672_v17 = vrot.slane %v6296_v59, %v20258_v41  ;;  %v8424_v28 = vrot.slane %v8408_v45, %v20258_v41  ;;  %v8459_v50 = vcombine.high %v8457_v54, %v8457_v54 }
 0x3f1   :  { %v4472_v25 = vadd.f32 %v19995_v22, %v4381_v58  ;;  %v20677_v44 = vrot.slane %v15267_v2, %v20258_v41  ;;  %v9962_v52 = vcombine.low %v8417_v48, %v8431_v39  ;;  %v15331_v16 = vcombine.high %v8417_v48, %v8431_v39 }
 0x3f2   :  { %24421 = vst [vmem:[#allocation111_spill] sm:$0xff] %v20672_v17  ;;  %v12044_v21 = vcombine.high %v12036_v19, %v12036_v19  ;;  %v20680_v10 = vrot.slane %v6343_v6, %v20258_v41  ;;  %v9964_v4 = vcombine.low %v8424_v28, %v8438_v23  ;;  %v12045_v13 = vcombine.high %v12043_v32, %v12043_v32 }
 0x3f3   :  { %24422 = vst [vmem:[#allocation112_spill] sm:$0xff] %v20677_v44  ;;  %v12078_v57 = vcombine.high %v11774_v7, %v11774_v7  ;;  %v20683_v20 = vrot.slane %v15268_v24, %v20258_v41  ;;  %v20686_v45 = vrot.slane %v6345_v43, %v20258_v41  ;;  %v20689_v22 = vrot.slane %v15269_v0, %v20258_v41  ;;  %v4383_v0 = vpop.xlane.xlu1 %4382 }
 0x3f4   :  { %24423 = vst [vmem:[#allocation113_spill] sm:$0xff] %v20680_v10  ;;  %v8480_v59 = vrot.slane %v8458_v8, %v20258_v41  ;;  %v15332_v2 = vcombine.high %v8424_v28, %v8438_v23  ;;  %v8466_v39 = vrot.slane %v8450_v1, %v20258_v41  ;;  %v8487_v6 = vrot.slane %v8459_v50, %v20258_v41  ;;  %v8049_v28 = vpop.xlane.xlu0 %8048 }
 0x3f5   :  { %24424 = vst [vmem:[#allocation114_spill] sm:$0xff] %v20683_v20  ;;  %24425 = vst [vmem:[#allocation115_spill] sm:$0xff] %v20686_v45  ;;  %v4824_v58 = vcombine.high %v4472_v25, %v4472_v25  ;;  %v20695_v48 = vrot.slane %v9962_v52, %v20258_v41  ;;  %v20698_v24 = vrot.slane %v15331_v16, %v20258_v41 }
 0x3f6   :  { %24426 = vst [vmem:[#allocation116_spill] sm:$0xff] %v20689_v22  ;;  %v12066_v43 = vrot.slane %v12044_v21, %v20258_v41  ;;  %v12085_v17 = vrot.slane %v11774_v7, %v20258_v41  ;;  %v20703_v44 = vrot.slane %v9964_v4, %v20258_v41  ;;  %v8473_v8 = vrot.slane %v8457_v54, %v20258_v41 }
 0x3f7   :  { %24427 = vst [vmem:[#allocation117_spill] sm:$0xff] %v20695_v48  ;;  %24428 = vst [vmem:[#allocation118_spill] sm:$0xff] %v20698_v24  ;;  %v12073_v1 = vrot.slane %v12045_v13, %v20258_v41  ;;  %v12092_v23 = vrot.slane %v12078_v57, %v20258_v41  ;;  %v10011_v50 = vcombine.low %v8466_v39, %v8480_v59 }
 0x3f8   :  { %24429 = vst [vmem:[#allocation119_spill] sm:$0xff] %v20703_v44  ;;  %v15333_v52 = vcombine.high %v8466_v39, %v8480_v59  ;;  %v12052_v16 = vrot.slane %v12036_v19, %v20258_v41  ;;  %v12059_v48 = vrot.slane %v12043_v32, %v20258_v41  ;;  %v10013_v21 = vcombine.low %v8473_v8, %v8487_v6 }
 0x3f9   :  { %v4831_v7 = vrot.slane %v4472_v25, %v20258_v41  ;;  %v4838_v24 = vrot.slane %v4824_v58, %v20258_v41  ;;  %v4473_v4 = vadd.f32 %v19999_v53, %v4383_v0  ;;  %v15334_v44 = vcombine.high %v8473_v8, %v8487_v6 }
 0x3fa   :  { %v13597_v54 = vcombine.low %v12052_v16, %v12066_v43  ;;  %v12093_v45 = vcombine.high %v12085_v17, %v12085_v17  ;;  %v8140_v13 = vadd.f32 %v20003_v49, %v8049_v28  ;;  %v15396_v57 = vcombine.high %v12052_v16, %v12066_v43  ;;  %v8051_v43 = vpop.xlane.xlu1 %8050 }
 0x3fb   :  { %v13599_v22 = vcombine.low %v12059_v48, %v12073_v1  ;;  %v15397_v10 = vcombine.high %v12059_v48, %v12073_v1  ;;  %v12094_v59 = vcombine.high %v12092_v23, %v12092_v23  ;;  %v20715_v19 = vrot.slane %v15332_v2, %v20258_v41 }
 0x3fc   :  { %v20718_v32 = vrot.slane %v10011_v50, %v20258_v41  ;;  %v20721_v25 = vrot.slane %v15333_v52, %v20258_v41  ;;  %v4839_v39 = vcombine.high %v4831_v7, %v4831_v7  ;;  %v20724_v53 = vrot.slane %v10013_v21, %v20258_v41 }
 0x3fd   :  { %24430 = vst [vmem:[#allocation120_spill] sm:$0xff] %v20715_v19  ;;  %v4840_v6 = vcombine.high %v4838_v24, %v4838_v24  ;;  %v4873_v58 = vcombine.high %v4473_v4, %v4473_v4  ;;  %v4880_v49 = vrot.slane %v4473_v4, %v20258_v41  ;;  %v20728_v48 = vrot.slane %v15334_v44, %v20258_v41  ;;  %v11684_v4 = vpop.xlane.xlu0 %11683 }
 0x3fe   :  { %24431 = vst [vmem:[#allocation121_spill] sm:$0xff] %v20724_v53  ;;  %v20731_v2 = vrot.slane %v13597_v54, %v20258_v41  ;;  %v12115_v0 = vrot.slane %v12093_v45, %v20258_v41  ;;  %v8492_v8 = vcombine.high %v8140_v13, %v8140_v13  ;;  %v20735_v1 = vrot.slane %v15396_v57, %v20258_v41 }
 0x3ff   :  { %24432 = vst [vmem:[#allocation122_spill] sm:$0xff] %v20728_v48  ;;  %v20738_v28 = vrot.slane %v13599_v22, %v20258_v41  ;;  %v20741_v50 = vrot.slane %v15397_v10, %v20258_v41  ;;  %v12122_v52 = vrot.slane %v12094_v59, %v20258_v41  ;;  %v12101_v44 = vrot.slane %v12085_v17, %v20258_v41 }
 0x400   :  { %24433 = vst [vmem:[#allocation123_spill] sm:$0xff] %v20731_v2  ;;  %24434 = vst [vmem:[#allocation124_spill] sm:$0xff] %v20735_v1  ;;  %v4861_v16 = vrot.slane %v4839_v39, %v20258_v41  ;;  %v4887_v21 = vrot.slane %v4873_v58, %v20258_v41  ;;  %v8141_v45 = vadd.f32 %v20007_v5, %v8051_v43  ;;  %v24437_v1 = vld [vmem:[#allocation37_spill] sm:$0xff] }
 0x401   :  { %24435 = vst [vmem:[#allocation125_spill] sm:$0xff] %v20738_v28  ;;  %24436 = vst [vmem:[#allocation126_spill] sm:$0xff] %v20741_v50  ;;  %v12108_v54 = vrot.slane %v12092_v23, %v20258_v41  ;;  %v4868_v57 = vrot.slane %v4840_v6, %v20258_v41  ;;  %v4888_v22 = vcombine.high %v4880_v49, %v4880_v49 }
 0x402   :  { %v8499_v28 = vrot.slane %v8140_v13, %v20258_v41  ;;  %v13646_v10 = vcombine.low %v12101_v44, %v12115_v0  ;;  %v15398_v50 = vcombine.high %v12101_v44, %v12115_v0  ;;  %v4847_v59 = vrot.slane %v4831_v7, %v20258_v41 }
 0x403   :  { %v8506_v17 = vrot.slane %v8492_v8, %v20258_v41  ;;  %v13648_v2 = vcombine.low %v12108_v54, %v12122_v52  ;;  %v15399_v39 = vcombine.high %v12108_v54, %v12122_v52  ;;  %v4854_v58 = vrot.slane %v4838_v24, %v20258_v41 }
 0x404   :  { %v11775_v5 = vadd.f32 %v24437_v1, %v11684_v4  ;;  %v6392_v43 = vcombine.low %v4847_v59, %v4861_v16  ;;  %v15270_v19 = vcombine.high %v4847_v59, %v4861_v16  ;;  %v4889_v23 = vcombine.high %v4887_v21, %v4887_v21  ;;  %v4385_v59 = vpop.xlane.xlu0 %4384 }
 0x405   :  { %v8541_v20 = vcombine.high %v8141_v45, %v8141_v45  ;;  %v6394_v6 = vcombine.low %v4854_v58, %v4868_v57  ;;  %v15271_v53 = vcombine.high %v4854_v58, %v4868_v57  ;;  %v4910_v13 = vrot.slane %v4888_v22, %v20258_v41 }
 0x406   :  { %v8507_v48 = vcombine.high %v8499_v28, %v8499_v28  ;;  %v20757_v0 = vrot.slane %v13646_v10, %v20258_v41  ;;  %v20760_v7 = vrot.slane %v15398_v50, %v20258_v41  ;;  %v8508_v8 = vcombine.high %v8506_v17, %v8506_v17 }
 0x407   :  { %v8548_v24 = vrot.slane %v8141_v45, %v20258_v41  ;;  %v20764_v1 = vrot.slane %v13648_v2, %v20258_v41  ;;  %v20767_v52 = vrot.slane %v15399_v39, %v20258_v41  ;;  %v4896_v44 = vrot.slane %v4880_v49, %v20258_v41  ;;  %v11686_v45 = vpop.xlane.xlu1 %11685 }
 0x408   :  { %24438 = vst [vmem:[#allocation37_spill] sm:$0xff] %v20757_v0  ;;  %v12127_v16 = vcombine.high %v11775_v5, %v11775_v5  ;;  %v20771_v4 = vrot.slane %v6392_v43, %v20258_v41  ;;  %v20774_v54 = vrot.slane %v15270_v19, %v20258_v41  ;;  %v4917_v50 = vrot.slane %v4889_v23, %v20258_v41 }
 0x409   :  { %24439 = vst [vmem:[#allocation127_spill] sm:$0xff] %v20764_v1  ;;  %24440 = vst [vmem:[#allocation128_spill] sm:$0xff] %v20767_v52  ;;  %v8555_v57 = vrot.slane %v8541_v20, %v20258_v41  ;;  %v20779_v2 = vrot.slane %v6394_v6, %v20258_v41  ;;  %v20782_v22 = vrot.slane %v15271_v53, %v20258_v41 }
 0x40a   :  { %24441 = vst [vmem:[#allocation129_spill] sm:$0xff] %v20771_v4  ;;  %24442 = vst [vmem:[#allocation130_spill] sm:$0xff] %v20774_v54  ;;  %v6441_v10 = vcombine.low %v4896_v44, %v4910_v13  ;;  %v8529_v49 = vrot.slane %v8507_v48, %v20258_v41  ;;  %v4903_v39 = vrot.slane %v4887_v21, %v20258_v41  ;;  %v24446_v48 = vld [vmem:[#allocation47_spill] sm:$0xff] }
 0x40b   :  { %24443 = vst [vmem:[#allocation131_spill] sm:$0xff] %v20779_v2  ;;  %24444 = vst [vmem:[#allocation132_spill] sm:$0xff] %v20782_v22  ;;  %v15272_v58 = vcombine.high %v4896_v44, %v4910_v13  ;;  %v8536_v19 = vrot.slane %v8508_v8, %v20258_v41  ;;  %v8556_v43 = vcombine.high %v8548_v24, %v8548_v24  ;;  %v24445_v2 = vld [vmem:[#allocation36_spill] sm:$0xff] }
 0x40c   :  { %v8515_v23 = vrot.slane %v8499_v28, %v20258_v41  ;;  %v12134_v20 = vrot.slane %v11775_v5, %v20258_v41  ;;  %v12141_v6 = vrot.slane %v12127_v16, %v20258_v41  ;;  %v11776_v4 = vadd.f32 %v24445_v2, %v11686_v45 }
 0x40d   :  { %v6443_v53 = vcombine.low %v4903_v39, %v4917_v50  ;;  %v8522_v22 = vrot.slane %v8506_v17, %v20258_v41  ;;  %v8557_v54 = vcombine.high %v8555_v57, %v8555_v57  ;;  %v4474_v1 = vadd.f32 %v24446_v48, %v4385_v59 }
 0x40e   :  { %v15273_v52 = vcombine.high %v4903_v39, %v4917_v50  ;;  %v20794_v21 = vrot.slane %v6441_v10, %v20258_v41  ;;  %v10060_v13 = vcombine.low %v8515_v23, %v8529_v49  ;;  %v15335_v8 = vcombine.high %v8515_v23, %v8529_v49  ;;  %v4387_v39 = vpop.xlane.xlu1 %4386 }
 0x40f   :  { %v20797_v28 = vrot.slane %v15272_v58, %v20258_v41  ;;  %v10062_v5 = vcombine.low %v8522_v22, %v8536_v19  ;;  %v8578_v44 = vrot.slane %v8556_v43, %v20258_v41  ;;  %v12142_v16 = vcombine.high %v12134_v20, %v12134_v20 }
 0x410   :  { %24447 = vst [vmem:[#allocation36_spill] sm:$0xff] %v20794_v21  ;;  %v15336_v45 = vcombine.high %v8522_v22, %v8536_v19  ;;  %v12143_v2 = vcombine.high %v12141_v6, %v12141_v6  ;;  %v12176_v0 = vcombine.high %v11776_v4, %v11776_v4  ;;  %v12183_v17 = vrot.slane %v11776_v4, %v20258_v41 }
 0x411   :  { %24448 = vst [vmem:[#allocation47_spill] sm:$0xff] %v20797_v28  ;;  %v20802_v59 = vrot.slane %v6443_v53, %v20258_v41  ;;  %v8564_v50 = vrot.slane %v8548_v24, %v20258_v41  ;;  %v8585_v10 = vrot.slane %v8557_v54, %v20258_v41  ;;  %v4922_v49 = vcombine.high %v4474_v1, %v4474_v1  ;;  %v8053_v53 = vpop.xlane.xlu0 %8052 }
 0x412   :  { %v20807_v58 = vrot.slane %v15273_v52, %v20258_v41  ;;  %v20810_v43 = vrot.slane %v10060_v13, %v20258_v41  ;;  %v20813_v22 = vrot.slane %v15335_v8, %v20258_v41  ;;  %v8571_v4 = vrot.slane %v8555_v57, %v20258_v41 }
 0x413   :  { %24449 = vst [vmem:[#allocation133_spill] sm:$0xff] %v20802_v59  ;;  %v10109_v19 = vcombine.low %v8564_v50, %v8578_v44  ;;  %v12164_v23 = vrot.slane %v12142_v16, %v20258_v41  ;;  %v12190_v24 = vrot.slane %v12176_v0, %v20258_v41  ;;  %v4929_v54 = vrot.slane %v4474_v1, %v20258_v41 }
 0x414   :  { %24450 = vst [vmem:[#allocation134_spill] sm:$0xff] %v20807_v58  ;;  %24451 = vst [vmem:[#allocation135_spill] sm:$0xff] %v20810_v43  ;;  %v15337_v48 = vcombine.high %v8564_v50, %v8578_v44  ;;  %v12171_v52 = vrot.slane %v12143_v2, %v20258_v41  ;;  %v12191_v59 = vcombine.high %v12183_v17, %v12183_v17  ;;  %v24453_v58 = vld [vmem:[#allocation53_spill] sm:$0xff]  ;;  %v24456_v44 = vld [vmem:[#allocation60_spill] sm:$0xff] }
 0x415   :  { %24452 = vst [vmem:[#allocation136_spill] sm:$0xff] %v20813_v22  ;;  %v4475_v13 = vadd.f32 %v24453_v58, %v4387_v39  ;;  %v10111_v43 = vcombine.low %v8571_v4, %v8585_v10  ;;  %v15338_v21 = vcombine.high %v8571_v4, %v8585_v10  ;;  %v12150_v8 = vrot.slane %v12134_v20, %v20258_v41 }
 0x416   :  { %v4936_v57 = vrot.slane %v4922_v49, %v20258_v41  ;;  %v20824_v22 = vrot.slane %v10062_v5, %v20258_v41  ;;  %v20827_v0 = vrot.slane %v15336_v45, %v20258_v41  ;;  %v12157_v1 = vrot.slane %v12141_v6, %v20258_v41 }
 0x417   :  { %v8142_v16 = vadd.f32 %v24456_v44, %v8053_v53  ;;  %v13695_v2 = vcombine.low %v12150_v8, %v12164_v23  ;;  %v15400_v50 = vcombine.high %v12150_v8, %v12164_v23  ;;  %v12192_v28 = vcombine.high %v12190_v24, %v12190_v24 }
 0x418   :  { %24454 = vst [vmem:[#allocation53_spill] sm:$0xff] %v20824_v22  ;;  %24455 = vst [vmem:[#allocation137_spill] sm:$0xff] %v20827_v0  ;;  %v4937_v39 = vcombine.high %v4929_v54, %v4929_v54  ;;  %v20832_v10 = vrot.slane %v10109_v19, %v20258_v41  ;;  %v13697_v20 = vcombine.low %v12157_v1, %v12171_v52  ;;  %v8055_v22 = vpop.xlane.xlu1 %8054 }
 0x419   :  { %v12213_v49 = vrot.slane %v12191_v59, %v20258_v41  ;;  %v4971_v58 = vcombine.high %v4475_v13, %v4475_v13  ;;  %v20836_v5 = vrot.slane %v15337_v48, %v20258_v41  ;;  %v20839_v45 = vrot.slane %v10111_v43, %v20258_v41 }
 0x41a   :  { %24457 = vst [vmem:[#allocation60_spill] sm:$0xff] %v20832_v10  ;;  %v20842_v6 = vrot.slane %v15338_v21, %v20258_v41  ;;  %v4938_v4 = vcombine.high %v4936_v57, %v4936_v57  ;;  %v15401_v23 = vcombine.high %v12157_v1, %v12171_v52  ;;  %v12199_v53 = vrot.slane %v12183_v17, %v20258_v41  ;;  %v11688_v1 = vpop.xlane.xlu0 %11687  ;;  %v24465_v10 = vld [vmem:[#allocation24_spill] sm:$0xff] }
 0x41b   :  { %24458 = vst [vmem:[#allocation138_spill] sm:$0xff] %v20836_v5  ;;  %24459 = vst [vmem:[#allocation139_spill] sm:$0xff] %v20839_v45  ;;  %v4978_v19 = vrot.slane %v4475_v13, %v20258_v41  ;;  %v8590_v8 = vcombine.high %v8142_v16, %v8142_v16  ;;  %v20847_v44 = vrot.slane %v13695_v2, %v20258_v41 }
 0x41c   :  { %24460 = vst [vmem:[#allocation140_spill] sm:$0xff] %v20842_v6  ;;  %v20850_v59 = vrot.slane %v15400_v50, %v20258_v41  ;;  %v12220_v48 = vrot.slane %v12192_v28, %v20258_v41  ;;  %v4959_v43 = vrot.slane %v4937_v39, %v20258_v41  ;;  %v20855_v21 = vrot.slane %v13697_v20, %v20258_v41  ;;  %v24464_v20 = vld [vmem:[#allocation61_spill] sm:$0xff] }
 0x41d   :  { %24461 = vst [vmem:[#allocation141_spill] sm:$0xff] %v20847_v44  ;;  %v12206_v52 = vrot.slane %v12190_v24, %v20258_v41  ;;  %v13744_v17 = vcombine.low %v12199_v53, %v12213_v49  ;;  %v4985_v13 = vrot.slane %v4971_v58, %v20258_v41  ;;  %v15402_v0 = vcombine.high %v12199_v53, %v12213_v49 }
 0x41e   :  { %24462 = vst [vmem:[#allocation142_spill] sm:$0xff] %v20850_v59  ;;  %24463 = vst [vmem:[#allocation143_spill] sm:$0xff] %v20855_v21  ;;  %v4945_v2 = vrot.slane %v4929_v54, %v20258_v41  ;;  %v4952_v50 = vrot.slane %v4936_v57, %v20258_v41  ;;  %v4966_v44 = vrot.slane %v4938_v4, %v20258_v41 }
 0x41f   :  { %v4986_v28 = vcombine.high %v4978_v19, %v4978_v19  ;;  %v8597_v39 = vrot.slane %v8142_v16, %v20258_v41  ;;  %v8604_v59 = vrot.slane %v8590_v8, %v20258_v41  ;;  %v8143_v21 = vadd.f32 %v24464_v20, %v8055_v22  ;;  %v11690_v22 = vpop.xlane.xlu1 %11689 }
 0x420   :  { %v13746_v45 = vcombine.low %v12206_v52, %v12220_v48  ;;  %v15403_v24 = vcombine.high %v12206_v52, %v12220_v48  ;;  %v6490_v6 = vcombine.low %v4945_v2, %v4959_v43  ;;  %v11777_v58 = vadd.f32 %v24465_v10, %v11688_v1 }
 0x421   :  { %v20867_v49 = vrot.slane %v15401_v23, %v20258_v41  ;;  %v20870_v54 = vrot.slane %v13744_v17, %v20258_v41  ;;  %v15274_v57 = vcombine.high %v4945_v2, %v4959_v43  ;;  %v4987_v4 = vcombine.high %v4985_v13, %v4985_v13 }
 0x422   :  { %v20873_v53 = vrot.slane %v15402_v0, %v20258_v41  ;;  %v6492_v16 = vcombine.low %v4952_v50, %v4966_v44  ;;  %v8605_v8 = vcombine.high %v8597_v39, %v8597_v39  ;;  %v8606_v5 = vcombine.high %v8604_v59, %v8604_v59 }
 0x423   :  { %24466 = vst [vmem:[#allocation61_spill] sm:$0xff] %v20867_v49  ;;  %24467 = vst [vmem:[#allocation24_spill] sm:$0xff] %v20870_v54  ;;  %v15275_v20 = vcombine.high %v4952_v50, %v4966_v44  ;;  %v5008_v48 = vrot.slane %v4986_v28, %v20258_v41  ;;  %v8639_v52 = vcombine.high %v8143_v21, %v8143_v21  ;;  %v24472_v50 = vld [vmem:[#allocation64_spill] sm:$0xff] }
 0x424   :  { %v8646_v10 = vrot.slane %v8143_v21, %v20258_v41  ;;  %v20878_v23 = vrot.slane %v13746_v45, %v20258_v41  ;;  %v20881_v17 = vrot.slane %v15403_v24, %v20258_v41  ;;  %v20884_v43 = vrot.slane %v6490_v6, %v20258_v41 }
 0x425   :  { %v12225_v0 = vcombine.high %v11777_v58, %v11777_v58  ;;  %v20887_v1 = vrot.slane %v15274_v57, %v20258_v41  ;;  %v4994_v44 = vrot.slane %v4978_v19, %v20258_v41  ;;  %v5015_v2 = vrot.slane %v4987_v4, %v20258_v41 }
 0x426   :  { %24468 = vst [vmem:[#allocation144_spill] sm:$0xff] %v20878_v23  ;;  %24469 = vst [vmem:[#allocation145_spill] sm:$0xff] %v20881_v17  ;;  %v11778_v28 = vadd.f32 %v24472_v50, %v11690_v22  ;;  %v20893_v21 = vrot.slane %v6492_v16, %v20258_v41  ;;  %v8627_v45 = vrot.slane %v8605_v8, %v20258_v41  ;;  %v4389_v50 = vpop.xlane.xlu0 %4388 }
 0x427   :  { %24470 = vst [vmem:[#allocation146_spill] sm:$0xff] %v20884_v43  ;;  %24471 = vst [vmem:[#allocation147_spill] sm:$0xff] %v20887_v1  ;;  %v8634_v24 = vrot.slane %v8606_v5, %v20258_v41  ;;  %v8653_v6 = vrot.slane %v8639_v52, %v20258_v41  ;;  %v5001_v43 = vrot.slane %v4985_v13, %v20258_v41 }
 0x428   :  { %24473 = vst [vmem:[#allocation64_spill] sm:$0xff] %v20893_v21  ;;  %v6539_v49 = vcombine.low %v4994_v44, %v5008_v48  ;;  %v8654_v57 = vcombine.high %v8646_v10, %v8646_v10  ;;  %v12232_v1 = vrot.slane %v11777_v58, %v20258_v41  ;;  %v15276_v19 = vcombine.high %v4994_v44, %v5008_v48 }
 0x429   :  { %v8613_v4 = vrot.slane %v8597_v39, %v20258_v41  ;;  %v8620_v22 = vrot.slane %v8604_v59, %v20258_v41  ;;  %v12239_v16 = vrot.slane %v12225_v0, %v20258_v41  ;;  %v20904_v8 = vrot.slane %v15275_v20, %v20258_v41  ;;  %v24476_v59 = vld [vmem:[#allocation38_spill] sm:$0xff] }
 0x42a   :  { %v6541_v5 = vcombine.low %v5001_v43, %v5015_v2  ;;  %v15277_v21 = vcombine.high %v5001_v43, %v5015_v2  ;;  %v12274_v52 = vcombine.high %v11778_v28, %v11778_v28  ;;  %v8655_v54 = vcombine.high %v8653_v6, %v8653_v6 }
 0x42b   :  { %24474 = vst [vmem:[#allocation148_spill] sm:$0xff] %v20904_v8  ;;  %v10158_v23 = vcombine.low %v8613_v4, %v8627_v45  ;;  %v15339_v13 = vcombine.high %v8613_v4, %v8627_v45  ;;  %v10160_v17 = vcombine.low %v8620_v22, %v8634_v24  ;;  %v20907_v58 = vrot.slane %v6539_v49, %v20258_v41 }
 0x42c   :  { %v8676_v39 = vrot.slane %v8654_v57, %v20258_v41  ;;  %v12240_v48 = vcombine.high %v12232_v1, %v12232_v1  ;;  %v4476_v44 = vadd.f32 %v24476_v59, %v4389_v50  ;;  %v20912_v0 = vrot.slane %v15276_v19, %v20258_v41 }
 0x42d   :  { %24475 = vst [vmem:[#allocation149_spill] sm:$0xff] %v20907_v58  ;;  %v15340_v20 = vcombine.high %v8620_v22, %v8634_v24  ;;  %v12241_v8 = vcombine.high %v12239_v16, %v12239_v16  ;;  %v12281_v43 = vrot.slane %v11778_v28, %v20258_v41  ;;  %v20916_v2 = vrot.slane %v6541_v5, %v20258_v41  ;;  %v4391_v22 = vpop.xlane.xlu1 %4390 }
 0x42e   :  { %24477 = vst [vmem:[#allocation38_spill] sm:$0xff] %v20912_v0  ;;  %v20919_v45 = vrot.slane %v15277_v21, %v20258_v41  ;;  %v8662_v49 = vrot.slane %v8646_v10, %v20258_v41  ;;  %v12288_v57 = vrot.slane %v12274_v52, %v20258_v41  ;;  %v20924_v4 = vrot.slane %v10158_v23, %v20258_v41  ;;  %v8057_v10 = vpop.xlane.xlu0 %8056 }
 0x42f   :  { %24478 = vst [vmem:[#allocation150_spill] sm:$0xff] %v20916_v2  ;;  %v20927_v19 = vrot.slane %v15339_v13, %v20258_v41  ;;  %v20930_v24 = vrot.slane %v10160_v17, %v20258_v41  ;;  %v8683_v28 = vrot.slane %v8655_v54, %v20258_v41  ;;  %v12262_v21 = vrot.slane %v12240_v48, %v20258_v41 }
 0x430   :  { %24479 = vst [vmem:[#allocation151_spill] sm:$0xff] %v20919_v45  ;;  %24480 = vst [vmem:[#allocation152_spill] sm:$0xff] %v20924_v4  ;;  %v10207_v50 = vcombine.low %v8662_v49, %v8676_v39  ;;  %v15341_v5 = vcombine.high %v8662_v49, %v8676_v39  ;;  %v5020_v59 = vcombine.high %v4476_v44, %v4476_v44  ;;  %v24485_v45 = vld [vmem:[#allocation49_spill] sm:$0xff] }
 0x431   :  { %24481 = vst [vmem:[#allocation153_spill] sm:$0xff] %v20927_v19  ;;  %24482 = vst [vmem:[#allocation154_spill] sm:$0xff] %v20930_v24  ;;  %v20935_v52 = vrot.slane %v15340_v20, %v20258_v41  ;;  %v8669_v23 = vrot.slane %v8653_v6, %v20258_v41  ;;  %v12269_v13 = vrot.slane %v12241_v8, %v20258_v41  ;;  %v24484_v19 = vld [vmem:[#allocation30_spill] sm:$0xff] }
 0x432   :  { %v12289_v4 = vcombine.high %v12281_v43, %v12281_v43  ;;  %v12248_v17 = vrot.slane %v12232_v1, %v20258_v41  ;;  %v12290_v24 = vcombine.high %v12288_v57, %v12288_v57  ;;  %v5027_v54 = vrot.slane %v4476_v44, %v20258_v41 }
 0x433   :  { %24483 = vst [vmem:[#allocation155_spill] sm:$0xff] %v20935_v52  ;;  %v4477_v2 = vadd.f32 %v24484_v19, %v4391_v22  ;;  %v10209_v39 = vcombine.low %v8669_v23, %v8683_v28  ;;  %v15342_v49 = vcombine.high %v8669_v23, %v8683_v28  ;;  %v12255_v48 = vrot.slane %v12239_v16, %v20258_v41 }
 0x434   :  { %v8144_v58 = vadd.f32 %v24485_v45, %v8057_v10  ;;  %v20945_v20 = vrot.slane %v10207_v50, %v20258_v41  ;;  %v20948_v6 = vrot.slane %v15341_v5, %v20258_v41  ;;  %v13793_v8 = vcombine.low %v12248_v17, %v12262_v21  ;;  %v8059_v10 = vpop.xlane.xlu1 %8058 }
 0x435   :  { %v5034_v1 = vrot.slane %v5020_v59, %v20258_v41  ;;  %v15404_v52 = vcombine.high %v12248_v17, %v12262_v21  ;;  %v13795_v0 = vcombine.low %v12255_v48, %v12269_v13  ;;  %v12311_v44 = vrot.slane %v12289_v4, %v20258_v41 }
 0x436   :  { %24486 = vst [vmem:[#allocation30_spill] sm:$0xff] %v20945_v20  ;;  %24487 = vst [vmem:[#allocation49_spill] sm:$0xff] %v20948_v6  ;;  %v5035_v19 = vcombine.high %v5027_v54, %v5027_v54  ;;  %v15405_v22 = vcombine.high %v12255_v48, %v12269_v13  ;;  %v12318_v28 = vrot.slane %v12290_v24, %v20258_v41  ;;  %v24491_v48 = vld [vmem:[#allocation55_spill] sm:$0xff] }
 0x437   :  { %v5069_v16 = vcombine.high %v4477_v2, %v4477_v2  ;;  %v5076_v45 = vrot.slane %v4477_v2, %v20258_v41  ;;  %v20955_v50 = vrot.slane %v10209_v39, %v20258_v41  ;;  %v20958_v5 = vrot.slane %v15342_v49, %v20258_v41 }
 0x438   :  { %v12297_v59 = vrot.slane %v12281_v43, %v20258_v41  ;;  %v8688_v21 = vcombine.high %v8144_v58, %v8144_v58  ;;  %v20962_v23 = vrot.slane %v13793_v8, %v20258_v41  ;;  %v12304_v4 = vrot.slane %v12288_v57, %v20258_v41 }
 0x439   :  { %24488 = vst [vmem:[#allocation156_spill] sm:$0xff] %v20955_v50  ;;  %24489 = vst [vmem:[#allocation157_spill] sm:$0xff] %v20958_v5  ;;  %v5036_v13 = vcombine.high %v5034_v1, %v5034_v1  ;;  %v8695_v24 = vrot.slane %v8144_v58, %v20258_v41  ;;  %v5057_v2 = vrot.slane %v5035_v19, %v20258_v41 }
 0x43a   :  { %24490 = vst [vmem:[#allocation158_spill] sm:$0xff] %v20962_v23  ;;  %v13842_v17 = vcombine.low %v12297_v59, %v12311_v44  ;;  %v5083_v39 = vrot.slane %v5069_v16, %v20258_v41  ;;  %v8145_v50 = vadd.f32 %v24491_v48, %v8059_v10  ;;  %v15406_v49 = vcombine.high %v12297_v59, %v12311_v44  ;;  %v11692_v10 = vpop.xlane.xlu0 %11691 }
 0x43b   :  { %v13844_v5 = vcombine.low %v12304_v4, %v12318_v28  ;;  %v5084_v20 = vcombine.high %v5076_v45, %v5076_v45  ;;  %v8702_v43 = vrot.slane %v8688_v21, %v20258_v41  ;;  %v20971_v8 = vrot.slane %v15404_v52, %v20258_v41 }
 0x43c   :  { %v15407_v23 = vcombine.high %v12304_v4, %v12318_v28  ;;  %v5043_v57 = vrot.slane %v5027_v54, %v20258_v41  ;;  %v5085_v6 = vcombine.high %v5083_v39, %v5083_v39  ;;  %v20975_v58 = vrot.slane %v13795_v0, %v20258_v41 }
 0x43d   :  { %24492 = vst [vmem:[#allocation55_spill] sm:$0xff] %v20971_v8  ;;  %v20978_v19 = vrot.slane %v15405_v22, %v20258_v41  ;;  %v5064_v16 = vrot.slane %v5036_v13, %v20258_v41  ;;  %v8703_v44 = vcombine.high %v8695_v24, %v8695_v24  ;;  %v20982_v59 = vrot.slane %v13842_v17, %v20258_v41 }
 0x43e   :  { %24493 = vst [vmem:[#allocation159_spill] sm:$0xff] %v20975_v58  ;;  %v5050_v52 = vrot.slane %v5034_v1, %v20258_v41  ;;  %v6588_v21 = vcombine.low %v5043_v57, %v5057_v2  ;;  %v8737_v28 = vcombine.high %v8145_v50, %v8145_v50  ;;  %v20986_v54 = vrot.slane %v15406_v49, %v20258_v41  ;;  %v24497_v58 = vld [vmem:[#allocation56_spill] sm:$0xff] }
 0x43f   :  { %24494 = vst [vmem:[#allocation160_spill] sm:$0xff] %v20978_v19  ;;  %24495 = vst [vmem:[#allocation161_spill] sm:$0xff] %v20982_v59  ;;  %v20989_v0 = vrot.slane %v13844_v5, %v20258_v41  ;;  %v5106_v22 = vrot.slane %v5084_v20, %v20258_v41  ;;  %v8704_v4 = vcombine.high %v8702_v43, %v8702_v43 }
 0x440   :  { %v20993_v13 = vrot.slane %v15407_v23, %v20258_v41  ;;  %v15278_v48 = vcombine.high %v5043_v57, %v5057_v2  ;;  %v5113_v17 = vrot.slane %v5085_v6, %v20258_v41  ;;  %v11779_v19 = vadd.f32 %v24497_v58, %v11692_v10 }
 0x441   :  { %24496 = vst [vmem:[#allocation162_spill] sm:$0xff] %v20989_v0  ;;  %v6590_v1 = vcombine.low %v5050_v52, %v5064_v16  ;;  %v5092_v8 = vrot.slane %v5076_v45, %v20258_v41  ;;  %v8725_v49 = vrot.slane %v8703_v44, %v20258_v41  ;;  %v8744_v59 = vrot.slane %v8145_v50, %v20258_v41 }
 0x442   :  { %v15279_v5 = vcombine.high %v5050_v52, %v5064_v16  ;;  %v21001_v0 = vrot.slane %v6588_v21, %v20258_v41  ;;  %v5099_v20 = vrot.slane %v5083_v39, %v20258_v41  ;;  %v8751_v23 = vrot.slane %v8737_v28, %v20258_v41 }
 0x443   :  { %v6637_v2 = vcombine.low %v5092_v8, %v5106_v22  ;;  %v15280_v57 = vcombine.high %v5092_v8, %v5106_v22  ;;  %v8711_v6 = vrot.slane %v8695_v24, %v20258_v41  ;;  %v8732_v58 = vrot.slane %v8704_v4, %v20258_v41 }
 0x444   :  { %24498 = vst [vmem:[#allocation56_spill] sm:$0xff] %v21001_v0  ;;  %v21008_v45 = vrot.slane %v15278_v48, %v20258_v41  ;;  %v6639_v44 = vcombine.low %v5099_v20, %v5113_v17  ;;  %v8718_v50 = vrot.slane %v8702_v43, %v20258_v41  ;;  %v12323_v16 = vcombine.high %v11779_v19, %v11779_v19 }
 0x445   :  { %v15281_v10 = vcombine.high %v5099_v20, %v5113_v17  ;;  %v10256_v52 = vcombine.low %v8711_v6, %v8725_v49  ;;  %v8752_v21 = vcombine.high %v8744_v59, %v8744_v59  ;;  %v21012_v39 = vrot.slane %v6590_v1, %v20258_v41  ;;  %v11694_v20 = vpop.xlane.xlu1 %11693 }
 0x446   :  { %24499 = vst [vmem:[#allocation163_spill] sm:$0xff] %v21008_v45  ;;  %v21015_v28 = vrot.slane %v15279_v5, %v20258_v41  ;;  %v8753_v8 = vcombine.high %v8751_v23, %v8751_v23  ;;  %v12330_v24 = vrot.slane %v11779_v19, %v20258_v41  ;;  %v17148_v22 = vmov 127   ;;  %v24505_v19 = vld [vmem:[#allocation29_spill] sm:$0xff] }
 0x447   :  { %24500 = vst [vmem:[#allocation164_spill] sm:$0xff] %v21012_v39  ;;  %16996 = vset.pattern.permute.xlu1 %v17148_v22  ;;  %v21019_v4 = vrot.slane %v6637_v2, %v20258_v41  ;;  %v21022_v43 = vrot.slane %v15280_v57, %v20258_v41  ;;  %v15343_v48 = vcombine.high %v8711_v6, %v8725_v49 }
 0x448   :  { %24501 = vst [vmem:[#allocation165_spill] sm:$0xff] %v21015_v28  ;;  %v10258_v17 = vcombine.low %v8718_v50, %v8732_v58  ;;  %16997 = vset.pattern.permute.xlu0 %v17148_v22  ;;  %v21025_v1 = vrot.slane %v6639_v44, %v20258_v41  ;;  %v15344_v5 = vcombine.high %v8718_v50, %v8732_v58  ;;  %v24506_v28 = vld [vmem:[#allocation23_spill] sm:$0xff] }
 0x449   :  { %24502 = vst [vmem:[#allocation166_spill] sm:$0xff] %v21019_v4  ;;  %24503 = vst [vmem:[#allocation167_spill] sm:$0xff] %v21022_v43  ;;  %v12337_v39 = vrot.slane %v12323_v16, %v20258_v41  ;;  %v24507_v0 = vcombine.low %v24505_v19, %v24506_v28  ;;  %v21033_v2 = vrot.slane %v15281_v10, %v20258_v41  ;;  %v24511_v16 = vld [vmem:[#allocation27_spill] sm:$0xff]  ;;  %v4393_v10 = vpop.xlane.xlu0 %4392 }
 0x44a   :  { %24504 = vst [vmem:[#allocation168_spill] sm:$0xff] %v21025_v1  ;;  %v21036_v57 = vrot.slane %v10256_v52, %v20258_v41  ;;  %v8774_v49 = vrot.slane %v8752_v21, %v20258_v41  ;;  %v24510_v6 = vcombine.high %v24505_v19, %v24506_v28  ;;  %v8781_v44 = vrot.slane %v8753_v8, %v20258_v41 }
 0x44b   :  { %v6171_v45 = vrot.slane %v24507_v0, %v20258_v41  ;;  %24508 = vst [vmem:[#allocation29_spill] sm:$0xff] %v21033_v2  ;;  %v12338_v50 = vcombine.high %v12330_v24, %v12330_v24  ;;  %v6179_v22 = vcombine.low %v24511_v16, %v20430_v36  ;;  %v24512_v0 = vld [vmem:[#allocation54_spill] sm:$0xff]  ;;  %v21048_v2 = vrot.slane %v15343_v48, %v20258_v41 }
 0x44c   :  { %24509 = vst [vmem:[#allocation23_spill] sm:$0xff] %v21036_v57  ;;  %v6178_v58 = vrot.slane %v24510_v6, %v20258_v41  ;;  %v11780_v1 = vadd.f32 %v24512_v0, %v11694_v20  ;;  %v8760_v52 = vrot.slane %v8744_v59, %v20258_v41  ;;  %v24514_v21 = vcombine.low %v20536_v56, %v20531_v30  ;;  %v24517_v57 = vld [vmem:[#allocation65_spill] sm:$0xff] }
 0x44d   :  { %24513 = vst [vmem:[#allocation27_spill] sm:$0xff] %v21048_v2  ;;  %v24515_v8 = vcombine.high %v20536_v56, %v20531_v30  ;;  %v8767_v36 = vrot.slane %v8751_v23, %v20258_v41  ;;  %v12339_v6 = vcombine.high %v12337_v39, %v12337_v39  ;;  %v21061_v48 = vrot.slane %v10258_v17, %v20258_v41 }
 0x44e   :  { %v6122_v28 = vrot.slane %v24514_v21, %v20258_v41  ;;  %v6180_v20 = vcombine.low %v6171_v45, %v6178_v58  ;;  %v12372_v16 = vcombine.high %v11780_v1, %v11780_v1  ;;  %v10305_v0 = vcombine.low %v8760_v52, %v8774_v49 }
 0x44f   :  { %v6129_v19 = vrot.slane %v24515_v8, %v20258_v41  ;;  %24516 = vst [vmem:[#allocation54_spill] sm:$0xff] %v21061_v48  ;;  %v15345_v59 = vcombine.high %v8760_v52, %v8774_v49  ;;  %v4478_v2 = vadd.f32 %v24517_v57, %v4393_v10  ;;  %v10307_v4 = vcombine.low %v8767_v36, %v8781_v44 }
 0x450   :  { %v12360_v21 = vrot.slane %v12338_v50, %v20258_v41  ;;  %v6187_v43 = vrot.slane %v6179_v22, %v20258_v41  ;;  %v6194_v30 = vrot.slane %v6180_v20, %v20258_v41  ;;  %v12379_v56 = vrot.slane %v11780_v1, %v20258_v41 }
 0x451   :  { %v12386_v23 = vrot.slane %v12372_v16, %v20258_v41  ;;  %v6130_v45 = vcombine.low %v20552_v11, %v20555_v60  ;;  %v6131_v17 = vcombine.low %v6122_v28, %v6129_v19  ;;  %v15346_v58 = vcombine.high %v8767_v36, %v8781_v44 }
 0x452   :  { %v12346_v49 = vrot.slane %v12330_v24, %v20258_v41  ;;  %v21073_v57 = vrot.slane %v12339_v6, %v20258_v41  ;;  %v6195_v10 = vcombine.low %v6187_v43, %v6194_v30  ;;  %v21076_v50 = vrot.slane %v15344_v5, %v20258_v41 }
 0x453   :  { %v21079_v22 = vrot.slane %v12337_v39, %v20258_v41  ;;  %v5118_v1 = vcombine.high %v4478_v2, %v4478_v2  ;;  %v5125_v52 = vrot.slane %v4478_v2, %v20258_v41  ;;  %v21083_v8 = vrot.slane %v10305_v0, %v20258_v41 }
 0x454   :  { %24518 = vst [vmem:[#allocation65_spill] sm:$0xff] %v21076_v50  ;;  %v13891_v11 = vcombine.low %v12346_v49, %v12360_v21  ;;  %v15408_v60 = vcombine.high %v12346_v49, %v12360_v21  ;;  %7670 = vperm.xlu1 %16996, %v6195_v10   ;;  %v6145_v24 = vrot.slane %v6131_v17, %v20258_v41  ;;  %v24521_v10 = vld [vmem:[#allocation68_spill] sm:$0xff] }
 0x455   :  { %v12387_v44 = vcombine.high %v12379_v56, %v12379_v56  ;;  %v12388_v28 = vcombine.high %v12386_v23, %v12386_v23  ;;  %v6138_v43 = vrot.slane %v6130_v45, %v20258_v41  ;;  %v9847_v5 = vcombine.low %v20452_v63, %v20455_v3  ;;  %v4395_v63 = vpop.xlane.xlu1 %4394  ;;  %v8061_v3 = vpop.xlane.xlu0 %8060 }
 0x456   :  { %v21090_v39 = vrot.slane %v15345_v59, %v20258_v41  ;;  %v21093_v2 = vrot.slane %v10307_v4, %v20258_v41  ;;  %v21096_v19 = vrot.slane %v15346_v58, %v20258_v41  ;;  %v13893_v36 = vcombine.low %v21079_v22, %v21073_v57 }
 0x457   :  { %v15409_v6 = vcombine.high %v21079_v22, %v21073_v57  ;;  %v5132_v20 = vrot.slane %v5118_v1, %v20258_v41  ;;  %v5133_v16 = vcombine.high %v5125_v52, %v5125_v52  ;;  %v6146_v0 = vcombine.low %v6138_v43, %v6145_v24  ;;  %v24522_v1 = vld [vmem:[#allocation58_spill] sm:$0xff] }
 0x458   :  { %v21104_v59 = vrot.slane %v13891_v11, %v20258_v41  ;;  %v21107_v4 = vrot.slane %v15408_v60, %v20258_v41  ;;  %v12395_v21 = vrot.slane %v12379_v56, %v20258_v41  ;;  %v9848_v30 = vcombine.low %v20458_v18, %v20465_v62  ;;  %v24523_v62 = vld [vmem:[#allocation39_spill] sm:$0xff] }
 0x459   :  { %v12402_v45 = vrot.slane %v12386_v23, %v20258_v41  ;;  %v12409_v17 = vrot.slane %v12387_v44, %v20258_v41  ;;  %v12416_v58 = vrot.slane %v12388_v28, %v20258_v41  ;;  %7667 = vperm.xlu0 %16997, %v6146_v0   ;;  %v9855_v49 = vrot.slane %v9847_v5, %v20258_v41 }
 0x45a   :  { %24519 = vst [vmem:[#allocation169_spill] sm:$0xff] %v21104_v59  ;;  %24520 = vst [vmem:[#allocation170_spill] sm:$0xff] %v21107_v4  ;;  %v9862_v57 = vrot.slane %v9848_v30, %v20258_v41  ;;  %v4479_v22 = vadd.f32 %v24521_v10, %v4395_v63  ;;  %v8146_v11 = vadd.f32 %v24522_v1, %v8061_v3  ;;  %v8063_v3 = vpop.xlane.xlu1 %8062 }
 0x45b   :  { %v9798_v56 = vcombine.low %v20436_v35, %v20439_v37  ;;  %v5134_v60 = vcombine.high %v5132_v20, %v5132_v20  ;;  %v5155_v18 = vrot.slane %v5133_v16, %v20258_v41  ;;  %v9799_v23 = vcombine.low %v24523_v62, %v20449_v31 }
 0x45c   :  { %v13482_v24 = vcombine.low %v20497_v55, %v20503_v33  ;;  %v9863_v44 = vcombine.low %v9855_v49, %v9862_v57  ;;  %v5167_v28 = vcombine.high %v4479_v22, %v4479_v22  ;;  %v5174_v43 = vrot.slane %v4479_v22, %v20258_v41 }
 0x45d   :  { %v8786_v5 = vcombine.high %v8146_v11, %v8146_v11  ;;  %v8793_v0 = vrot.slane %v8146_v11, %v20258_v41  ;;  %v9806_v63 = vrot.slane %v9798_v56, %v20258_v41  ;;  %v9813_v35 = vrot.slane %v9799_v23, %v20258_v41  ;;  %v24525_v56 = vld [vmem:[#allocation66_spill] sm:$0xff] }
 0x45e   :  { %v13483_v37 = vcombine.low %v20506_v47, %v20510_v42  ;;  %v21133_v16 = vrot.slane %v13893_v36, %v20258_v41  ;;  %v13940_v31 = vcombine.low %v12395_v21, %v12409_v17  ;;  %v5141_v55 = vrot.slane %v5125_v52, %v20258_v41  ;;  %11338 = vperm.xlu1 %16996, %v9863_v44  }
 0x45f   :  { %v5181_v33 = vrot.slane %v5167_v28, %v20258_v41  ;;  %v15410_v30 = vcombine.high %v12395_v21, %v12409_v17  ;;  %v13942_v49 = vcombine.low %v12402_v45, %v12416_v58  ;;  %v15411_v57 = vcombine.high %v12402_v45, %v12416_v58 }
 0x460   :  { %24524 = vst [vmem:[#allocation68_spill] sm:$0xff] %v21133_v16  ;;  %v9814_v10 = vcombine.low %v9806_v63, %v9813_v35  ;;  %v5162_v22 = vrot.slane %v5134_v60, %v20258_v41  ;;  %v6686_v1 = vcombine.low %v5141_v55, %v5155_v18  ;;  %v5182_v11 = vcombine.high %v5174_v43, %v5174_v43 }
 0x461   :  { %v8800_v47 = vrot.slane %v8786_v5, %v20258_v41  ;;  %v8801_v42 = vcombine.high %v8793_v0, %v8793_v0  ;;  %v13490_v36 = vrot.slane %v13482_v24, %v20258_v41  ;;  %v13497_v52 = vrot.slane %v13483_v37, %v20258_v41 }
 0x462   :  { %11335 = vperm.xlu0 %16997, %v9814_v10   ;;  %v8147_v62 = vadd.f32 %v24525_v56, %v8063_v3  ;;  %v21143_v23 = vrot.slane %v15409_v6, %v20258_v41  ;;  %v5148_v21 = vrot.slane %v5132_v20, %v20258_v41  ;;  %v15282_v45 = vcombine.high %v5141_v55, %v5155_v18  ;;  %v11696_v20 = vpop.xlane.xlu0 %11695 }
 0x463   :  { %v5183_v17 = vcombine.high %v5181_v33, %v5181_v33  ;;  %v21147_v58 = vrot.slane %v13940_v31, %v20258_v41  ;;  %v21150_v60 = vrot.slane %v15410_v30, %v20258_v41  ;;  %v13498_v44 = vcombine.low %v13490_v36, %v13497_v52 }
 0x464   :  { %24526 = vst [vmem:[#allocation58_spill] sm:$0xff] %v21143_v23  ;;  %v8835_v28 = vcombine.high %v8147_v62, %v8147_v62  ;;  %v21153_v24 = vrot.slane %v13942_v49, %v20258_v41  ;;  %v21156_v5 = vrot.slane %v15411_v57, %v20258_v41  ;;  %v6688_v6 = vcombine.low %v5148_v21, %v5162_v22 }
 0x465   :  { %v5204_v63 = vrot.slane %v5182_v11, %v20258_v41  ;;  %v15283_v18 = vcombine.high %v5148_v21, %v5162_v22  ;;  %v21160_v35 = vrot.slane %v6686_v1, %v20258_v41  ;;  %v8802_v37 = vcombine.high %v8800_v47, %v8800_v47  ;;  %14973 = vperm.xlu1 %16996, %v13498_v44   ;;  %v24529_v22 = vld [vmem:[#allocation73_spill] sm:$0xff] }
 0x466   :  { %v8823_v31 = vrot.slane %v8801_v42, %v20258_v41  ;;  %v21164_v55 = vrot.slane %v15282_v45, %v20258_v41  ;;  %v5190_v3 = vrot.slane %v5174_v43, %v20258_v41  ;;  %v5211_v30 = vrot.slane %v5183_v17, %v20258_v41 }
 0x467   :  { %24527 = vst [vmem:[#allocation39_spill] sm:$0xff] %v21160_v35  ;;  %v8809_v49 = vrot.slane %v8793_v0, %v20258_v41  ;;  %v8842_v57 = vrot.slane %v8147_v62, %v20258_v41  ;;  %v8849_v10 = vrot.slane %v8835_v28, %v20258_v41  ;;  %v11781_v1 = vadd.f32 %v24529_v22, %v11696_v20 }
 0x468   :  { %24528 = vst [vmem:[#allocation66_spill] sm:$0xff] %v21164_v55  ;;  %v13433_v11 = vcombine.low %v20474_v29, %v20480_v40  ;;  %v21175_v42 = vrot.slane %v6688_v6, %v20258_v41  ;;  %v5197_v36 = vrot.slane %v5181_v33, %v20258_v41  ;;  %v6735_v52 = vcombine.low %v5190_v3, %v5204_v63 }
 0x469   :  { %v8816_v43 = vrot.slane %v8800_v47, %v20258_v41  ;;  %v15284_v56 = vcombine.high %v5190_v3, %v5204_v63  ;;  %v8830_v0 = vrot.slane %v8802_v37, %v20258_v41  ;;  %v10354_v21 = vcombine.low %v8809_v49, %v8823_v31  ;;  %v24532_v37 = vld [vmem:[#allocation95_spill] sm:$0xff] }
 0x46a   :  { %24530 = vst [vmem:[#allocation73_spill] sm:$0xff] %v21175_v42  ;;  %v13434_v62 = vcombine.low %v20485_v61, %v20494_v27  ;;  %v6737_v45 = vcombine.low %v5197_v36, %v5211_v30  ;;  %v15347_v17 = vcombine.high %v8809_v49, %v8823_v31  ;;  %v12421_v44 = vcombine.high %v11781_v1, %v11781_v1  ;;  %v24533_v61 = vld [vmem:[#allocation48_spill] sm:$0xff] }
 0x46b   :  { %v12428_v29 = vrot.slane %v11781_v1, %v20258_v41  ;;  %v8850_v40 = vcombine.high %v8842_v57, %v8842_v57  ;;  %v8851_v28 = vcombine.high %v8849_v10, %v8849_v10  ;;  %v13441_v6 = vrot.slane %v13433_v11, %v20258_v41  ;;  %v11698_v1 = vpop.xlane.xlu1 %11697  ;;  %v4397_v11 = vpop.xlane.xlu0 %4396 }
 0x46c   :  { %v13448_v33 = vrot.slane %v13434_v62, %v20258_v41  ;;  %v21186_v47 = vrot.slane %v15283_v18, %v20258_v41  ;;  %v15285_v63 = vcombine.high %v5197_v36, %v5211_v30  ;;  %v6277_v20 = vcombine.low %v20513_v51, %v20516_v9 }
 0x46d   :  { %v6278_v27 = vcombine.low %v24533_v61, %v24532_v37  ;;  %v21193_v31 = vrot.slane %v6735_v52, %v20258_v41  ;;  %v21196_v3 = vrot.slane %v15284_v56, %v20258_v41  ;;  %v10356_v49 = vcombine.low %v8816_v43, %v8830_v0 }
 0x46e   :  { %24531 = vst [vmem:[#allocation171_spill] sm:$0xff] %v21186_v47  ;;  %v13449_v22 = vcombine.low %v13441_v6, %v13448_v33  ;;  %v15348_v62 = vcombine.high %v8816_v43, %v8830_v0  ;;  %v21199_v18 = vrot.slane %v10354_v21, %v20258_v41  ;;  %v12435_v30 = vrot.slane %v12421_v44, %v20258_v41  ;;  %v24536_v0 = vld [vmem:[#allocation71_spill] sm:$0xff]  ;;  %v24537_v33 = vld [vmem:[#allocation77_spill] sm:$0xff] }
 0x46f   :  { %v12436_v51 = vcombine.high %v12428_v29, %v12428_v29  ;;  %v21203_v9 = vrot.slane %v6737_v45, %v20258_v41  ;;  %v21206_v36 = vrot.slane %v15347_v17, %v20258_v41  ;;  %v8872_v52 = vrot.slane %v8850_v40, %v20258_v41 }
 0x470   :  { %24534 = vst [vmem:[#allocation95_spill] sm:$0xff] %v21199_v18  ;;  %v8879_v56 = vrot.slane %v8851_v28, %v20258_v41  ;;  %14970 = vperm.xlu0 %16997, %v13449_v22   ;;  %v6285_v6 = vrot.slane %v6277_v20, %v20258_v41  ;;  %v6292_v43 = vrot.slane %v6278_v27, %v20258_v41 }
 0x471   :  { %24535 = vst [vmem:[#allocation48_spill] sm:$0xff] %v21206_v36  ;;  %v11782_v21 = vadd.f32 %v24536_v0, %v11698_v1  ;;  %v4480_v44 = vadd.f32 %v24537_v33, %v4397_v11  ;;  %v21215_v37 = vrot.slane %v15285_v63, %v20258_v41  ;;  %v8858_v45 = vrot.slane %v8842_v57, %v20258_v41  ;;  %v24538_v63 = vld [vmem:[#allocation96_spill] sm:$0xff]  ;;  %v24547_v36 = vld [vmem:[#allocation103_spill] sm:$0xff] }
 0x472   :  { %v8865_v17 = vrot.slane %v8849_v10, %v20258_v41  ;;  %v9945_v40 = vcombine.low %v20564_v38, %v20567_v15  ;;  %v12437_v28 = vcombine.high %v12435_v30, %v12435_v30  ;;  %v21222_v61 = vrot.slane %v12436_v51, %v20258_v41 }
 0x473   :  { %v6293_v20 = vcombine.low %v6285_v6, %v6292_v43  ;;  %v12470_v27 = vcombine.high %v11782_v21, %v11782_v21  ;;  %v10403_v22 = vcombine.low %v8858_v45, %v8872_v52  ;;  %v21225_v1 = vrot.slane %v12428_v29, %v20258_v41 }
 0x474   :  { %v5216_v11 = vcombine.high %v4480_v44, %v4480_v44  ;;  %v9946_v0 = vcombine.low %v24538_v63, %v20577_v34  ;;  %v15349_v57 = vcombine.high %v8858_v45, %v8872_v52  ;;  %v10405_v33 = vcombine.low %v8865_v17, %v8879_v56 }
 0x475   :  { %v15350_v10 = vcombine.high %v8865_v17, %v8879_v56  ;;  %7676 = vperm.xlu1 %16996, %v6293_v20   ;;  %v12477_v38 = vrot.slane %v11782_v21, %v20258_v41  ;;  %v12484_v15 = vrot.slane %v12470_v27, %v20258_v41  ;;  %v5223_v51 = vrot.slane %v4480_v44, %v20258_v41 }
 0x476   :  { %v9953_v6 = vrot.slane %v9945_v40, %v20258_v41  ;;  %v9960_v43 = vrot.slane %v9946_v0, %v20258_v41  ;;  %v21235_v29 = vrot.slane %v10356_v49, %v20258_v41  ;;  %v21238_v18 = vrot.slane %v15348_v62, %v20258_v41 }
 0x477   :  { %v12465_v34 = vrot.slane %v12437_v28, %v20258_v41  ;;  %v13989_v52 = vcombine.low %v21225_v1, %v21222_v61  ;;  %v21244_v56 = vrot.slane %v10403_v22, %v20258_v41  ;;  %v12451_v21 = vrot.slane %v12435_v30, %v20258_v41  ;;  %v4399_v22 = vpop.xlane.xlu1 %4398 }
 0x478   :  { %24539 = vst [vmem:[#allocation71_spill] sm:$0xff] %v21235_v29  ;;  %24540 = vst [vmem:[#allocation77_spill] sm:$0xff] %v21238_v18  ;;  %v5230_v44 = vrot.slane %v5216_v11, %v20258_v41  ;;  %v9961_v45 = vcombine.low %v9953_v6, %v9960_v43  ;;  %v21249_v17 = vrot.slane %v15349_v57, %v20258_v41 }
 0x479   :  { %v21252_v49 = vrot.slane %v10405_v33, %v20258_v41  ;;  %v12485_v62 = vcombine.high %v12477_v38, %v12477_v38  ;;  %v6228_v40 = vcombine.low %v20641_v46, %v20645_v12  ;;  %v21257_v28 = vrot.slane %v15350_v10, %v20258_v41  ;;  %v8065_v33 = vpop.xlane.xlu0 %8064 }
 0x47a   :  { %v12486_v20 = vcombine.high %v12484_v15, %v12484_v15  ;;  %v5231_v27 = vcombine.high %v5223_v51, %v5223_v51  ;;  %11344 = vperm.xlu0 %16997, %v9961_v45   ;;  %v6229_v30 = vcombine.low %v20648_v26, %v20652_v14  ;;  %v15412_v11 = vcombine.high %v21225_v1, %v21222_v61  ;;  %v24542_v61 = vld [vmem:[#allocation74_spill] sm:$0xff] }
 0x47b   :  { %v13991_v63 = vcombine.low %v12451_v21, %v12465_v34  ;;  %v15413_v0 = vcombine.high %v12451_v21, %v12465_v34  ;;  %v21264_v57 = vrot.slane %v13989_v52, %v20258_v41  ;;  %v12493_v46 = vrot.slane %v12477_v38, %v20258_v41  ;;  %v24543_v21 = vld [vmem:[#allocation83_spill] sm:$0xff]  ;;  %v24544_v38 = vld [vmem:[#allocation102_spill] sm:$0xff] }
 0x47c   :  { %v12500_v12 = vrot.slane %v12484_v15, %v20258_v41  ;;  %v5232_v10 = vcombine.high %v5230_v44, %v5230_v44  ;;  %v5239_v6 = vrot.slane %v5223_v51, %v20258_v41  ;;  %v12507_v43 = vrot.slane %v12485_v62, %v20258_v41  ;;  %v24546_v62 = vld [vmem:[#allocation104_spill] sm:$0xff] }
 0x47d   :  { %24541 = vst [vmem:[#allocation96_spill] sm:$0xff] %v21264_v57  ;;  %v6236_v26 = vrot.slane %v6228_v40, %v20258_v41  ;;  %v6243_v14 = vrot.slane %v6229_v30, %v20258_v41  ;;  %v4481_v1 = vadd.f32 %v24542_v61, %v4399_v22  ;;  %v12514_v34 = vrot.slane %v12486_v20, %v20258_v41  ;;  %v24545_v57 = vld [vmem:[#allocation101_spill] sm:$0xff] }
 0x47e   :  { %v5253_v52 = vrot.slane %v5231_v27, %v20258_v41  ;;  %v8148_v45 = vadd.f32 %v24543_v21, %v8065_v33  ;;  %v13580_v15 = vcombine.low %v24545_v57, %v24544_v38  ;;  %v13581_v40 = vcombine.low %v24547_v36, %v24546_v62  ;;  %v8067_v27 = vpop.xlane.xlu1 %8066 }
 0x47f   :  { %v6244_v29 = vcombine.low %v6236_v26, %v6243_v14  ;;  %v5265_v18 = vcombine.high %v4481_v1, %v4481_v1  ;;  %v5272_v51 = vrot.slane %v4481_v1, %v20258_v41  ;;  %v5246_v30 = vrot.slane %v5230_v44, %v20258_v41 }
 0x480   :  { %v5260_v22 = vrot.slane %v5232_v10, %v20258_v41  ;;  %v8884_v61 = vcombine.high %v8148_v45, %v8148_v45  ;;  %v8891_v20 = vrot.slane %v8148_v45, %v20258_v41  ;;  %v14038_v42 = vcombine.low %v12493_v46, %v12507_v43  ;;  %v24548_v10 = vld [vmem:[#allocation85_spill] sm:$0xff] }
 0x481   :  { %v15414_v33 = vcombine.high %v12493_v46, %v12507_v43  ;;  %7673 = vperm.xlu1 %16996, %v6244_v29   ;;  %v13588_v57 = vrot.slane %v13580_v15, %v20258_v41  ;;  %v13595_v26 = vrot.slane %v13581_v40, %v20258_v41  ;;  %v6784_v14 = vcombine.low %v5239_v6, %v5253_v52 }
 0x482   :  { %v15286_v1 = vcombine.high %v5239_v6, %v5253_v52  ;;  %v5279_v21 = vrot.slane %v5265_v18, %v20258_v41  ;;  %v5280_v36 = vcombine.high %v5272_v51, %v5272_v51  ;;  %v14040_v38 = vcombine.low %v12500_v12, %v12514_v34 }
 0x483   :  { %v15415_v44 = vcombine.high %v12500_v12, %v12514_v34  ;;  %v13596_v62 = vcombine.low %v13588_v57, %v13595_v26  ;;  %v8149_v47 = vadd.f32 %v24548_v10, %v8067_v27  ;;  %v21289_v45 = vrot.slane %v15412_v11, %v20258_v41  ;;  %v24561_v10 = vld [vmem:[#allocation97_spill] sm:$0xff] }
 0x484   :  { %v6786_v35 = vcombine.low %v5246_v30, %v5260_v22  ;;  %v8898_v29 = vrot.slane %v8884_v61, %v20258_v41  ;;  %v8899_v46 = vcombine.high %v8891_v20, %v8891_v20  ;;  %v21293_v43 = vrot.slane %v13991_v63, %v20258_v41 }
 0x485   :  { %24549 = vst [vmem:[#allocation74_spill] sm:$0xff] %v21289_v45  ;;  %v21296_v6 = vrot.slane %v15413_v0, %v20258_v41  ;;  %v21299_v18 = vrot.slane %v14038_v42, %v20258_v41  ;;  %v15287_v12 = vcombine.high %v5246_v30, %v5260_v22  ;;  %14979 = vperm.xlu0 %16997, %v13596_v62   ;;  %v24560_v62 = vld [vmem:[#allocation98_spill] sm:$0xff]  ;;  %v24570_v45 = vld [vmem:[#allocation108_spill] sm:$0xff] }
 0x486   :  { %24550 = vst [vmem:[#allocation83_spill] sm:$0xff] %v21293_v43  ;;  %v21302_v34 = vrot.slane %v15414_v33, %v20258_v41  ;;  %v21305_v11 = vrot.slane %v6784_v14, %v20258_v41  ;;  %v5281_v52 = vcombine.high %v5279_v21, %v5279_v21  ;;  %v5302_v15 = vrot.slane %v5280_v36, %v20258_v41  ;;  %v11700_v33 = vpop.xlane.xlu0 %11699 }
 0x487   :  { %24551 = vst [vmem:[#allocation102_spill] sm:$0xff] %v21296_v6  ;;  %24552 = vst [vmem:[#allocation101_spill] sm:$0xff] %v21299_v18  ;;  %v21309_v63 = vrot.slane %v14040_v38, %v20258_v41  ;;  %v21312_v0 = vrot.slane %v15415_v44, %v20258_v41  ;;  %v21315_v42 = vrot.slane %v15286_v1, %v20258_v41  ;;  %v24586_v18 = vld [vmem:[#allocation115_spill] sm:$0xff] }
 0x488   :  { %24553 = vst [vmem:[#allocation104_spill] sm:$0xff] %v21302_v34  ;;  %24554 = vst [vmem:[#allocation103_spill] sm:$0xff] %v21305_v11  ;;  %v8933_v40 = vcombine.high %v8149_v47, %v8149_v47  ;;  %v21318_v30 = vrot.slane %v6786_v35, %v20258_v41  ;;  %v5288_v22 = vrot.slane %v5272_v51, %v20258_v41  ;;  %v24564_v11 = vld [vmem:[#allocation91_spill] sm:$0xff] }
 0x489   :  { %24555 = vst [vmem:[#allocation85_spill] sm:$0xff] %v21309_v63  ;;  %24556 = vst [vmem:[#allocation172_spill] sm:$0xff] %v21312_v0  ;;  %v8900_v61 = vcombine.high %v8898_v29, %v8898_v29  ;;  %v8921_v27 = vrot.slane %v8899_v46, %v20258_v41  ;;  %v21323_v57 = vrot.slane %v15287_v12, %v20258_v41  ;;  %v24563_v12 = vld [vmem:[#allocation99_spill] sm:$0xff] }
 0x48a   :  { %24557 = vst [vmem:[#allocation173_spill] sm:$0xff] %v21315_v42  ;;  %24558 = vst [vmem:[#allocation174_spill] sm:$0xff] %v21318_v30  ;;  %v5295_v26 = vrot.slane %v5279_v21, %v20258_v41  ;;  %v8907_v14 = vrot.slane %v8891_v20, %v20258_v41  ;;  %v8940_v1 = vrot.slane %v8149_v47, %v20258_v41  ;;  %v24562_v30 = vld [vmem:[#allocation100_spill] sm:$0xff]  ;;  %v4401_v63 = vpop.xlane.xlu0 %4400 }
 0x48b   :  { %24559 = vst [vmem:[#allocation175_spill] sm:$0xff] %v21323_v57  ;;  %v5309_v36 = vrot.slane %v5281_v52, %v20258_v41  ;;  %v6833_v38 = vcombine.low %v5288_v22, %v5302_v15  ;;  %v15288_v35 = vcombine.high %v5288_v22, %v5302_v15  ;;  %v8914_v44 = vrot.slane %v8898_v29, %v20258_v41  ;;  %v24565_v52 = vld [vmem:[#allocation122_spill] sm:$0xff]  ;;  %v24566_v15 = vld [vmem:[#allocation121_spill] sm:$0xff] }
 0x48c   :  { %v8947_v51 = vrot.slane %v8933_v40, %v20258_v41  ;;  %v9896_v46 = vcombine.low %v24561_v10, %v24560_v62  ;;  %v9897_v57 = vcombine.low %v24563_v12, %v24562_v30  ;;  %v11783_v21 = vadd.f32 %v24564_v11, %v11700_v33  ;;  %v11702_v33 = vpop.xlane.xlu1 %11701 }
 0x48d   :  { %v8928_v20 = vrot.slane %v8900_v61, %v20258_v41  ;;  %v10452_v42 = vcombine.low %v8907_v14, %v8921_v27  ;;  %v10043_v47 = vcombine.low %v20718_v32, %v20721_v25  ;;  %v10044_v22 = vcombine.low %v24566_v15, %v24565_v52  ;;  %v24568_v52 = vld [vmem:[#allocation106_spill] sm:$0xff] }
 0x48e   :  { %v15351_v29 = vcombine.high %v8907_v14, %v8921_v27  ;;  %v8948_v43 = vcombine.high %v8940_v1, %v8940_v1  ;;  %v9904_v40 = vrot.slane %v9896_v46, %v20258_v41  ;;  %v9911_v62 = vrot.slane %v9897_v57, %v20258_v41 }
 0x48f   :  { %v6835_v10 = vcombine.low %v5295_v26, %v5309_v36  ;;  %v15289_v6 = vcombine.high %v5295_v26, %v5309_v36  ;;  %v12519_v30 = vcombine.high %v11783_v21, %v11783_v21  ;;  %v12526_v11 = vrot.slane %v11783_v21, %v20258_v41  ;;  %v24567_v36 = vld [vmem:[#allocation94_spill] sm:$0xff] }
 0x490   :  { %v21345_v61 = vrot.slane %v6833_v38, %v20258_v41  ;;  %v21348_v32 = vrot.slane %v15288_v35, %v20258_v41  ;;  %v8949_v25 = vcombine.high %v8947_v51, %v8947_v51  ;;  %v9912_v12 = vcombine.low %v9904_v40, %v9911_v62  ;;  %v24569_v38 = vld [vmem:[#allocation105_spill] sm:$0xff]  ;;  %v24571_v35 = vld [vmem:[#allocation107_spill] sm:$0xff] }
 0x491   :  { %v10454_v27 = vcombine.low %v8914_v44, %v8928_v20  ;;  %v12533_v14 = vrot.slane %v12519_v30, %v20258_v41  ;;  %v10051_v46 = vrot.slane %v10043_v47, %v20258_v41  ;;  %v10058_v57 = vrot.slane %v10044_v22, %v20258_v41 }
 0x492   :  { %v8970_v26 = vrot.slane %v8948_v43, %v20258_v41  ;;  %11341 = vperm.xlu1 %16996, %v9912_v12   ;;  %v11784_v21 = vadd.f32 %v24567_v36, %v11702_v33  ;;  %v13531_v15 = vcombine.low %v24569_v38, %v24568_v52  ;;  %v13532_v55 = vcombine.low %v24571_v35, %v24570_v45 }
 0x493   :  { %v15352_v40 = vcombine.high %v8914_v44, %v8928_v20  ;;  %v21360_v62 = vrot.slane %v10452_v42, %v20258_v41  ;;  %v12534_v30 = vcombine.high %v12526_v11, %v12526_v11  ;;  %v10059_v47 = vcombine.low %v10051_v46, %v10058_v57  ;;  %v24574_v44 = vld [vmem:[#allocation86_spill] sm:$0xff] }
 0x494   :  { %v8956_v22 = vrot.slane %v8940_v1, %v20258_v41  ;;  %v8977_v43 = vrot.slane %v8949_v25, %v20258_v41  ;;  %v13539_v12 = vrot.slane %v13531_v15, %v20258_v41  ;;  %v13546_v33 = vrot.slane %v13532_v55, %v20258_v41 }
 0x495   :  { %24572 = vst [vmem:[#allocation98_spill] sm:$0xff] %v21360_v62  ;;  %v21367_v36 = vrot.slane %v15351_v29, %v20258_v41  ;;  %v12535_v52 = vcombine.high %v12533_v14, %v12533_v14  ;;  %11350 = vperm.xlu0 %16997, %v10059_v47   ;;  %v12568_v45 = vcombine.high %v11784_v21, %v11784_v21 }
 0x496   :  { %v4482_v20 = vadd.f32 %v24574_v44, %v4401_v63  ;;  %v21371_v42 = vrot.slane %v6835_v10, %v20258_v41  ;;  %v8963_v46 = vrot.slane %v8947_v51, %v20258_v41  ;;  %v10501_v1 = vcombine.low %v8956_v22, %v8970_v26  ;;  %v24579_v44 = vld [vmem:[#allocation127_spill] sm:$0xff] }
 0x497   :  { %24573 = vst [vmem:[#allocation97_spill] sm:$0xff] %v21367_v36  ;;  %v13547_v57 = vcombine.low %v13539_v12, %v13546_v33  ;;  %v21375_v25 = vrot.slane %v15289_v6, %v20258_v41  ;;  %v21378_v55 = vrot.slane %v10454_v27, %v20258_v41  ;;  %v12556_v29 = vrot.slane %v12534_v30, %v20258_v41 }
 0x498   :  { %v12575_v38 = vrot.slane %v11784_v21, %v20258_v41  ;;  %v21383_v15 = vrot.slane %v15352_v40, %v20258_v41  ;;  %v15353_v63 = vcombine.high %v8956_v22, %v8970_v26  ;;  %v10503_v10 = vcombine.low %v8963_v46, %v8977_v43  ;;  %v24577_v26 = vld [vmem:[#allocation37_spill] sm:$0xff] }
 0x499   :  { %24575 = vst [vmem:[#allocation100_spill] sm:$0xff] %v21378_v55  ;;  %v15354_v35 = vcombine.high %v8963_v46, %v8977_v43  ;;  %14976 = vperm.xlu1 %16996, %v13547_v57   ;;  %v12542_v51 = vrot.slane %v12526_v11, %v20258_v41  ;;  %v21387_v47 = vrot.slane %v12535_v52, %v20258_v41  ;;  %v24578_v11 = vld [vmem:[#allocation128_spill] sm:$0xff]  ;;  %v4403_v46 = vpop.xlane.xlu1 %4402  ;;  %v24581_v55 = vld [vmem:[#allocation114_spill] sm:$0xff] }
 0x49a   :  { %24576 = vst [vmem:[#allocation99_spill] sm:$0xff] %v21383_v15  ;;  %v12582_v6 = vrot.slane %v12568_v45, %v20258_v41  ;;  %v5314_v27 = vcombine.high %v4482_v20, %v4482_v20  ;;  %v21391_v12 = vrot.slane %v10501_v1, %v20258_v41  ;;  %v12549_v21 = vrot.slane %v12533_v14, %v20258_v41 }
 0x49b   :  { %v5321_v40 = vrot.slane %v4482_v20, %v20258_v41  ;;  %v13678_v30 = vcombine.low %v24577_v26, %v20760_v7  ;;  %v14087_v22 = vcombine.low %v12542_v51, %v12556_v29  ;;  %v15416_v43 = vcombine.high %v12542_v51, %v12556_v29 }
 0x49c   :  { %v12583_v33 = vcombine.high %v12575_v38, %v12575_v38  ;;  %v13679_v52 = vcombine.low %v24579_v44, %v24578_v11  ;;  %v21400_v45 = vrot.slane %v15353_v63, %v20258_v41  ;;  %v21403_v1 = vrot.slane %v10503_v10, %v20258_v41  ;;  %v24580_v63 = vld [vmem:[#allocation82_spill] sm:$0xff]  ;;  %v24582_v10 = vld [vmem:[#allocation113_spill] sm:$0xff] }
 0x49d   :  { %v21406_v14 = vrot.slane %v15354_v35, %v20258_v41  ;;  %v12591_v20 = vrot.slane %v12575_v38, %v20258_v41  ;;  %v14089_v7 = vcombine.low %v12549_v21, %v21387_v47  ;;  %v12584_v57 = vcombine.high %v12582_v6, %v12582_v6 }
 0x49e   :  { %v5328_v29 = vrot.slane %v5314_v27, %v20258_v41  ;;  %v13693_v51 = vrot.slane %v13679_v52, %v20258_v41  ;;  %v5329_v26 = vcombine.high %v5321_v40, %v5321_v40  ;;  %v13686_v11 = vrot.slane %v13678_v30, %v20258_v41  ;;  %v24585_v30 = vld [vmem:[#allocation116_spill] sm:$0xff] }
 0x49f   :  { %v4483_v44 = vadd.f32 %v24580_v63, %v4403_v46  ;;  %v6375_v15 = vcombine.low %v24582_v10, %v24581_v55  ;;  %v15417_v35 = vcombine.high %v12549_v21, %v21387_v47  ;;  %v21418_v62 = vrot.slane %v14087_v22, %v20258_v41  ;;  %v8069_v63 = vpop.xlane.xlu0 %8068 }
 0x4a0   :  { %v21421_v38 = vrot.slane %v15416_v43, %v20258_v41  ;;  %v12605_v27 = vrot.slane %v12583_v33, %v20258_v41  ;;  %v13694_v36 = vcombine.low %v13686_v11, %v13693_v51  ;;  %v6376_v46 = vcombine.low %v24586_v18, %v24585_v30  ;;  %v24588_v18 = vld [vmem:[#allocation35_spill] sm:$0xff]  ;;  %v24589_v30 = vld [vmem:[#allocation138_spill] sm:$0xff] }
 0x4a1   :  { %24583 = vst [vmem:[#allocation91_spill] sm:$0xff] %v21418_v62  ;;  %v5363_v52 = vcombine.high %v4483_v44, %v4483_v44  ;;  %v5370_v0 = vrot.slane %v4483_v44, %v20258_v41  ;;  %v21428_v55 = vrot.slane %v14089_v7, %v20258_v41  ;;  %v12598_v47 = vrot.slane %v12582_v6, %v20258_v41  ;;  %v24590_v7 = vld [vmem:[#allocation60_spill] sm:$0xff]  ;;  %v24592_v6 = vld [vmem:[#allocation139_spill] sm:$0xff] }
 0x4a2   :  { %24584 = vst [vmem:[#allocation122_spill] sm:$0xff] %v21421_v38  ;;  %v12612_v21 = vrot.slane %v12584_v57, %v20258_v41  ;;  %v5330_v22 = vcombine.high %v5328_v29, %v5328_v29  ;;  %v5351_v43 = vrot.slane %v5329_v26, %v20258_v41  ;;  %14985 = vperm.xlu0 %16997, %v13694_v36   ;;  %v24591_v62 = vld [vmem:[#allocation140_spill] sm:$0xff]  ;;  %v8071_v57 = vpop.xlane.xlu1 %8070 }
 0x4a3   :  { %24587 = vst [vmem:[#allocation121_spill] sm:$0xff] %v21428_v55  ;;  %v5377_v33 = vrot.slane %v5363_v52, %v20258_v41  ;;  %v5378_v51 = vcombine.high %v5370_v0, %v5370_v0  ;;  %v6383_v11 = vrot.slane %v6375_v15, %v20258_v41  ;;  %v6390_v44 = vrot.slane %v6376_v46, %v20258_v41 }
 0x4a4   :  { %v8150_v10 = vadd.f32 %v24588_v18, %v8069_v63  ;;  %v10141_v55 = vcombine.low %v24590_v7, %v24589_v30  ;;  %v10142_v38 = vcombine.low %v24592_v6, %v24591_v62  ;;  %v14136_v34 = vcombine.low %v12591_v20, %v12605_v27  ;;  %v24593_v30 = vld [vmem:[#allocation45_spill] sm:$0xff] }
 0x4a5   :  { %v15418_v16 = vcombine.high %v12591_v20, %v12605_v27  ;;  %v5337_v36 = vrot.slane %v5321_v40, %v20258_v41  ;;  %v5344_v26 = vrot.slane %v5328_v29, %v20258_v41  ;;  %v14138_v52 = vcombine.low %v12598_v47, %v12612_v21 }
 0x4a6   :  { %v5358_v15 = vrot.slane %v5330_v22, %v20258_v41  ;;  %v6391_v23 = vcombine.low %v6383_v11, %v6390_v44  ;;  %v8982_v46 = vcombine.high %v8150_v10, %v8150_v10  ;;  %v15419_v59 = vcombine.high %v12598_v47, %v12612_v21 }
 0x4a7   :  { %v5379_v63 = vcombine.high %v5377_v33, %v5377_v33  ;;  %v10156_v18 = vrot.slane %v10142_v38, %v20258_v41  ;;  %v8151_v7 = vadd.f32 %v24593_v30, %v8071_v57  ;;  %v6882_v4 = vcombine.low %v5337_v36, %v5351_v43 }
 0x4a8   :  { %v5400_v62 = vrot.slane %v5378_v51, %v20258_v41  ;;  %7682 = vperm.xlu1 %16996, %v6391_v23   ;;  %v8989_v20 = vrot.slane %v8150_v10, %v20258_v41  ;;  %v10149_v40 = vrot.slane %v10141_v55, %v20258_v41  ;;  %v21450_v29 = vrot.slane %v15417_v35, %v20258_v41 }
 0x4a9   :  { %v21453_v27 = vrot.slane %v14136_v34, %v20258_v41  ;;  %v15290_v47 = vcombine.high %v5337_v36, %v5351_v43  ;;  %v8996_v21 = vrot.slane %v8982_v46, %v20258_v41  ;;  %v6884_v38 = vcombine.low %v5344_v26, %v5358_v15  ;;  %v24604_v46 = vld [vmem:[#allocation109_spill] sm:$0xff] }
 0x4aa   :  { %24594 = vst [vmem:[#allocation94_spill] sm:$0xff] %v21450_v29  ;;  %v15291_v22 = vcombine.high %v5344_v26, %v5358_v15  ;;  %v5386_v11 = vrot.slane %v5370_v0, %v20258_v41  ;;  %v10157_v44 = vcombine.low %v10149_v40, %v10156_v18  ;;  %v21458_v23 = vrot.slane %v15418_v16, %v20258_v41  ;;  %v11704_v26 = vpop.xlane.xlu0 %11703 }
 0x4ab   :  { %24595 = vst [vmem:[#allocation106_spill] sm:$0xff] %v21453_v27  ;;  %v21461_v51 = vrot.slane %v14138_v52, %v20258_v41  ;;  %v5407_v35 = vrot.slane %v5379_v63, %v20258_v41  ;;  %v9031_v55 = vcombine.high %v8151_v7, %v8151_v7  ;;  %v21465_v34 = vrot.slane %v15419_v59, %v20258_v41 }
 0x4ac   :  { %24596 = vst [vmem:[#allocation105_spill] sm:$0xff] %v21458_v23  ;;  %v21468_v43 = vrot.slane %v6882_v4, %v20258_v41  ;;  %v6931_v10 = vcombine.low %v5386_v11, %v5400_v62  ;;  %v8997_v6 = vcombine.high %v8989_v20, %v8989_v20  ;;  %11356 = vperm.xlu0 %16997, %v10157_v44   ;;  %v24603_v4 = vld [vmem:[#allocation110_spill] sm:$0xff]  ;;  %v24607_v44 = vld [vmem:[#allocation28_spill] sm:$0xff] }
 0x4ad   :  { %24597 = vst [vmem:[#allocation108_spill] sm:$0xff] %v21461_v51  ;;  %24598 = vst [vmem:[#allocation107_spill] sm:$0xff] %v21465_v34  ;;  %v5393_v0 = vrot.slane %v5377_v33, %v20258_v41  ;;  %v15292_v57 = vcombine.high %v5386_v11, %v5400_v62  ;;  %v8998_v16 = vcombine.high %v8996_v21, %v8996_v21  ;;  %v24605_v62 = vld [vmem:[#allocation112_spill] sm:$0xff] }
 0x4ae   :  { %24599 = vst [vmem:[#allocation86_spill] sm:$0xff] %v21468_v43  ;;  %v9038_v36 = vrot.slane %v8151_v7, %v20258_v41  ;;  %v21473_v52 = vrot.slane %v15290_v47, %v20258_v41  ;;  %v21476_v15 = vrot.slane %v6884_v38, %v20258_v41  ;;  %v21479_v59 = vrot.slane %v15291_v22, %v20258_v41  ;;  %v24606_v7 = vld [vmem:[#allocation111_spill] sm:$0xff] }
 0x4af   :  { %v6326_v63 = vcombine.low %v24604_v46, %v24603_v4  ;;  %v6933_v18 = vcombine.low %v5393_v0, %v5407_v35  ;;  %v9005_v33 = vrot.slane %v8989_v20, %v20258_v41  ;;  %v9045_v30 = vrot.slane %v9031_v55, %v20258_v41  ;;  %v24608_v20 = vld [vmem:[#allocation24_spill] sm:$0xff] }
 0x4b0   :  { %24600 = vst [vmem:[#allocation37_spill] sm:$0xff] %v21473_v52  ;;  %24601 = vst [vmem:[#allocation128_spill] sm:$0xff] %v21476_v15  ;;  %v6327_v40 = vcombine.low %v24606_v7, %v24605_v62  ;;  %v15293_v11 = vcombine.high %v5393_v0, %v5407_v35  ;;  %v21488_v47 = vrot.slane %v6931_v10, %v20258_v41  ;;  %v24609_v10 = vld [vmem:[#allocation145_spill] sm:$0xff]  ;;  %v24610_v62 = vld [vmem:[#allocation144_spill] sm:$0xff] }
 0x4b1   :  { %24602 = vst [vmem:[#allocation127_spill] sm:$0xff] %v21479_v59  ;;  %v9019_v38 = vrot.slane %v8997_v6, %v20258_v41  ;;  %v11785_v22 = vadd.f32 %v24607_v44, %v11704_v26  ;;  %v21493_v51 = vrot.slane %v15292_v57, %v20258_v41  ;;  %v9026_v4 = vrot.slane %v8998_v16, %v20258_v41  ;;  %v11706_v6 = vpop.xlane.xlu1 %11705  ;;  %v24613_v15 = vld [vmem:[#allocation117_spill] sm:$0xff]  ;;  %v24615_v52 = vld [vmem:[#allocation119_spill] sm:$0xff] }
 0x4b2   :  { %v9046_v46 = vcombine.high %v9038_v36, %v9038_v36  ;;  %v13776_v55 = vcombine.low %v24608_v20, %v20873_v53  ;;  %v6334_v34 = vrot.slane %v6326_v63, %v20258_v41  ;;  %v6341_v35 = vrot.slane %v6327_v40, %v20258_v41 }
 0x4b3   :  { %v12617_v0 = vcombine.high %v11785_v22, %v11785_v22  ;;  %v13777_v7 = vcombine.low %v24610_v62, %v24609_v10  ;;  %v21503_v26 = vrot.slane %v6933_v18, %v20258_v41  ;;  %v9012_v57 = vrot.slane %v8996_v21, %v20258_v41  ;;  %v24611_v62 = vld [vmem:[#allocation40_spill] sm:$0xff]  ;;  %v24612_v18 = vld [vmem:[#allocation118_spill] sm:$0xff] }
 0x4b4   :  { %v9047_v44 = vcombine.high %v9045_v30, %v9045_v30  ;;  %v12624_v16 = vrot.slane %v11785_v22, %v20258_v41  ;;  %v21508_v27 = vrot.slane %v15293_v11, %v20258_v41  ;;  %v10550_v53 = vcombine.low %v9005_v33, %v9019_v38  ;;  %v24614_v11 = vld [vmem:[#allocation120_spill] sm:$0xff] }
 0x4b5   :  { %v6342_v63 = vcombine.low %v6334_v34, %v6341_v35  ;;  %v12631_v40 = vrot.slane %v12617_v0, %v20258_v41  ;;  %v13784_v20 = vrot.slane %v13776_v55, %v20258_v41  ;;  %v13791_v10 = vrot.slane %v13777_v7, %v20258_v41  ;;  %v4405_v34 = vpop.xlane.xlu0 %4404 }
 0x4b6   :  { %v11786_v23 = vadd.f32 %v24611_v62, %v11706_v6  ;;  %v9994_v59 = vcombine.low %v24613_v15, %v24612_v18  ;;  %v15355_v21 = vcombine.high %v9005_v33, %v9019_v38  ;;  %v10552_v43 = vcombine.low %v9012_v57, %v9026_v4 }
 0x4b7   :  { %v9068_v22 = vrot.slane %v9046_v46, %v20258_v41  ;;  %7679 = vperm.xlu1 %16996, %v6342_v63   ;;  %v9995_v29 = vcombine.low %v24615_v52, %v24614_v11  ;;  %v9054_v35 = vrot.slane %v9038_v36, %v20258_v41  ;;  %v9075_v55 = vrot.slane %v9047_v44, %v20258_v41  ;;  %v24616_v52 = vld [vmem:[#allocation34_spill] sm:$0xff] }
 0x4b8   :  { %v12632_v0 = vcombine.high %v12624_v16, %v12624_v16  ;;  %v13792_v7 = vcombine.low %v13784_v20, %v13791_v10  ;;  %v15356_v48 = vcombine.high %v9012_v57, %v9026_v4  ;;  %v12633_v6 = vcombine.high %v12631_v40, %v12631_v40 }
 0x4b9   :  { %v12666_v62 = vcombine.high %v11786_v23, %v11786_v23  ;;  %v10009_v15 = vrot.slane %v9995_v29, %v20258_v41  ;;  %v9061_v33 = vrot.slane %v9045_v30, %v20258_v41  ;;  %v12673_v38 = vrot.slane %v11786_v23, %v20258_v41 }
 0x4ba   :  { %14991 = vperm.xlu0 %16997, %v13792_v7   ;;  %v10002_v46 = vrot.slane %v9994_v59, %v20258_v41  ;;  %v4484_v63 = vadd.f32 %v24616_v52, %v4405_v34  ;;  %v21527_v36 = vrot.slane %v10550_v53, %v20258_v41  ;;  %v21530_v44 = vrot.slane %v15355_v21, %v20258_v41  ;;  %v24622_v7 = vld [vmem:[#allocation149_spill] sm:$0xff] }
 0x4bb   :  { %v21533_v4 = vrot.slane %v10552_v43, %v20258_v41  ;;  %v10599_v57 = vcombine.low %v9054_v35, %v9068_v22  ;;  %v15357_v29 = vcombine.high %v9054_v35, %v9068_v22  ;;  %v10601_v20 = vcombine.low %v9061_v33, %v9075_v55  ;;  %v24621_v43 = vld [vmem:[#allocation38_spill] sm:$0xff] }
 0x4bc   :  { %24617 = vst [vmem:[#allocation82_spill] sm:$0xff] %v21527_v36  ;;  %24618 = vst [vmem:[#allocation114_spill] sm:$0xff] %v21530_v44  ;;  %v12654_v30 = vrot.slane %v12632_v0, %v20258_v41  ;;  %v10010_v10 = vcombine.low %v10002_v46, %v10009_v15  ;;  %v21537_v23 = vrot.slane %v15356_v48, %v20258_v41  ;;  %v24623_v15 = vld [vmem:[#allocation151_spill] sm:$0xff]  ;;  %v24628_v36 = vld [vmem:[#allocation124_spill] sm:$0xff] }
 0x4bd   :  { %24619 = vst [vmem:[#allocation113_spill] sm:$0xff] %v21533_v4  ;;  %v12661_v59 = vrot.slane %v12633_v6, %v20258_v41  ;;  %v12680_v53 = vrot.slane %v12666_v62, %v20258_v41  ;;  %v5412_v18 = vcombine.high %v4484_v63, %v4484_v63  ;;  %v15358_v11 = vcombine.high %v9061_v33, %v9075_v55  ;;  %v24624_v6 = vld [vmem:[#allocation150_spill] sm:$0xff]  ;;  %v4407_v62 = vpop.xlane.xlu1 %4406 }
 0x4be   :  { %24620 = vst [vmem:[#allocation116_spill] sm:$0xff] %v21537_v23  ;;  %v12640_v21 = vrot.slane %v12624_v16, %v20258_v41  ;;  %v12681_v34 = vcombine.high %v12673_v38, %v12673_v38  ;;  %11347 = vperm.xlu1 %16996, %v10010_v10   ;;  %v6571_v22 = vcombine.low %v24622_v7, %v24621_v43  ;;  %v24630_v44 = vld [vmem:[#allocation126_spill] sm:$0xff] }
 0x4bf   :  { %v21545_v35 = vrot.slane %v10599_v57, %v20258_v41  ;;  %v12647_v0 = vrot.slane %v12631_v40, %v20258_v41  ;;  %v5419_v48 = vrot.slane %v4484_v63, %v20258_v41  ;;  %v6572_v46 = vcombine.low %v24624_v6, %v24623_v15  ;;  %v24626_v6 = vld [vmem:[#allocation15_spill] sm:$0xff] }
 0x4c0   :  { %v21552_v55 = vrot.slane %v15357_v29, %v20258_v41  ;;  %v21555_v16 = vrot.slane %v10601_v20, %v20258_v41  ;;  %v14185_v33 = vcombine.low %v12640_v21, %v12654_v30  ;;  %v5426_v52 = vrot.slane %v5412_v18, %v20258_v41  ;;  %v24629_v18 = vld [vmem:[#allocation123_spill] sm:$0xff] }
 0x4c1   :  { %v15420_v10 = vcombine.high %v12640_v21, %v12654_v30  ;;  %v14187_v57 = vcombine.low %v12647_v0, %v12661_v59  ;;  %v15421_v43 = vcombine.high %v12647_v0, %v12661_v59  ;;  %v12682_v7 = vcombine.high %v12680_v53, %v12680_v53 }
 0x4c2   :  { %24625 = vst [vmem:[#allocation115_spill] sm:$0xff] %v21555_v16  ;;  %v12703_v40 = vrot.slane %v12681_v34, %v20258_v41  ;;  %v6579_v63 = vrot.slane %v6571_v22, %v20258_v41  ;;  %v6586_v15 = vrot.slane %v6572_v46, %v20258_v41  ;;  %v4485_v4 = vadd.f32 %v24626_v6, %v4407_v62  ;;  %v24631_v34 = vld [vmem:[#allocation125_spill] sm:$0xff]  ;;  %v8073_v22 = vpop.xlane.xlu0 %8072  ;;  %v24645_v16 = vld [vmem:[#allocation47_spill] sm:$0xff] }
 0x4c3   :  { %v21563_v29 = vrot.slane %v15358_v11, %v20258_v41  ;;  %v12689_v20 = vrot.slane %v12673_v38, %v20258_v41  ;;  %v5427_v23 = vcombine.high %v5419_v48, %v5419_v48  ;;  %v13629_v30 = vcombine.low %v24629_v18, %v24628_v36  ;;  %v24636_v18 = vld [vmem:[#allocation52_spill] sm:$0xff] }
 0x4c4   :  { %v5428_v21 = vcombine.high %v5426_v52, %v5426_v52  ;;  %v6587_v59 = vcombine.low %v6579_v63, %v6586_v15  ;;  %v5461_v0 = vcombine.high %v4485_v4, %v4485_v4  ;;  %v13630_v50 = vcombine.low %v24631_v34, %v24630_v44 }
 0x4c5   :  { %24627 = vst [vmem:[#allocation35_spill] sm:$0xff] %v21563_v29  ;;  %v21571_v46 = vrot.slane %v14185_v33, %v20258_v41  ;;  %v21574_v62 = vrot.slane %v15420_v10, %v20258_v41  ;;  %v21577_v11 = vrot.slane %v14187_v57, %v20258_v41  ;;  %v12696_v38 = vrot.slane %v12680_v53, %v20258_v41 }
 0x4c6   :  { %v21581_v36 = vrot.slane %v15421_v43, %v20258_v41  ;;  %v12710_v63 = vrot.slane %v12682_v7, %v20258_v41  ;;  %v14234_v15 = vcombine.low %v12689_v20, %v12703_v40  ;;  %7694 = vperm.xlu0 %16997, %v6587_v59   ;;  %v5468_v44 = vrot.slane %v4485_v4, %v20258_v41 }
 0x4c7   :  { %24632 = vst [vmem:[#allocation138_spill] sm:$0xff] %v21571_v46  ;;  %24633 = vst [vmem:[#allocation60_spill] sm:$0xff] %v21574_v62  ;;  %v15422_v6 = vcombine.high %v12689_v20, %v12703_v40  ;;  %v13637_v33 = vrot.slane %v13629_v30, %v20258_v41  ;;  %v13644_v10 = vrot.slane %v13630_v50, %v20258_v41  ;;  %v24639_v40 = vld [vmem:[#allocation157_spill] sm:$0xff]  ;;  %v24640_v20 = vld [vmem:[#allocation156_spill] sm:$0xff] }
 0x4c8   :  { %24634 = vst [vmem:[#allocation140_spill] sm:$0xff] %v21577_v11  ;;  %24635 = vst [vmem:[#allocation139_spill] sm:$0xff] %v21581_v36  ;;  %v8152_v34 = vadd.f32 %v24636_v18, %v8073_v22  ;;  %v5449_v57 = vrot.slane %v5427_v23, %v20258_v41  ;;  %v5456_v53 = vrot.slane %v5428_v21, %v20258_v41  ;;  %v24637_v11 = vld [vmem:[#allocation49_spill] sm:$0xff]  ;;  %v24638_v36 = vld [vmem:[#allocation30_spill] sm:$0xff] }
 0x4c9   :  { %v5475_v43 = vrot.slane %v5461_v0, %v20258_v41  ;;  %v10239_v7 = vcombine.low %v24638_v36, %v24637_v11  ;;  %v13645_v46 = vcombine.low %v13637_v33, %v13644_v10  ;;  %v10240_v30 = vcombine.low %v24640_v20, %v24639_v40  ;;  %v8075_v36 = vpop.xlane.xlu1 %8074  ;;  %v24644_v20 = vld [vmem:[#allocation16_spill] sm:$0xff] }
 0x4ca   :  { %v9080_v59 = vcombine.high %v8152_v34, %v8152_v34  ;;  %v9087_v4 = vrot.slane %v8152_v34, %v20258_v41  ;;  %v14236_v62 = vcombine.low %v12696_v38, %v12710_v63  ;;  %v15423_v50 = vcombine.high %v12696_v38, %v12710_v63 }
 0x4cb   :  { %v5435_v22 = vrot.slane %v5419_v48, %v20258_v41  ;;  %v5476_v18 = vcombine.high %v5468_v44, %v5468_v44  ;;  %v5442_v23 = vrot.slane %v5426_v52, %v20258_v41  ;;  %14982 = vperm.xlu1 %16996, %v13645_v46   ;;  %v10247_v0 = vrot.slane %v10239_v7, %v20258_v41  ;;  %v11708_v46 = vpop.xlane.xlu0 %11707 }
 0x4cc   :  { %v9094_v21 = vrot.slane %v9080_v59, %v20258_v41  ;;  %v10254_v11 = vrot.slane %v10240_v30, %v20258_v41  ;;  %v21602_v33 = vrot.slane %v14234_v15, %v20258_v41  ;;  %v21605_v10 = vrot.slane %v15422_v6, %v20258_v41  ;;  %v24646_v15 = vld [vmem:[#allocation36_spill] sm:$0xff] }
 0x4cd   :  { %v6980_v38 = vcombine.low %v5435_v22, %v5449_v57  ;;  %v5477_v63 = vcombine.high %v5475_v43, %v5475_v43  ;;  %v15294_v48 = vcombine.high %v5435_v22, %v5449_v57  ;;  %v6982_v34 = vcombine.low %v5442_v23, %v5456_v53  ;;  %v24648_v57 = vld [vmem:[#allocation134_spill] sm:$0xff]  ;;  %v24649_v22 = vld [vmem:[#allocation133_spill] sm:$0xff] }
 0x4ce   :  { %24641 = vst [vmem:[#allocation45_spill] sm:$0xff] %v21602_v33  ;;  %24642 = vst [vmem:[#allocation110_spill] sm:$0xff] %v21605_v10  ;;  %v9095_v40 = vcombine.high %v9087_v4, %v9087_v4  ;;  %v10255_v52 = vcombine.low %v10247_v0, %v10254_v11  ;;  %v21608_v59 = vrot.slane %v14236_v62, %v20258_v41 }
 0x4cf   :  { %v5498_v7 = vrot.slane %v5476_v18, %v20258_v41  ;;  %v8153_v30 = vadd.f32 %v24644_v20, %v8075_v36  ;;  %v6473_v33 = vcombine.low %v24646_v15, %v24645_v16  ;;  %v21615_v6 = vrot.slane %v15423_v50, %v20258_v41  ;;  %v24651_v36 = vld [vmem:[#allocation19_spill] sm:$0xff] }
 0x4d0   :  { %24643 = vst [vmem:[#allocation109_spill] sm:$0xff] %v21608_v59  ;;  %v15295_v10 = vcombine.high %v5442_v23, %v5456_v53  ;;  %v9096_v29 = vcombine.high %v9094_v21, %v9094_v21  ;;  %11362 = vperm.xlu0 %16997, %v10255_v52   ;;  %v6474_v0 = vcombine.low %v24649_v22, %v24648_v57 }
 0x4d1   :  { %24647 = vst [vmem:[#allocation112_spill] sm:$0xff] %v21615_v6  ;;  %v21620_v11 = vrot.slane %v6980_v38, %v20258_v41  ;;  %v5484_v62 = vrot.slane %v5468_v44, %v20258_v41  ;;  %v5505_v18 = vrot.slane %v5477_v63, %v20258_v41  ;;  %v11787_v20 = vadd.f32 %v24651_v36, %v11708_v46  ;;  %v24673_v6 = vld [vmem:[#allocation168_spill] sm:$0xff] }
 0x4d2   :  { %v21626_v16 = vrot.slane %v15294_v48, %v20258_v41  ;;  %v21629_v50 = vrot.slane %v6982_v34, %v20258_v41  ;;  %v9117_v53 = vrot.slane %v9095_v40, %v20258_v41  ;;  %v9129_v23 = vcombine.high %v8153_v30, %v8153_v30 }
 0x4d3   :  { %24650 = vst [vmem:[#allocation111_spill] sm:$0xff] %v21620_v11  ;;  %v5491_v52 = vrot.slane %v5475_v43, %v20258_v41  ;;  %v7029_v15 = vcombine.low %v5484_v62, %v5498_v7  ;;  %v6481_v38 = vrot.slane %v6473_v33, %v20258_v41  ;;  %v6488_v44 = vrot.slane %v6474_v0, %v20258_v41  ;;  %v4409_v11 = vpop.xlane.xlu0 %4408 }
 0x4d4   :  { %24652 = vst [vmem:[#allocation28_spill] sm:$0xff] %v21626_v16  ;;  %24653 = vst [vmem:[#allocation24_spill] sm:$0xff] %v21629_v50  ;;  %v15296_v57 = vcombine.high %v5484_v62, %v5498_v7  ;;  %v9103_v63 = vrot.slane %v9087_v4, %v20258_v41  ;;  %v21637_v46 = vrot.slane %v9096_v29, %v20258_v41  ;;  %v24655_v29 = vld [vmem:[#allocation161_spill] sm:$0xff]  ;;  %v24667_v16 = vld [vmem:[#allocation132_spill] sm:$0xff] }
 0x4d5   :  { %v12715_v48 = vcombine.high %v11787_v20, %v11787_v20  ;;  %v7031_v22 = vcombine.low %v5491_v52, %v5505_v18  ;;  %v15297_v34 = vcombine.high %v5491_v52, %v5505_v18  ;;  %v9136_v36 = vrot.slane %v8153_v30, %v20258_v41  ;;  %v24656_v18 = vld [vmem:[#allocation162_spill] sm:$0xff] }
 0x4d6   :  { %v6489_v40 = vcombine.low %v6481_v38, %v6488_v44  ;;  %v21641_v50 = vrot.slane %v9094_v21, %v20258_v41  ;;  %v10648_v43 = vcombine.low %v9103_v63, %v9117_v53  ;;  %v9143_v33 = vrot.slane %v9129_v23, %v20258_v41  ;;  %v11710_v23 = vpop.xlane.xlu1 %11709 }
 0x4d7   :  { %v12722_v0 = vrot.slane %v11787_v20, %v20258_v41  ;;  %v21646_v7 = vrot.slane %v15295_v10, %v20258_v41  ;;  %v15359_v4 = vcombine.high %v9103_v63, %v9117_v53  ;;  %v13874_v62 = vcombine.low %v24655_v29, %v20986_v54 }
 0x4d8   :  { %7688 = vperm.xlu1 %16996, %v6489_v40   ;;  %v13875_v30 = vcombine.low %v24656_v18, %v20993_v13  ;;  %v21653_v52 = vrot.slane %v7029_v15, %v20258_v41  ;;  %v21656_v21 = vrot.slane %v15296_v57, %v20258_v41  ;;  %v10650_v20 = vcombine.low %v21641_v50, %v21637_v46  ;;  %v24663_v40 = vld [vmem:[#allocation18_spill] sm:$0xff]  ;;  %v24665_v18 = vld [vmem:[#allocation129_spill] sm:$0xff] }
 0x4d9   :  { %24654 = vst [vmem:[#allocation145_spill] sm:$0xff] %v21646_v7  ;;  %v12729_v10 = vrot.slane %v12715_v48, %v20258_v41  ;;  %v21662_v53 = vrot.slane %v7031_v22, %v20258_v41  ;;  %v21665_v54 = vrot.slane %v15297_v34, %v20258_v41  ;;  %v15360_v13 = vcombine.high %v21641_v50, %v21637_v46  ;;  %v24664_v34 = vld [vmem:[#allocation130_spill] sm:$0xff] }
 0x4da   :  { %24657 = vst [vmem:[#allocation144_spill] sm:$0xff] %v21653_v52  ;;  %24658 = vst [vmem:[#allocation40_spill] sm:$0xff] %v21656_v21  ;;  %v9144_v15 = vcombine.high %v9136_v36, %v9136_v36  ;;  %v21670_v38 = vrot.slane %v10648_v43, %v20258_v41  ;;  %v9145_v44 = vcombine.high %v9143_v33, %v9143_v33 }
 0x4db   :  { %24659 = vst [vmem:[#allocation118_spill] sm:$0xff] %v21662_v53  ;;  %24660 = vst [vmem:[#allocation117_spill] sm:$0xff] %v21665_v54  ;;  %v12730_v57 = vcombine.high %v12722_v0, %v12722_v0  ;;  %v13889_v63 = vrot.slane %v13875_v30, %v20258_v41  ;;  %v21674_v48 = vrot.slane %v15359_v4, %v20258_v41 }
 0x4dc   :  { %24661 = vst [vmem:[#allocation120_spill] sm:$0xff] %v21670_v38  ;;  %v13882_v22 = vrot.slane %v13874_v62, %v20258_v41  ;;  %v11788_v29 = vadd.f32 %v24663_v40, %v11710_v23  ;;  %v6424_v7 = vcombine.low %v24665_v18, %v24664_v34  ;;  %v21681_v50 = vrot.slane %v10650_v20, %v20258_v41  ;;  %v24668_v62 = vld [vmem:[#allocation131_spill] sm:$0xff]  ;;  %v24669_v20 = vld [vmem:[#allocation20_spill] sm:$0xff] }
 0x4dd   :  { %24662 = vst [vmem:[#allocation119_spill] sm:$0xff] %v21674_v48  ;;  %v9152_v46 = vrot.slane %v9136_v36, %v20258_v41  ;;  %v9159_v43 = vrot.slane %v9143_v33, %v20258_v41  ;;  %v12731_v38 = vcombine.high %v12729_v10, %v12729_v10  ;;  %v9166_v30 = vrot.slane %v9144_v15, %v20258_v41 }
 0x4de   :  { %24666 = vst [vmem:[#allocation34_spill] sm:$0xff] %v21681_v50  ;;  %v13890_v4 = vcombine.low %v13882_v22, %v13889_v63  ;;  %v12764_v48 = vcombine.high %v11788_v29, %v11788_v29  ;;  %v6425_v59 = vcombine.low %v24668_v62, %v24667_v16  ;;  %v9173_v23 = vrot.slane %v9145_v44, %v20258_v41  ;;  %v24670_v62 = vld [vmem:[#allocation167_spill] sm:$0xff]  ;;  %v24671_v44 = vld [vmem:[#allocation166_spill] sm:$0xff] }
 0x4df   :  { %v12752_v40 = vrot.slane %v12730_v57, %v20258_v41  ;;  %v12771_v34 = vrot.slane %v11788_v29, %v20258_v41  ;;  %v4486_v18 = vadd.f32 %v24669_v20, %v4409_v11  ;;  %v12738_v36 = vrot.slane %v12722_v0, %v20258_v41  ;;  %v24672_v57 = vld [vmem:[#allocation29_spill] sm:$0xff]  ;;  %v4411_v20 = vpop.xlane.xlu1 %4410 }
 0x4e0   :  { %14997 = vperm.xlu0 %16997, %v13890_v4   ;;  %v12778_v33 = vrot.slane %v12764_v48, %v20258_v41  ;;  %v6432_v15 = vrot.slane %v6424_v7, %v20258_v41  ;;  %v6439_v63 = vrot.slane %v6425_v59, %v20258_v41  ;;  %v12759_v22 = vrot.slane %v12731_v38, %v20258_v41 }
 0x4e1   :  { %v5510_v16 = vcombine.high %v4486_v18, %v4486_v18  ;;  %v6669_v50 = vcombine.low %v24671_v44, %v24670_v62  ;;  %v6670_v29 = vcombine.low %v24673_v6, %v24672_v57  ;;  %v10697_v53 = vcombine.low %v9152_v46, %v9166_v30 }
 0x4e2   :  { %v15361_v11 = vcombine.high %v9152_v46, %v9166_v30  ;;  %v12745_v0 = vrot.slane %v12729_v10, %v20258_v41  ;;  %v6440_v4 = vcombine.low %v6432_v15, %v6439_v63  ;;  %v10699_v48 = vcombine.low %v9159_v43, %v9173_v23  ;;  %v24674_v30 = vld [vmem:[#allocation63_spill] sm:$0xff] }
 0x4e3   :  { %v15362_v54 = vcombine.high %v9159_v43, %v9173_v23  ;;  %v14283_v7 = vcombine.low %v12738_v36, %v12752_v40  ;;  %v12779_v52 = vcombine.high %v12771_v34, %v12771_v34  ;;  %v12780_v59 = vcombine.high %v12778_v33, %v12778_v33 }
 0x4e4   :  { %7685 = vperm.xlu1 %16996, %v6440_v4   ;;  %v5517_v38 = vrot.slane %v4486_v18, %v20258_v41  ;;  %v5524_v21 = vrot.slane %v5510_v16, %v20258_v41  ;;  %v6684_v62 = vrot.slane %v6670_v29, %v20258_v41  ;;  %v15424_v44 = vcombine.high %v12738_v36, %v12752_v40  ;;  %v8077_v29 = vpop.xlane.xlu0 %8076 }
 0x4e5   :  { %v14285_v6 = vcombine.low %v12745_v0, %v12759_v22  ;;  %v6677_v46 = vrot.slane %v6669_v50, %v20258_v41  ;;  %v4487_v10 = vadd.f32 %v24674_v30, %v4411_v20  ;;  %v21708_v15 = vrot.slane %v15360_v13, %v20258_v41 }
 0x4e6   :  { %v21711_v43 = vrot.slane %v10697_v53, %v20258_v41  ;;  %v21714_v23 = vrot.slane %v15361_v11, %v20258_v41  ;;  %v15425_v18 = vcombine.high %v12745_v0, %v12759_v22  ;;  %v21717_v63 = vrot.slane %v10699_v48, %v20258_v41  ;;  %v24679_v48 = vld [vmem:[#allocation136_spill] sm:$0xff] }
 0x4e7   :  { %24675 = vst [vmem:[#allocation38_spill] sm:$0xff] %v21708_v15  ;;  %v21720_v40 = vrot.slane %v15362_v54, %v20258_v41  ;;  %v12801_v50 = vrot.slane %v12779_v52, %v20258_v41  ;;  %v6685_v36 = vcombine.low %v6677_v46, %v6684_v62  ;;  %v21724_v16 = vrot.slane %v14283_v7, %v20258_v41  ;;  %v24680_v7 = vld [vmem:[#allocation135_spill] sm:$0xff]  ;;  %v24681_v46 = vld [vmem:[#allocation137_spill] sm:$0xff]  ;;  %v24683_v15 = vld [vmem:[#allocation26_spill] sm:$0xff] }
 0x4e8   :  { %v12808_v13 = vrot.slane %v12780_v59, %v20258_v41  ;;  %v5525_v53 = vcombine.high %v5517_v38, %v5517_v38  ;;  %v5526_v57 = vcombine.high %v5524_v21, %v5524_v21  ;;  %v21728_v11 = vrot.slane %v15424_v44, %v20258_v41 }
 0x4e9   :  { %24676 = vst [vmem:[#allocation149_spill] sm:$0xff] %v21724_v16  ;;  %v21731_v22 = vrot.slane %v14285_v6, %v20258_v41  ;;  %v12787_v54 = vrot.slane %v12771_v34, %v20258_v41  ;;  %7700 = vperm.xlu0 %16997, %v6685_v36   ;;  %v5559_v0 = vcombine.high %v4487_v10, %v4487_v10  ;;  %v24682_v6 = vld [vmem:[#allocation53_spill] sm:$0xff] }
 0x4ea   :  { %v21735_v52 = vrot.slane %v15425_v18, %v20258_v41  ;;  %v12794_v4 = vrot.slane %v12778_v33, %v20258_v41  ;;  %v5566_v20 = vrot.slane %v4487_v10, %v20258_v41  ;;  %v10092_v59 = vcombine.low %v24680_v7, %v24679_v48 }
 0x4eb   :  { %24677 = vst [vmem:[#allocation151_spill] sm:$0xff] %v21731_v22  ;;  %v14332_v62 = vcombine.low %v12787_v54, %v12801_v50  ;;  %v5533_v44 = vrot.slane %v5517_v38, %v20258_v41  ;;  %v10093_v30 = vcombine.low %v24682_v6, %v24681_v46  ;;  %v8154_v34 = vadd.f32 %v24683_v15, %v8077_v29 }
 0x4ec   :  { %24678 = vst [vmem:[#allocation150_spill] sm:$0xff] %v21735_v52  ;;  %v15426_v36 = vcombine.high %v12787_v54, %v12801_v50  ;;  %v14334_v22 = vcombine.low %v12794_v4, %v12808_v13  ;;  %v5547_v18 = vrot.slane %v5525_v53, %v20258_v41  ;;  %v5554_v52 = vrot.slane %v5526_v57, %v20258_v41  ;;  %v8079_v54 = vpop.xlane.xlu1 %8078 }
 0x4ed   :  { %v5573_v33 = vrot.slane %v5559_v0, %v20258_v41  ;;  %v10100_v10 = vrot.slane %v10092_v59, %v20258_v41  ;;  %v10107_v48 = vrot.slane %v10093_v30, %v20258_v41  ;;  %v9178_v7 = vcombine.high %v8154_v34, %v8154_v34  ;;  %v24687_v30 = vld [vmem:[#allocation44_spill] sm:$0xff] }
 0x4ee   :  { %v5540_v38 = vrot.slane %v5524_v21, %v20258_v41  ;;  %v5574_v16 = vcombine.high %v5566_v20, %v5566_v20  ;;  %v10337_v46 = vcombine.low %v21083_v8, %v21090_v39  ;;  %v10338_v15 = vcombine.low %v21093_v2, %v21096_v19 }
 0x4ef   :  { %v15427_v50 = vcombine.high %v12794_v4, %v12808_v13  ;;  %v21756_v53 = vrot.slane %v14332_v62, %v20258_v41  ;;  %v10108_v57 = vcombine.low %v10100_v10, %v10107_v48  ;;  %v9185_v29 = vrot.slane %v8154_v34, %v20258_v41  ;;  %v24690_v10 = vld [vmem:[#allocation141_spill] sm:$0xff] }
 0x4f0   :  { %v21760_v0 = vrot.slane %v15426_v36, %v20258_v41  ;;  %v7078_v59 = vcombine.low %v5533_v44, %v5547_v18  ;;  %v15298_v21 = vcombine.high %v5533_v44, %v5547_v18  ;;  %v9192_v6 = vrot.slane %v9178_v7, %v20258_v41 }
 0x4f1   :  { %24684 = vst [vmem:[#allocation15_spill] sm:$0xff] %v21756_v53  ;;  %v21764_v8 = vrot.slane %v14334_v22, %v20258_v41  ;;  %v7080_v39 = vcombine.low %v5540_v38, %v5554_v52  ;;  %v15299_v2 = vcombine.high %v5540_v38, %v5554_v52  ;;  %v5575_v19 = vcombine.high %v5573_v33, %v5573_v33  ;;  %v24689_v22 = vld [vmem:[#allocation142_spill] sm:$0xff] }
 0x4f2   :  { %24685 = vst [vmem:[#allocation124_spill] sm:$0xff] %v21760_v0  ;;  %11353 = vperm.xlu1 %16996, %v10108_v57   ;;  %v5596_v13 = vrot.slane %v5574_v16, %v20258_v41  ;;  %v10345_v4 = vrot.slane %v10337_v46, %v20258_v41  ;;  %v10352_v62 = vrot.slane %v10338_v15, %v20258_v41  ;;  %v24691_v57 = vld [vmem:[#allocation61_spill] sm:$0xff]  ;;  %v24692_v16 = vld [vmem:[#allocation143_spill] sm:$0xff]  ;;  %v11712_v46 = vpop.xlane.xlu0 %11711 }
 0x4f3   :  { %24686 = vst [vmem:[#allocation123_spill] sm:$0xff] %v21764_v8  ;;  %v8155_v34 = vadd.f32 %v24687_v30, %v8079_v54  ;;  %v21771_v36 = vrot.slane %v15427_v50, %v20258_v41  ;;  %v5582_v44 = vrot.slane %v5566_v20, %v20258_v41  ;;  %v9193_v18 = vcombine.high %v9185_v29, %v9185_v29 }
 0x4f4   :  { %v13727_v48 = vcombine.low %v24690_v10, %v24689_v22  ;;  %v9194_v52 = vcombine.high %v9192_v6, %v9192_v6  ;;  %v10353_v7 = vcombine.low %v10345_v4, %v10352_v62  ;;  %v13728_v8 = vcombine.low %v24692_v16, %v24691_v57  ;;  %v24697_v57 = vld [vmem:[#allocation50_spill] sm:$0xff] }
 0x4f5   :  { %24688 = vst [vmem:[#allocation126_spill] sm:$0xff] %v21771_v36  ;;  %v9227_v38 = vcombine.high %v8155_v34, %v8155_v34  ;;  %v21779_v15 = vrot.slane %v7078_v59, %v20258_v41  ;;  %v21782_v54 = vrot.slane %v15298_v21, %v20258_v41  ;;  %v21785_v50 = vrot.slane %v7080_v39, %v20258_v41 }
 0x4f6   :  { %v21788_v20 = vrot.slane %v15299_v2, %v20258_v41  ;;  %v5589_v30 = vrot.slane %v5573_v33, %v20258_v41  ;;  %v5603_v4 = vrot.slane %v5575_v19, %v20258_v41  ;;  %v7127_v62 = vcombine.low %v5582_v44, %v5596_v13  ;;  %11368 = vperm.xlu0 %16997, %v10353_v7  }
 0x4f7   :  { %24693 = vst [vmem:[#allocation125_spill] sm:$0xff] %v21779_v15  ;;  %24694 = vst [vmem:[#allocation52_spill] sm:$0xff] %v21782_v54  ;;  %v9234_v22 = vrot.slane %v8155_v34, %v20258_v41  ;;  %v15300_v10 = vcombine.high %v5582_v44, %v5596_v13  ;;  %v13735_v59 = vrot.slane %v13727_v48, %v20258_v41 }
 0x4f8   :  { %24695 = vst [vmem:[#allocation49_spill] sm:$0xff] %v21785_v50  ;;  %24696 = vst [vmem:[#allocation30_spill] sm:$0xff] %v21788_v20  ;;  %v13742_v21 = vrot.slane %v13728_v8, %v20258_v41  ;;  %v11789_v16 = vadd.f32 %v24697_v57, %v11712_v46  ;;  %v9215_v39 = vrot.slane %v9193_v18, %v20258_v41  ;;  %v4413_v57 = vpop.xlane.xlu0 %4412 }
 0x4f9   :  { %v9222_v2 = vrot.slane %v9194_v52, %v20258_v41  ;;  %v9241_v50 = vrot.slane %v9227_v38, %v20258_v41  ;;  %v6767_v33 = vcombine.low %v21193_v31, %v21196_v3  ;;  %v6768_v13 = vcombine.low %v21203_v9, %v21215_v37  ;;  %v11714_v3 = vpop.xlane.xlu1 %11713 }
 0x4fa   :  { %v13743_v19 = vcombine.low %v13735_v59, %v13742_v21  ;;  %v12813_v7 = vcombine.high %v11789_v16, %v11789_v16  ;;  %v12820_v34 = vrot.slane %v11789_v16, %v20258_v41  ;;  %v7129_v44 = vcombine.low %v5589_v30, %v5603_v4 }
 0x4fb   :  { %v15301_v8 = vcombine.high %v5589_v30, %v5603_v4  ;;  %v9201_v48 = vrot.slane %v9185_v29, %v20258_v41  ;;  %v9242_v46 = vcombine.high %v9234_v22, %v9234_v22  ;;  %v9208_v18 = vrot.slane %v9192_v6, %v20258_v41 }
 0x4fc   :  { %14988 = vperm.xlu1 %16996, %v13743_v19   ;;  %v12827_v52 = vrot.slane %v12813_v7, %v20258_v41  ;;  %v6775_v38 = vrot.slane %v6767_v33, %v20258_v41  ;;  %v6782_v31 = vrot.slane %v6768_v13, %v20258_v41  ;;  %v21810_v59 = vrot.slane %v7127_v62, %v20258_v41  ;;  %v24698_v19 = vld [vmem:[#allocation32_spill] sm:$0xff]  ;;  %v24699_v13 = vld [vmem:[#allocation147_spill] sm:$0xff]  ;;  %v24700_v62 = vld [vmem:[#allocation146_spill] sm:$0xff] }
 0x4fd   :  { %v21813_v9 = vrot.slane %v15300_v10, %v20258_v41  ;;  %v10746_v37 = vcombine.low %v9201_v48, %v9215_v39  ;;  %v9243_v30 = vcombine.high %v9241_v50, %v9241_v50  ;;  %v15363_v29 = vcombine.high %v9201_v48, %v9215_v39  ;;  %v24701_v39 = vld [vmem:[#allocation148_spill] sm:$0xff] }
 0x4fe   :  { %v10748_v4 = vcombine.low %v9208_v18, %v9222_v2  ;;  %v12828_v21 = vcombine.high %v12820_v34, %v12820_v34  ;;  %v6783_v6 = vcombine.low %v6775_v38, %v6782_v31  ;;  %v21816_v16 = vrot.slane %v7129_v44, %v20258_v41  ;;  %v24702_v48 = vld [vmem:[#allocation64_spill] sm:$0xff] }
 0x4ff   :  { %v9264_v33 = vrot.slane %v9242_v46, %v20258_v41  ;;  %v11790_v7 = vadd.f32 %v24698_v19, %v11714_v3  ;;  %v6522_v20 = vcombine.low %v24700_v62, %v24699_v13  ;;  %v21823_v10 = vrot.slane %v15301_v8, %v20258_v41  ;;  %v24704_v3 = vld [vmem:[#allocation25_spill] sm:$0xff] }
 0x500   :  { %v15364_v15 = vcombine.high %v9208_v18, %v9222_v2  ;;  %v12829_v54 = vcombine.high %v12827_v52, %v12827_v52  ;;  %7706 = vperm.xlu0 %16997, %v6783_v6   ;;  %v6523_v38 = vcombine.low %v24702_v48, %v24701_v39  ;;  %v21828_v31 = vrot.slane %v10746_v37, %v20258_v41 }
 0x501   :  { %v9250_v44 = vrot.slane %v9234_v22, %v20258_v41  ;;  %v9271_v46 = vrot.slane %v9243_v30, %v20258_v41  ;;  %v4488_v19 = vadd.f32 %v24704_v3, %v4413_v57  ;;  %v21834_v13 = vrot.slane %v15363_v29, %v20258_v41 }
 0x502   :  { %24703 = vst [vmem:[#allocation157_spill] sm:$0xff] %v21828_v31  ;;  %v21837_v8 = vrot.slane %v10748_v4, %v20258_v41  ;;  %v12850_v2 = vrot.slane %v12828_v21, %v20258_v41  ;;  %v12862_v18 = vcombine.high %v11790_v7, %v11790_v7  ;;  %v9257_v6 = vrot.slane %v9241_v50, %v20258_v41 }
 0x503   :  { %24705 = vst [vmem:[#allocation156_spill] sm:$0xff] %v21834_v13  ;;  %v10795_v62 = vcombine.low %v9250_v44, %v9264_v33  ;;  %v6530_v37 = vrot.slane %v6522_v20, %v20258_v41  ;;  %v6537_v22 = vrot.slane %v6523_v38, %v20258_v41  ;;  %v15365_v39 = vcombine.high %v9250_v44, %v9264_v33 }
 0x504   :  { %24706 = vst [vmem:[#allocation16_spill] sm:$0xff] %v21837_v8  ;;  %v12836_v30 = vrot.slane %v12820_v34, %v20258_v41  ;;  %v21845_v57 = vrot.slane %v12829_v54, %v20258_v41  ;;  %v5608_v29 = vcombine.high %v4488_v19, %v4488_v19  ;;  %v10797_v48 = vcombine.low %v9257_v6, %v9271_v46 }
 0x505   :  { %v15366_v4 = vcombine.high %v9257_v6, %v9271_v46  ;;  %v12869_v3 = vrot.slane %v11790_v7, %v20258_v41  ;;  %v6538_v21 = vcombine.low %v6530_v37, %v6537_v22  ;;  %v21849_v31 = vrot.slane %v12827_v52, %v20258_v41 }
 0x506   :  { %v14381_v50 = vcombine.low %v12836_v30, %v12850_v2  ;;  %v12876_v20 = vrot.slane %v12862_v18, %v20258_v41  ;;  %v5615_v38 = vrot.slane %v4488_v19, %v20258_v41  ;;  %v21854_v33 = vrot.slane %v15364_v15, %v20258_v41  ;;  %v4415_v19 = vpop.xlane.xlu1 %4414 }
 0x507   :  { %v15428_v34 = vcombine.high %v12836_v30, %v12850_v2  ;;  %7691 = vperm.xlu1 %16996, %v6538_v21   ;;  %v10435_v54 = vcombine.low %v21244_v56, %v21249_v17  ;;  %v10436_v7 = vcombine.low %v21252_v49, %v21257_v28  ;;  %v21861_v44 = vrot.slane %v10795_v62, %v20258_v41  ;;  %v8081_v21 = vpop.xlane.xlu0 %8080 }
 0x508   :  { %24707 = vst [vmem:[#allocation47_spill] sm:$0xff] %v21854_v33  ;;  %v21864_v52 = vrot.slane %v15365_v39, %v20258_v41  ;;  %v14383_v46 = vcombine.low %v21849_v31, %v21845_v57  ;;  %v5622_v15 = vrot.slane %v5608_v29, %v20258_v41  ;;  %v21870_v2 = vrot.slane %v10797_v48, %v20258_v41  ;;  %v24708_v39 = vld [vmem:[#allocation46_spill] sm:$0xff]  ;;  %v24709_v29 = vld [vmem:[#allocation153_spill] sm:$0xff]  ;;  %v24710_v48 = vld [vmem:[#allocation152_spill] sm:$0xff] }
 0x509   :  { %v21873_v56 = vrot.slane %v15366_v4, %v20258_v41  ;;  %v15429_v17 = vcombine.high %v21849_v31, %v21845_v57  ;;  %v12877_v49 = vcombine.high %v12869_v3, %v12869_v3  ;;  %v21878_v28 = vrot.slane %v14381_v50, %v20258_v41  ;;  %v24711_v33 = vld [vmem:[#allocation155_spill] sm:$0xff] }
 0x50a   :  { %v12878_v18 = vcombine.high %v12876_v20, %v12876_v20  ;;  %v5623_v6 = vcombine.high %v5615_v38, %v5615_v38  ;;  %v10450_v62 = vrot.slane %v10436_v7, %v20258_v41  ;;  %v21882_v37 = vrot.slane %v15428_v34, %v20258_v41 }
 0x50b   :  { %v10443_v22 = vrot.slane %v10435_v54, %v20258_v41  ;;  %v4489_v30 = vadd.f32 %v24708_v39, %v4415_v19  ;;  %v10190_v4 = vcombine.low %v24710_v48, %v24709_v29  ;;  %v21889_v31 = vrot.slane %v14383_v46, %v20258_v41  ;;  %v24712_v54 = vld [vmem:[#allocation154_spill] sm:$0xff]  ;;  %v24713_v46 = vld [vmem:[#allocation59_spill] sm:$0xff] }
 0x50c   :  { %v12885_v57 = vrot.slane %v12869_v3, %v20258_v41  ;;  %v12892_v50 = vrot.slane %v12876_v20, %v20258_v41  ;;  %v5624_v13 = vcombine.high %v5622_v15, %v5622_v15  ;;  %v12899_v7 = vrot.slane %v12877_v49, %v20258_v41 }
 0x50d   :  { %v10451_v34 = vcombine.low %v10443_v22, %v10450_v62  ;;  %v5657_v8 = vcombine.high %v4489_v30, %v4489_v30  ;;  %v10191_v36 = vcombine.low %v24712_v54, %v24711_v33  ;;  %v12906_v19 = vrot.slane %v12878_v18, %v20258_v41  ;;  %v8083_v54 = vpop.xlane.xlu1 %8082 }
 0x50e   :  { %v5645_v39 = vrot.slane %v5623_v6, %v20258_v41  ;;  %v5664_v29 = vrot.slane %v4489_v30, %v20258_v41  ;;  %v8156_v48 = vadd.f32 %v24713_v46, %v8081_v21  ;;  %v5631_v3 = vrot.slane %v5615_v38, %v20258_v41 }
 0x50f   :  { %11374 = vperm.xlu0 %16997, %v10451_v34   ;;  %v5671_v20 = vrot.slane %v5657_v8, %v20258_v41  ;;  %v10198_v49 = vrot.slane %v10190_v4, %v20258_v41  ;;  %v10205_v62 = vrot.slane %v10191_v36, %v20258_v41  ;;  %v5652_v22 = vrot.slane %v5624_v13, %v20258_v41 }
 0x510   :  { %v9276_v33 = vcombine.high %v8156_v48, %v8156_v48  ;;  %v6865_v18 = vcombine.low %v21345_v61, %v21348_v32  ;;  %v6866_v6 = vcombine.low %v21371_v42, %v21375_v25  ;;  %v14430_v30 = vcombine.low %v12885_v57, %v12899_v7 }
 0x511   :  { %v15430_v21 = vcombine.high %v12885_v57, %v12899_v7  ;;  %v5638_v38 = vrot.slane %v5622_v15, %v20258_v41  ;;  %v10206_v34 = vcombine.low %v10198_v49, %v10205_v62  ;;  %v14432_v8 = vcombine.low %v12892_v50, %v12906_v19  ;;  %v24714_v57 = vld [vmem:[#allocation51_spill] sm:$0xff] }
 0x512   :  { %v15431_v46 = vcombine.high %v12892_v50, %v12906_v19  ;;  %v7176_v4 = vcombine.low %v5631_v3, %v5645_v39  ;;  %v5672_v53 = vcombine.high %v5664_v29, %v5664_v29  ;;  %v5673_v36 = vcombine.high %v5671_v20, %v5671_v20 }
 0x513   :  { %11359 = vperm.xlu1 %16996, %v10206_v34   ;;  %v9283_v13 = vrot.slane %v8156_v48, %v20258_v41  ;;  %v9290_v0 = vrot.slane %v9276_v33, %v20258_v41  ;;  %v6880_v61 = vrot.slane %v6866_v6, %v20258_v41  ;;  %v15302_v32 = vcombine.high %v5631_v3, %v5645_v39 }
 0x514   :  { %v7178_v42 = vcombine.low %v5638_v38, %v5652_v22  ;;  %v6873_v25 = vrot.slane %v6865_v18, %v20258_v41  ;;  %v8157_v15 = vadd.f32 %v24714_v57, %v8083_v54  ;;  %v21916_v7 = vrot.slane %v15429_v17, %v20258_v41  ;;  %v24725_v57 = vld [vmem:[#allocation160_spill] sm:$0xff] }
 0x515   :  { %v21919_v50 = vrot.slane %v14430_v30, %v20258_v41  ;;  %v21922_v19 = vrot.slane %v15430_v21, %v20258_v41  ;;  %v15303_v48 = vcombine.high %v5638_v38, %v5652_v22  ;;  %v21925_v49 = vrot.slane %v14432_v8, %v20258_v41  ;;  %v11716_v30 = vpop.xlane.xlu0 %11715  ;;  %v11718_v21 = vpop.xlane.xlu1 %11717 }
 0x516   :  { %v21928_v39 = vrot.slane %v15431_v46, %v20258_v41  ;;  %v5694_v3 = vrot.slane %v5672_v53, %v20258_v41  ;;  %v6881_v62 = vcombine.low %v6873_v25, %v6880_v61  ;;  %v21932_v33 = vrot.slane %v7176_v4, %v20258_v41  ;;  %v24723_v4 = vld [vmem:[#allocation55_spill] sm:$0xff] }
 0x517   :  { %24715 = vst [vmem:[#allocation36_spill] sm:$0xff] %v21919_v50  ;;  %24716 = vst [vmem:[#allocation134_spill] sm:$0xff] %v21922_v19  ;;  %v5701_v17 = vrot.slane %v5673_v36, %v20258_v41  ;;  %v9291_v18 = vcombine.high %v9283_v13, %v9283_v13  ;;  %v9292_v6 = vcombine.high %v9290_v0, %v9290_v0  ;;  %v24724_v36 = vld [vmem:[#allocation158_spill] sm:$0xff]  ;;  %v24760_v50 = vld [vmem:[#allocation140_spill] sm:$0xff] }
 0x518   :  { %24717 = vst [vmem:[#allocation133_spill] sm:$0xff] %v21925_v49  ;;  %24718 = vst [vmem:[#allocation19_spill] sm:$0xff] %v21928_v39  ;;  %v21936_v22 = vrot.slane %v15302_v32, %v20258_v41  ;;  %v21939_v38 = vrot.slane %v7178_v42, %v20258_v41  ;;  %v5680_v34 = vrot.slane %v5664_v29, %v20258_v41  ;;  %7712 = vperm.xlu0 %16997, %v6881_v62   ;;  %v24726_v42 = vld [vmem:[#allocation159_spill] sm:$0xff] }
 0x519   :  { %24719 = vst [vmem:[#allocation161_spill] sm:$0xff] %v21932_v33  ;;  %v9325_v53 = vcombine.high %v8157_v15, %v8157_v15  ;;  %v21943_v54 = vrot.slane %v15303_v48, %v20258_v41  ;;  %v5687_v8 = vrot.slane %v5671_v20, %v20258_v41  ;;  %v9332_v46 = vrot.slane %v8157_v15, %v20258_v41  ;;  %v24727_v33 = vld [vmem:[#allocation69_spill] sm:$0xff] }
 0x51a   :  { %24720 = vst [vmem:[#allocation162_spill] sm:$0xff] %v21936_v22  ;;  %24721 = vst [vmem:[#allocation18_spill] sm:$0xff] %v21939_v38  ;;  %v13825_v61 = vcombine.low %v24724_v36, %v24723_v4  ;;  %v7225_v25 = vcombine.low %v5680_v34, %v5694_v3  ;;  %v9299_v32 = vrot.slane %v9283_v13, %v20258_v41 }
 0x51b   :  { %24722 = vst [vmem:[#allocation130_spill] sm:$0xff] %v21943_v54  ;;  %v13826_v38 = vcombine.low %v24726_v42, %v24725_v57  ;;  %v11791_v29 = vadd.f32 %v24727_v33, %v11716_v30  ;;  %v15304_v62 = vcombine.high %v5680_v34, %v5694_v3  ;;  %v7227_v22 = vcombine.low %v5687_v8, %v5701_v17  ;;  %v21963_v33 = vpop.xlane.xlu1 %4418  ;;  %v24728_v42 = vld [vmem:[#allocation33_spill] sm:$0xff] }
 0x51c   :  { %v9313_v48 = vrot.slane %v9291_v18, %v20258_v41  ;;  %v9320_v54 = vrot.slane %v9292_v6, %v20258_v41  ;;  %v9339_v20 = vrot.slane %v9325_v53, %v20258_v41  ;;  %v13833_v15 = vrot.slane %v13825_v61, %v20258_v41 }
 0x51d   :  { %v13840_v4 = vrot.slane %v13826_v38, %v20258_v41  ;;  %v12911_v36 = vcombine.high %v11791_v29, %v11791_v29  ;;  %v9306_v13 = vrot.slane %v9290_v0, %v20258_v41  ;;  %v9340_v49 = vcombine.high %v9332_v46, %v9332_v46 }
 0x51e   :  { %v10533_v57 = vcombine.low %v21391_v12, %v21400_v45  ;;  %v10534_v3 = vcombine.low %v21403_v1, %v21406_v14  ;;  %v15305_v18 = vcombine.high %v5687_v8, %v5701_v17  ;;  %v21966_v6 = vrot.slane %v7225_v25, %v20258_v41 }
 0x51f   :  { %v13841_v30 = vcombine.low %v13833_v15, %v13840_v4  ;;  %v12918_v34 = vrot.slane %v11791_v29, %v20258_v41  ;;  %v21970_v38 = vrot.slane %v15304_v62, %v20258_v41  ;;  %v10844_v0 = vcombine.low %v9299_v32, %v9313_v48 }
 0x520   :  { %v15367_v53 = vcombine.high %v9299_v32, %v9313_v48  ;;  %v12925_v61 = vrot.slane %v12911_v36, %v20258_v41  ;;  %v21974_v12 = vrot.slane %v7227_v22, %v20258_v41  ;;  %v10846_v45 = vcombine.low %v9306_v13, %v9320_v54  ;;  %v4417_v36 = vpop.xlane.xlu0 %4416 }
 0x521   :  { %v15368_v1 = vcombine.high %v9306_v13, %v9320_v54  ;;  %v9341_v14 = vcombine.high %v9339_v20, %v9339_v20  ;;  %14994 = vperm.xlu1 %16996, %v13841_v30   ;;  %v9362_v17 = vrot.slane %v9340_v49, %v20258_v41  ;;  %v10541_v8 = vrot.slane %v10533_v57, %v20258_v41  ;;  %v21988_v13 = vpop.xlane.xlu1 %8086 }
 0x522   :  { %v10548_v25 = vrot.slane %v10534_v3, %v20258_v41  ;;  %v11792_v29 = vadd.f32 %v24728_v42, %v11718_v21  ;;  %v21981_v62 = vrot.slane %v15305_v18, %v20258_v41  ;;  %v9348_v32 = vrot.slane %v9332_v46, %v20258_v41 }
 0x523   :  { %v12926_v48 = vcombine.high %v12918_v34, %v12918_v34  ;;  %v13972_v22 = vcombine.low %v21147_v58, %v21150_v60  ;;  %v12927_v54 = vcombine.high %v12925_v61, %v12925_v61  ;;  %v13973_v49 = vcombine.low %v21153_v24, %v21156_v5 }
 0x524   :  { %v10549_v15 = vcombine.low %v10541_v8, %v10548_v25  ;;  %v12960_v4 = vcombine.high %v11792_v29, %v11792_v29  ;;  %v21991_v21 = vrot.slane %v10844_v0, %v20258_v41  ;;  %v21994_v57 = vrot.slane %v15367_v53, %v20258_v41  ;;  %v24733_v53 = vld [vmem:[#allocation67_spill] sm:$0xff] }
 0x525   :  { %v21997_v46 = vrot.slane %v10846_v45, %v20258_v41  ;;  %v22000_v58 = vrot.slane %v15368_v1, %v20258_v41  ;;  %v9355_v60 = vrot.slane %v9339_v20, %v20258_v41  ;;  %v9369_v3 = vrot.slane %v9341_v14, %v20258_v41 }
 0x526   :  { %24729 = vst [vmem:[#allocation129_spill] sm:$0xff] %v21991_v21  ;;  %24730 = vst [vmem:[#allocation132_spill] sm:$0xff] %v21994_v57  ;;  %v10893_v24 = vcombine.low %v9348_v32, %v9362_v17  ;;  %11380 = vperm.xlu0 %16997, %v10549_v15   ;;  %v12967_v5 = vrot.slane %v11792_v29, %v20258_v41  ;;  %v15369_v18 = vcombine.high %v9348_v32, %v9362_v17 }
 0x527   :  { %24731 = vst [vmem:[#allocation131_spill] sm:$0xff] %v21997_v46  ;;  %24732 = vst [vmem:[#allocation20_spill] sm:$0xff] %v22000_v58  ;;  %v13980_v30 = vrot.slane %v13972_v22, %v20258_v41  ;;  %v13987_v0 = vrot.slane %v13973_v49, %v20258_v41  ;;  %v4490_v8 = vadd.f32 %v24733_v53, %v4417_v36 }
 0x528   :  { %v12948_v45 = vrot.slane %v12926_v48, %v20258_v41  ;;  %v12955_v1 = vrot.slane %v12927_v54, %v20258_v41  ;;  %v12974_v25 = vrot.slane %v12960_v4, %v20258_v41  ;;  %v6963_v20 = vcombine.low %v21488_v47, %v21493_v51  ;;  %v22017_v48 = vpop.xlane.xlu1 %11721 }
 0x529   :  { %v13988_v14 = vcombine.low %v13980_v30, %v13987_v0  ;;  %v5706_v42 = vcombine.high %v4490_v8, %v4490_v8  ;;  %v5713_v29 = vrot.slane %v4490_v8, %v20258_v41  ;;  %v6964_v17 = vcombine.low %v21503_v26, %v21508_v27 }
 0x52a   :  { %v10895_v32 = vcombine.low %v9355_v60, %v9369_v3  ;;  %v15370_v22 = vcombine.high %v9355_v60, %v9369_v3  ;;  %v12934_v15 = vrot.slane %v12918_v34, %v20258_v41  ;;  %v12975_v49 = vcombine.high %v12967_v5, %v12967_v5 }
 0x52b   :  { %v12941_v54 = vrot.slane %v12925_v61, %v20258_v41  ;;  %15003 = vperm.xlu1 %16996, %v13988_v14   ;;  %v5720_v4 = vrot.slane %v5706_v42, %v20258_v41  ;;  %v6971_v51 = vrot.slane %v6963_v20, %v20258_v41  ;;  %v6978_v47 = vrot.slane %v6964_v17, %v20258_v41  ;;  %v8085_v61 = vpop.xlane.xlu0 %8084  ;;  %v24734_v20 = vld [vmem:[#allocation70_spill] sm:$0xff]  ;;  %v24736_v42 = vld [vmem:[#allocation56_spill] sm:$0xff] }
 0x52c   :  { %v22024_v36 = vrot.slane %v10893_v24, %v20258_v41  ;;  %v22027_v27 = vrot.slane %v15369_v18, %v20258_v41  ;;  %v14479_v26 = vcombine.low %v12934_v15, %v12948_v45  ;;  %v12976_v34 = vcombine.high %v12974_v25, %v12974_v25  ;;  %v24735_v24 = vld [vmem:[#allocation163_spill] sm:$0xff]  ;;  %v22048_v46 = vpop.xlane.xlu1 %4422 }
 0x52d   :  { %v15432_v60 = vcombine.high %v12934_v15, %v12948_v45  ;;  %v14481_v3 = vcombine.low %v12941_v54, %v12955_v1  ;;  %v5721_v30 = vcombine.high %v5713_v29, %v5713_v29  ;;  %v6979_v0 = vcombine.low %v6971_v51, %v6978_v47  ;;  %v24737_v15 = vld [vmem:[#allocation165_spill] sm:$0xff]  ;;  %v24738_v51 = vld [vmem:[#allocation164_spill] sm:$0xff] }
 0x52e   :  { %v22030_v53 = vrot.slane %v10895_v32, %v20258_v41  ;;  %v12997_v8 = vrot.slane %v12975_v49, %v20258_v41  ;;  %v4491_v14 = vadd.f32 %v24734_v20, %v21963_v33  ;;  %v6620_v17 = vcombine.low %v24736_v42, %v24735_v24  ;;  %v24739_v33 = vld [vmem:[#allocation41_spill] sm:$0xff] }
 0x52f   :  { %v22038_v18 = vrot.slane %v15370_v22, %v20258_v41  ;;  %v15433_v21 = vcombine.high %v12941_v54, %v12955_v1  ;;  %v5722_v45 = vcombine.high %v5720_v4, %v5720_v4  ;;  %7718 = vperm.xlu0 %16997, %v6979_v0   ;;  %v6621_v47 = vcombine.low %v24738_v51, %v24737_v15 }
 0x530   :  { %v22043_v32 = vrot.slane %v14479_v26, %v20258_v41  ;;  %v12983_v49 = vrot.slane %v12967_v5, %v20258_v41  ;;  %v13004_v57 = vrot.slane %v12976_v34, %v20258_v41  ;;  %v8158_v20 = vadd.f32 %v24739_v33, %v8085_v61 }
 0x531   :  { %v22051_v22 = vrot.slane %v15432_v60, %v20258_v41  ;;  %v22054_v1 = vrot.slane %v14481_v3, %v20258_v41  ;;  %v5743_v54 = vrot.slane %v5721_v30, %v20258_v41  ;;  %v5755_v0 = vcombine.high %v4491_v14, %v4491_v14 }
 0x532   :  { %v12990_v26 = vrot.slane %v12974_v25, %v20258_v41  ;;  %v14528_v24 = vcombine.low %v12983_v49, %v12997_v8  ;;  %v6628_v5 = vrot.slane %v6620_v17, %v20258_v41  ;;  %v6635_v34 = vrot.slane %v6621_v47, %v20258_v41 }
 0x533   :  { %24740 = vst [vmem:[#allocation167_spill] sm:$0xff] %v22054_v1  ;;  %v15434_v42 = vcombine.high %v12983_v49, %v12997_v8  ;;  %v5729_v61 = vrot.slane %v5713_v29, %v20258_v41  ;;  %v22062_v15 = vrot.slane %v5722_v45, %v20258_v41  ;;  %v9374_v60 = vcombine.high %v8158_v20, %v8158_v20  ;;  %v24743_v49 = vld [vmem:[#allocation115_spill] sm:$0xff] }
 0x534   :  { %v14530_v51 = vcombine.low %v12990_v26, %v13004_v57  ;;  %v15435_v3 = vcombine.high %v12990_v26, %v13004_v57  ;;  %v5762_v33 = vrot.slane %v4491_v14, %v20258_v41  ;;  %v6636_v30 = vcombine.low %v6628_v5, %v6635_v34  ;;  %v24742_v57 = vld [vmem:[#allocation35_spill] sm:$0xff]  ;;  %v22077_v26 = vpop.xlane.xlu1 %8090 }
 0x535   :  { %v22066_v58 = vrot.slane %v5720_v4, %v20258_v41  ;;  %v7274_v25 = vcombine.low %v5729_v61, %v5743_v54  ;;  %v5769_v17 = vrot.slane %v5755_v0, %v20258_v41  ;;  %v9381_v47 = vrot.slane %v8158_v20, %v20258_v41 }
 0x536   :  { %v22071_v8 = vrot.slane %v15433_v21, %v20258_v41  ;;  %v15306_v29 = vcombine.high %v5729_v61, %v5743_v54  ;;  %7697 = vperm.xlu1 %16996, %v6636_v30   ;;  %v10631_v45 = vcombine.low %v21545_v35, %v21552_v55  ;;  %v10632_v14 = vcombine.low %v24743_v49, %v24742_v57  ;;  %v24751_v57 = vld [vmem:[#allocation27_spill] sm:$0xff] }
 0x537   :  { %v22080_v4 = vrot.slane %v14528_v24, %v20258_v41  ;;  %v22083_v0 = vrot.slane %v15434_v42, %v20258_v41  ;;  %v7276_v21 = vcombine.low %v22066_v58, %v22062_v15  ;;  %v9388_v20 = vrot.slane %v9374_v60, %v20258_v41  ;;  %v24752_v49 = vld [vmem:[#allocation23_spill] sm:$0xff] }
 0x538   :  { %24741 = vst [vmem:[#allocation166_spill] sm:$0xff] %v22071_v8  ;;  %v22089_v54 = vrot.slane %v14530_v51, %v20258_v41  ;;  %v22092_v35 = vrot.slane %v15435_v3, %v20258_v41  ;;  %v15307_v55 = vcombine.high %v22066_v58, %v22062_v15  ;;  %v5770_v5 = vcombine.high %v5762_v33, %v5762_v33  ;;  %v24750_v51 = vld [vmem:[#allocation75_spill] sm:$0xff]  ;;  %v11720_v58 = vpop.xlane.xlu0 %11719 }
 0x539   :  { %24744 = vst [vmem:[#allocation29_spill] sm:$0xff] %v22080_v4  ;;  %24745 = vst [vmem:[#allocation168_spill] sm:$0xff] %v22083_v0  ;;  %v22097_v24 = vrot.slane %v7274_v25, %v20258_v41  ;;  %v5771_v34 = vcombine.high %v5769_v17, %v5769_v17  ;;  %v9389_v42 = vcombine.high %v9381_v47, %v9381_v47  ;;  %v24755_v4 = vld [vmem:[#allocation54_spill] sm:$0xff] }
 0x53a   :  { %24746 = vst [vmem:[#allocation63_spill] sm:$0xff] %v22089_v54  ;;  %24747 = vst [vmem:[#allocation136_spill] sm:$0xff] %v22092_v35  ;;  %v10646_v61 = vrot.slane %v10632_v14, %v20258_v41  ;;  %v22101_v30 = vrot.slane %v15306_v29, %v20258_v41  ;;  %v10639_v60 = vrot.slane %v10631_v45, %v20258_v41  ;;  %v24754_v45 = vld [vmem:[#allocation65_spill] sm:$0xff] }
 0x53b   :  { %24748 = vst [vmem:[#allocation135_spill] sm:$0xff] %v22097_v24  ;;  %v8159_v3 = vadd.f32 %v24750_v51, %v21988_v13  ;;  %v10288_v54 = vcombine.low %v24752_v49, %v24751_v57  ;;  %v22109_v15 = vrot.slane %v7276_v21, %v20258_v41  ;;  %v5778_v25 = vrot.slane %v5762_v33, %v20258_v41  ;;  %v22116_v13 = vpop.xlane.xlu1 %11725  ;;  %v24756_v49 = vld [vmem:[#allocation79_spill] sm:$0xff] }
 0x53c   :  { %24749 = vst [vmem:[#allocation137_spill] sm:$0xff] %v22101_v30  ;;  %v5785_v24 = vrot.slane %v5769_v17, %v20258_v41  ;;  %v9390_v14 = vcombine.high %v9388_v20, %v9388_v20  ;;  %v5792_v29 = vrot.slane %v5770_v5, %v20258_v41  ;;  %v10647_v30 = vcombine.low %v10639_v60, %v10646_v61 }
 0x53d   :  { %24753 = vst [vmem:[#allocation53_spill] sm:$0xff] %v22109_v15  ;;  %v9423_v35 = vcombine.high %v8159_v3, %v8159_v3  ;;  %v10289_v0 = vcombine.low %v24755_v4, %v24754_v45  ;;  %v5799_v51 = vrot.slane %v5771_v34, %v20258_v41  ;;  %v9411_v57 = vrot.slane %v9389_v42, %v20258_v41  ;;  %v24757_v15 = vld [vmem:[#allocation60_spill] sm:$0xff]  ;;  %v24758_v34 = vld [vmem:[#allocation138_spill] sm:$0xff]  ;;  %v24759_v42 = vld [vmem:[#allocation139_spill] sm:$0xff] }
 0x53e   :  { %v9430_v21 = vrot.slane %v8159_v3, %v20258_v41  ;;  %v11793_v33 = vadd.f32 %v24756_v49, %v11720_v58  ;;  %v9397_v17 = vrot.slane %v9381_v47, %v20258_v41  ;;  %11386 = vperm.xlu0 %16997, %v10647_v30   ;;  %v10296_v61 = vrot.slane %v10288_v54, %v20258_v41 }
 0x53f   :  { %v9437_v5 = vrot.slane %v9423_v35, %v20258_v41  ;;  %v10303_v60 = vrot.slane %v10289_v0, %v20258_v41  ;;  %v9418_v4 = vrot.slane %v9390_v14, %v20258_v41  ;;  %v14217_v39 = vcombine.low %v24758_v34, %v24757_v15  ;;  %v22135_v34 = vpop.xlane.xlu1 %4426 }
 0x540   :  { %v13009_v45 = vcombine.high %v11793_v33, %v11793_v33  ;;  %v14218_v3 = vcombine.low %v24760_v50, %v24759_v42  ;;  %v7323_v19 = vcombine.low %v5778_v25, %v5792_v29  ;;  %v15308_v58 = vcombine.high %v5778_v25, %v5792_v29 }
 0x541   :  { %v9404_v47 = vrot.slane %v9388_v20, %v20258_v41  ;;  %v10304_v30 = vcombine.low %v10296_v61, %v10303_v60  ;;  %v7325_v49 = vcombine.low %v5785_v24, %v5799_v51  ;;  %v15309_v35 = vcombine.high %v5785_v24, %v5799_v51  ;;  %v24761_v20 = vld [vmem:[#allocation72_spill] sm:$0xff] }
 0x542   :  { %v10942_v1 = vcombine.low %v9397_v17, %v9411_v57  ;;  %v9438_v54 = vcombine.high %v9430_v21, %v9430_v21  ;;  %v9439_v8 = vcombine.high %v9437_v5, %v9437_v5  ;;  %v13016_v0 = vrot.slane %v11793_v33, %v20258_v41 }
 0x543   :  { %11365 = vperm.xlu1 %16996, %v10304_v30   ;;  %v13023_v14 = vrot.slane %v13009_v45, %v20258_v41  ;;  %v14232_v15 = vrot.slane %v14218_v3, %v20258_v41  ;;  %v15371_v50 = vcombine.high %v9397_v17, %v9411_v57  ;;  %v10944_v42 = vcombine.low %v9404_v47, %v9418_v4  ;;  %v4421_v3 = vpop.xlane.xlu0 %4420 }
 0x544   :  { %v14225_v25 = vrot.slane %v14217_v39, %v20258_v41  ;;  %v11794_v29 = vadd.f32 %v24761_v20, %v22017_v48  ;;  %v22141_v24 = vrot.slane %v15307_v55, %v20258_v41  ;;  %v22144_v51 = vrot.slane %v7323_v19, %v20258_v41  ;;  %v24773_v20 = vld [vmem:[#allocation58_spill] sm:$0xff] }
 0x545   :  { %v22147_v33 = vrot.slane %v15308_v58, %v20258_v41  ;;  %v15372_v61 = vcombine.high %v9404_v47, %v9418_v4  ;;  %v22150_v60 = vrot.slane %v7325_v49, %v20258_v41  ;;  %v22153_v57 = vrot.slane %v15309_v35, %v20258_v41  ;;  %v24771_v35 = vld [vmem:[#allocation170_spill] sm:$0xff] }
 0x546   :  { %24762 = vst [vmem:[#allocation26_spill] sm:$0xff] %v22141_v24  ;;  %24763 = vst [vmem:[#allocation44_spill] sm:$0xff] %v22144_v51  ;;  %v9460_v39 = vrot.slane %v9438_v54, %v20258_v41  ;;  %v14233_v17 = vcombine.low %v14225_v25, %v14232_v15  ;;  %v22157_v48 = vrot.slane %v10942_v1, %v20258_v41  ;;  %v24772_v54 = vld [vmem:[#allocation169_spill] sm:$0xff]  ;;  %v22174_v25 = vpop.xlane.xlu1 %8094 }
 0x547   :  { %24764 = vst [vmem:[#allocation142_spill] sm:$0xff] %v22147_v33  ;;  %24765 = vst [vmem:[#allocation141_spill] sm:$0xff] %v22150_v60  ;;  %v9467_v55 = vrot.slane %v9439_v8, %v20258_v41  ;;  %v13024_v19 = vcombine.high %v13016_v0, %v13016_v0  ;;  %v13025_v45 = vcombine.high %v13023_v14, %v13023_v14 }
 0x548   :  { %24766 = vst [vmem:[#allocation61_spill] sm:$0xff] %v22153_v57  ;;  %24767 = vst [vmem:[#allocation143_spill] sm:$0xff] %v22157_v48  ;;  %v22161_v58 = vrot.slane %v15371_v50, %v20258_v41  ;;  %v22164_v4 = vrot.slane %v10944_v42, %v20258_v41  ;;  %v9446_v47 = vrot.slane %v9430_v21, %v20258_v41  ;;  %15018 = vperm.xlu0 %16997, %v14233_v17   ;;  %v24774_v48 = vld [vmem:[#allocation68_spill] sm:$0xff] }
 0x549   :  { %v13058_v30 = vcombine.high %v11794_v29, %v11794_v29  ;;  %v22168_v49 = vrot.slane %v15372_v61, %v20258_v41  ;;  %v9453_v1 = vrot.slane %v9437_v5, %v20258_v41  ;;  %v13065_v8 = vrot.slane %v11794_v29, %v20258_v41  ;;  %v24775_v17 = vld [vmem:[#allocation76_spill] sm:$0xff] }
 0x54a   :  { %24768 = vst [vmem:[#allocation50_spill] sm:$0xff] %v22161_v58  ;;  %24769 = vst [vmem:[#allocation32_spill] sm:$0xff] %v22164_v4  ;;  %v13923_v15 = vcombine.low %v24772_v54, %v24771_v35  ;;  %v10991_v50 = vcombine.low %v9446_v47, %v9460_v39  ;;  %v13032_v42 = vrot.slane %v13016_v0, %v20258_v41  ;;  %v24776_v57 = vld [vmem:[#allocation40_spill] sm:$0xff]  ;;  %v22198_v33 = vpop.xlane.xlu1 %11729 }
 0x54b   :  { %24770 = vst [vmem:[#allocation147_spill] sm:$0xff] %v22168_v49  ;;  %v13924_v21 = vcombine.low %v24774_v48, %v24773_v20  ;;  %v4492_v58 = vadd.f32 %v24775_v17, %v4421_v3  ;;  %v15373_v4 = vcombine.high %v9446_v47, %v9460_v39  ;;  %v10993_v61 = vcombine.low %v9453_v1, %v9467_v55  ;;  %v24777_v48 = vld [vmem:[#allocation144_spill] sm:$0xff]  ;;  %v24778_v3 = vld [vmem:[#allocation117_spill] sm:$0xff]  ;;  %v24779_v39 = vld [vmem:[#allocation118_spill] sm:$0xff] }
 0x54c   :  { %v13046_v49 = vrot.slane %v13024_v19, %v20258_v41  ;;  %v13053_v5 = vrot.slane %v13025_v45, %v20258_v41  ;;  %v13072_v29 = vrot.slane %v13058_v30, %v20258_v41  ;;  %v13931_v35 = vrot.slane %v13923_v15, %v20258_v41 }
 0x54d   :  { %v13938_v54 = vrot.slane %v13924_v21, %v20258_v41  ;;  %v5804_v24 = vcombine.high %v4492_v58, %v4492_v58  ;;  %v13039_v0 = vrot.slane %v13023_v14, %v20258_v41  ;;  %v13073_v60 = vcombine.high %v13065_v8, %v13065_v8 }
 0x54e   :  { %v7061_v20 = vcombine.low %v24777_v48, %v24776_v57  ;;  %v7062_v47 = vcombine.low %v24779_v39, %v24778_v3  ;;  %v15374_v17 = vcombine.high %v9453_v1, %v9467_v55  ;;  %v22191_v19 = vrot.slane %v10991_v50, %v20258_v41  ;;  %v24784_v3 = vld [vmem:[#allocation101_spill] sm:$0xff] }
 0x54f   :  { %v13939_v45 = vcombine.low %v13931_v35, %v13938_v54  ;;  %v5811_v30 = vrot.slane %v4492_v58, %v20258_v41  ;;  %v22195_v15 = vrot.slane %v15373_v4, %v20258_v41  ;;  %v14577_v21 = vcombine.low %v13032_v42, %v13046_v49  ;;  %v24782_v35 = vld [vmem:[#allocation87_spill] sm:$0xff]  ;;  %v24783_v54 = vld [vmem:[#allocation104_spill] sm:$0xff] }
 0x550   :  { %24780 = vst [vmem:[#allocation146_spill] sm:$0xff] %v22191_v19  ;;  %v15436_v51 = vcombine.high %v13032_v42, %v13046_v49  ;;  %v5818_v14 = vrot.slane %v5804_v24, %v20258_v41  ;;  %v22201_v57 = vrot.slane %v10993_v61, %v20258_v41  ;;  %v14579_v48 = vcombine.low %v13039_v0, %v13053_v5  ;;  %v8089_v19 = vpop.xlane.xlu0 %8088 }
 0x551   :  { %v15437_v55 = vcombine.high %v13039_v0, %v13053_v5  ;;  %v13074_v1 = vcombine.high %v13072_v29, %v13072_v29  ;;  %15000 = vperm.xlu1 %16996, %v13939_v45   ;;  %v13095_v50 = vrot.slane %v13073_v60, %v20258_v41  ;;  %v7069_v58 = vrot.slane %v7061_v20, %v20258_v41  ;;  %v24785_v60 = vld [vmem:[#allocation172_spill] sm:$0xff] }
 0x552   :  { %24781 = vst [vmem:[#allocation148_spill] sm:$0xff] %v22201_v57  ;;  %v7076_v4 = vrot.slane %v7062_v47, %v20258_v41  ;;  %v4493_v49 = vadd.f32 %v24782_v35, %v22048_v46  ;;  %v22209_v24 = vrot.slane %v15374_v17, %v20258_v41  ;;  %v13081_v42 = vrot.slane %v13065_v8, %v20258_v41  ;;  %v24786_v57 = vld [vmem:[#allocation85_spill] sm:$0xff] }
 0x553   :  { %v5819_v61 = vcombine.high %v5811_v30, %v5811_v30  ;;  %v14070_v5 = vcombine.low %v24784_v3, %v24783_v54  ;;  %v5820_v0 = vcombine.high %v5818_v14, %v5818_v14  ;;  %v14071_v20 = vcombine.low %v24786_v57, %v24785_v60  ;;  %v22231_v54 = vpop.xlane.xlu1 %4430 }
 0x554   :  { %v7077_v39 = vcombine.low %v7069_v58, %v7076_v4  ;;  %v5853_v45 = vcombine.high %v4493_v49, %v4493_v49  ;;  %v22217_v47 = vrot.slane %v14577_v21, %v20258_v41  ;;  %v22220_v46 = vrot.slane %v15436_v51, %v20258_v41 }
 0x555   :  { %v22223_v17 = vrot.slane %v14579_v48, %v20258_v41  ;;  %v22226_v8 = vrot.slane %v15437_v55, %v20258_v41  ;;  %v13088_v35 = vrot.slane %v13072_v29, %v20258_v41  ;;  %v13102_v58 = vrot.slane %v13074_v1, %v20258_v41  ;;  %v24790_v48 = vld [vmem:[#allocation78_spill] sm:$0xff] }
 0x556   :  { %24787 = vst [vmem:[#allocation64_spill] sm:$0xff] %v22217_v47  ;;  %v14626_v4 = vcombine.low %v13081_v42, %v13095_v50  ;;  %7724 = vperm.xlu0 %16997, %v7077_v39   ;;  %v5860_v57 = vrot.slane %v4493_v49, %v20258_v41  ;;  %v15438_v21 = vcombine.high %v13081_v42, %v13095_v50 }
 0x557   :  { %24788 = vst [vmem:[#allocation25_spill] sm:$0xff] %v22223_v17  ;;  %24789 = vst [vmem:[#allocation46_spill] sm:$0xff] %v22226_v8  ;;  %v14078_v51 = vrot.slane %v14070_v5, %v20258_v41  ;;  %v14085_v3 = vrot.slane %v14071_v20, %v20258_v41  ;;  %v8160_v60 = vadd.f32 %v24790_v48, %v8089_v19 }
 0x558   :  { %v5841_v55 = vrot.slane %v5819_v61, %v20258_v41  ;;  %v5848_v17 = vrot.slane %v5820_v0, %v20258_v41  ;;  %v5867_v29 = vrot.slane %v5853_v45, %v20258_v41  ;;  %v10729_v1 = vcombine.low %v21711_v43, %v21714_v23  ;;  %v11724_v61 = vpop.xlane.xlu0 %11723 }
 0x559   :  { %v14086_v39 = vcombine.low %v14078_v51, %v14085_v3  ;;  %v9472_v49 = vcombine.high %v8160_v60, %v8160_v60  ;;  %v9479_v8 = vrot.slane %v8160_v60, %v20258_v41  ;;  %v10730_v50 = vcombine.low %v21717_v63, %v21720_v40 }
 0x55a   :  { %v14628_v42 = vcombine.low %v13088_v35, %v13102_v58  ;;  %v15439_v5 = vcombine.high %v13088_v35, %v13102_v58  ;;  %v5827_v19 = vrot.slane %v5811_v30, %v20258_v41  ;;  %v5868_v20 = vcombine.high %v5860_v57, %v5860_v57  ;;  %v22255_v30 = vpop.xlane.xlu1 %8098 }
 0x55b   :  { %v5834_v0 = vrot.slane %v5818_v14, %v20258_v41  ;;  %15009 = vperm.xlu1 %16996, %v14086_v39   ;;  %v9486_v45 = vrot.slane %v9472_v49, %v20258_v41  ;;  %v10737_v43 = vrot.slane %v10729_v1, %v20258_v41  ;;  %v10744_v23 = vrot.slane %v10730_v50, %v20258_v41  ;;  %v24794_v39 = vld [vmem:[#allocation81_spill] sm:$0xff]  ;;  %v24795_v49 = vld [vmem:[#allocation66_spill] sm:$0xff]  ;;  %v24796_v50 = vld [vmem:[#allocation39_spill] sm:$0xff] }
 0x55c   :  { %v22250_v51 = vrot.slane %v14626_v4, %v20258_v41  ;;  %v22253_v63 = vrot.slane %v15438_v21, %v20258_v41  ;;  %v7372_v40 = vcombine.low %v5827_v19, %v5841_v55  ;;  %v5869_v35 = vcombine.high %v5867_v29, %v5867_v29 }
 0x55d   :  { %v15310_v58 = vcombine.high %v5827_v19, %v5841_v55  ;;  %v7374_v3 = vcombine.low %v5834_v0, %v5848_v17  ;;  %v9487_v14 = vcombine.high %v9479_v8, %v9479_v8  ;;  %v10745_v48 = vcombine.low %v10737_v43, %v10744_v23  ;;  %v24798_v55 = vld [vmem:[#allocation171_spill] sm:$0xff]  ;;  %v24799_v19 = vld [vmem:[#allocation73_spill] sm:$0xff] }
 0x55e   :  { %24791 = vst [vmem:[#allocation153_spill] sm:$0xff] %v22250_v51  ;;  %24792 = vst [vmem:[#allocation152_spill] sm:$0xff] %v22253_v63  ;;  %v22258_v60 = vrot.slane %v14628_v42, %v20258_v41  ;;  %v5890_v1 = vrot.slane %v5868_v20, %v20258_v41  ;;  %v8161_v4 = vadd.f32 %v24794_v39, %v22077_v26  ;;  %v24801_v26 = vld [vmem:[#allocation80_spill] sm:$0xff] }
 0x55f   :  { %v6718_v21 = vcombine.low %v24796_v50, %v24795_v49  ;;  %v22266_v51 = vrot.slane %v15439_v5, %v20258_v41  ;;  %v15311_v63 = vcombine.high %v5834_v0, %v5848_v17  ;;  %v9488_v47 = vcombine.high %v9486_v45, %v9486_v45  ;;  %11392 = vperm.xlu0 %16997, %v10745_v48  }
 0x560   :  { %24793 = vst [vmem:[#allocation155_spill] sm:$0xff] %v22258_v60  ;;  %v6719_v43 = vcombine.low %v24799_v19, %v24798_v55  ;;  %v22271_v42 = vrot.slane %v7372_v40, %v20258_v41  ;;  %v5876_v20 = vrot.slane %v5860_v57, %v20258_v41  ;;  %v5897_v23 = vrot.slane %v5869_v35, %v20258_v41  ;;  %v4425_v60 = vpop.xlane.xlu0 %4424  ;;  %v22286_v35 = vpop.xlane.xlu1 %11733 }
 0x561   :  { %24797 = vst [vmem:[#allocation154_spill] sm:$0xff] %v22266_v51  ;;  %v11795_v39 = vadd.f32 %v24801_v26, %v11724_v61  ;;  %v22277_v49 = vrot.slane %v15310_v58, %v20258_v41  ;;  %v22280_v17 = vrot.slane %v7374_v3, %v20258_v41  ;;  %v9509_v5 = vrot.slane %v9487_v14, %v20258_v41 }
 0x562   :  { %24800 = vst [vmem:[#allocation59_spill] sm:$0xff] %v22271_v42  ;;  %v9521_v0 = vcombine.high %v8161_v4, %v8161_v4  ;;  %v5883_v48 = vrot.slane %v5867_v29, %v20258_v41  ;;  %v7421_v40 = vcombine.low %v5876_v20, %v5890_v1  ;;  %v6726_v50 = vrot.slane %v6718_v21, %v20258_v41 }
 0x563   :  { %24802 = vst [vmem:[#allocation51_spill] sm:$0xff] %v22277_v49  ;;  %24803 = vst [vmem:[#allocation55_spill] sm:$0xff] %v22280_v17  ;;  %v6733_v57 = vrot.slane %v6719_v43, %v20258_v41  ;;  %v15312_v61 = vcombine.high %v5876_v20, %v5890_v1  ;;  %v9495_v55 = vrot.slane %v9479_v8, %v20258_v41  ;;  %v24815_v17 = vld [vmem:[#allocation48_spill] sm:$0xff] }
 0x564   :  { %v22290_v58 = vrot.slane %v9488_v47, %v20258_v41  ;;  %v13107_v3 = vcombine.high %v11795_v39, %v11795_v39  ;;  %v7423_v19 = vcombine.low %v5883_v48, %v5897_v23  ;;  %v15313_v26 = vcombine.high %v5883_v48, %v5897_v23  ;;  %v24805_v47 = vld [vmem:[#allocation149_spill] sm:$0xff]  ;;  %v24806_v23 = vld [vmem:[#allocation150_spill] sm:$0xff]  ;;  %v24807_v48 = vld [vmem:[#allocation151_spill] sm:$0xff] }
 0x565   :  { %v9528_v14 = vrot.slane %v8161_v4, %v20258_v41  ;;  %v6734_v42 = vcombine.low %v6726_v50, %v6733_v57  ;;  %v22294_v29 = vrot.slane %v9486_v45, %v20258_v41  ;;  %v11040_v21 = vcombine.low %v9495_v55, %v9509_v5  ;;  %v22305_v50 = vpop.xlane.xlu0 %8092 }
 0x566   :  { %v9535_v43 = vrot.slane %v9521_v0, %v20258_v41  ;;  %v13114_v49 = vrot.slane %v11795_v39, %v20258_v41  ;;  %v22299_v1 = vrot.slane %v15311_v63, %v20258_v41  ;;  %v15375_v8 = vcombine.high %v9495_v55, %v9509_v5 }
 0x567   :  { %7703 = vperm.xlu1 %16996, %v6734_v42   ;;  %v14315_v20 = vcombine.low %v24805_v47, %v21728_v11  ;;  %v14316_v4 = vcombine.low %v24807_v48, %v24806_v23  ;;  %v22308_v45 = vrot.slane %v7421_v40, %v20258_v41  ;;  %v22311_v0 = vrot.slane %v15312_v61, %v20258_v41  ;;  %v22324_v40 = vpop.permute.xlu1 %7670 }
 0x568   :  { %24804 = vst [vmem:[#allocation158_spill] sm:$0xff] %v22299_v1  ;;  %v11042_v63 = vcombine.low %v22294_v29, %v22290_v58  ;;  %v13121_v39 = vrot.slane %v13107_v3, %v20258_v41  ;;  %v22317_v42 = vrot.slane %v7423_v19, %v20258_v41  ;;  %v22320_v11 = vrot.slane %v15313_v26, %v20258_v41  ;;  %v24814_v26 = vld [vmem:[#allocation89_spill] sm:$0xff] }
 0x569   :  { %24808 = vst [vmem:[#allocation160_spill] sm:$0xff] %v22308_v45  ;;  %v15376_v5 = vcombine.high %v22294_v29, %v22290_v58  ;;  %v9536_v57 = vcombine.high %v9528_v14, %v9528_v14  ;;  %24811 = vst [vmem:[#allocation33_spill] sm:$0xff] %v22324_v40  ;;  %v22327_v61 = vrot.slane %v11040_v21, %v20258_v41  ;;  %v24816_v58 = vld [vmem:[#allocation95_spill] sm:$0xff]  ;;  %v24818_v40 = vld [vmem:[#allocation77_spill] sm:$0xff] }
 0x56a   :  { %24809 = vst [vmem:[#allocation159_spill] sm:$0xff] %v22317_v42  ;;  %24810 = vst [vmem:[#allocation69_spill] sm:$0xff] %v22320_v11  ;;  %v9537_v55 = vcombine.high %v9535_v43, %v9535_v43  ;;  %v13122_v47 = vcombine.high %v13114_v49, %v13114_v49  ;;  %v14330_v23 = vrot.slane %v14316_v4, %v20258_v41  ;;  %v22346_v11 = vpop.xlane.xlu0 %11727 }
 0x56b   :  { %24812 = vst [vmem:[#allocation67_spill] sm:$0xff] %v22327_v61  ;;  %v22331_v3 = vrot.slane %v15375_v8, %v20258_v41  ;;  %v14323_v19 = vrot.slane %v14315_v20, %v20258_v41  ;;  %v11796_v48 = vadd.f32 %v24814_v26, %v22116_v13  ;;  %v10386_v29 = vcombine.low %v24816_v58, %v24815_v17  ;;  %v24819_v20 = vld [vmem:[#allocation71_spill] sm:$0xff]  ;;  %v24820_v26 = vld [vmem:[#allocation93_spill] sm:$0xff] }
 0x56c   :  { %v22339_v1 = vrot.slane %v11042_v63, %v20258_v41  ;;  %v9544_v21 = vrot.slane %v9528_v14, %v20258_v41  ;;  %v9551_v61 = vrot.slane %v9535_v43, %v20258_v41  ;;  %v13123_v51 = vcombine.high %v13121_v39, %v13121_v39 }
 0x56d   :  { %24813 = vst [vmem:[#allocation70_spill] sm:$0xff] %v22331_v3  ;;  %v9558_v4 = vrot.slane %v9536_v57, %v20258_v41  ;;  %v14331_v8 = vcombine.low %v14323_v19, %v14330_v23  ;;  %v13156_v3 = vcombine.high %v11796_v48, %v11796_v48  ;;  %v10387_v42 = vcombine.low %v24819_v20, %v24818_v40  ;;  %v22356_v40 = vpop.permute.xlu1 %11338 }
 0x56e   :  { %24817 = vst [vmem:[#allocation163_spill] sm:$0xff] %v22339_v1  ;;  %v9565_v13 = vrot.slane %v9537_v55, %v20258_v41  ;;  %v13144_v17 = vrot.slane %v13122_v47, %v20258_v41  ;;  %v13163_v63 = vrot.slane %v11796_v48, %v20258_v41  ;;  %v4494_v14 = vadd.f32 %v24820_v26, %v4425_v60 }
 0x56f   :  { %v13130_v43 = vrot.slane %v13114_v49, %v20258_v41  ;;  %15024 = vperm.xlu0 %16997, %v14331_v8   ;;  %v13170_v57 = vrot.slane %v13156_v3, %v20258_v41  ;;  %v10394_v23 = vrot.slane %v10386_v29, %v20258_v41  ;;  %v10401_v19 = vrot.slane %v10387_v42, %v20258_v41 }
 0x570   :  { %24821 = vst [vmem:[#allocation56_spill] sm:$0xff] %v22356_v40  ;;  %v13151_v58 = vrot.slane %v13123_v51, %v20258_v41  ;;  %v5902_v55 = vcombine.high %v4494_v14, %v4494_v14  ;;  %v7159_v47 = vcombine.low %v21810_v59, %v21813_v9  ;;  %v7160_v60 = vcombine.low %v21816_v16, %v21823_v10  ;;  %v22366_v59 = vpop.xlane.xlu0 %4428 }
 0x571   :  { %v11089_v48 = vcombine.low %v9544_v21, %v9558_v4  ;;  %v15377_v49 = vcombine.high %v9544_v21, %v9558_v4  ;;  %v13137_v8 = vrot.slane %v13121_v39, %v20258_v41  ;;  %v10402_v3 = vcombine.low %v10394_v23, %v10401_v19  ;;  %v24822_v39 = vld [vmem:[#allocation84_spill] sm:$0xff] }
 0x572   :  { %v11091_v20 = vcombine.low %v9551_v61, %v9565_v13  ;;  %v15378_v29 = vcombine.high %v9551_v61, %v9565_v13  ;;  %v14675_v26 = vcombine.low %v13130_v43, %v13144_v17  ;;  %v13171_v42 = vcombine.high %v13163_v63, %v13163_v63 }
 0x573   :  { %v15440_v1 = vcombine.high %v13130_v43, %v13144_v17  ;;  %v13172_v40 = vcombine.high %v13170_v57, %v13170_v57  ;;  %11371 = vperm.xlu1 %16996, %v10402_v3   ;;  %v5909_v51 = vrot.slane %v4494_v14, %v20258_v41  ;;  %v7174_v45 = vrot.slane %v7160_v60, %v20258_v41  ;;  %v22381_v14 = vpop.permute.xlu1 %14973 }
 0x574   :  { %v14677_v9 = vcombine.low %v13137_v8, %v13151_v58  ;;  %v5916_v16 = vrot.slane %v5902_v55, %v20258_v41  ;;  %v7167_v10 = vrot.slane %v7159_v47, %v20258_v41  ;;  %v4495_v21 = vadd.f32 %v24822_v39, %v22135_v34  ;;  %24824 = vst [vmem:[#allocation164_spill] sm:$0xff] %v22381_v14  ;;  %v24832_v39 = vld [vmem:[#allocation83_spill] sm:$0xff] }
 0x575   :  { %v22373_v61 = vrot.slane %v15376_v5, %v20258_v41  ;;  %v22376_v4 = vrot.slane %v11089_v48, %v20258_v41  ;;  %v22379_v13 = vrot.slane %v15377_v49, %v20258_v41  ;;  %v15441_v17 = vcombine.high %v13137_v8, %v13151_v58 }
 0x576   :  { %v22384_v43 = vrot.slane %v11091_v20, %v20258_v41  ;;  %v22387_v23 = vrot.slane %v15378_v29, %v20258_v41  ;;  %v13193_v34 = vrot.slane %v13171_v42, %v20258_v41  ;;  %v7175_v19 = vcombine.low %v7167_v10, %v7174_v45  ;;  %v24830_v29 = vld [vmem:[#allocation96_spill] sm:$0xff]  ;;  %v22408_v42 = vpop.xlane.xlu0 %8096  ;;  %v24831_v10 = vld [vmem:[#allocation102_spill] sm:$0xff] }
 0x577   :  { %24823 = vst [vmem:[#allocation165_spill] sm:$0xff] %v22373_v61  ;;  %v22391_v5 = vrot.slane %v14675_v26, %v20258_v41  ;;  %v13200_v55 = vrot.slane %v13172_v40, %v20258_v41  ;;  %v5917_v47 = vcombine.high %v5909_v51, %v5909_v51  ;;  %v5951_v60 = vcombine.high %v4495_v21, %v4495_v21  ;;  %v24829_v40 = vld [vmem:[#allocation74_spill] sm:$0xff] }
 0x578   :  { %v22395_v58 = vrot.slane %v15440_v1, %v20258_v41  ;;  %v22398_v48 = vrot.slane %v14677_v9, %v20258_v41  ;;  %v13179_v49 = vrot.slane %v13163_v63, %v20258_v41  ;;  %v5918_v8 = vcombine.high %v5916_v16, %v5916_v16  ;;  %7730 = vperm.xlu0 %16997, %v7175_v19   ;;  %v24833_v19 = vld [vmem:[#allocation90_spill] sm:$0xff] }
 0x579   :  { %24825 = vst [vmem:[#allocation41_spill] sm:$0xff] %v22391_v5  ;;  %v22402_v3 = vrot.slane %v15441_v17, %v20258_v41  ;;  %v13186_v45 = vrot.slane %v13170_v57, %v20258_v41  ;;  %v5958_v20 = vrot.slane %v4495_v21, %v20258_v41  ;;  %v14021_v26 = vcombine.low %v24830_v29, %v24829_v40 }
 0x57a   :  { %24826 = vst [vmem:[#allocation35_spill] sm:$0xff] %v22395_v58  ;;  %24827 = vst [vmem:[#allocation115_spill] sm:$0xff] %v22398_v48  ;;  %v14724_v1 = vcombine.low %v13179_v49, %v13193_v34  ;;  %v5965_v9 = vrot.slane %v5951_v60, %v20258_v41  ;;  %v14022_v63 = vcombine.low %v24832_v39, %v24831_v10  ;;  %v22417_v48 = vpop.permute.xlu1 %7676 }
 0x57b   :  { %24828 = vst [vmem:[#allocation75_spill] sm:$0xff] %v22402_v3  ;;  %v8162_v61 = vadd.f32 %v24833_v19, %v22305_v50  ;;  %v15442_v17 = vcombine.high %v13179_v49, %v13193_v34  ;;  %v14726_v14 = vcombine.low %v13186_v45, %v13200_v55  ;;  %v5925_v57 = vrot.slane %v5909_v51, %v20258_v41 }
 0x57c   :  { %v5939_v21 = vrot.slane %v5917_v47, %v20258_v41  ;;  %24834 = vst [vmem:[#allocation27_spill] sm:$0xff] %v22417_v48  ;;  %v5946_v40 = vrot.slane %v5918_v8, %v20258_v41  ;;  %v14029_v29 = vrot.slane %v14021_v26, %v20258_v41  ;;  %v14036_v60 = vrot.slane %v14022_v63, %v20258_v41  ;;  %v22435_v48 = vpop.xlane.xlu0 %11731 }
 0x57d   :  { %v9570_v3 = vcombine.high %v8162_v61, %v8162_v61  ;;  %v5932_v10 = vrot.slane %v5916_v16, %v20258_v41  ;;  %v5966_v39 = vcombine.high %v5958_v20, %v5958_v20  ;;  %v10827_v50 = vcombine.low %v21861_v44, %v21864_v52 }
 0x57e   :  { %v10828_v51 = vcombine.low %v21870_v2, %v21873_v56  ;;  %v15443_v34 = vcombine.high %v13186_v45, %v13200_v55  ;;  %v22428_v47 = vrot.slane %v14724_v1, %v20258_v41  ;;  %v5967_v49 = vcombine.high %v5965_v9, %v5965_v9 }
 0x57f   :  { %v14037_v8 = vcombine.low %v14029_v29, %v14036_v60  ;;  %v22431_v26 = vrot.slane %v15442_v17, %v20258_v41  ;;  %v7470_v63 = vcombine.low %v5925_v57, %v5939_v21  ;;  %v9577_v19 = vrot.slane %v8162_v61, %v20258_v41  ;;  %v24835_v17 = vld [vmem:[#allocation21_spill] sm:$0xff]  ;;  %v22445_v29 = vpop.permute.xlu1 %7673 }
 0x580   :  { %v9584_v16 = vrot.slane %v9570_v3, %v20258_v41  ;;  %v22438_v44 = vrot.slane %v14726_v14, %v20258_v41  ;;  %v15314_v52 = vcombine.high %v5925_v57, %v5939_v21  ;;  %v7472_v2 = vcombine.low %v5932_v10, %v5946_v40  ;;  %24836 = vst [vmem:[#allocation23_spill] sm:$0xff] %v22445_v29  ;;  %v24837_v21 = vld [vmem:[#allocation173_spill] sm:$0xff]  ;;  %v22456_v58 = vpop.permute.xlu0 %7667 }
 0x581   :  { %v15315_v56 = vcombine.high %v5932_v10, %v5946_v40  ;;  %15006 = vperm.xlu1 %16996, %v14037_v8   ;;  %v5988_v55 = vrot.slane %v5966_v39, %v20258_v41  ;;  %v10835_v45 = vrot.slane %v10827_v50, %v20258_v41  ;;  %v10842_v1 = vrot.slane %v10828_v51, %v20258_v41  ;;  %v24838_v40 = vld [vmem:[#allocation103_spill] sm:$0xff]  ;;  %v24840_v51 = vld [vmem:[#allocation174_spill] sm:$0xff] }
 0x582   :  { %v8163_v61 = vadd.f32 %v24835_v17, %v22174_v25  ;;  %v22448_v3 = vrot.slane %v15443_v34, %v20258_v41  ;;  %v5974_v14 = vrot.slane %v5958_v20, %v20258_v41  ;;  %v5995_v57 = vrot.slane %v5967_v49, %v20258_v41  ;;  %v24839_v8 = vld [vmem:[#allocation175_spill] sm:$0xff] }
 0x583   :  { %v6816_v60 = vcombine.low %v24838_v40, %v24837_v21  ;;  %v9585_v10 = vcombine.high %v9577_v19, %v9577_v19  ;;  %v9586_v39 = vcombine.high %v9584_v16, %v9584_v16  ;;  %v10843_v50 = vcombine.low %v10835_v45, %v10842_v1 }
 0x584   :  { %v6817_v5 = vcombine.low %v24840_v51, %v24839_v8  ;;  %v22459_v25 = vrot.slane %v7470_v63, %v20258_v41  ;;  %v22462_v34 = vrot.slane %v15314_v52, %v20258_v41  ;;  %v22465_v20 = vrot.slane %v7472_v2, %v20258_v41  ;;  %v24845_v52 = vld [vmem:[#allocation92_spill] sm:$0xff] }
 0x585   :  { %v22468_v49 = vrot.slane %v15315_v56, %v20258_v41  ;;  %v5981_v17 = vrot.slane %v5965_v9, %v20258_v41  ;;  %v7519_v45 = vcombine.low %v5974_v14, %v5988_v55  ;;  %v15316_v1 = vcombine.high %v5974_v14, %v5988_v55  ;;  %11398 = vperm.xlu0 %16997, %v10843_v50   ;;  %v22482_v55 = vpop.permute.xlu1 %11341 }
 0x586   :  { %24841 = vst [vmem:[#allocation65_spill] sm:$0xff] %v22459_v25  ;;  %24842 = vst [vmem:[#allocation54_spill] sm:$0xff] %v22462_v34  ;;  %v9619_v21 = vcombine.high %v8163_v61, %v8163_v61  ;;  %v9626_v40 = vrot.slane %v8163_v61, %v20258_v41  ;;  %v6824_v63 = vrot.slane %v6816_v60, %v20258_v41 }
 0x587   :  { %24843 = vst [vmem:[#allocation79_spill] sm:$0xff] %v22465_v20  ;;  %24844 = vst [vmem:[#allocation60_spill] sm:$0xff] %v22468_v49  ;;  %v6831_v8 = vrot.slane %v6817_v5, %v20258_v41  ;;  %v11797_v51 = vadd.f32 %v24845_v52, %v22346_v11  ;;  %v7521_v2 = vcombine.low %v5981_v17, %v5995_v57  ;;  %v22490_v52 = vpop.permute.xlu0 %11335  ;;  %v24851_v49 = vld [vmem:[#allocation99_spill] sm:$0xff] }
 0x588   :  { %v9607_v25 = vrot.slane %v9585_v10, %v20258_v41  ;;  %v22478_v56 = vrot.slane %v9586_v39, %v20258_v41  ;;  %v14413_v9 = vcombine.low %v21878_v28, %v21882_v37  ;;  %24846 = vst [vmem:[#allocation138_spill] sm:$0xff] %v22482_v55  ;;  %v14414_v5 = vcombine.low %v21889_v31, %v21916_v7 }
 0x589   :  { %v6832_v14 = vcombine.low %v6824_v63, %v6831_v8  ;;  %v13205_v61 = vcombine.high %v11797_v51, %v11797_v51  ;;  %v13212_v60 = vrot.slane %v11797_v51, %v20258_v41  ;;  %v15317_v50 = vcombine.high %v5981_v17, %v5995_v57  ;;  %v22512_v20 = vpop.permute.xlu1 %14976 }
 0x58a   :  { %v9593_v11 = vrot.slane %v9577_v19, %v20258_v41  ;;  %v9600_v10 = vrot.slane %v9584_v16, %v20258_v41  ;;  %v9633_v39 = vrot.slane %v9619_v21, %v20258_v41  ;;  %v9634_v34 = vcombine.high %v9626_v40, %v9626_v40  ;;  %24850 = vst [vmem:[#allocation139_spill] sm:$0xff] %v22512_v20 }
 0x58b   :  { %7709 = vperm.xlu1 %16996, %v6832_v14   ;;  %v13219_v28 = vrot.slane %v13205_v61, %v20258_v41  ;;  %v14421_v37 = vrot.slane %v14413_v9, %v20258_v41  ;;  %v14428_v63 = vrot.slane %v14414_v5, %v20258_v41  ;;  %v22496_v8 = vrot.slane %v7519_v45, %v20258_v41  ;;  %v24847_v14 = vld [vmem:[#allocation88_spill] sm:$0xff]  ;;  %v24848_v61 = vld [vmem:[#allocation97_spill] sm:$0xff]  ;;  %v24849_v5 = vld [vmem:[#allocation98_spill] sm:$0xff] }
 0x58c   :  { %v22499_v31 = vrot.slane %v15316_v1, %v20258_v41  ;;  %v11138_v7 = vcombine.low %v9593_v11, %v9607_v25  ;;  %v15379_v19 = vcombine.high %v9593_v11, %v9607_v25  ;;  %v22502_v16 = vrot.slane %v7521_v2, %v20258_v41 }
 0x58d   :  { %v11140_v57 = vcombine.low %v9600_v10, %v22478_v56  ;;  %v13220_v17 = vcombine.high %v13212_v60, %v13212_v60  ;;  %v14429_v21 = vcombine.low %v14421_v37, %v14428_v63  ;;  %v22506_v51 = vrot.slane %v15317_v50, %v20258_v41  ;;  %v24852_v37 = vld [vmem:[#allocation100_spill] sm:$0xff] }
 0x58e   :  { %v9635_v9 = vcombine.high %v9633_v39, %v9633_v39  ;;  %v11798_v45 = vadd.f32 %v24847_v14, %v22198_v33  ;;  %v10484_v1 = vcombine.low %v24849_v5, %v24848_v61  ;;  %v15380_v25 = vcombine.high %v9600_v10, %v22478_v56  ;;  %v24855_v14 = vld [vmem:[#allocation31_spill] sm:$0xff]  ;;  %v22526_v5 = vpop.permute.xlu0 %14970 }
 0x58f   :  { %v9656_v2 = vrot.slane %v9634_v34, %v20258_v41  ;;  %v13221_v11 = vcombine.high %v13219_v28, %v13219_v28  ;;  %15030 = vperm.xlu0 %16997, %v14429_v21   ;;  %v10485_v63 = vcombine.low %v24852_v37, %v24851_v49  ;;  %v22519_v50 = vrot.slane %v11138_v7, %v20258_v41 }
 0x590   :  { %v22522_v55 = vrot.slane %v15379_v19, %v20258_v41  ;;  %v13254_v33 = vcombine.high %v11798_v45, %v11798_v45  ;;  %v4496_v61 = vadd.f32 %v24855_v14, %v22366_v59  ;;  %v22529_v56 = vrot.slane %v11140_v57, %v20258_v41 }
 0x591   :  { %24853 = vst [vmem:[#allocation140_spill] sm:$0xff] %v22519_v50  ;;  %v9642_v34 = vrot.slane %v9626_v40, %v20258_v41  ;;  %v13242_v10 = vrot.slane %v13220_v17, %v20258_v41  ;;  %v13261_v49 = vrot.slane %v11798_v45, %v20258_v41  ;;  %v9663_v7 = vrot.slane %v9635_v9, %v20258_v41 }
 0x592   :  { %24854 = vst [vmem:[#allocation72_spill] sm:$0xff] %v22522_v55  ;;  %24856 = vst [vmem:[#allocation170_spill] sm:$0xff] %v22529_v56  ;;  %v13268_v19 = vrot.slane %v13254_v33, %v20258_v41  ;;  %v10492_v21 = vrot.slane %v10484_v1, %v20258_v41  ;;  %v10499_v37 = vrot.slane %v10485_v63, %v20258_v41  ;;  %v22542_v56 = vpop.permute.xlu1 %7682 }
 0x593   :  { %v9649_v59 = vrot.slane %v9633_v39, %v20258_v41  ;;  %v11187_v14 = vcombine.low %v9642_v34, %v9656_v2  ;;  %v13228_v57 = vrot.slane %v13212_v60, %v20258_v41  ;;  %v13249_v50 = vrot.slane %v13221_v11, %v20258_v41  ;;  %24857 = vst [vmem:[#allocation169_spill] sm:$0xff] %v22542_v56  ;;  %v24867_v56 = vld [vmem:[#allocation94_spill] sm:$0xff] }
 0x594   :  { %v15381_v40 = vcombine.high %v9642_v34, %v9656_v2  ;;  %v13235_v17 = vrot.slane %v13219_v28, %v20258_v41  ;;  %v10500_v55 = vcombine.low %v10492_v21, %v10499_v37  ;;  %v6000_v45 = vcombine.high %v4496_v61, %v4496_v61  ;;  %v22548_v2 = vpop.permute.xlu0 %11344 }
 0x595   :  { %v14773_v9 = vcombine.low %v13228_v57, %v13242_v10  ;;  %v15444_v33 = vcombine.high %v13228_v57, %v13242_v10  ;;  %v13269_v20 = vcombine.high %v13261_v49, %v13261_v49  ;;  %v7258_v1 = vcombine.low %v21974_v12, %v21981_v62 }
 0x596   :  { %v11189_v63 = vcombine.low %v9649_v59, %v9663_v7  ;;  %v15382_v39 = vcombine.high %v9649_v59, %v9663_v7  ;;  %v13270_v29 = vcombine.high %v13268_v19, %v13268_v19  ;;  %11377 = vperm.xlu1 %16996, %v10500_v55   ;;  %v7257_v60 = vcombine.low %v21966_v6, %v21970_v38  ;;  %v24859_v55 = vld [vmem:[#allocation42_spill] sm:$0xff] }
 0x597   :  { %v22551_v28 = vrot.slane %v15380_v25, %v20258_v41  ;;  %v14775_v11 = vcombine.low %v13235_v17, %v13249_v50  ;;  %v15445_v34 = vcombine.high %v13235_v17, %v13249_v50  ;;  %v6007_v10 = vrot.slane %v4496_v61, %v20258_v41 }
 0x598   :  { %v22555_v21 = vrot.slane %v11187_v14, %v20258_v41  ;;  %v22558_v12 = vrot.slane %v15381_v40, %v20258_v41  ;;  %v6014_v62 = vrot.slane %v6000_v45, %v20258_v41  ;;  %v4497_v6 = vadd.f32 %v24859_v55, %v22231_v54  ;;  %v22579_v14 = vpop.permute.xlu1 %7679 }
 0x599   :  { %24858 = vst [vmem:[#allocation58_spill] sm:$0xff] %v22551_v28  ;;  %v22564_v38 = vrot.slane %v14773_v9, %v20258_v41  ;;  %v22567_v25 = vrot.slane %v15444_v33, %v20258_v41  ;;  %v13291_v50 = vrot.slane %v13269_v20, %v20258_v41  ;;  %v7272_v61 = vrot.slane %v7258_v1, %v20258_v41 }
 0x59a   :  { %v22572_v7 = vrot.slane %v11189_v63, %v20258_v41  ;;  %v22575_v37 = vrot.slane %v15382_v39, %v20258_v41  ;;  %v13298_v59 = vrot.slane %v13270_v29, %v20258_v41  ;;  %v7265_v54 = vrot.slane %v7257_v60, %v20258_v41  ;;  %24862 = vst [vmem:[#allocation40_spill] sm:$0xff] %v22579_v14  ;;  %v22589_v63 = vpop.permute.xlu0 %14979  ;;  %v24866_v14 = vld [vmem:[#allocation91_spill] sm:$0xff]  ;;  %v24869_v29 = vld [vmem:[#allocation17_spill] sm:$0xff] }
 0x59b   :  { %24860 = vst [vmem:[#allocation68_spill] sm:$0xff] %v22564_v38  ;;  %24861 = vst [vmem:[#allocation76_spill] sm:$0xff] %v22567_v25  ;;  %v22582_v57 = vrot.slane %v14775_v11, %v20258_v41  ;;  %v22585_v40 = vrot.slane %v15445_v34, %v20258_v41  ;;  %v13277_v20 = vrot.slane %v13261_v49, %v20258_v41  ;;  %v24865_v49 = vld [vmem:[#allocation122_spill] sm:$0xff]  ;;  %v24874_v38 = vld [vmem:[#allocation45_spill] sm:$0xff] }
 0x59c   :  { %v6015_v17 = vcombine.high %v6007_v10, %v6007_v10  ;;  %v13284_v45 = vrot.slane %v13268_v19, %v20258_v41  ;;  %v6016_v9 = vcombine.high %v6014_v62, %v6014_v62  ;;  %v7273_v33 = vcombine.low %v7265_v54, %v7272_v61  ;;  %v24873_v25 = vld [vmem:[#allocation110_spill] sm:$0xff] }
 0x59d   :  { %24863 = vst [vmem:[#allocation144_spill] sm:$0xff] %v22582_v57  ;;  %24864 = vst [vmem:[#allocation117_spill] sm:$0xff] %v22585_v40  ;;  %v6049_v1 = vcombine.high %v4497_v6, %v4497_v6  ;;  %v14822_v39 = vcombine.low %v13277_v20, %v13291_v50  ;;  %v15446_v60 = vcombine.high %v13277_v20, %v13291_v50  ;;  %v24868_v57 = vld [vmem:[#allocation121_spill] sm:$0xff] }
 0x59e   :  { %v6023_v11 = vrot.slane %v6007_v10, %v20258_v41  ;;  %v14824_v55 = vcombine.low %v13284_v45, %v13298_v59  ;;  %v15447_v34 = vcombine.high %v13284_v45, %v13298_v59  ;;  %v6030_v28 = vrot.slane %v6014_v62, %v20258_v41  ;;  %7736 = vperm.xlu0 %16997, %v7273_v33  }
 0x59f   :  { %v14119_v19 = vcombine.low %v24866_v14, %v24865_v49  ;;  %v6037_v61 = vrot.slane %v6015_v17, %v20258_v41  ;;  %v6056_v54 = vrot.slane %v4497_v6, %v20258_v41  ;;  %v14120_v40 = vcombine.low %v24868_v57, %v24867_v56  ;;  %v22608_v14 = vpop.permute.xlu1 %11347 }
 0x5a0   :  { %v8164_v50 = vadd.f32 %v24869_v29, %v22408_v42  ;;  %v6044_v10 = vrot.slane %v6016_v9, %v20258_v41  ;;  %v6063_v59 = vrot.slane %v6049_v1, %v20258_v41  ;;  %v10925_v20 = vcombine.low %v22024_v36, %v22027_v27  ;;  %24870 = vst [vmem:[#allocation118_spill] sm:$0xff] %v22608_v14  ;;  %v22626_v27 = vpop.permute.xlu0 %11350 }
 0x5a1   :  { %v14127_v62 = vrot.slane %v14119_v19, %v20258_v41  ;;  %v14134_v17 = vrot.slane %v14120_v40, %v20258_v41  ;;  %v10926_v56 = vcombine.low %v22030_v53, %v22038_v18  ;;  %v22615_v42 = vrot.slane %v14822_v39, %v20258_v41  ;;  %24871 = vst [vmem:[#allocation87_spill] sm:$0xff] %v22626_v27 }
 0x5a2   :  { %v9668_v6 = vcombine.high %v8164_v50, %v8164_v50  ;;  %v9675_v45 = vrot.slane %v8164_v50, %v20258_v41  ;;  %v22618_v57 = vrot.slane %v15446_v60, %v20258_v41  ;;  %v22621_v9 = vrot.slane %v14824_v55, %v20258_v41 }
 0x5a3   :  { %v22624_v36 = vrot.slane %v15447_v34, %v20258_v41  ;;  %v7568_v40 = vcombine.low %v6023_v11, %v6037_v61  ;;  %v6064_v33 = vcombine.high %v6056_v54, %v6056_v54  ;;  %v14135_v1 = vcombine.low %v14127_v62, %v14134_v17  ;;  %v24872_v34 = vld [vmem:[#allocation14_spill] sm:$0xff]  ;;  %v24875_v62 = vld [vmem:[#allocation112_spill] sm:$0xff]  ;;  %v24876_v17 = vld [vmem:[#allocation109_spill] sm:$0xff] }
 0x5a4   :  { %v9682_v29 = vrot.slane %v9668_v6, %v20258_v41  ;;  %v15318_v53 = vcombine.high %v6023_v11, %v6037_v61  ;;  %v9683_v18 = vcombine.high %v9675_v45, %v9675_v45  ;;  %v10933_v39 = vrot.slane %v10925_v20, %v20258_v41  ;;  %v24877_v11 = vld [vmem:[#allocation43_spill] sm:$0xff]  ;;  %v22639_v20 = vpop.permute.xlu1 %14982 }
 0x5a5   :  { %v10940_v60 = vrot.slane %v10926_v56, %v20258_v41  ;;  %v7570_v49 = vcombine.low %v6030_v28, %v6044_v10  ;;  %v15319_v19 = vcombine.high %v6030_v28, %v6044_v10  ;;  %v6065_v55 = vcombine.high %v6063_v59, %v6063_v59  ;;  %15012 = vperm.xlu1 %16996, %v14135_v1  }
 0x5a6   :  { %v8165_v50 = vadd.f32 %v24872_v34, %v22255_v30  ;;  %v14266_v27 = vcombine.low %v24874_v38, %v24873_v25  ;;  %v14267_v6 = vcombine.low %v24876_v17, %v24875_v62  ;;  %v11799_v61 = vadd.f32 %v24877_v11, %v22435_v48  ;;  %24878 = vst [vmem:[#allocation104_spill] sm:$0xff] %v22639_v20 }
 0x5a7   :  { %v10941_v14 = vcombine.low %v10933_v39, %v10940_v60  ;;  %v22642_v56 = vrot.slane %v7568_v40, %v20258_v41  ;;  %v6072_v28 = vrot.slane %v6056_v54, %v20258_v41  ;;  %v6086_v10 = vrot.slane %v6064_v33, %v20258_v41  ;;  %v22649_v60 = vpop.permute.xlu0 %14985 }
 0x5a8   :  { %v9684_v30 = vcombine.high %v9682_v29, %v9682_v29  ;;  %v9705_v1 = vrot.slane %v9683_v18, %v20258_v41  ;;  %v9717_v38 = vcombine.high %v8165_v50, %v8165_v50  ;;  %v14274_v25 = vrot.slane %v14266_v27, %v20258_v41 }
 0x5a9   :  { %24879 = vst [vmem:[#allocation101_spill] sm:$0xff] %v22642_v56  ;;  %11404 = vperm.xlu0 %16997, %v10941_v14   ;;  %v14281_v39 = vrot.slane %v14267_v6, %v20258_v41  ;;  %v22652_v48 = vrot.slane %v15318_v53, %v20258_v41  ;;  %v22655_v40 = vrot.slane %v7570_v49, %v20258_v41 }
 0x5aa   :  { %v22658_v54 = vrot.slane %v15319_v19, %v20258_v41  ;;  %v9724_v33 = vrot.slane %v8165_v50, %v20258_v41  ;;  %v6093_v14 = vrot.slane %v6065_v55, %v20258_v41  ;;  %v9691_v18 = vrot.slane %v9675_v45, %v20258_v41  ;;  %v22668_v50 = vpop.permute.xlu1 %7688 }
 0x5ab   :  { %24880 = vst [vmem:[#allocation172_spill] sm:$0xff] %v22652_v48  ;;  %24881 = vst [vmem:[#allocation85_spill] sm:$0xff] %v22655_v40  ;;  %v14282_v27 = vcombine.low %v14274_v25, %v14281_v39  ;;  %v13303_v34 = vcombine.high %v11799_v61, %v11799_v61  ;;  %v6079_v62 = vrot.slane %v6063_v59, %v20258_v41  ;;  %v24884_v59 = vld [vmem:[#allocation166_spill] sm:$0xff]  ;;  %v24885_v39 = vld [vmem:[#allocation167_spill] sm:$0xff] }
 0x5ac   :  { %24882 = vst [vmem:[#allocation78_spill] sm:$0xff] %v22658_v54  ;;  %v7617_v17 = vcombine.low %v6072_v28, %v6086_v10  ;;  %v9712_v53 = vrot.slane %v9684_v30, %v20258_v41  ;;  %v13310_v6 = vrot.slane %v11799_v61, %v20258_v41  ;;  %v15320_v49 = vcombine.high %v6072_v28, %v6086_v10  ;;  %v24897_v48 = vld [vmem:[#allocation128_spill] sm:$0xff] }
 0x5ad   :  { %v9698_v11 = vrot.slane %v9682_v29, %v20258_v41  ;;  %v11236_v19 = vcombine.low %v9691_v18, %v9705_v1  ;;  %v9731_v40 = vrot.slane %v9717_v38, %v20258_v41  ;;  %15021 = vperm.xlu1 %16996, %v14282_v27   ;;  %24883 = vst [vmem:[#allocation81_spill] sm:$0xff] %v22668_v50  ;;  %v22675_v29 = vpop.permute.xlu0 %11356  ;;  %v24902_v50 = vld [vmem:[#allocation141_spill] sm:$0xff] }
 0x5ae   :  { %v15383_v55 = vcombine.high %v9691_v18, %v9705_v1  ;;  %v9732_v45 = vcombine.high %v9724_v33, %v9724_v33  ;;  %v14511_v25 = vcombine.low %v22043_v32, %v22051_v22  ;;  %v14512_v54 = vcombine.low %v24885_v39, %v24884_v59  ;;  %24886 = vst [vmem:[#allocation66_spill] sm:$0xff] %v22675_v29  ;;  %v24890_v59 = vld [vmem:[#allocation37_spill] sm:$0xff]  ;;  %v24891_v39 = vld [vmem:[#allocation86_spill] sm:$0xff]  ;;  %v22700_v18 = vpop.permute.xlu1 %7685 }
 0x5af   :  { %v7619_v30 = vcombine.low %v6079_v62, %v6093_v14  ;;  %v15321_v20 = vcombine.high %v6079_v62, %v6093_v14  ;;  %v13317_v61 = vrot.slane %v13303_v34, %v20258_v41  ;;  %v13318_v28 = vcombine.high %v13310_v6, %v13310_v6  ;;  %24892 = vst [vmem:[#allocation80_spill] sm:$0xff] %v22700_v18  ;;  %v24903_v29 = vld [vmem:[#allocation114_spill] sm:$0xff] }
 0x5b0   :  { %v11238_v10 = vcombine.low %v9698_v11, %v9712_v53  ;;  %v15384_v38 = vcombine.high %v9698_v11, %v9712_v53  ;;  %v14519_v27 = vrot.slane %v14511_v25, %v20258_v41  ;;  %v14526_v1 = vrot.slane %v14512_v54, %v20258_v41 }
 0x5b1   :  { %v22682_v32 = vrot.slane %v7617_v17, %v20258_v41  ;;  %v22685_v22 = vrot.slane %v15320_v49, %v20258_v41  ;;  %v9733_v14 = vcombine.high %v9731_v40, %v9731_v40  ;;  %v22688_v34 = vrot.slane %v11236_v19, %v20258_v41  ;;  %v22718_v56 = vpop.permute.xlu0 %14991 }
 0x5b2   :  { %v22691_v62 = vrot.slane %v15383_v55, %v20258_v41  ;;  %v9754_v53 = vrot.slane %v9732_v45, %v20258_v41  ;;  %v14527_v11 = vcombine.low %v14519_v27, %v14526_v1  ;;  %v22695_v54 = vrot.slane %v7619_v30, %v20258_v41  ;;  %v24895_v1 = vld [vmem:[#allocation62_spill] sm:$0xff]  ;;  %24898 = vst [vmem:[#allocation151_spill] sm:$0xff] %v22718_v56 }
 0x5b3   :  { %24887 = vst [vmem:[#allocation39_spill] sm:$0xff] %v22682_v32  ;;  %24888 = vst [vmem:[#allocation171_spill] sm:$0xff] %v22688_v34  ;;  %v13319_v25 = vcombine.high %v13317_v61, %v13317_v61  ;;  %v13340_v17 = vrot.slane %v13318_v28, %v20258_v41  ;;  %v6914_v49 = vcombine.low %v24891_v39, %v24890_v59  ;;  %v24896_v39 = vld [vmem:[#allocation127_spill] sm:$0xff] }
 0x5b4   :  { %24889 = vst [vmem:[#allocation73_spill] sm:$0xff] %v22691_v62  ;;  %v22703_v19 = vrot.slane %v15321_v20, %v20258_v41  ;;  %v22706_v55 = vrot.slane %v11238_v10, %v20258_v41  ;;  %v22709_v45 = vrot.slane %v15384_v38, %v20258_v41  ;;  %v9740_v30 = vrot.slane %v9724_v33, %v20258_v41  ;;  %v24899_v33 = vld [vmem:[#allocation142_spill] sm:$0xff] }
 0x5b5   :  { %15036 = vperm.xlu0 %16997, %v14527_v11   ;;  %v9761_v27 = vrot.slane %v9733_v14, %v20258_v41  ;;  %v13326_v28 = vrot.slane %v13310_v6, %v20258_v41  ;;  %v11800_v59 = vadd.f32 %v24895_v1, %v22286_v35  ;;  %v6915_v20 = vcombine.low %v24897_v48, %v24896_v39  ;;  %v24900_v11 = vld [vmem:[#allocation44_spill] sm:$0xff]  ;;  %v24901_v39 = vld [vmem:[#allocation61_spill] sm:$0xff]  ;;  %v24904_v10 = vld [vmem:[#allocation82_spill] sm:$0xff] }
 0x5b6   :  { %24893 = vst [vmem:[#allocation149_spill] sm:$0xff] %v22706_v55  ;;  %24894 = vst [vmem:[#allocation150_spill] sm:$0xff] %v22709_v45  ;;  %v9747_v38 = vrot.slane %v9731_v40, %v20258_v41  ;;  %v11285_v55 = vcombine.low %v9740_v30, %v9754_v53  ;;  %v7355_v45 = vcombine.low %v24900_v11, %v24899_v33  ;;  %v22733_v11 = vpop.permute.xlu1 %11353 }
 0x5b7   :  { %v13347_v14 = vrot.slane %v13319_v25, %v20258_v41  ;;  %v14871_v6 = vcombine.low %v13326_v28, %v13340_v17  ;;  %v6922_v18 = vrot.slane %v6914_v49, %v20258_v41  ;;  %v6929_v35 = vrot.slane %v6915_v20, %v20258_v41  ;;  %24905 = vst [vmem:[#allocation89_spill] sm:$0xff] %v22733_v11  ;;  %v24925_v11 = vld [vmem:[#allocation111_spill] sm:$0xff] }
 0x5b8   :  { %v15385_v1 = vcombine.high %v9740_v30, %v9754_v53  ;;  %v15448_v48 = vcombine.high %v13326_v28, %v13340_v17  ;;  %v7356_v56 = vcombine.low %v24902_v50, %v24901_v39  ;;  %v10582_v62 = vcombine.low %v24904_v10, %v24903_v29  ;;  %v24906_v53 = vld [vmem:[#allocation116_spill] sm:$0xff]  ;;  %v24907_v17 = vld [vmem:[#allocation113_spill] sm:$0xff] }
 0x5b9   :  { %v11287_v40 = vcombine.low %v9747_v38, %v9761_v27  ;;  %v13333_v34 = vrot.slane %v13317_v61, %v20258_v41  ;;  %v13352_v32 = vcombine.high %v11800_v59, %v11800_v59  ;;  %v6930_v33 = vcombine.low %v6922_v18, %v6929_v35  ;;  %v22743_v61 = vpop.permute.xlu0 %7694 }
 0x5ba   :  { %v15386_v25 = vcombine.high %v9747_v38, %v9761_v27  ;;  %v7363_v49 = vrot.slane %v7355_v45, %v20258_v41  ;;  %v7370_v20 = vrot.slane %v7356_v56, %v20258_v41  ;;  %v10583_v30 = vcombine.low %v24907_v17, %v24906_v53  ;;  %24909 = vst [vmem:[#allocation95_spill] sm:$0xff] %v22743_v61  ;;  %v24917_v17 = vld [vmem:[#allocation126_spill] sm:$0xff] }
 0x5bb   :  { %v14873_v28 = vcombine.low %v13333_v34, %v13347_v14  ;;  %v15449_v50 = vcombine.high %v13333_v34, %v13347_v14  ;;  %v22740_v39 = vrot.slane %v14871_v6, %v20258_v41  ;;  %v13359_v29 = vrot.slane %v11800_v59, %v20258_v41  ;;  %7715 = vperm.xlu1 %16996, %v6930_v33  }
 0x5bc   :  { %v22746_v18 = vrot.slane %v15448_v48, %v20258_v41  ;;  %v7371_v27 = vcombine.low %v7363_v49, %v7370_v20  ;;  %v10590_v45 = vrot.slane %v10582_v62, %v20258_v41  ;;  %v10597_v56 = vrot.slane %v10583_v30, %v20258_v41  ;;  %v24911_v62 = vld [vmem:[#allocation146_spill] sm:$0xff]  ;;  %v24912_v48 = vld [vmem:[#allocation148_spill] sm:$0xff]  ;;  %v24918_v30 = vld [vmem:[#allocation123_spill] sm:$0xff] }
 0x5bd   :  { %24908 = vst [vmem:[#allocation48_spill] sm:$0xff] %v22740_v39  ;;  %v22751_v10 = vrot.slane %v11285_v55, %v20258_v41  ;;  %v22754_v34 = vrot.slane %v15385_v1, %v20258_v41  ;;  %v22757_v38 = vrot.slane %v11287_v40, %v20258_v41  ;;  %v13366_v59 = vrot.slane %v13352_v32, %v20258_v41  ;;  %v24914_v49 = vld [vmem:[#allocation124_spill] sm:$0xff]  ;;  %v24915_v32 = vld [vmem:[#allocation15_spill] sm:$0xff] }
 0x5be   :  { %24910 = vst [vmem:[#allocation77_spill] sm:$0xff] %v22746_v18  ;;  %v22761_v14 = vrot.slane %v15386_v25, %v20258_v41  ;;  %7742 = vperm.xlu0 %16997, %v7371_v27   ;;  %v10598_v6 = vcombine.low %v10590_v45, %v10597_v56  ;;  %v11023_v35 = vcombine.low %v24911_v62, %v22195_v15  ;;  %v22775_v25 = vpop.permute.xlu1 %14988  ;;  %v24920_v56 = vld [vmem:[#allocation64_spill] sm:$0xff] }
 0x5bf   :  { %v11024_v55 = vcombine.low %v24912_v48, %v22209_v24  ;;  %v22768_v33 = vrot.slane %v14873_v28, %v20258_v41  ;;  %v22771_v1 = vrot.slane %v15449_v50, %v20258_v41  ;;  %v13367_v40 = vcombine.high %v13359_v29, %v13359_v29  ;;  %24916 = vst [vmem:[#allocation93_spill] sm:$0xff] %v22775_v25  ;;  %v24919_v50 = vld [vmem:[#allocation57_spill] sm:$0xff]  ;;  %v24921_v48 = vld [vmem:[#allocation46_spill] sm:$0xff]  ;;  %v22788_v25 = vpop.permute.xlu0 %11362 }
 0x5c0   :  { %v14364_v20 = vcombine.low %v24915_v32, %v24914_v49  ;;  %11383 = vperm.xlu1 %16996, %v10598_v6   ;;  %v11031_v15 = vrot.slane %v11023_v35, %v20258_v41  ;;  %v14365_v28 = vcombine.low %v24918_v30, %v24917_v17  ;;  %v13368_v27 = vcombine.high %v13366_v59, %v13366_v59  ;;  %v24922_v49 = vld [vmem:[#allocation25_spill] sm:$0xff] }
 0x5c1   :  { %24913 = vst [vmem:[#allocation71_spill] sm:$0xff] %v22768_v33  ;;  %v11038_v24 = vrot.slane %v11024_v55, %v20258_v41  ;;  %v7766_v45 = vadd.s32 4294967288, %v24919_v50  ;;  %v14609_v62 = vcombine.low %v24920_v56, %v22220_v46  ;;  %v14610_v32 = vcombine.low %v24922_v49, %v24921_v48  ;;  %24923 = vst [vmem:[#allocation84_spill] sm:$0xff] %v22788_v25  ;;  %v24924_v55 = vld [vmem:[#allocation28_spill] sm:$0xff]  ;;  %v24926_v46 = vld [vmem:[#allocation145_spill] sm:$0xff] }
 0x5c2   :  { %v14372_v6 = vrot.slane %v14364_v20, %v20258_v41  ;;  %v14379_v35 = vrot.slane %v14365_v28, %v20258_v41  ;;  %v7012_v18 = vcombine.low %v24925_v11, %v24924_v55  ;;  %v13375_v17 = vrot.slane %v13359_v29, %v20258_v41  ;;  %v24927_v56 = vld [vmem:[#allocation24_spill] sm:$0xff]  ;;  %v24929_v49 = vld [vmem:[#allocation22_spill] sm:$0xff]  ;;  %v24931_v55 = vld [vmem:[#allocation159_spill] sm:$0xff] }
 0x5c3   :  { %v11039_v53 = vcombine.low %v11031_v15, %v11038_v24  ;;  %v13389_v30 = vrot.slane %v13367_v40, %v20258_v41  ;;  %v14624_v39 = vrot.slane %v14610_v32, %v20258_v41  ;;  %v7013_v61 = vcombine.low %v24927_v56, %v24926_v46  ;;  %v24928_v24 = vld [vmem:[#allocation160_spill] sm:$0xff]  ;;  %v24930_v32 = vld [vmem:[#allocation69_spill] sm:$0xff]  ;;  %v22810_v46 = vpop.permute.xlu1 %7691  ;;  %v24935_v56 = vld [vmem:[#allocation34_spill] sm:$0xff] }
 0x5c4   :  { %v13382_v48 = vrot.slane %v13366_v59, %v20258_v41  ;;  %v14380_v15 = vcombine.low %v14372_v6, %v14379_v35  ;;  %v14617_v20 = vrot.slane %v14609_v62, %v20258_v41  ;;  %v7453_v28 = vcombine.low %v24928_v24, %v22311_v0  ;;  %v24932_v62 = vld [vmem:[#allocation119_spill] sm:$0xff]  ;;  %v24933_v6 = vld [vmem:[#allocation120_spill] sm:$0xff]  ;;  %v24934_v0 = vld [vmem:[#allocation38_spill] sm:$0xff] }
 0x5c5   :  { %11410 = vperm.xlu0 %16997, %v11039_v53   ;;  %v13396_v11 = vrot.slane %v13368_v27, %v20258_v41  ;;  %v22805_v29 = vsub.s32 %v7766_v45, %v24929_v49  ;;  %v7027_v40 = vrot.slane %v7013_v61, %v20258_v41  ;;  %v7454_v25 = vcombine.low %v24931_v55, %v24930_v32  ;;  %v22820_v32 = vpop.permute.xlu0 %14997 }
 0x5c6   :  { %15027 = vperm.xlu1 %16996, %v14380_v15   ;;  %v14625_v59 = vcombine.low %v14617_v20, %v14624_v39  ;;  %v7020_v53 = vrot.slane %v7012_v18, %v20258_v41  ;;  %v10680_v35 = vcombine.low %v24933_v6, %v24932_v62  ;;  %v10681_v27 = vcombine.low %v24935_v56, %v24934_v0  ;;  %v24936_v62 = vld [vmem:[#allocation33_spill] sm:$0xff]  ;;  %v24939_v6 = vld [vmem:[#allocation19_spill] sm:$0xff] }
 0x5c7   :  { %v14920_v24 = vcombine.low %v13375_v17, %v13389_v30  ;;  %v15450_v45 = vcombine.high %v13375_v17, %v13389_v30  ;;  %v7468_v33 = vrot.slane %v7454_v25, %v20258_v41  ;;  %v11121_v61 = vcombine.low %v22376_v4, %v22379_v13  ;;  %v24940_v0 = vld [vmem:[#allocation133_spill] sm:$0xff] }
 0x5c8   :  { %v7028_v15 = vcombine.low %v7020_v53, %v7027_v40  ;;  %v7461_v39 = vrot.slane %v7453_v28, %v20258_v41  ;;  %v10695_v18 = vrot.slane %v10681_v27, %v20258_v41  ;;  %v11122_v20 = vcombine.low %v22384_v43, %v22387_v23  ;;  %v24937_v23 = vld [vmem:[#allocation134_spill] sm:$0xff]  ;;  %v22842_v27 = vpop.permute.xlu1 %11359 }
 0x5c9   :  { %15042 = vperm.xlu0 %16997, %v14625_v59   ;;  %v14922_v55 = vcombine.low %v13382_v48, %v13396_v11  ;;  %v7770_v17 = vrot.slane %v24936_v62, %v22805_v29  ;;  %v22830_v25 = vsub.s32 %v24919_v50, %v24929_v49  ;;  %v15451_v4 = vcombine.high %v13382_v48, %v13396_v11  ;;  %v24938_v59 = vld [vmem:[#allocation36_spill] sm:$0xff] }
 0x5ca   :  { %7721 = vperm.xlu1 %16996, %v7028_v15   ;;  %v7469_v13 = vcombine.low %v7461_v39, %v7468_v33  ;;  %v10688_v30 = vrot.slane %v10680_v35, %v20258_v41  ;;  %v11136_v28 = vrot.slane %v11122_v20, %v20258_v41  ;;  %v22835_v40 = vrot.slane %v14920_v24, %v20258_v41  ;;  %v22857_v20 = vpop.permute.xlu0 %7700 }
 0x5cb   :  { %v11129_v43 = vrot.slane %v11121_v61, %v20258_v41  ;;  %v14462_v53 = vcombine.low %v24938_v59, %v24937_v23  ;;  %v14463_v56 = vcombine.low %v24940_v0, %v24939_v6  ;;  %v22845_v48 = vrot.slane %v15450_v45, %v20258_v41  ;;  %v24947_v23 = vld [vmem:[#allocation41_spill] sm:$0xff] }
 0x5cc   :  { %v10696_v33 = vcombine.low %v10688_v30, %v10695_v18  ;;  %v14756_v11 = vcombine.low %v22428_v47, %v22431_v26  ;;  %v14757_v35 = vcombine.low %v22438_v44, %v22448_v3  ;;  %v22852_v24 = vrot.slane %v14922_v55, %v20258_v41  ;;  %v24941_v47 = vld [vmem:[#allocation52_spill] sm:$0xff]  ;;  %v24942_v26 = vld [vmem:[#allocation125_spill] sm:$0xff]  ;;  %v24943_v44 = vld [vmem:[#allocation30_spill] sm:$0xff] }
 0x5cd   :  { %7748 = vperm.xlu0 %16997, %v7469_v13   ;;  %v7765_v61 = vrot.slane %v22456_v58, %v22830_v25  ;;  %v11137_v15 = vcombine.low %v11129_v43, %v11136_v28  ;;  %v14477_v39 = vrot.slane %v14463_v56, %v20258_v41  ;;  %v14470_v45 = vrot.slane %v14462_v53, %v20258_v41  ;;  %v24944_v3 = vld [vmem:[#allocation49_spill] sm:$0xff]  ;;  %v24945_v58 = vld [vmem:[#allocation56_spill] sm:$0xff]  ;;  %v24946_v43 = vld [vmem:[#allocation35_spill] sm:$0xff] }
 0x5ce   :  { %11389 = vperm.xlu1 %16996, %v10696_v33   ;;  %v14771_v18 = vrot.slane %v14757_v35, %v20258_v41  ;;  %v7110_v62 = vcombine.low %v24942_v26, %v24941_v47  ;;  %v7111_v55 = vcombine.low %v24944_v3, %v24943_v44  ;;  %v22866_v13 = vrot.slane %v15451_v4, %v20258_v41  ;;  %v24948_v56 = vld [vmem:[#allocation75_spill] sm:$0xff]  ;;  %v24951_v3 = vld [vmem:[#allocation16_spill] sm:$0xff] }
 0x5cf   :  { %v11437_v30 = vrot.slane %v24945_v58, %v22805_v29  ;;  %v7780_v28 = vadd.s32 4294967272, %v24919_v50  ;;  %v14707_v59 = vcombine.low %v24947_v23, %v24946_v43  ;;  %v14478_v53 = vcombine.low %v14470_v45, %v14477_v39  ;;  %v24949_v33 = vld [vmem:[#allocation115_spill] sm:$0xff]  ;;  %v22883_v43 = vpop.permute.xlu1 %14994  ;;  %v24952_v45 = vld [vmem:[#allocation156_spill] sm:$0xff] }
 0x5d0   :  { %v14764_v6 = vrot.slane %v14756_v11, %v20258_v41  ;;  %v7125_v0 = vrot.slane %v7111_v55, %v20258_v41  ;;  %v14708_v35 = vcombine.low %v24949_v33, %v24948_v56  ;;  %v7772_v4 = vsel %vm7771_vm1, %v7770_v17, %v7765_v61  ;;  %v24950_v44 = vld [vmem:[#allocation47_spill] sm:$0xff]  ;;  %v24953_v55 = vld [vmem:[#allocation157_spill] sm:$0xff]  ;;  %v24954_v17 = vld [vmem:[#allocation164_spill] sm:$0xff] }
 0x5d1   :  { %11416 = vperm.xlu0 %16997, %v11137_v15   ;;  %v11433_v47 = vrot.slane %v22490_v52, %v22830_v25  ;;  %v7773_v26 = vadd.s32 4294967280, %v24919_v50  ;;  %v10779_v58 = vcombine.low %v24951_v3, %v24950_v44  ;;  %v7118_v11 = vrot.slane %v7110_v62, %v20258_v41  ;;  %v24956_v3 = vld [vmem:[#allocation29_spill] sm:$0xff] }
 0x5d2   :  { %15033 = vperm.xlu1 %16996, %v14478_v53   ;;  %v14772_v15 = vcombine.low %v14764_v6, %v14771_v18  ;;  %v14722_v39 = vrot.slane %v14708_v35, %v20258_v41  ;;  %v10778_v23 = vcombine.low %v24953_v55, %v24952_v45  ;;  %v15072_v61 = vrot.slane %v24954_v17, %v22805_v29  ;;  %v22897_v53 = vpop.permute.xlu0 %11368  ;;  %v24957_v45 = vld [vmem:[#allocation136_spill] sm:$0xff]  ;;  %v24958_v55 = vld [vmem:[#allocation63_spill] sm:$0xff] }
 0x5d3   :  { %v15068_v52 = vrot.slane %v22526_v5, %v22830_v25  ;;  %v22894_v56 = vsub.s32 %v7780_v28, %v24929_v49  ;;  %v14715_v33 = vrot.slane %v14707_v59, %v20258_v41  ;;  %v7126_v18 = vcombine.low %v7118_v11, %v7125_v0  ;;  %v24955_v28 = vld [vmem:[#allocation168_spill] sm:$0xff]  ;;  %v22922_v11 = vpop.permute.xlu1 %15003 }
 0x5d4   :  { %v10793_v62 = vrot.slane %v10779_v58, %v20258_v41  ;;  %v7551_v6 = vcombine.low %v22496_v8, %v22499_v31  ;;  %v7552_v35 = vcombine.low %v22502_v16, %v22506_v51  ;;  %v11438_v44 = vsel %vm7771_vm1, %v11437_v30, %v11433_v47  ;;  %v24959_v51 = vld [vmem:[#allocation27_spill] sm:$0xff] }
 0x5d5   :  { %15051 = vperm.xlu0 %16997, %v14772_v15   ;;  %v22906_v5 = vsub.s32 %v7773_v26, %v24929_v49  ;;  %v14560_v59 = vcombine.low %v24956_v3, %v24955_v28  ;;  %v14561_v15 = vcombine.low %v24958_v55, %v24957_v45  ;;  %v14723_v0 = vcombine.low %v14715_v33, %v14722_v39  ;;  %v24962_v28 = vld [vmem:[#allocation162_spill] sm:$0xff]  ;;  %v24963_v3 = vld [vmem:[#allocation161_spill] sm:$0xff] }
 0x5d6   :  { %7727 = vperm.xlu1 %16996, %v7126_v18   ;;  %v10786_v58 = vrot.slane %v10778_v23, %v20258_v41  ;;  %v7566_v8 = vrot.slane %v7552_v35, %v20258_v41  ;;  %v11220_v31 = vcombine.low %v22572_v7, %v22575_v37  ;;  %v15073_v16 = vsel %vm7771_vm1, %v15072_v61, %v15068_v52  ;;  %v24960_v37 = vld [vmem:[#allocation23_spill] sm:$0xff]  ;;  %v24961_v52 = vld [vmem:[#allocation138_spill] sm:$0xff]  ;;  %v22933_v35 = vpop.permute.xlu0 %7706 }
 0x5d7   :  { %v7784_v30 = vrot.slane %v24959_v51, %v22894_v56  ;;  %v7794_v26 = vadd.s32 4294967256, %v24919_v50  ;;  %v7559_v23 = vrot.slane %v7551_v6, %v20258_v41  ;;  %v14575_v17 = vrot.slane %v14561_v15, %v20258_v41  ;;  %v24964_v55 = vld [vmem:[#allocation130_spill] sm:$0xff] }
 0x5d8   :  { %v10794_v39 = vcombine.low %v10786_v58, %v10793_v62  ;;  %v11219_v7 = vcombine.low %v22555_v21, %v22558_v12  ;;  %v7777_v61 = vrot.slane %v24960_v37, %v22906_v5  ;;  %v11442_v33 = vrot.slane %v24961_v52, %v22906_v5  ;;  %v24965_v21 = vld [vmem:[#allocation18_spill] sm:$0xff] }
 0x5d9   :  { %15048 = vperm.xlu0 %16997, %v14723_v0   ;;  %v14568_v18 = vrot.slane %v14560_v59, %v20258_v41  ;;  %v7567_v62 = vcombine.low %v7559_v23, %v7566_v8  ;;  %v11234_v6 = vrot.slane %v11220_v31, %v20258_v41  ;;  %v7208_v45 = vcombine.low %v24963_v3, %v24962_v28  ;;  %v24966_v59 = vld [vmem:[#allocation139_spill] sm:$0xff]  ;;  %v24967_v3 = vld [vmem:[#allocation20_spill] sm:$0xff] }
 0x5da   :  { %11395 = vperm.xlu1 %16996, %v10794_v39   ;;  %v7209_v12 = vcombine.low %v24965_v21, %v24964_v55  ;;  %v22943_v0 = vsub.s32 %v7794_v26, %v24929_v49  ;;  %v15077_v58 = vrot.slane %v24966_v59, %v22906_v5  ;;  %v14855_v8 = vcombine.low %v22621_v9, %v22624_v36  ;;  %v24968_v55 = vld [vmem:[#allocation131_spill] sm:$0xff]  ;;  %v22958_v59 = vpop.permute.xlu1 %7697 }
 0x5db   :  { %v14576_v31 = vcombine.low %v14568_v18, %v14575_v17  ;;  %v11227_v39 = vrot.slane %v11219_v7, %v20258_v41  ;;  %v14854_v37 = vcombine.low %v22615_v42, %v22618_v57  ;;  %v7779_v52 = vsel %vm7778_vm2, %v7777_v61, %v7772_v4  ;;  %v24969_v7 = vld [vmem:[#allocation132_spill] sm:$0xff]  ;;  %v24970_v18 = vld [vmem:[#allocation129_spill] sm:$0xff]  ;;  %v24971_v57 = vld [vmem:[#allocation87_spill] sm:$0xff] }
 0x5dc   :  { %v7223_v23 = vrot.slane %v7209_v12, %v20258_v41  ;;  %v11443_v26 = vsel %vm7778_vm2, %v11442_v33, %v11438_v44  ;;  %v7808_v28 = vadd.s32 4294967240, %v24919_v50  ;;  %v10877_v21 = vcombine.low %v24968_v55, %v24967_v3  ;;  %v24972_v33 = vld [vmem:[#allocation117_spill] sm:$0xff]  ;;  %v24975_v55 = vld [vmem:[#allocation154_spill] sm:$0xff]  ;;  %v24980_v4 = vld [vmem:[#allocation76_spill] sm:$0xff] }
 0x5dd   :  { %7754 = vperm.xlu0 %16997, %v7567_v62   ;;  %v11235_v9 = vcombine.low %v11227_v39, %v11234_v6  ;;  %v7216_v36 = vrot.slane %v7208_v45, %v20258_v41  ;;  %v14869_v17 = vrot.slane %v14855_v8, %v20258_v41  ;;  %v10876_v42 = vcombine.low %v24970_v18, %v24969_v7  ;;  %v24973_v62 = vld [vmem:[#allocation144_spill] sm:$0xff]  ;;  %v24974_v3 = vld [vmem:[#allocation169_spill] sm:$0xff]  ;;  %v24976_v7 = vld [vmem:[#allocation155_spill] sm:$0xff] }
 0x5de   :  { %15039 = vperm.xlu1 %16996, %v14576_v31   ;;  %v22967_v44 = vsel %vm7778_vm2, %v15077_v58, %v15073_v16  ;;  %v7787_v61 = vadd.s32 4294967264, %v24919_v50  ;;  %v14806_v12 = vcombine.low %v24973_v62, %v24972_v33  ;;  %v22972_v31 = vpop.permute.xlu0 %11374  ;;  %v14862_v8 = vrot.slane %v14854_v37, %v20258_v41  ;;  %v24978_v37 = vld [vmem:[#allocation153_spill] sm:$0xff] }
 0x5df   :  { %v7224_v45 = vcombine.low %v7216_v36, %v7223_v23  ;;  %v10891_v39 = vrot.slane %v10877_v21, %v20258_v41  ;;  %v22981_v58 = vsub.s32 %v7808_v28, %v24929_v49  ;;  %v14659_v18 = vcombine.low %v24976_v7, %v24975_v55  ;;  %v24979_v28 = vld [vmem:[#allocation68_spill] sm:$0xff]  ;;  %v24983_v55 = vld [vmem:[#allocation26_spill] sm:$0xff]  ;;  %v24984_v7 = vld [vmem:[#allocation53_spill] sm:$0xff] }
 0x5e0   :  { %v14870_v33 = vcombine.low %v14862_v8, %v14869_v17  ;;  %v10884_v62 = vrot.slane %v10876_v42, %v20258_v41  ;;  %v14820_v23 = vrot.slane %v14806_v12, %v20258_v41  ;;  %v22990_v21 = vsub.s32 %v7787_v61, %v24929_v49  ;;  %v24982_v8 = vld [vmem:[#allocation39_spill] sm:$0xff] }
 0x5e1   :  { %11422 = vperm.xlu0 %16997, %v11235_v9   ;;  %v24977_v9 = vld [vmem:[#allocation152_spill] sm:$0xff]  ;;  %v7822_v6 = vadd.s32 4294967224, %v24919_v50  ;;  %v24981_v16 = vcombine.low %v24979_v28, %v24980_v4  ;;  %v7650_v17 = vcombine.low %v22695_v54, %v22703_v19  ;;  %v14673_v12 = vrot.slane %v14659_v18, %v20258_v41  ;;  %v24986_v18 = vld [vmem:[#allocation137_spill] sm:$0xff] }
 0x5e2   :  { %7733 = vperm.xlu1 %16996, %v7224_v45   ;;  %v14658_v36 = vcombine.low %v24978_v37, %v24977_v9  ;;  %v22999_v45 = vpop.permute.xlu1 %11365  ;;  %v10892_v42 = vcombine.low %v10884_v62, %v10891_v39  ;;  %v7649_v61 = vcombine.low %v24982_v8, %v22685_v22  ;;  %v7307_v9 = vcombine.low %v24984_v7, %v24983_v55  ;;  %v24985_v37 = vld [vmem:[#allocation66_spill] sm:$0xff]  ;;  %v23014_v4 = vpop.permute.xlu0 %7712  ;;  %v24988_v28 = vld [vmem:[#allocation40_spill] sm:$0xff]  ;;  %v24992_v7 = vld [vmem:[#allocation147_spill] sm:$0xff] }
 0x5e3   :  { %v14813_v15 = vrot.slane %v24981_v16, %v20258_v41  ;;  %v11467_v47 = vrot.slane %v24985_v37, %v22981_v58  ;;  %v7786_v54 = vsel %vm7785_vm3, %v7784_v30, %v7779_v52  ;;  %v11318_v19 = vcombine.low %v22757_v38, %v22761_v14  ;;  %v24990_v38 = vld [vmem:[#allocation118_spill] sm:$0xff] }
 0x5e4   :  { %v14666_v22 = vrot.slane %v14658_v36, %v20258_v41  ;;  %v7664_v16 = vrot.slane %v7650_v17, %v20258_v41  ;;  %v7791_v8 = vrot.slane %v24988_v28, %v22990_v21  ;;  %v24989_v51 = vrot.slane %v22548_v2, %v22894_v56 }
 0x5e5   :  { %15057 = vperm.xlu0 %16997, %v14870_v33   ;;  %v14821_v39 = vcombine.low %v14813_v15, %v14820_v23  ;;  %v24987_v33 = vld [vmem:[#allocation135_spill] sm:$0xff]  ;;  %v11452_v14 = vrot.slane %v24990_v38, %v22990_v21  ;;  %v11317_v15 = vcombine.low %v22751_v10, %v22754_v34  ;;  %v23031_v52 = vsub.s32 %v7822_v6, %v24929_v49 }
 0x5e6   :  { %11401 = vperm.xlu1 %16996, %v10892_v42   ;;  %v7306_v62 = vcombine.low %v24987_v33, %v24986_v18  ;;  %v11448_v30 = vsel %vm7785_vm3, %v24989_v51, %v11443_v26  ;;  %v14674_v23 = vcombine.low %v14666_v22, %v14673_v12  ;;  %v7657_v36 = vrot.slane %v7649_v61, %v20258_v41  ;;  %v24991_v42 = vld [vmem:[#allocation104_spill] sm:$0xff]  ;;  %v23041_v10 = vpop.permute.xlu1 %15000  ;;  %v24994_v12 = vld [vmem:[#allocation50_spill] sm:$0xff]  ;;  %v24995_v61 = vld [vmem:[#allocation143_spill] sm:$0xff] }
 0x5e7   :  { %v7321_v17 = vrot.slane %v7307_v9, %v20258_v41  ;;  %v15087_v2 = vrot.slane %v24991_v42, %v22990_v21  ;;  %v11332_v26 = vrot.slane %v11318_v19, %v20258_v41  ;;  %v7801_v55 = vadd.s32 4294967248, %v24919_v50  ;;  %v24993_v18 = vld [vmem:[#allocation32_spill] sm:$0xff]  ;;  %v24996_v9 = vld [vmem:[#allocation71_spill] sm:$0xff] }
 0x5e8   :  { %v10975_v33 = vcombine.low %v24993_v18, %v24992_v7  ;;  %v7665_v34 = vcombine.low %v7657_v36, %v7664_v16  ;;  %v7314_v6 = vrot.slane %v7306_v62, %v20258_v41  ;;  %v14904_v22 = vcombine.low %v24996_v9, %v22771_v1  ;;  %v24997_v19 = vld [vmem:[#allocation151_spill] sm:$0xff]  ;;  %v23053_v7 = vpop.permute.xlu0 %11380 }
 0x5e9   :  { %15054 = vperm.xlu0 %16997, %v14821_v39   ;;  %v10974_v39 = vcombine.low %v24995_v61, %v24994_v12  ;;  %v7793_v28 = vsel %vm7792_vm4, %v7791_v8, %v7786_v54  ;;  %v11453_v38 = vsel %vm7792_vm4, %v11452_v14, %v11448_v30  ;;  %v11325_v42 = vrot.slane %v11317_v15, %v20258_v41  ;;  %v24999_v54 = vld [vmem:[#allocation158_spill] sm:$0xff]  ;;  %v25000_v8 = vld [vmem:[#allocation55_spill] sm:$0xff]  ;;  %v25004_v61 = vld [vmem:[#allocation84_spill] sm:$0xff] }
 0x5ea   :  { %15045 = vperm.xlu1 %16996, %v14674_v23   ;;  %v24998_v16 = vrot.slane %v22589_v63, %v22894_v56  ;;  %v7322_v23 = vcombine.low %v7314_v6, %v7321_v17  ;;  %v10989_v1 = vrot.slane %v10975_v33, %v20258_v41  ;;  %v7405_v36 = vcombine.low %v25000_v8, %v24999_v54  ;;  %v25001_v18 = vld [vmem:[#allocation95_spill] sm:$0xff] }
 0x5eb   :  { %v11333_v15 = vcombine.low %v11325_v42, %v11332_v26  ;;  %v23067_v12 = vsub.s32 %v7801_v55, %v24929_v49  ;;  %v10982_v63 = vrot.slane %v10974_v39, %v20258_v41  ;;  %v25002_v17 = vld [vmem:[#allocation51_spill] sm:$0xff]  ;;  %v14953_v6 = vcombine.low %v22852_v24, %v22866_v13  ;;  %v25006_v42 = vld [vmem:[#allocation48_spill] sm:$0xff]  ;;  %v25009_v13 = vld [vmem:[#allocation165_spill] sm:$0xff] }
 0x5ec   :  { %v15083_v62 = vsel %vm7785_vm3, %v24998_v16, %v22967_v44  ;;  %v14918_v44 = vrot.slane %v14904_v22, %v20258_v41  ;;  %v7836_v55 = vadd.s32 4294967208, %v24919_v50  ;;  %v25007_v16 = vld [vmem:[#allocation77_spill] sm:$0xff]  ;;  %v23084_v22 = vpop.permute.xlu1 %15009  ;;  %v7419_v54 = vrot.slane %v7405_v36, %v20258_v41  ;;  %v25010_v8 = vld [vmem:[#allocation163_spill] sm:$0xff] }
 0x5ed   :  { %7760 = vperm.xlu0 %16997, %v7665_v34   ;;  %v15088_v14 = vsel %vm7792_vm4, %v15087_v2, %v15083_v62  ;;  %v25003_v34 = vld [vmem:[#allocation59_spill] sm:$0xff]  ;;  %v25005_v2 = vld [vmem:[#allocation81_spill] sm:$0xff]  ;;  %v25008_v39 = vcombine.low %v25006_v42, %v25007_v16  ;;  %v14952_v24 = vcombine.low %v22835_v40, %v22845_v48  ;;  %v7815_v16 = vadd.s32 4294967232, %v24919_v50  ;;  %v25012_v48 = vld [vmem:[#allocation70_spill] sm:$0xff] }
 0x5ee   :  { %7739 = vperm.xlu1 %16996, %v7322_v23   ;;  %v7404_v33 = vcombine.low %v25003_v34, %v25002_v17  ;;  %v7812_v26 = vrot.slane %v25005_v2, %v22981_v58  ;;  %v10990_v23 = vcombine.low %v10982_v63, %v10989_v1  ;;  %v11073_v17 = vcombine.low %v25010_v8, %v25009_v13  ;;  %v25011_v2 = vld [vmem:[#allocation80_spill] sm:$0xff]  ;;  %v25014_v8 = vld [vmem:[#allocation89_spill] sm:$0xff] }
 0x5ef   :  { %v14911_v62 = vrot.slane %v25008_v39, %v20258_v41  ;;  %v7805_v42 = vrot.slane %v25011_v2, %v23067_v12  ;;  %v23096_v39 = vpop.permute.xlu0 %7718  ;;  %v14967_v40 = vrot.slane %v14953_v6, %v20258_v41  ;;  %v23103_v13 = vsub.s32 %v7836_v55, %v24929_v49  ;;  %v25016_v6 = vld [vmem:[#allocation79_spill] sm:$0xff] }
 0x5f0   :  { %v7412_v36 = vrot.slane %v7404_v33, %v20258_v41  ;;  %v11462_v2 = vrot.slane %v25014_v8, %v23067_v12  ;;  %v7850_v34 = vadd.s32 4294967192, %v24919_v50  ;;  %v11087_v33 = vrot.slane %v11073_v17, %v20258_v41  ;;  %v23125_v17 = vpop.permute.xlu1 %7703 }
 0x5f1   :  { %11428 = vperm.xlu0 %16997, %v11333_v15   ;;  %v14919_v1 = vcombine.low %v14911_v62, %v14918_v44  ;;  %v25013_v15 = vld [vmem:[#allocation67_spill] sm:$0xff]  ;;  %v14960_v44 = vrot.slane %v14952_v24, %v20258_v41  ;;  %v25015_v62 = vld [vmem:[#allocation60_spill] sm:$0xff]  ;;  %v23123_v24 = vsub.s32 %v7815_v16, %v24929_v49  ;;  %v25022_v16 = vld [vmem:[#allocation58_spill] sm:$0xff] }
 0x5f2   :  { %11407 = vperm.xlu1 %16996, %v10990_v23   ;;  %v11072_v63 = vcombine.low %v25013_v15, %v25012_v48  ;;  %v7420_v9 = vcombine.low %v7412_v36, %v7419_v54  ;;  %v7503_v23 = vcombine.low %v25016_v6, %v25015_v62  ;;  %v25017_v48 = vrot.slane %v24974_v3, %v22943_v0  ;;  %v25021_v6 = vld [vmem:[#allocation65_spill] sm:$0xff] }
 0x5f3   :  { %v25018_v15 = vrot.slane %v24971_v57, %v22943_v0  ;;  %v14968_v62 = vcombine.low %v14960_v44, %v14967_v40  ;;  %v7840_v57 = vrot.slane %v22857_v20, %v23103_v13  ;;  %v23139_v51 = vpop.permute.xlu0 %11386  ;;  %v25025_v44 = vld [vmem:[#allocation72_spill] sm:$0xff] }
 0x5f4   :  { %v7800_v55 = vsel %vm7799_vm5, %v25017_v48, %v7793_v28  ;;  %v11080_v3 = vrot.slane %v11072_v63, %v20258_v41  ;;  %v25020_v28 = vld [vmem:[#allocation54_spill] sm:$0xff]  ;;  %v7517_v63 = vrot.slane %v7503_v23, %v20258_v41  ;;  %v11487_v23 = vrot.slane %v22897_v53, %v23103_v13 }
 0x5f5   :  { %15060 = vperm.xlu0 %16997, %v14919_v1   ;;  %v11458_v8 = vsel %vm7799_vm5, %v25018_v15, %v11453_v38  ;;  %v25019_v1 = vld [vmem:[#allocation93_spill] sm:$0xff]  ;;  %v7807_v36 = vsel %vm7806_vm6, %v7805_v42, %v7800_v55  ;;  %v7502_v48 = vcombine.low %v25021_v6, %v25020_v28  ;;  %v23135_v15 = vsub.s32 %v7850_v34, %v24929_v49  ;;  %v25026_v55 = vld [vmem:[#allocation140_spill] sm:$0xff]  ;;  %v25027_v28 = vld [vmem:[#allocation78_spill] sm:$0xff] }
 0x5f6   :  { %v15097_v54 = vrot.slane %v25019_v1, %v23067_v12  ;;  %7745 = vperm.xlu1 %16996, %v7420_v9   ;;  %v11463_v38 = vsel %vm7806_vm6, %v11462_v2, %v11458_v8  ;;  %v25023_v1 = vld [vmem:[#allocation170_spill] sm:$0xff]  ;;  %v25024_v9 = vrot.slane %v22649_v60, %v22943_v0  ;;  %v11088_v40 = vcombine.low %v11080_v3, %v11087_v33  ;;  %v25028_v6 = vld [vmem:[#allocation85_spill] sm:$0xff] }
 0x5f7   :  { %v11171_v30 = vcombine.low %v25023_v1, %v25022_v16  ;;  %v7819_v34 = vrot.slane %v22810_v46, %v23123_v24  ;;  %v11170_v8 = vcombine.low %v25026_v55, %v25025_v44  ;;  %v7510_v60 = vrot.slane %v7502_v48, %v20258_v41  ;;  %v11372_v16 = vpop.permute.xlu1 %11371 }
 0x5f8   :  { %v15093_v42 = vsel %vm7799_vm5, %v25024_v9, %v15088_v14  ;;  %v11472_v14 = vrot.slane %v22842_v27, %v23123_v24  ;;  %v15107_v33 = vrot.slane %v22883_v43, %v23123_v24  ;;  %v7854_v46 = vrot.slane %v22933_v35, %v23135_v15 }
 0x5f9   :  { %15063 = vperm.xlu0 %16997, %v14968_v62   ;;  %v15098_v2 = vsel %vm7806_vm6, %v15097_v54, %v15093_v42  ;;  %v7601_v62 = vcombine.low %v25028_v6, %v25027_v28  ;;  %v7814_v54 = vsel %vm7813_vm7, %v7812_v26, %v7807_v36  ;;  %v11185_v3 = vrot.slane %v11171_v30, %v20258_v41  ;;  %v25030_v36 = vld [vmem:[#allocation150_spill] sm:$0xff]  ;;  %v25031_v42 = vld [vmem:[#allocation149_spill] sm:$0xff]  ;;  %v25035_v28 = vld [vmem:[#allocation171_spill] sm:$0xff] }
 0x5fa   :  { %11413 = vperm.xlu1 %16996, %v11088_v40   ;;  %v7518_v1 = vcombine.low %v7510_v60, %v7517_v63  ;;  %v11468_v27 = vsel %vm7813_vm7, %v11467_v47, %v11463_v38  ;;  %v25029_v43 = vrot.slane %v24997_v19, %v22981_v58  ;;  %v7829_v53 = vadd.s32 4294967216, %v24919_v50  ;;  %v23178_v63 = vpop.permute.xlu0 %15018  ;;  %v25036_v6 = vld [vmem:[#allocation73_spill] sm:$0xff] }
 0x5fb   :  { %v7821_v9 = vsel %vm7820_vm8, %v7819_v34, %v7814_v54  ;;  %v11178_v26 = vrot.slane %v11170_v8, %v20258_v41  ;;  %v7615_v30 = vrot.slane %v7601_v62, %v20258_v41  ;;  %v11269_v40 = vcombine.low %v25031_v42, %v25030_v36  ;;  %v25033_v34 = vld [vmem:[#allocation172_spill] sm:$0xff] }
 0x5fc   :  { %v15103_v48 = vsel %vm7813_vm7, %v25029_v43, %v15098_v2  ;;  %v11473_v47 = vsel %vm7820_vm8, %v11472_v14, %v11468_v27  ;;  %v23183_v19 = vsub.s32 %v7829_v53, %v24929_v49  ;;  %v25032_v2 = vld [vmem:[#allocation101_spill] sm:$0xff]  ;;  %v15122_v8 = vrot.slane %v22922_v11, %v23103_v13 }
 0x5fd   :  { %v15108_v37 = vsel %vm7820_vm8, %v15107_v33, %v15103_v48  ;;  %v11186_v38 = vcombine.low %v11178_v26, %v11185_v3  ;;  %v25034_v44 = vcombine.low %v25032_v2, %v25033_v34  ;;  %v25037_v62 = vcombine.low %v25035_v28, %v25036_v6  ;;  %v15007_v48 = vpop.permute.xlu1 %15006 }
 0x5fe   :  { %7751 = vperm.xlu1 %16996, %v7518_v1   ;;  %v7833_v14 = vrot.slane %v22958_v59, %v23183_v19  ;;  %v11482_v33 = vrot.slane %v22999_v45, %v23183_v19  ;;  %v15117_v54 = vrot.slane %v23041_v10, %v23183_v19  ;;  %v11283_v1 = vrot.slane %v11269_v40, %v20258_v41  ;;  %v23220_v40 = vpop.permute.xlu0 %7724 }
 0x5ff   :  { %v7608_v55 = vrot.slane %v25034_v44, %v20258_v41  ;;  %v11276_v60 = vrot.slane %v25037_v62, %v20258_v41  ;;  %v25038_v11 = vrot.slane %v25001_v18, %v23031_v52  ;;  %v7843_v43 = vadd.s32 4294967200, %v24919_v50  ;;  %v25041_v18 = vld [vmem:[#allocation105_spill] sm:$0xff] }
 0x600   :  { %v25039_v45 = vrot.slane %v25004_v61, %v23031_v52  ;;  %v25040_v10 = vrot.slane %v22820_v32, %v23031_v52  ;;  %v25043_v61 = vld [vmem:[#allocation107_spill] sm:$0xff]  ;;  %v15132_v32 = vrot.slane %v23084_v22, %v23135_v15 }
 0x601   :  { %v7616_v3 = vcombine.low %v7608_v55, %v7615_v30  ;;  %v7828_v27 = vsel %vm7827_vm9, %v25038_v11, %v7821_v9  ;;  %v25042_v30 = vld [vmem:[#allocation106_spill] sm:$0xff] }
 0x602   :  { %11419 = vperm.xlu1 %16996, %v11186_v38   ;;  %v7835_v59 = vsel %vm7834_vm10, %v7833_v14, %v7828_v27  ;;  %v11478_v53 = vsel %vm7827_vm9, %v25039_v45, %v11473_v47  ;;  %v15113_v26 = vsel %vm7827_vm9, %v25040_v10, %v15108_v37  ;;  %v14168_v9 = vcombine.low %v25042_v30, %v25041_v18  ;;  %v25044_v47 = vld [vmem:[#allocation108_spill] sm:$0xff] }
 0x603   :  { %v11483_v36 = vsel %vm7834_vm10, %v11482_v33, %v11478_v53  ;;  %v15118_v42 = vsel %vm7834_vm10, %v15117_v54, %v15113_v26  ;;  %v23223_v38 = vsub.s32 %v7843_v43, %v24929_v49  ;;  %v14169_v2 = vcombine.low %v25044_v47, %v25043_v61 }
 0x604   :  { %v7857_v37 = vadd.s32 4294967184, %v24919_v50  ;;  %v7842_v34 = vsel %vm7841_vm11, %v7840_v57, %v7835_v59  ;;  %v11488_v6 = vsel %vm7841_vm11, %v11487_v23, %v11483_v36  ;;  %v15123_v22 = vsel %vm7841_vm11, %v15122_v8, %v15118_v42  ;;  %v11393_v8 = vpop.permute.xlu0 %11392 }
 0x605   :  { %v7847_v44 = vrot.slane %v23125_v17, %v23223_v38  ;;  %v11492_v55 = vrot.slane %v11372_v16, %v23223_v38  ;;  %v15127_v28 = vrot.slane %v15007_v48, %v23223_v38  ;;  %v11284_v16 = vcombine.low %v11276_v60, %v11283_v1 }
 0x606   :  { %7757 = vperm.xlu1 %16996, %v7616_v3   ;;  %v23241_v62 = vsub.s32 %v7857_v37, %v24929_v49  ;;  %v7710_v17 = vpop.permute.xlu1 %7709  ;;  %v14183_v33 = vrot.slane %v14169_v2, %v20258_v41  ;;  %v14176_v11 = vrot.slane %v14168_v9, %v20258_v41  ;;  %v11497_v1 = vrot.slane %v22972_v31, %v23135_v15 }
 0x607   :  { %v7849_v20 = vsel %vm7848_vm12, %v7847_v44, %v7842_v34  ;;  %v11493_v57 = vsel %vm7848_vm12, %v11492_v55, %v11488_v6  ;;  %v15128_v14 = vsel %vm7848_vm12, %v15127_v28, %v15123_v22  ;;  %v15147_v36 = vrot.slane %v23178_v63, %v22830_v25 }
 0x608   :  { %v7861_v54 = vrot.slane %v7710_v17, %v23241_v62  ;;  %v15133_v23 = vsel %vm7855_vm13, %v15132_v32, %v15128_v14  ;;  %v7856_v3 = vsel %vm7855_vm13, %v7854_v46, %v7849_v20  ;;  %v14184_v43 = vcombine.low %v14176_v11, %v14183_v33  ;;  %v15025_v60 = vpop.permute.xlu0 %15024 }
 0x609   :  { %v11498_v45 = vsel %vm7855_vm13, %v11497_v1, %v11493_v57  ;;  %v15156_v61 = vrot.slane %v15025_v60, %v22906_v5  ;;  %v7878_v20 = vrot.slane %v23096_v39, %v22805_v29  ;;  %v7888_v17 = vrot.slane %v23220_v40, %v22894_v56 }
 0x60a   :  { %11425 = vperm.xlu1 %16996, %v11284_v16   ;;  %v23255_v27 = vsel %vm7862_vm14, %v7861_v54, %v7856_v3  ;;  %v11516_v3 = vrot.slane %v23139_v51, %v22805_v29  ;;  %v11526_v60 = vrot.slane %v11393_v8, %v22894_v56 }
 0x60c   :  { %v23261_v35 = vpop.permute.xlu0 %7730 }
 0x60e   :  { %15015 = vperm.xlu1 %16996, %v14184_v43  }
 0x610   :  { %v23266_v53 = vpop.permute.xlu0 %11398 }
 0x611   :  { %v11378_v48 = vpop.permute.xlu1 %11377 }
 0x612   :  { %v11502_v59 = vrot.slane %v11378_v48, %v23241_v62 }
 0x614   :  { %v23264_v46 = vsel %vm7862_vm14, %v11502_v59, %v11498_v45  ;;  %v23268_v10 = vpop.permute.xlu0 %15030 }
 0x619   :  { %v23274_v31 = vpop.permute.xlu0 %7736 }
 0x620   :  { %v15013_v26 = vpop.permute.xlu1 %15012 }
 0x621   :  { %v15137_v18 = vrot.slane %v15013_v26, %v23241_v62 }
 0x623   :  { %v23272_v30 = vsel %vm7862_vm14, %v15137_v18, %v15133_v23 }
 0x624   :  { %v23282_v32 = vpop.permute.xlu0 %11404 }
 0x628   :  { %v15022_v9 = vpop.permute.xlu1 %15021 }
 0x629   :  { %v15151_v42 = vrot.slane %v15022_v9, %v22805_v29 }
 0x62b   :  { %v15152_v47 = vsel %vm7771_vm1, %v15151_v42, %v15147_v36 }
 0x62c   :  { %v15157_v2 = vsel %vm7778_vm2, %v15156_v61, %v15152_v47 }
 0x630   :  { %v23284_v37 = vpop.permute.xlu0 %15036 }
 0x636   :  { %v7716_v34 = vpop.permute.xlu1 %7715 }
 0x637   :  { %v7874_v63 = vrot.slane %v7716_v34, %v22830_v25 }
 0x639   :  { %v23286_v44 = vpop.permute.xlu0 %7742  ;;  %v7879_v16 = vsel %vm7771_vm1, %v7878_v20, %v7874_v63 }
 0x63b   :  { %v11384_v55 = vpop.permute.xlu1 %11383 }
 0x63c   :  { %v11512_v33 = vrot.slane %v11384_v55, %v22830_v25 }
 0x63e   :  { %v11517_v40 = vsel %vm7771_vm1, %v11516_v3, %v11512_v33 }
 0x640   :  { %v23288_v28 = vpop.permute.xlu0 %11410 }
 0x641   :  { %v15028_v6 = vpop.permute.xlu1 %15027 }
 0x642   :  { %v15161_v20 = vrot.slane %v15028_v6, %v22894_v56 }
 0x644   :  { %v23291_v22 = vpop.permute.xlu0 %15042 }
 0x645   :  { %v7722_v57 = vpop.permute.xlu1 %7721 }
 0x646   :  { %v7883_v14 = vrot.slane %v7722_v57, %v22906_v5 }
 0x648   :  { %v23300_v54 = vpop.permute.xlu0 %7748  ;;  %v7884_v23 = vsel %vm7778_vm2, %v7883_v14, %v7879_v16  ;;  %v7898_v16 = vrot.slane %v23261_v35, %v22943_v0 }
 0x649   :  { %v11390_v11 = vpop.permute.xlu1 %11389  ;;  %v7889_v39 = vsel %vm7785_vm3, %v7888_v17, %v7884_v23  ;;  %v15162_v23 = vsel %vm7785_vm3, %v15161_v20, %v15157_v2  ;;  %v11536_v2 = vrot.slane %v23266_v53, %v22943_v0 }
 0x64a   :  { %v11521_v43 = vrot.slane %v11390_v11, %v22906_v5  ;;  %v15166_v11 = vrot.slane %v23268_v10, %v22990_v21 }
 0x64c   :  { %v23309_v1 = vpop.permute.xlu0 %11416  ;;  %v11522_v25 = vsel %vm7778_vm2, %v11521_v43, %v11517_v40  ;;  %v7908_v40 = vrot.slane %v23274_v31, %v22981_v58 }
 0x64d   :  { %v15034_v48 = vpop.permute.xlu1 %15033  ;;  %v11527_v59 = vsel %vm7785_vm3, %v11526_v60, %v11522_v25 }
 0x64e   :  { %v15171_v3 = vrot.slane %v15034_v48, %v22943_v0 }
 0x650   :  { %v23313_v45 = vpop.permute.xlu0 %15051 }
 0x651   :  { %v7728_v26 = vpop.permute.xlu1 %7727 }
 0x652   :  { %v7893_v34 = vrot.slane %v7728_v26, %v22990_v21 }
 0x654   :  { %v23315_v29 = vpop.permute.xlu0 %15048  ;;  %v7894_v57 = vsel %vm7792_vm4, %v7893_v34, %v7889_v39 }
 0x655   :  { %v11396_v51 = vpop.permute.xlu1 %11395  ;;  %v7899_v43 = vsel %vm7799_vm5, %v7898_v16, %v7894_v57  ;;  %v7864_v57 = vadd.s32 4294967176, %v24919_v50  ;;  %v7928_v50 = vrot.slane %v23300_v54, %v23103_v13 }
 0x656   :  { %v11531_v14 = vrot.slane %v11396_v51, %v22990_v21  ;;  %v15167_v21 = vsel %vm7792_vm4, %v15166_v11, %v15162_v23 }
 0x657   :  { %v15172_v25 = vsel %vm7799_vm5, %v15171_v3, %v15167_v21  ;;  %v7867_v23 = vsub.s32 %v7864_v57, %v24929_v49  ;;  %v15196_v3 = vrot.slane %v23315_v29, %v23183_v19  ;;  %v15201_v29 = vrot.slane %v23313_v45, %v23103_v13 }
 0x658   :  { %v23317_v9 = vpop.permute.xlu0 %7754  ;;  %v11532_v6 = vsel %vm7792_vm4, %v11531_v14, %v11527_v59  ;;  %v15176_v59 = vrot.slane %v23284_v37, %v23067_v12 }
 0x659   :  { %v15040_v18 = vpop.permute.xlu1 %15039  ;;  %v11537_v26 = vsel %vm7799_vm5, %v11536_v2, %v11532_v6  ;;  %v7938_v49 = vrot.slane %v23317_v9, %v23135_v15  ;;  %v7868_v2 = vrot.slane %v23014_v4, %v7867_v23 }
 0x65a   :  { %v15181_v48 = vrot.slane %v15040_v18, %v22981_v58  ;;  %v7918_v18 = vrot.slane %v23286_v44, %v23031_v52 }
 0x65c   :  { %v23319_v8 = vpop.permute.xlu0 %11422 }
 0x65d   :  { %v7734_v5 = vpop.permute.xlu1 %7733 }
 0x65e   :  { %v7903_v17 = vrot.slane %v7734_v5, %v23067_v12 }
 0x660   :  { %v23321_v61 = vpop.permute.xlu0 %15057  ;;  %v7904_v39 = vsel %vm7806_vm6, %v7903_v17, %v7899_v43 }
 0x661   :  { %v11402_v36 = vpop.permute.xlu1 %11401  ;;  %v7909_v51 = vsel %vm7813_vm7, %v7908_v40, %v7904_v39  ;;  %v11566_v39 = vrot.slane %v23309_v1, %v23103_v13  ;;  %v11576_v13 = vrot.slane %v23319_v8, %v23135_v15  ;;  %v15211_v8 = vrot.slane %v23321_v61, %v23135_v15 }
 0x662   :  { %v11541_v60 = vrot.slane %v11402_v36, %v23067_v12  ;;  %v11546_v36 = vrot.slane %v23282_v32, %v22981_v58  ;;  %v15177_v12 = vsel %vm7806_vm6, %v15176_v59, %v15172_v25 }
 0x663   :  { %v15182_v34 = vsel %vm7813_vm7, %v15181_v48, %v15177_v12  ;;  %v7870_v48 = vsel %vm7869_vm15, %v7868_v2, %v23255_v27 }
 0x664   :  { %v23324_v55 = vpop.permute.xlu0 %15054  ;;  %v11542_v5 = vsel %vm7806_vm6, %v11541_v60, %v11537_v26  ;;  %v11507_v26 = vrot.slane %v23053_v7, %v7867_v23 }
 0x665   :  { %v15046_v42 = vpop.permute.xlu1 %15045  ;;  %v11547_v14 = vsel %vm7813_vm7, %v11546_v36, %v11542_v5  ;;  %v15206_v4 = vrot.slane %v23324_v55, %v23223_v38 }
 0x666   :  { %v15191_v20 = vrot.slane %v15046_v42, %v23031_v52  ;;  %v11556_v42 = vrot.slane %v23288_v28, %v23031_v52  ;;  %v11508_v7 = vsel %vm7869_vm15, %v11507_v26, %v23264_v46 }
 0x668   :  { %v23337_v56 = vpop.permute.xlu0 %7760 }
 0x669   :  { %v7740_v47 = vpop.permute.xlu1 %7739  ;;  %v7948_v40 = vrot.slane %v23337_v56, %v7867_v23 }
 0x66a   :  { %v7913_v35 = vrot.slane %v7740_v47, %v23123_v24 }
 0x66c   :  { %v7914_v0 = vsel %vm7820_vm8, %v7913_v35, %v7909_v51  ;;  %v11429_v37 = vpop.permute.xlu0 %11428 }
 0x66d   :  { %v11408_v63 = vpop.permute.xlu1 %11407  ;;  %v7919_v58 = vsel %vm7827_vm9, %v7918_v18, %v7914_v0  ;;  %v11586_v0 = vrot.slane %v11429_v37, %v7867_v23  ;;  %v25045_v37 = vlaneseq }
 0x66e   :  { %v11551_v53 = vrot.slane %v11408_v63, %v23123_v24  ;;  %v15186_v63 = vrot.slane %v23291_v22, %v23123_v24 }
 0x66f   :  { %vm23423_vm0 = vcmp.lt.s32.totalorder %v25045_v37, 256 }
 0x670   :  { %v11552_v32 = vsel %vm7820_vm8, %v11551_v53, %v11547_v14  ;;  %v15187_v24 = vsel %vm7820_vm8, %v15186_v63, %v15182_v34  ;;  %v15061_v11 = vpop.permute.xlu0 %15060 }
 0x671   :  { %v7746_v33 = vpop.permute.xlu1 %7745  ;;  %v11557_v43 = vsel %vm7827_vm9, %v11556_v42, %v11552_v32  ;;  %v15216_v27 = vrot.slane %v15061_v11, %v23241_v62 }
 0x672   :  { %v7923_v31 = vrot.slane %v7746_v33, %v23183_v19  ;;  %v15192_v33 = vsel %vm7827_vm9, %v15191_v20, %v15187_v24 }
 0x673   :  { %v15197_v60 = vsel %vm7834_vm10, %v15196_v3, %v15192_v33 }
 0x674   :  { %v7924_v44 = vsel %vm7834_vm10, %v7923_v31, %v7919_v58  ;;  %v15064_v45 = vpop.permute.xlu0 %15063 }
 0x675   :  { %v11414_v10 = vpop.permute.xlu1 %11413  ;;  %v7929_v6 = vsel %vm7841_vm11, %v7928_v50, %v7924_v44 }
 0x676   :  { %v11561_v17 = vrot.slane %v11414_v10, %v23183_v19  ;;  %v15202_v10 = vsel %vm7841_vm11, %v15201_v29, %v15197_v60 }
 0x677   :  { %v15207_v53 = vsel %vm7848_vm12, %v15206_v4, %v15202_v10 }
 0x678   :  { %v11562_v52 = vsel %vm7834_vm10, %v11561_v17, %v11557_v43 }
 0x679   :  { %v7752_v47 = vpop.permute.xlu1 %7751  ;;  %v11567_v21 = vsel %vm7841_vm11, %v11566_v39, %v11562_v52 }
 0x67a   :  { %v7933_v16 = vrot.slane %v7752_v47, %v23223_v38 }
 0x67c   :  { %v7934_v28 = vsel %vm7848_vm12, %v7933_v16, %v7929_v6 }
 0x67d   :  { %v11420_v22 = vpop.permute.xlu1 %11419  ;;  %v7939_v1 = vsel %vm7855_vm13, %v7938_v49, %v7934_v28 }
 0x67e   :  { %v11571_v54 = vrot.slane %v11420_v22, %v23223_v38  ;;  %v15221_v38 = vrot.slane %v15064_v45, %v7867_v23 }
 0x680   :  { %v11572_v9 = vsel %vm7848_vm12, %v11571_v54, %v11567_v21 }
 0x681   :  { %v7758_v19 = vpop.permute.xlu1 %7757  ;;  %v11577_v31 = vsel %vm7855_vm13, %v11576_v13, %v11572_v9 }
 0x682   :  { %v7943_v35 = vrot.slane %v7758_v19, %v23241_v62 }
 0x684   :  { %v7944_v25 = vsel %vm7862_vm14, %v7943_v35, %v7939_v1 }
 0x685   :  { %v7949_v56 = vsel %vm7869_vm15, %v7948_v40, %v7944_v25  ;;  %v11426_v59 = vpop.permute.xlu1 %11425 }
 0x686   :  { %v7950_v51 = vcombine.low %v7870_v48, %v7949_v56  ;;  %v11581_v5 = vrot.slane %v11426_v59, %v23241_v62  ;;  %v15212_v62 = vsel %vm7855_vm13, %v15211_v8, %v15207_v53 }
 0x687   :  { %v15217_v20 = vsel %vm7862_vm14, %v15216_v27, %v15212_v62 }
 0x688   :  { %v11582_v55 = vsel %vm7862_vm14, %v11581_v5, %v11577_v31  ;;  %v7957_v36 = vrot.slane %v7950_v51, %v20258_v41  ;;  %v15222_v57 = vsel %vm7869_vm15, %v15221_v38, %v15217_v20 }
 0x689   :  { %v11587_v18 = vsel %vm7869_vm15, %v11586_v0, %v11582_v55  ;;  %v15016_v12 = vpop.permute.xlu1 %15015 }
 0x68a   :  { %v11588_v34 = vcombine.low %v11508_v7, %v11587_v18  ;;  %v15142_v15 = vrot.slane %v15016_v12, %v7867_v23  ;;  %v7964_v61 = vrot.slane %v7957_v36, %v20258_v41 }
 0x68c   :  { %v15143_v46 = vsel %vm7869_vm15, %v15142_v15, %v23272_v30  ;;  %7970 = vst.msk [vmem:[#allocation9] ss:$4 sm:$0x3] %vm23423_vm0, %v7964_v61  ;;  %v11595_v63 = vrot.slane %v11588_v34, %v20258_v41 }
 0x68d   :  { %v15223_v14 = vcombine.low %v15143_v46, %v15222_v57 }
 0x68e   :  { %v11602_v58 = vrot.slane %v11595_v63, %v20258_v41 }
 0x68f   :  { %v15230_v32 = vrot.slane %v15223_v14, %v20258_v41 }
 0x690   :  { %11605 = vst.msk [vmem:[#allocation9 + $0x1] ss:$4 sm:$0x3] %vm23423_vm0, %v11602_v58 }
 0x691   :  { %v15237_v44 = vrot.slane %v15230_v32, %v20258_v41 }
 0x693   :  { %15240 = vst.msk [vmem:[#allocation9 + $0x2] ss:$4 sm:$0x3] %vm23423_vm0, %v15237_v44 }
 0x694   :  { %17125 = shalt.err (!%p17122_p5)
}
 0x695   :  { %15250 = dma.vmem_to_hbm [thread:$0]  %s15248_s28, 128, %s23452_s6, [#allocation4]  }
 0x696   :  { %17140 = dma.done.wait [#allocation4], 128  }
 0x697   :  { %17141 = vsyncadd [#allocation4], 4294967168 }
 0x698   :  { %15254 = vsyncpa [#allocation3], 1 }
 0x699   :  { %15255 = vsyncpa [#allocation7], 1 }
 0x69a   :  { %15256 = vsyncpa [#allocation4], 1 }
 0x69b   :  { %15257 = vsyncpa [#allocation5], 1 }

</bundles_post_ra>
